<compile_context>
chip_gen: v5e
topology: v5e:2x2
jax: 0.10.0
libtpu: 0.0.40
codegen_flags: <defaults>
</compile_context>

<pallas_src>
import functools

import jax
import jax.numpy as jnp
from jax import lax
from jax.experimental import pallas as pl
from jax.experimental.pallas import tpu as pltpu


# ---------------------------------------------------------------------------
# Fused kernel: one grid step == Bt batch elements
# ---------------------------------------------------------------------------
def _dense_conv_light_kernel(imp_ref, rsp_ref, wti_ref, wtr_ref, out_ref,
                             ims_ref, rss_ref, *, Bt, Hi, Wi, Hr, Wr, Co, prec):
    f32 = jnp.float32

    # ---- stage 1: both 'same' convs, each a single MXU matmul ---------------
    # ims[b*SEG + (Hr-1) + h, j*Wi*Co + w*Co + c] = im[b, h, w-j, c]   (0 for w<j / h<0)
    # rows b*SEG .. b*SEG+Hr-2 are exact zeros (causal top halo, from all-zero LHS rows).
    ims_ref[...] = jnp.dot(imp_ref[...], wti_ref[...],
                           preferred_element_type=f32, precision=prec)
    # rss[b*Hr + i, j*Wi*Co + w*Co + c] = rs[b, c, i, j]   (tap-tiled along w, bias folded)
    rss_ref[...] = jnp.dot(rsp_ref[...], wtr_ref[...],
                           preferred_element_type=f32, precision=prec)

    # ---- stage 2: depthwise causal taps: pure lane-aligned VPU FMAs ----------
    SEG = Hi + Hr - 1
    NW = Wi * Co
    for b in range(Bt):                                   # static unroll, Bt small
        base = b * SEG
        scales = rss_ref[pl.ds(b * Hr, Hr), :]            # [Hr, Wr*NW]
        accs = []                                         # one accumulator per i
        for i in range(Hr):
            # rows base+(Hr-1-i) .. : includes the per-batch zero halo rows for h-i < 0
            win = ims_ref[pl.ds(base + (Hr - 1 - i), Hi), :]   # [Hi, Wr*NW]
            acc_i = None
            for j in range(Wr):
                sl = slice(j * NW, (j + 1) * NW)          # 128-lane-aligned slice
                term = win[:, sl] * scales[i:i + 1, sl]   # [Hi, NW] * [1, NW]
                acc_i = term if acc_i is None else acc_i + term
            accs.append(acc_i)
        total = accs[0]
        for a in accs[1:]:
            total = total + a
        # full-width unmasked store at an 8-aligned sublane offset
        out_ref[pl.ds(b * Hi, Hi), :] = total.astype(out_ref.dtype)


# ---------------------------------------------------------------------------
# Weight preprocessing (wrapper / XLA, weights only, cached by jit)
# ---------------------------------------------------------------------------
def _same_conv_weight_matrix(weight, width):
    """weight [Co, Cin, KH, KW] -> [KH*width*Cin, width*Co] implementing the width
    'same' conv as one matmul over lanes x[ky*width*Cin + wi*Cin + ci] -> out[w*Co + c].
    Out-of-range width taps become zero columns (zero padding folded into weights)."""
    Co, Cin, KH, KW = weight.shape
    pw = (KW - 1) // 2
    kx = jnp.arange(width)[:, None] - jnp.arange(width)[None, :] + pw   # [w_in, w_out]
    valid = (kx >= 0) & (kx < KW)
    kx_c = jnp.clip(kx, 0, KW - 1)
    w_t = jnp.transpose(weight, (2, 3, 1, 0))                           # [KH, KW, Cin, Co]
    w_g = jnp.take(w_t, kx_c, axis=1)                                   # [KH, w_in, w_out, Cin, Co]
    w_g = jnp.where(valid[None, :, :, None, None], w_g, 0.0)
    w_g = jnp.transpose(w_g, (0, 1, 3, 2, 4))                           # [KH, w_in, Cin, w_out, Co]
    return w_g.reshape(KH * width * Cin, width * Co)


def _impulse_rhs(w_imp, b_imp, Wi, Wr):
    """[KHi*Wi*Ci + 1, Wr*Wi*Co]: 'same' conv + bias row + causal left pad + the Wr
    lane-shifted tap views, all folded into one matrix."""
    Co = w_imp.shape[0]
    core = _same_conv_weight_matrix(w_imp, Wi)                          # [K0, Wi*Co]
    bias = jnp.tile(b_imp, Wi)[None, :]                                 # [1, Wi*Co]
    T = jnp.concatenate([core, bias], axis=0)                           # [K0+1, Wi*Co]
    T = jnp.concatenate([jnp.zeros((T.shape[0], (Wr - 1) * Co), T.dtype), T], axis=1)
    # fold the tap views: out[:, j*Wi*Co + q] = T[:, (Wr-1-j)*Co + q]
    cols = ((Wr - 1 - jnp.arange(Wr)) * Co)[:, None] + jnp.arange(Wi * Co)[None, :]
    return T[:, cols.reshape(-1)]                                       # [K0+1, Wr*Wi*Co]


def _response_rhs(w_rsp, b_rsp, Wi, Wr):
    """[KHr*Wr*Cr + 1, Wr*Wi*Co]: 'same' conv + bias, output lane-tiled so the per-tap
    per-channel scale is already broadcast across the Wi output-width lanes."""
    Co = w_rsp.shape[0]
    core = _same_conv_weight_matrix(w_rsp, Wr)                          # [K0, Wr*Co]
    bias = jnp.tile(b_rsp, Wr)[None, :]
    R = jnp.concatenate([core, bias], axis=0)                           # [K, Wr*Co]
    K = R.shape[0]
    R = jnp.broadcast_to(R.reshape(K, Wr, 1, Co), (K, Wr, Wi, Co))
    return R.reshape(K, Wr * Wi * Co)


def _build_lhs(x_cl, KH, halo_top):
    """x_cl [B, H, W*C] -> [B*(H+halo_top), KH*W*C + 1]: vertical ky-im2col of the
    'same'-padded rows, a constant-1 column (bias via MXU), and `halo_top` all-zero
    rows at the top of every batch segment (exact-zero causal halo, no bias leak).
    Fuses with the mandatory NCHW->row-flat transpose in the wrapper."""
    B, H, WC = x_cl.shape
    ph = (KH - 1) // 2
    xp = jnp.pad(x_cl, ((0, 0), (ph, ph), (0, 0)))
    rows = [xp[:, ky:ky + H, :] for ky in range(KH)]
    rows.append(jnp.ones((B, H, 1), x_cl.dtype))
    lhs = jnp.concatenate(rows, axis=-1)                                # [B, H, KH*WC+1]
    if halo_top:
        lhs = jnp.pad(lhs, ((0, 0), (halo_top, 0), (0, 0)))
    return lhs.reshape(B * (H + halo_top), KH * WC + 1)


def _pick_batch_block(B, row_sizes, target):
    """Largest divisor of B <= target whose row blocks satisfy the (8, .) tiling rule
    (or Bt == B, where block == full array is always legal)."""
    best = None
    for d in range(1, min(B, target) + 1):
        if B % d == 0 and (d == B or all((d * r) % 8 == 0 for r in row_sizes)):
            best = d
    return best if best is not None else B


# ---------------------------------------------------------------------------
# Wrapper: single fused pallas_call
# ---------------------------------------------------------------------------
@functools.partial(jax.jit, static_argnames=("batch_block", "fast_mxu"))
def dense_conv2d_light(response, impulse, w_imp, b_imp, w_rsp, b_rsp,
                       batch_block=8, fast_mxu=False):
    """response [B,Cr,Hr,Wr], impulse [B,Ci,Hi,Wi],
       w_imp [Co,Ci,KHi,KWi]+b_imp[Co], w_rsp [Co,Cr,KHr,KWr]+b_rsp[Co]
       -> [B, Co, Hi, Wi]   (== DenseConv2d_light.forward)"""
    B, Cr, Hr, Wr = response.shape
    _, Ci, Hi, Wi = impulse.shape
    Co, _, KHi, KWi = w_imp.shape
    _, _, KHr, KWr = w_rsp.shape
    assert w_imp.shape[1] == Ci and w_rsp.shape[1] == Cr and w_rsp.shape[0] == Co
    # TODO(synk): even kernel sizes / dilation != 1 need asymmetric 'same' padding.
    assert KHi % 2 == 1 and KWi % 2 == 1 and KHr % 2 == 1 and KWr % 2 == 1
    f32 = jnp.float32
    prec = lax.Precision.DEFAULT if fast_mxu else lax.Precision.HIGHEST

    SEG = Hi + Hr - 1                # per-batch row segment of the im slab (incl. causal halo)
    NW = Wi * Co                     # 128 lanes in the demo
    N3 = Wr * NW                     # im slab width with the Wr tap views folded in
    KI = KHi * Wi * Ci + 1
    KR = KHr * Wr * Cr + 1

    # channels-last row-flat activations x[b, h, w*C+c]; im2col/ones/halo fold into
    # the same layout fusion (the review's note on wrapper transposes applies to the
    # unavoidable NCHW <-> row-flat permutes, not to extra round trips).
    imp_cl = jnp.transpose(impulse.astype(f32), (0, 2, 3, 1)).reshape(B, Hi, Wi * Ci)
    rsp_cl = jnp.transpose(response.astype(f32), (0, 2, 3, 1)).reshape(B, Hr, Wr * Cr)
    imp_lhs = _build_lhs(imp_cl, KHi, Hr - 1)            # [B*SEG, KI]
    rsp_lhs = _build_lhs(rsp_cl, KHr, 0)                 # [B*Hr,  KR]

    wti = _impulse_rhs(w_imp.astype(f32), b_imp.astype(f32), Wi, Wr)   # [KI, N3]
    wtr = _response_rhs(w_rsp.astype(f32), b_rsp.astype(f32), Wi, Wr)  # [KR, N3]

    Bt = _pick_batch_block(B, (SEG, Hr, Hi), batch_block)
    steps = B // Bt

    kernel = functools.partial(_dense_conv_light_kernel,
                               Bt=Bt, Hi=Hi, Wi=Wi, Hr=Hr, Wr=Wr, Co=Co, prec=prec)

    out_flat = pl.pallas_call(
        kernel,
        out_shape=jax.ShapeDtypeStruct((B * Hi, NW), f32),     # lane-dense output slab
        grid=(steps,),
        in_specs=[
            pl.BlockSpec((Bt * SEG, KI), lambda g: (g, 0)),    # impulse ky-im2col LHS
            pl.BlockSpec((Bt * Hr, KR), lambda g: (g, 0)),     # response ky-im2col LHS
            pl.BlockSpec((KI, N3), lambda g: (0, 0)),          # impulse RHS (constant)
            pl.BlockSpec((KR, N3), lambda g: (0, 0)),          # response RHS (constant)
        ],
        out_specs=pl.BlockSpec((Bt * Hi, NW), lambda g: (g, 0)),
        scratch_shapes=[
            pltpu.VMEM((Bt * SEG, N3), f32),                   # im slab (tap views folded)
            pltpu.VMEM((Bt * Hr, N3), f32),                    # rs slab (tap-tiled scales)
        ],
        compiler_params=pltpu.CompilerParams(dimension_semantics=("parallel",)),
    )(imp_lhs, rsp_lhs, wti, wtr)

    # NOTE: channels-last pipelines should consume out_flat ([B*Hi, Wi*Co]) directly;
    # this NCHW permute exists only for API parity with the PyTorch module.
    return jnp.transpose(out_flat.reshape(B, Hi, Wi, Co), (0, 3, 1, 2))


# ---------------------------------------------------------------------------
# Pure-JAX reference (same math as the PyTorch module)
# ---------------------------------------------------------------------------
def reference_forward(response, impulse, w_imp, b_imp, w_rsp, b_rsp):
    dn = ("NCHW", "OIHW", "NCHW")
    im = lax.conv_general_dilated(impulse, w_imp, (1, 1), "SAME", dimension_numbers=dn,
                                  precision=lax.Precision.HIGHEST) + b_imp[None, :, None, None]
    rs = lax.conv_general_dilated(response, w_rsp, (1, 1), "SAME", dimension_numbers=dn,
                                  precision=lax.Precision.HIGHEST) + b_rsp[None, :, None, None]
    B, Co, Hr, Wr = rs.shape
    _, _, Hi, Wi = im.shape
    # sparseConv2d: per-(batch,channel) causal transposed conv, cropped to Hi x Wi
    im_pad = jnp.pad(im, ((0, 0), (0, 0), (Hr - 1, 0), (Wr - 1, 0)))
    out = jnp.zeros((B, Co, Hi, Wi), jnp.float32)
    for i in range(Hr):
        for j in range(Wr):
            win = im_pad[:, :, Hr - 1 - i:Hr - 1 - i + Hi, Wr - 1 - j:Wr - 1 - j + Wi]
            out = out + win * rs[:, :, i:i + 1, j:j + 1]
    return out


if __name__ == "__main__":
    # DenseConv2d_light(response_channels=3, impulse_channels=4, out_channels=8, 3x3 kernels)
    # B=16 so the batch-blocked kernel runs 2 grid steps of Bt=8 (M=144 per MXU matmul).
    B, Cr, Hr, Wr = 16, 3, 3, 3
    Ci, Hi, Wi = 4, 16, 16
    Co, KHi, KWi, KHr, KWr = 8, 3, 3, 3, 3

    key = jax.random.PRNGKey(0)
    ks = jax.random.split(key, 6)
    response = jax.random.normal(ks[0], (B, Cr, Hr, Wr), jnp.float32)
    impulse = jax.random.normal(ks[1], (B, Ci, Hi, Wi), jnp.float32)
    # synthetic nn.Conv2d parameters
    w_imp = jax.random.normal(ks[2], (Co, Ci, KHi, KWi), jnp.float32) * 0.1
    b_imp = jax.random.normal(ks[3], (Co,), jnp.float32) * 0.1
    w_rsp = jax.random.normal(ks[4], (Co, Cr, KHr, KWr), jnp.float32) * 0.1
    b_rsp = jax.random.normal(ks[5], (Co,), jnp.float32) * 0.1

    out = dense_conv2d_light(response, impulse, w_imp, b_imp, w_rsp, b_rsp)
    out = jax.block_until_ready(out)

    ref = reference_forward(response, impulse, w_imp, b_imp, w_rsp, b_rsp)
    assert out.shape == (B, Co, Hi, Wi), out.shape
    max_err = float(jnp.max(jnp.abs(out - ref)))
    assert jnp.allclose(out, ref, rtol=1e-3, atol=1e-3), max_err
    print("KERNEL_OK")
</pallas_src>

<mosaic_0001>
module attributes {stable_mosaic.version = 11 : i64} {
  func.func @_dense_conv_light_kernel(%arg0: i32, %arg1: memref<144x193xf32, #tpu.memory_space<vmem>>, %arg2: memref<24x28xf32, #tpu.memory_space<vmem>>, %arg3: memref<193x384xf32, #tpu.memory_space<vmem>>, %arg4: memref<28x384xf32, #tpu.memory_space<vmem>>, %arg5: memref<128x128xf32, #tpu.memory_space<vmem>>, %arg6: memref<144x384xf32, #tpu.memory_space<vmem>>, %arg7: memref<24x384xf32, #tpu.memory_space<vmem>>) attributes {dimension_semantics = [#tpu.dimension_semantics<parallel>], iteration_bounds = array<i64: 2>, scalar_prefetch = 0 : i64, scratch_operands = 2 : i64, tpu.core_type = #tpu.core_type<tc>, window_params = [{transform_indices = @transform_0, window_bounds = array<i64: 144, 193>}, {transform_indices = @transform_1, window_bounds = array<i64: 24, 28>}, {pipeline_mode = #tpu.pipeline_mode<synchronous>, transform_indices = @transform_2, window_bounds = array<i64: 193, 384>}, {pipeline_mode = #tpu.pipeline_mode<synchronous>, transform_indices = @transform_3, window_bounds = array<i64: 28, 384>}, {transform_indices = @transform_4, window_bounds = array<i64: 128, 128>}]} {
    %c0 = arith.constant 0 : index
    %c0_0 = arith.constant 0 : index
    %0 = vector.load %arg1[%c0, %c0_0] : memref<144x193xf32, #tpu.memory_space<vmem>>, vector<144x193xf32>
    %c0_1 = arith.constant 0 : index
    %c0_2 = arith.constant 0 : index
    %1 = vector.load %arg3[%c0_1, %c0_2] : memref<193x384xf32, #tpu.memory_space<vmem>>, vector<193x384xf32>
    %cst = arith.constant dense<0.000000e+00> : vector<144x384xf32>
    %2 = tpu.matmul %0, %1, %cst {dimension_numbers = #tpu.dot_dimension_numbers<[1], [0], [0], [1], [0, 0, 1, 1], [], []>, precision = #tpu.contract_precision<fp32>} : vector<144x193xf32>, vector<193x384xf32>, vector<144x384xf32> -> vector<144x384xf32>
    %c0_3 = arith.constant 0 : index
    %c0_4 = arith.constant 0 : index
    %3 = vector.load %arg6[%c0_3, %c0_4] : memref<144x384xf32, #tpu.memory_space<vmem>>, vector<144x384xf32>
    tpu.vector_store %arg6[%c0_3, %c0_4], %2 {strides = array<i32>} : memref<144x384xf32, #tpu.memory_space<vmem>>, vector<144x384xf32>,
    %c0_5 = arith.constant 0 : index
    %c0_6 = arith.constant 0 : index
    %4 = vector.load %arg2[%c0_5, %c0_6] : memref<24x28xf32, #tpu.memory_space<vmem>>, vector<24x28xf32>
    %c0_7 = arith.constant 0 : index
    %c0_8 = arith.constant 0 : index
    %5 = vector.load %arg4[%c0_7, %c0_8] : memref<28x384xf32, #tpu.memory_space<vmem>>, vector<28x384xf32>
    %cst_9 = arith.constant dense<0.000000e+00> : vector<24x384xf32>
    %6 = tpu.matmul %4, %5, %cst_9 {dimension_numbers = #tpu.dot_dimension_numbers<[1], [0], [0], [1], [0, 0, 1, 1], [], []>, precision = #tpu.contract_precision<fp32>} : vector<24x28xf32>, vector<28x384xf32>, vector<24x384xf32> -> vector<24x384xf32>
    %c0_10 = arith.constant 0 : index
    %c0_11 = arith.constant 0 : index
    %7 = vector.load %arg7[%c0_10, %c0_11] : memref<24x384xf32, #tpu.memory_space<vmem>>, vector<24x384xf32>
    tpu.vector_store %arg7[%c0_10, %c0_11], %6 {strides = array<i32>} : memref<24x384xf32, #tpu.memory_space<vmem>>, vector<24x384xf32>,
    %c0_12 = arith.constant 0 : index
    %c0_13 = arith.constant 0 : index
    %8 = vector.load %arg7[%c0_12, %c0_13] : memref<24x384xf32, #tpu.memory_space<vmem>>, vector<3x384xf32>
    %c2 = arith.constant 2 : index
    %c0_14 = arith.constant 0 : index
    %9 = vector.load %arg6[%c2, %c0_14] : memref<144x384xf32, #tpu.memory_space<vmem>>, vector<16x384xf32>
    %10 = vector.extract_strided_slice %9 {offsets = [0, 0], sizes = [16, 128], strides = [1, 1]} : vector<16x384xf32> to vector<16x128xf32>
    %11 = vector.extract_strided_slice %8 {offsets = [0, 0], sizes = [1, 128], strides = [1, 1]} : vector<3x384xf32> to vector<1x128xf32>
    %12 = vector.broadcast %11 : vector<1x128xf32> to vector<16x128xf32>
    %13 = arith.mulf %10, %12 : vector<16x128xf32>
    %14 = vector.extract_strided_slice %9 {offsets = [0, 128], sizes = [16, 128], strides = [1, 1]} : vector<16x384xf32> to vector<16x128xf32>
    %15 = vector.extract_strided_slice %8 {offsets = [0, 128], sizes = [1, 128], strides = [1, 1]} : vector<3x384xf32> to vector<1x128xf32>
    %16 = vector.broadcast %15 : vector<1x128xf32> to vector<16x128xf32>
    %17 = arith.mulf %14, %16 : vector<16x128xf32>
    %18 = arith.addf %13, %17 : vector<16x128xf32>
    %19 = vector.extract_strided_slice %9 {offsets = [0, 256], sizes = [16, 128], strides = [1, 1]} : vector<16x384xf32> to vector<16x128xf32>
    %20 = vector.extract_strided_slice %8 {offsets = [0, 256], sizes = [1, 128], strides = [1, 1]} : vector<3x384xf32> to vector<1x128xf32>
    %21 = vector.broadcast %20 : vector<1x128xf32> to vector<16x128xf32>
    %22 = arith.mulf %19, %21 : vector<16x128xf32>
    %23 = arith.addf %18, %22 : vector<16x128xf32>
    %c1 = arith.constant 1 : index
    %c0_15 = arith.constant 0 : index
    %24 = vector.load %arg6[%c1, %c0_15] : memref<144x384xf32, #tpu.memory_space<vmem>>, vector<16x384xf32>
    %25 = vector.extract_strided_slice %24 {offsets = [0, 0], sizes = [16, 128], strides = [1, 1]} : vector<16x384xf32> to vector<16x128xf32>
    %26 = vector.extract_strided_slice %8 {offsets = [1, 0], sizes = [1, 128], strides = [1, 1]} : vector<3x384xf32> to vector<1x128xf32>
    %27 = vector.broadcast %26 : vector<1x128xf32> to vector<16x128xf32>
    %28 = arith.mulf %25, %27 : vector<16x128xf32>
    %29 = vector.extract_strided_slice %24 {offsets = [0, 128], sizes = [16, 128], strides = [1, 1]} : vector<16x384xf32> to vector<16x128xf32>
    %30 = vector.extract_strided_slice %8 {offsets = [1, 128], sizes = [1, 128], strides = [1, 1]} : vector<3x384xf32> to vector<1x128xf32>
    %31 = vector.broadcast %30 : vector<1x128xf32> to vector<16x128xf32>
    %32 = arith.mulf %29, %31 : vector<16x128xf32>
    %33 = arith.addf %28, %32 : vector<16x128xf32>
    %34 = vector.extract_strided_slice %24 {offsets = [0, 256], sizes = [16, 128], strides = [1, 1]} : vector<16x384xf32> to vector<16x128xf32>
    %35 = vector.extract_strided_slice %8 {offsets = [1, 256], sizes = [1, 128], strides = [1, 1]} : vector<3x384xf32> to vector<1x128xf32>
    %36 = vector.broadcast %35 : vector<1x128xf32> to vector<16x128xf32>
    %37 = arith.mulf %34, %36 : vector<16x128xf32>
    %38 = arith.addf %33, %37 : vector<16x128xf32>
    %c0_16 = arith.constant 0 : index
    %c0_17 = arith.constant 0 : index
    %39 = vector.load %arg6[%c0_16, %c0_17] : memref<144x384xf32, #tpu.memory_space<vmem>>, vector<16x384xf32>
    %40 = vector.extract_strided_slice %39 {offsets = [0, 0], sizes = [16, 128], strides = [1, 1]} : vector<16x384xf32> to vector<16x128xf32>
    %41 = vector.extract_strided_slice %8 {offsets = [2, 0], sizes = [1, 128], strides = [1, 1]} : vector<3x384xf32> to vector<1x128xf32>
    %42 = vector.broadcast %41 : vector<1x128xf32> to vector<16x128xf32>
    %43 = arith.mulf %40, %42 : vector<16x128xf32>
    %44 = vector.extract_strided_slice %39 {offsets = [0, 128], sizes = [16, 128], strides = [1, 1]} : vector<16x384xf32> to vector<16x128xf32>
    %45 = vector.extract_strided_slice %8 {offsets = [2, 128], sizes = [1, 128], strides = [1, 1]} : vector<3x384xf32> to vector<1x128xf32>
    %46 = vector.broadcast %45 : vector<1x128xf32> to vector<16x128xf32>
    %47 = arith.mulf %44, %46 : vector<16x128xf32>
    %48 = arith.addf %43, %47 : vector<16x128xf32>
    %49 = vector.extract_strided_slice %39 {offsets = [0, 256], sizes = [16, 128], strides = [1, 1]} : vector<16x384xf32> to vector<16x128xf32>
    %50 = vector.extract_strided_slice %8 {offsets = [2, 256], sizes = [1, 128], strides = [1, 1]} : vector<3x384xf32> to vector<1x128xf32>
    %51 = vector.broadcast %50 : vector<1x128xf32> to vector<16x128xf32>
    %52 = arith.mulf %49, %51 : vector<16x128xf32>
    %53 = arith.addf %48, %52 : vector<16x128xf32>
    %54 = arith.addf %23, %38 : vector<16x128xf32>
    %55 = arith.addf %54, %53 : vector<16x128xf32>
    %c0_18 = arith.constant 0 : index
    %c0_19 = arith.constant 0 : index
    %56 = vector.load %arg5[%c0_18, %c0_19] : memref<128x128xf32, #tpu.memory_space<vmem>>, vector<16x128xf32>
    tpu.vector_store %arg5[%c0_18, %c0_19], %55 {strides = array<i32>} : memref<128x128xf32, #tpu.memory_space<vmem>>, vector<16x128xf32>,
    %c3 = arith.constant 3 : index
    %c0_20 = arith.constant 0 : index
    %57 = vector.load %arg7[%c3, %c0_20] : memref<24x384xf32, #tpu.memory_space<vmem>>, vector<3x384xf32>
    %c20 = arith.constant 20 : index
    %c0_21 = arith.constant 0 : index
    %58 = vector.load %arg6[%c20, %c0_21] : memref<144x384xf32, #tpu.memory_space<vmem>>, vector<16x384xf32>
    %59 = vector.extract_strided_slice %58 {offsets = [0, 0], sizes = [16, 128], strides = [1, 1]} : vector<16x384xf32> to vector<16x128xf32>
    %60 = vector.extract_strided_slice %57 {offsets = [0, 0], sizes = [1, 128], strides = [1, 1]} : vector<3x384xf32> to vector<1x128xf32>
    %61 = vector.broadcast %60 : vector<1x128xf32> to vector<16x128xf32>
    %62 = arith.mulf %59, %61 : vector<16x128xf32>
    %63 = vector.extract_strided_slice %58 {offsets = [0, 128], sizes = [16, 128], strides = [1, 1]} : vector<16x384xf32> to vector<16x128xf32>
    %64 = vector.extract_strided_slice %57 {offsets = [0, 128], sizes = [1, 128], strides = [1, 1]} : vector<3x384xf32> to vector<1x128xf32>
    %65 = vector.broadcast %64 : vector<1x128xf32> to vector<16x128xf32>
    %66 = arith.mulf %63, %65 : vector<16x128xf32>
    %67 = arith.addf %62, %66 : vector<16x128xf32>
    %68 = vector.extract_strided_slice %58 {offsets = [0, 256], sizes = [16, 128], strides = [1, 1]} : vector<16x384xf32> to vector<16x128xf32>
    %69 = vector.extract_strided_slice %57 {offsets = [0, 256], sizes = [1, 128], strides = [1, 1]} : vector<3x384xf32> to vector<1x128xf32>
    %70 = vector.broadcast %69 : vector<1x128xf32> to vector<16x128xf32>
    %71 = arith.mulf %68, %70 : vector<16x128xf32>
    %72 = arith.addf %67, %71 : vector<16x128xf32>
    %c19 = arith.constant 19 : index
    %c0_22 = arith.constant 0 : index
    %73 = vector.load %arg6[%c19, %c0_22] : memref<144x384xf32, #tpu.memory_space<vmem>>, vector<16x384xf32>
    %74 = vector.extract_strided_slice %73 {offsets = [0, 0], sizes = [16, 128], strides = [1, 1]} : vector<16x384xf32> to vector<16x128xf32>
    %75 = vector.extract_strided_slice %57 {offsets = [1, 0], sizes = [1, 128], strides = [1, 1]} : vector<3x384xf32> to vector<1x128xf32>
    %76 = vector.broadcast %75 : vector<1x128xf32> to vector<16x128xf32>
    %77 = arith.mulf %74, %76 : vector<16x128xf32>
    %78 = vector.extract_strided_slice %73 {offsets = [0, 128], sizes = [16, 128], strides = [1, 1]} : vector<16x384xf32> to vector<16x128xf32>
    %79 = vector.extract_strided_slice %57 {offsets = [1, 128], sizes = [1, 128], strides = [1, 1]} : vector<3x384xf32> to vector<1x128xf32>
    %80 = vector.broadcast %79 : vector<1x128xf32> to vector<16x128xf32>
    %81 = arith.mulf %78, %80 : vector<16x128xf32>
    %82 = arith.addf %77, %81 : vector<16x128xf32>
    %83 = vector.extract_strided_slice %73 {offsets = [0, 256], sizes = [16, 128], strides = [1, 1]} : vector<16x384xf32> to vector<16x128xf32>
    %84 = vector.extract_strided_slice %57 {offsets = [1, 256], sizes = [1, 128], strides = [1, 1]} : vector<3x384xf32> to vector<1x128xf32>
    %85 = vector.broadcast %84 : vector<1x128xf32> to vector<16x128xf32>
    %86 = arith.mulf %83, %85 : vector<16x128xf32>
    %87 = arith.addf %82, %86 : vector<16x128xf32>
    %c18 = arith.constant 18 : index
    %c0_23 = arith.constant 0 : index
    %88 = vector.load %arg6[%c18, %c0_23] : memref<144x384xf32, #tpu.memory_space<vmem>>, vector<16x384xf32>
    %89 = vector.extract_strided_slice %88 {offsets = [0, 0], sizes = [16, 128], strides = [1, 1]} : vector<16x384xf32> to vector<16x128xf32>
    %90 = vector.extract_strided_slice %57 {offsets = [2, 0], sizes = [1, 128], strides = [1, 1]} : vector<3x384xf32> to vector<1x128xf32>
    %91 = vector.broadcast %90 : vector<1x128xf32> to vector<16x128xf32>
    %92 = arith.mulf %89, %91 : vector<16x128xf32>
    %93 = vector.extract_strided_slice %88 {offsets = [0, 128], sizes = [16, 128], strides = [1, 1]} : vector<16x384xf32> to vector<16x128xf32>
    %94 = vector.extract_strided_slice %57 {offsets = [2, 128], sizes = [1, 128], strides = [1, 1]} : vector<3x384xf32> to vector<1x128xf32>
    %95 = vector.broadcast %94 : vector<1x128xf32> to vector<16x128xf32>
    %96 = arith.mulf %93, %95 : vector<16x128xf32>
    %97 = arith.addf %92, %96 : vector<16x128xf32>
    %98 = vector.extract_strided_slice %88 {offsets = [0, 256], sizes = [16, 128], strides = [1, 1]} : vector<16x384xf32> to vector<16x128xf32>
    %99 = vector.extract_strided_slice %57 {offsets = [2, 256], sizes = [1, 128], strides = [1, 1]} : vector<3x384xf32> to vector<1x128xf32>
    %100 = vector.broadcast %99 : vector<1x128xf32> to vector<16x128xf32>
    %101 = arith.mulf %98, %100 : vector<16x128xf32>
    %102 = arith.addf %97, %101 : vector<16x128xf32>
    %103 = arith.addf %72, %87 : vector<16x128xf32>
    %104 = arith.addf %103, %102 : vector<16x128xf32>
    %c16 = arith.constant 16 : index
    %c0_24 = arith.constant 0 : index
    %105 = vector.load %arg5[%c16, %c0_24] : memref<128x128xf32, #tpu.memory_space<vmem>>, vector<16x128xf32>
    tpu.vector_store %arg5[%c16, %c0_24], %104 {strides = array<i32>} : memref<128x128xf32, #tpu.memory_space<vmem>>, vector<16x128xf32>,
    %c6 = arith.constant 6 : index
    %c0_25 = arith.constant 0 : index
    %106 = vector.load %arg7[%c6, %c0_25] : memref<24x384xf32, #tpu.memory_space<vmem>>, vector<3x384xf32>
    %c38 = arith.constant 38 : index
    %c0_26 = arith.constant 0 : index
    %107 = vector.load %arg6[%c38, %c0_26] : memref<144x384xf32, #tpu.memory_space<vmem>>, vector<16x384xf32>
    %108 = vector.extract_strided_slice %107 {offsets = [0, 0], sizes = [16, 128], strides = [1, 1]} : vector<16x384xf32> to vector<16x128xf32>
    %109 = vector.extract_strided_slice %106 {offsets = [0, 0], sizes = [1, 128], strides = [1, 1]} : vector<3x384xf32> to vector<1x128xf32>
    %110 = vector.broadcast %109 : vector<1x128xf32> to vector<16x128xf32>
    %111 = arith.mulf %108, %110 : vector<16x128xf32>
    %112 = vector.extract_strided_slice %107 {offsets = [0, 128], sizes = [16, 128], strides = [1, 1]} : vector<16x384xf32> to vector<16x128xf32>
    %113 = vector.extract_strided_slice %106 {offsets = [0, 128], sizes = [1, 128], strides = [1, 1]} : vector<3x384xf32> to vector<1x128xf32>
    %114 = vector.broadcast %113 : vector<1x128xf32> to vector<16x128xf32>
    %115 = arith.mulf %112, %114 : vector<16x128xf32>
    %116 = arith.addf %111, %115 : vector<16x128xf32>
    %117 = vector.extract_strided_slice %107 {offsets = [0, 256], sizes = [16, 128], strides = [1, 1]} : vector<16x384xf32> to vector<16x128xf32>
    %118 = vector.extract_strided_slice %106 {offsets = [0, 256], sizes = [1, 128], strides = [1, 1]} : vector<3x384xf32> to vector<1x128xf32>
    %119 = vector.broadcast %118 : vector<1x128xf32> to vector<16x128xf32>
    %120 = arith.mulf %117, %119 : vector<16x128xf32>
    %121 = arith.addf %116, %120 : vector<16x128xf32>
    %c37 = arith.constant 37 : index
    %c0_27 = arith.constant 0 : index
    %122 = vector.load %arg6[%c37, %c0_27] : memref<144x384xf32, #tpu.memory_space<vmem>>, vector<16x384xf32>
    %123 = vector.extract_strided_slice %122 {offsets = [0, 0], sizes = [16, 128], strides = [1, 1]} : vector<16x384xf32> to vector<16x128xf32>
    %124 = vector.extract_strided_slice %106 {offsets = [1, 0], sizes = [1, 128], strides = [1, 1]} : vector<3x384xf32> to vector<1x128xf32>
    %125 = vector.broadcast %124 : vector<1x128xf32> to vector<16x128xf32>
    %126 = arith.mulf %123, %125 : vector<16x128xf32>
    %127 = vector.extract_strided_slice %122 {offsets = [0, 128], sizes = [16, 128], strides = [1, 1]} : vector<16x384xf32> to vector<16x128xf32>
    %128 = vector.extract_strided_slice %106 {offsets = [1, 128], sizes = [1, 128], strides = [1, 1]} : vector<3x384xf32> to vector<1x128xf32>
    %129 = vector.broadcast %128 : vector<1x128xf32> to vector<16x128xf32>
    %130 = arith.mulf %127, %129 : vector<16x128xf32>
    %131 = arith.addf %126, %130 : vector<16x128xf32>
    %132 = vector.extract_strided_slice %122 {offsets = [0, 256], sizes = [16, 128], strides = [1, 1]} : vector<16x384xf32> to vector<16x128xf32>
    %133 = vector.extract_strided_slice %106 {offsets = [1, 256], sizes = [1, 128], strides = [1, 1]} : vector<3x384xf32> to vector<1x128xf32>
    %134 = vector.broadcast %133 : vector<1x128xf32> to vector<16x128xf32>
    %135 = arith.mulf %132, %134 : vector<16x128xf32>
    %136 = arith.addf %131, %135 : vector<16x128xf32>
    %c36 = arith.constant 36 : index
    %c0_28 = arith.constant 0 : index
    %137 = vector.load %arg6[%c36, %c0_28] : memref<144x384xf32, #tpu.memory_space<vmem>>, vector<16x384xf32>
    %138 = vector.extract_strided_slice %137 {offsets = [0, 0], sizes = [16, 128], strides = [1, 1]} : vector<16x384xf32> to vector<16x128xf32>
    %139 = vector.extract_strided_slice %106 {offsets = [2, 0], sizes = [1, 128], strides = [1, 1]} : vector<3x384xf32> to vector<1x128xf32>
    %140 = vector.broadcast %139 : vector<1x128xf32> to vector<16x128xf32>
    %141 = arith.mulf %138, %140 : vector<16x128xf32>
    %142 = vector.extract_strided_slice %137 {offsets = [0, 128], sizes = [16, 128], strides = [1, 1]} : vector<16x384xf32> to vector<16x128xf32>
    %143 = vector.extract_strided_slice %106 {offsets = [2, 128], sizes = [1, 128], strides = [1, 1]} : vector<3x384xf32> to vector<1x128xf32>
    %144 = vector.broadcast %143 : vector<1x128xf32> to vector<16x128xf32>
    %145 = arith.mulf %142, %144 : vector<16x128xf32>
    %146 = arith.addf %141, %145 : vector<16x128xf32>
    %147 = vector.extract_strided_slice %137 {offsets = [0, 256], sizes = [16, 128], strides = [1, 1]} : vector<16x384xf32> to vector<16x128xf32>
    %148 = vector.extract_strided_slice %106 {offsets = [2, 256], sizes = [1, 128], strides = [1, 1]} : vector<3x384xf32> to vector<1x128xf32>
    %149 = vector.broadcast %148 : vector<1x128xf32> to vector<16x128xf32>
    %150 = arith.mulf %147, %149 : vector<16x128xf32>
    %151 = arith.addf %146, %150 : vector<16x128xf32>
    %152 = arith.addf %121, %136 : vector<16x128xf32>
    %153 = arith.addf %152, %151 : vector<16x128xf32>
    %c32 = arith.constant 32 : index
    %c0_29 = arith.constant 0 : index
    %154 = vector.load %arg5[%c32, %c0_29] : memref<128x128xf32, #tpu.memory_space<vmem>>, vector<16x128xf32>
    tpu.vector_store %arg5[%c32, %c0_29], %153 {strides = array<i32>} : memref<128x128xf32, #tpu.memory_space<vmem>>, vector<16x128xf32>,
    %c9 = arith.constant 9 : index
    %c0_30 = arith.constant 0 : index
    %155 = vector.load %arg7[%c9, %c0_30] : memref<24x384xf32, #tpu.memory_space<vmem>>, vector<3x384xf32>
    %c56 = arith.constant 56 : index
    %c0_31 = arith.constant 0 : index
    %156 = vector.load %arg6[%c56, %c0_31] : memref<144x384xf32, #tpu.memory_space<vmem>>, vector<16x384xf32>
    %157 = vector.extract_strided_slice %156 {offsets = [0, 0], sizes = [16, 128], strides = [1, 1]} : vector<16x384xf32> to vector<16x128xf32>
    %158 = vector.extract_strided_slice %155 {offsets = [0, 0], sizes = [1, 128], strides = [1, 1]} : vector<3x384xf32> to vector<1x128xf32>
    %159 = vector.broadcast %158 : vector<1x128xf32> to vector<16x128xf32>
    %160 = arith.mulf %157, %159 : vector<16x128xf32>
    %161 = vector.extract_strided_slice %156 {offsets = [0, 128], sizes = [16, 128], strides = [1, 1]} : vector<16x384xf32> to vector<16x128xf32>
    %162 = vector.extract_strided_slice %155 {offsets = [0, 128], sizes = [1, 128], strides = [1, 1]} : vector<3x384xf32> to vector<1x128xf32>
    %163 = vector.broadcast %162 : vector<1x128xf32> to vector<16x128xf32>
    %164 = arith.mulf %161, %163 : vector<16x128xf32>
    %165 = arith.addf %160, %164 : vector<16x128xf32>
    %166 = vector.extract_strided_slice %156 {offsets = [0, 256], sizes = [16, 128], strides = [1, 1]} : vector<16x384xf32> to vector<16x128xf32>
    %167 = vector.extract_strided_slice %155 {offsets = [0, 256], sizes = [1, 128], strides = [1, 1]} : vector<3x384xf32> to vector<1x128xf32>
    %168 = vector.broadcast %167 : vector<1x128xf32> to vector<16x128xf32>
    %169 = arith.mulf %166, %168 : vector<16x128xf32>
    %170 = arith.addf %165, %169 : vector<16x128xf32>
    %c55 = arith.constant 55 : index
    %c0_32 = arith.constant 0 : index
    %171 = vector.load %arg6[%c55, %c0_32] : memref<144x384xf32, #tpu.memory_space<vmem>>, vector<16x384xf32>
    %172 = vector.extract_strided_slice %171 {offsets = [0, 0], sizes = [16, 128], strides = [1, 1]} : vector<16x384xf32> to vector<16x128xf32>
    %173 = vector.extract_strided_slice %155 {offsets = [1, 0], sizes = [1, 128], strides = [1, 1]} : vector<3x384xf32> to vector<1x128xf32>
    %174 = vector.broadcast %173 : vector<1x128xf32> to vector<16x128xf32>
    %175 = arith.mulf %172, %174 : vector<16x128xf32>
    %176 = vector.extract_strided_slice %171 {offsets = [0, 128], sizes = [16, 128], strides = [1, 1]} : vector<16x384xf32> to vector<16x128xf32>
    %177 = vector.extract_strided_slice %155 {offsets = [1, 128], sizes = [1, 128], strides = [1, 1]} : vector<3x384xf32> to vector<1x128xf32>
    %178 = vector.broadcast %177 : vector<1x128xf32> to vector<16x128xf32>
    %179 = arith.mulf %176, %178 : vector<16x128xf32>
    %180 = arith.addf %175, %179 : vector<16x128xf32>
    %181 = vector.extract_strided_slice %171 {offsets = [0, 256], sizes = [16, 128], strides = [1, 1]} : vector<16x384xf32> to vector<16x128xf32>
    %182 = vector.extract_strided_slice %155 {offsets = [1, 256], sizes = [1, 128], strides = [1, 1]} : vector<3x384xf32> to vector<1x128xf32>
    %183 = vector.broadcast %182 : vector<1x128xf32> to vector<16x128xf32>
    %184 = arith.mulf %181, %183 : vector<16x128xf32>
    %185 = arith.addf %180, %184 : vector<16x128xf32>
    %c54 = arith.constant 54 : index
    %c0_33 = arith.constant 0 : index
    %186 = vector.load %arg6[%c54, %c0_33] : memref<144x384xf32, #tpu.memory_space<vmem>>, vector<16x384xf32>
    %187 = vector.extract_strided_slice %186 {offsets = [0, 0], sizes = [16, 128], strides = [1, 1]} : vector<16x384xf32> to vector<16x128xf32>
    %188 = vector.extract_strided_slice %155 {offsets = [2, 0], sizes = [1, 128], strides = [1, 1]} : vector<3x384xf32> to vector<1x128xf32>
    %189 = vector.broadcast %188 : vector<1x128xf32> to vector<16x128xf32>
    %190 = arith.mulf %187, %189 : vector<16x128xf32>
    %191 = vector.extract_strided_slice %186 {offsets = [0, 128], sizes = [16, 128], strides = [1, 1]} : vector<16x384xf32> to vector<16x128xf32>
    %192 = vector.extract_strided_slice %155 {offsets = [2, 128], sizes = [1, 128], strides = [1, 1]} : vector<3x384xf32> to vector<1x128xf32>
    %193 = vector.broadcast %192 : vector<1x128xf32> to vector<16x128xf32>
    %194 = arith.mulf %191, %193 : vector<16x128xf32>
    %195 = arith.addf %190, %194 : vector<16x128xf32>
    %196 = vector.extract_strided_slice %186 {offsets = [0, 256], sizes = [16, 128], strides = [1, 1]} : vector<16x384xf32> to vector<16x128xf32>
    %197 = vector.extract_strided_slice %155 {offsets = [2, 256], sizes = [1, 128], strides = [1, 1]} : vector<3x384xf32> to vector<1x128xf32>
    %198 = vector.broadcast %197 : vector<1x128xf32> to vector<16x128xf32>
    %199 = arith.mulf %196, %198 : vector<16x128xf32>
    %200 = arith.addf %195, %199 : vector<16x128xf32>
    %201 = arith.addf %170, %185 : vector<16x128xf32>
    %202 = arith.addf %201, %200 : vector<16x128xf32>
    %c48 = arith.constant 48 : index
    %c0_34 = arith.constant 0 : index
    %203 = vector.load %arg5[%c48, %c0_34] : memref<128x128xf32, #tpu.memory_space<vmem>>, vector<16x128xf32>
    tpu.vector_store %arg5[%c48, %c0_34], %202 {strides = array<i32>} : memref<128x128xf32, #tpu.memory_space<vmem>>, vector<16x128xf32>,
    %c12 = arith.constant 12 : index
    %c0_35 = arith.constant 0 : index
    %204 = vector.load %arg7[%c12, %c0_35] : memref<24x384xf32, #tpu.memory_space<vmem>>, vector<3x384xf32>
    %c74 = arith.constant 74 : index
    %c0_36 = arith.constant 0 : index
    %205 = vector.load %arg6[%c74, %c0_36] : memref<144x384xf32, #tpu.memory_space<vmem>>, vector<16x384xf32>
    %206 = vector.extract_strided_slice %205 {offsets = [0, 0], sizes = [16, 128], strides = [1, 1]} : vector<16x384xf32> to vector<16x128xf32>
    %207 = vector.extract_strided_slice %204 {offsets = [0, 0], sizes = [1, 128], strides = [1, 1]} : vector<3x384xf32> to vector<1x128xf32>
    %208 = vector.broadcast %207 : vector<1x128xf32> to vector<16x128xf32>
    %209 = arith.mulf %206, %208 : vector<16x128xf32>
    %210 = vector.extract_strided_slice %205 {offsets = [0, 128], sizes = [16, 128], strides = [1, 1]} : vector<16x384xf32> to vector<16x128xf32>
    %211 = vector.extract_strided_slice %204 {offsets = [0, 128], sizes = [1, 128], strides = [1, 1]} : vector<3x384xf32> to vector<1x128xf32>
    %212 = vector.broadcast %211 : vector<1x128xf32> to vector<16x128xf32>
    %213 = arith.mulf %210, %212 : vector<16x128xf32>
    %214 = arith.addf %209, %213 : vector<16x128xf32>
    %215 = vector.extract_strided_slice %205 {offsets = [0, 256], sizes = [16, 128], strides = [1, 1]} : vector<16x384xf32> to vector<16x128xf32>
    %216 = vector.extract_strided_slice %204 {offsets = [0, 256], sizes = [1, 128], strides = [1, 1]} : vector<3x384xf32> to vector<1x128xf32>
    %217 = vector.broadcast %216 : vector<1x128xf32> to vector<16x128xf32>
    %218 = arith.mulf %215, %217 : vector<16x128xf32>
    %219 = arith.addf %214, %218 : vector<16x128xf32>
    %c73 = arith.constant 73 : index
    %c0_37 = arith.constant 0 : index
    %220 = vector.load %arg6[%c73, %c0_37] : memref<144x384xf32, #tpu.memory_space<vmem>>, vector<16x384xf32>
    %221 = vector.extract_strided_slice %220 {offsets = [0, 0], sizes = [16, 128], strides = [1, 1]} : vector<16x384xf32> to vector<16x128xf32>
    %222 = vector.extract_strided_slice %204 {offsets = [1, 0], sizes = [1, 128], strides = [1, 1]} : vector<3x384xf32> to vector<1x128xf32>
    %223 = vector.broadcast %222 : vector<1x128xf32> to vector<16x128xf32>
    %224 = arith.mulf %221, %223 : vector<16x128xf32>
    %225 = vector.extract_strided_slice %220 {offsets = [0, 128], sizes = [16, 128], strides = [1, 1]} : vector<16x384xf32> to vector<16x128xf32>
    %226 = vector.extract_strided_slice %204 {offsets = [1, 128], sizes = [1, 128], strides = [1, 1]} : vector<3x384xf32> to vector<1x128xf32>
    %227 = vector.broadcast %226 : vector<1x128xf32> to vector<16x128xf32>
    %228 = arith.mulf %225, %227 : vector<16x128xf32>
    %229 = arith.addf %224, %228 : vector<16x128xf32>
    %230 = vector.extract_strided_slice %220 {offsets = [0, 256], sizes = [16, 128], strides = [1, 1]} : vector<16x384xf32> to vector<16x128xf32>
    %231 = vector.extract_strided_slice %204 {offsets = [1, 256], sizes = [1, 128], strides = [1, 1]} : vector<3x384xf32> to vector<1x128xf32>
    %232 = vector.broadcast %231 : vector<1x128xf32> to vector<16x128xf32>
    %233 = arith.mulf %230, %232 : vector<16x128xf32>
    %234 = arith.addf %229, %233 : vector<16x128xf32>
    %c72 = arith.constant 72 : index
    %c0_38 = arith.constant 0 : index
    %235 = vector.load %arg6[%c72, %c0_38] : memref<144x384xf32, #tpu.memory_space<vmem>>, vector<16x384xf32>
    %236 = vector.extract_strided_slice %235 {offsets = [0, 0], sizes = [16, 128], strides = [1, 1]} : vector<16x384xf32> to vector<16x128xf32>
    %237 = vector.extract_strided_slice %204 {offsets = [2, 0], sizes = [1, 128], strides = [1, 1]} : vector<3x384xf32> to vector<1x128xf32>
    %238 = vector.broadcast %237 : vector<1x128xf32> to vector<16x128xf32>
    %239 = arith.mulf %236, %238 : vector<16x128xf32>
    %240 = vector.extract_strided_slice %235 {offsets = [0, 128], sizes = [16, 128], strides = [1, 1]} : vector<16x384xf32> to vector<16x128xf32>
    %241 = vector.extract_strided_slice %204 {offsets = [2, 128], sizes = [1, 128], strides = [1, 1]} : vector<3x384xf32> to vector<1x128xf32>
    %242 = vector.broadcast %241 : vector<1x128xf32> to vector<16x128xf32>
    %243 = arith.mulf %240, %242 : vector<16x128xf32>
    %244 = arith.addf %239, %243 : vector<16x128xf32>
    %245 = vector.extract_strided_slice %235 {offsets = [0, 256], sizes = [16, 128], strides = [1, 1]} : vector<16x384xf32> to vector<16x128xf32>
    %246 = vector.extract_strided_slice %204 {offsets = [2, 256], sizes = [1, 128], strides = [1, 1]} : vector<3x384xf32> to vector<1x128xf32>
    %247 = vector.broadcast %246 : vector<1x128xf32> to vector<16x128xf32>
    %248 = arith.mulf %245, %247 : vector<16x128xf32>
    %249 = arith.addf %244, %248 : vector<16x128xf32>
    %250 = arith.addf %219, %234 : vector<16x128xf32>
    %251 = arith.addf %250, %249 : vector<16x128xf32>
    %c64 = arith.constant 64 : index
    %c0_39 = arith.constant 0 : index
    %252 = vector.load %arg5[%c64, %c0_39] : memref<128x128xf32, #tpu.memory_space<vmem>>, vector<16x128xf32>
    tpu.vector_store %arg5[%c64, %c0_39], %251 {strides = array<i32>} : memref<128x128xf32, #tpu.memory_space<vmem>>, vector<16x128xf32>,
    %c15 = arith.constant 15 : index
    %c0_40 = arith.constant 0 : index
    %253 = vector.load %arg7[%c15, %c0_40] : memref<24x384xf32, #tpu.memory_space<vmem>>, vector<3x384xf32>
    %c92 = arith.constant 92 : index
    %c0_41 = arith.constant 0 : index
    %254 = vector.load %arg6[%c92, %c0_41] : memref<144x384xf32, #tpu.memory_space<vmem>>, vector<16x384xf32>
    %255 = vector.extract_strided_slice %254 {offsets = [0, 0], sizes = [16, 128], strides = [1, 1]} : vector<16x384xf32> to vector<16x128xf32>
    %256 = vector.extract_strided_slice %253 {offsets = [0, 0], sizes = [1, 128], strides = [1, 1]} : vector<3x384xf32> to vector<1x128xf32>
    %257 = vector.broadcast %256 : vector<1x128xf32> to vector<16x128xf32>
    %258 = arith.mulf %255, %257 : vector<16x128xf32>
    %259 = vector.extract_strided_slice %254 {offsets = [0, 128], sizes = [16, 128], strides = [1, 1]} : vector<16x384xf32> to vector<16x128xf32>
    %260 = vector.extract_strided_slice %253 {offsets = [0, 128], sizes = [1, 128], strides = [1, 1]} : vector<3x384xf32> to vector<1x128xf32>
    %261 = vector.broadcast %260 : vector<1x128xf32> to vector<16x128xf32>
    %262 = arith.mulf %259, %261 : vector<16x128xf32>
    %263 = arith.addf %258, %262 : vector<16x128xf32>
    %264 = vector.extract_strided_slice %254 {offsets = [0, 256], sizes = [16, 128], strides = [1, 1]} : vector<16x384xf32> to vector<16x128xf32>
    %265 = vector.extract_strided_slice %253 {offsets = [0, 256], sizes = [1, 128], strides = [1, 1]} : vector<3x384xf32> to vector<1x128xf32>
    %266 = vector.broadcast %265 : vector<1x128xf32> to vector<16x128xf32>
    %267 = arith.mulf %264, %266 : vector<16x128xf32>
    %268 = arith.addf %263, %267 : vector<16x128xf32>
    %c91 = arith.constant 91 : index
    %c0_42 = arith.constant 0 : index
    %269 = vector.load %arg6[%c91, %c0_42] : memref<144x384xf32, #tpu.memory_space<vmem>>, vector<16x384xf32>
    %270 = vector.extract_strided_slice %269 {offsets = [0, 0], sizes = [16, 128], strides = [1, 1]} : vector<16x384xf32> to vector<16x128xf32>
    %271 = vector.extract_strided_slice %253 {offsets = [1, 0], sizes = [1, 128], strides = [1, 1]} : vector<3x384xf32> to vector<1x128xf32>
    %272 = vector.broadcast %271 : vector<1x128xf32> to vector<16x128xf32>
    %273 = arith.mulf %270, %272 : vector<16x128xf32>
    %274 = vector.extract_strided_slice %269 {offsets = [0, 128], sizes = [16, 128], strides = [1, 1]} : vector<16x384xf32> to vector<16x128xf32>
    %275 = vector.extract_strided_slice %253 {offsets = [1, 128], sizes = [1, 128], strides = [1, 1]} : vector<3x384xf32> to vector<1x128xf32>
    %276 = vector.broadcast %275 : vector<1x128xf32> to vector<16x128xf32>
    %277 = arith.mulf %274, %276 : vector<16x128xf32>
    %278 = arith.addf %273, %277 : vector<16x128xf32>
    %279 = vector.extract_strided_slice %269 {offsets = [0, 256], sizes = [16, 128], strides = [1, 1]} : vector<16x384xf32> to vector<16x128xf32>
    %280 = vector.extract_strided_slice %253 {offsets = [1, 256], sizes = [1, 128], strides = [1, 1]} : vector<3x384xf32> to vector<1x128xf32>
    %281 = vector.broadcast %280 : vector<1x128xf32> to vector<16x128xf32>
    %282 = arith.mulf %279, %281 : vector<16x128xf32>
    %283 = arith.addf %278, %282 : vector<16x128xf32>
    %c90 = arith.constant 90 : index
    %c0_43 = arith.constant 0 : index
    %284 = vector.load %arg6[%c90, %c0_43] : memref<144x384xf32, #tpu.memory_space<vmem>>, vector<16x384xf32>
    %285 = vector.extract_strided_slice %284 {offsets = [0, 0], sizes = [16, 128], strides = [1, 1]} : vector<16x384xf32> to vector<16x128xf32>
    %286 = vector.extract_strided_slice %253 {offsets = [2, 0], sizes = [1, 128], strides = [1, 1]} : vector<3x384xf32> to vector<1x128xf32>
    %287 = vector.broadcast %286 : vector<1x128xf32> to vector<16x128xf32>
    %288 = arith.mulf %285, %287 : vector<16x128xf32>
    %289 = vector.extract_strided_slice %284 {offsets = [0, 128], sizes = [16, 128], strides = [1, 1]} : vector<16x384xf32> to vector<16x128xf32>
    %290 = vector.extract_strided_slice %253 {offsets = [2, 128], sizes = [1, 128], strides = [1, 1]} : vector<3x384xf32> to vector<1x128xf32>
    %291 = vector.broadcast %290 : vector<1x128xf32> to vector<16x128xf32>
    %292 = arith.mulf %289, %291 : vector<16x128xf32>
    %293 = arith.addf %288, %292 : vector<16x128xf32>
    %294 = vector.extract_strided_slice %284 {offsets = [0, 256], sizes = [16, 128], strides = [1, 1]} : vector<16x384xf32> to vector<16x128xf32>
    %295 = vector.extract_strided_slice %253 {offsets = [2, 256], sizes = [1, 128], strides = [1, 1]} : vector<3x384xf32> to vector<1x128xf32>
    %296 = vector.broadcast %295 : vector<1x128xf32> to vector<16x128xf32>
    %297 = arith.mulf %294, %296 : vector<16x128xf32>
    %298 = arith.addf %293, %297 : vector<16x128xf32>
    %299 = arith.addf %268, %283 : vector<16x128xf32>
    %300 = arith.addf %299, %298 : vector<16x128xf32>
    %c80 = arith.constant 80 : index
    %c0_44 = arith.constant 0 : index
    %301 = vector.load %arg5[%c80, %c0_44] : memref<128x128xf32, #tpu.memory_space<vmem>>, vector<16x128xf32>
    tpu.vector_store %arg5[%c80, %c0_44], %300 {strides = array<i32>} : memref<128x128xf32, #tpu.memory_space<vmem>>, vector<16x128xf32>,
    %c18_45 = arith.constant 18 : index
    %c0_46 = arith.constant 0 : index
    %302 = vector.load %arg7[%c18_45, %c0_46] : memref<24x384xf32, #tpu.memory_space<vmem>>, vector<3x384xf32>
    %c110 = arith.constant 110 : index
    %c0_47 = arith.constant 0 : index
    %303 = vector.load %arg6[%c110, %c0_47] : memref<144x384xf32, #tpu.memory_space<vmem>>, vector<16x384xf32>
    %304 = vector.extract_strided_slice %303 {offsets = [0, 0], sizes = [16, 128], strides = [1, 1]} : vector<16x384xf32> to vector<16x128xf32>
    %305 = vector.extract_strided_slice %302 {offsets = [0, 0], sizes = [1, 128], strides = [1, 1]} : vector<3x384xf32> to vector<1x128xf32>
    %306 = vector.broadcast %305 : vector<1x128xf32> to vector<16x128xf32>
    %307 = arith.mulf %304, %306 : vector<16x128xf32>
    %308 = vector.extract_strided_slice %303 {offsets = [0, 128], sizes = [16, 128], strides = [1, 1]} : vector<16x384xf32> to vector<16x128xf32>
    %309 = vector.extract_strided_slice %302 {offsets = [0, 128], sizes = [1, 128], strides = [1, 1]} : vector<3x384xf32> to vector<1x128xf32>
    %310 = vector.broadcast %309 : vector<1x128xf32> to vector<16x128xf32>
    %311 = arith.mulf %308, %310 : vector<16x128xf32>
    %312 = arith.addf %307, %311 : vector<16x128xf32>
    %313 = vector.extract_strided_slice %303 {offsets = [0, 256], sizes = [16, 128], strides = [1, 1]} : vector<16x384xf32> to vector<16x128xf32>
    %314 = vector.extract_strided_slice %302 {offsets = [0, 256], sizes = [1, 128], strides = [1, 1]} : vector<3x384xf32> to vector<1x128xf32>
    %315 = vector.broadcast %314 : vector<1x128xf32> to vector<16x128xf32>
    %316 = arith.mulf %313, %315 : vector<16x128xf32>
    %317 = arith.addf %312, %316 : vector<16x128xf32>
    %c109 = arith.constant 109 : index
    %c0_48 = arith.constant 0 : index
    %318 = vector.load %arg6[%c109, %c0_48] : memref<144x384xf32, #tpu.memory_space<vmem>>, vector<16x384xf32>
    %319 = vector.extract_strided_slice %318 {offsets = [0, 0], sizes = [16, 128], strides = [1, 1]} : vector<16x384xf32> to vector<16x128xf32>
    %320 = vector.extract_strided_slice %302 {offsets = [1, 0], sizes = [1, 128], strides = [1, 1]} : vector<3x384xf32> to vector<1x128xf32>
    %321 = vector.broadcast %320 : vector<1x128xf32> to vector<16x128xf32>
    %322 = arith.mulf %319, %321 : vector<16x128xf32>
    %323 = vector.extract_strided_slice %318 {offsets = [0, 128], sizes = [16, 128], strides = [1, 1]} : vector<16x384xf32> to vector<16x128xf32>
    %324 = vector.extract_strided_slice %302 {offsets = [1, 128], sizes = [1, 128], strides = [1, 1]} : vector<3x384xf32> to vector<1x128xf32>
    %325 = vector.broadcast %324 : vector<1x128xf32> to vector<16x128xf32>
    %326 = arith.mulf %323, %325 : vector<16x128xf32>
    %327 = arith.addf %322, %326 : vector<16x128xf32>
    %328 = vector.extract_strided_slice %318 {offsets = [0, 256], sizes = [16, 128], strides = [1, 1]} : vector<16x384xf32> to vector<16x128xf32>
    %329 = vector.extract_strided_slice %302 {offsets = [1, 256], sizes = [1, 128], strides = [1, 1]} : vector<3x384xf32> to vector<1x128xf32>
    %330 = vector.broadcast %329 : vector<1x128xf32> to vector<16x128xf32>
    %331 = arith.mulf %328, %330 : vector<16x128xf32>
    %332 = arith.addf %327, %331 : vector<16x128xf32>
    %c108 = arith.constant 108 : index
    %c0_49 = arith.constant 0 : index
    %333 = vector.load %arg6[%c108, %c0_49] : memref<144x384xf32, #tpu.memory_space<vmem>>, vector<16x384xf32>
    %334 = vector.extract_strided_slice %333 {offsets = [0, 0], sizes = [16, 128], strides = [1, 1]} : vector<16x384xf32> to vector<16x128xf32>
    %335 = vector.extract_strided_slice %302 {offsets = [2, 0], sizes = [1, 128], strides = [1, 1]} : vector<3x384xf32> to vector<1x128xf32>
    %336 = vector.broadcast %335 : vector<1x128xf32> to vector<16x128xf32>
    %337 = arith.mulf %334, %336 : vector<16x128xf32>
    %338 = vector.extract_strided_slice %333 {offsets = [0, 128], sizes = [16, 128], strides = [1, 1]} : vector<16x384xf32> to vector<16x128xf32>
    %339 = vector.extract_strided_slice %302 {offsets = [2, 128], sizes = [1, 128], strides = [1, 1]} : vector<3x384xf32> to vector<1x128xf32>
    %340 = vector.broadcast %339 : vector<1x128xf32> to vector<16x128xf32>
    %341 = arith.mulf %338, %340 : vector<16x128xf32>
    %342 = arith.addf %337, %341 : vector<16x128xf32>
    %343 = vector.extract_strided_slice %333 {offsets = [0, 256], sizes = [16, 128], strides = [1, 1]} : vector<16x384xf32> to vector<16x128xf32>
    %344 = vector.extract_strided_slice %302 {offsets = [2, 256], sizes = [1, 128], strides = [1, 1]} : vector<3x384xf32> to vector<1x128xf32>
    %345 = vector.broadcast %344 : vector<1x128xf32> to vector<16x128xf32>
    %346 = arith.mulf %343, %345 : vector<16x128xf32>
    %347 = arith.addf %342, %346 : vector<16x128xf32>
    %348 = arith.addf %317, %332 : vector<16x128xf32>
    %349 = arith.addf %348, %347 : vector<16x128xf32>
    %c96 = arith.constant 96 : index
    %c0_50 = arith.constant 0 : index
    %350 = vector.load %arg5[%c96, %c0_50] : memref<128x128xf32, #tpu.memory_space<vmem>>, vector<16x128xf32>
    tpu.vector_store %arg5[%c96, %c0_50], %349 {strides = array<i32>} : memref<128x128xf32, #tpu.memory_space<vmem>>, vector<16x128xf32>,
    %c21 = arith.constant 21 : index
    %c0_51 = arith.constant 0 : index
    %351 = vector.load %arg7[%c21, %c0_51] : memref<24x384xf32, #tpu.memory_space<vmem>>, vector<3x384xf32>
    %c128 = arith.constant 128 : index
    %c0_52 = arith.constant 0 : index
    %352 = vector.load %arg6[%c128, %c0_52] : memref<144x384xf32, #tpu.memory_space<vmem>>, vector<16x384xf32>
    %353 = vector.extract_strided_slice %352 {offsets = [0, 0], sizes = [16, 128], strides = [1, 1]} : vector<16x384xf32> to vector<16x128xf32>
    %354 = vector.extract_strided_slice %351 {offsets = [0, 0], sizes = [1, 128], strides = [1, 1]} : vector<3x384xf32> to vector<1x128xf32>
    %355 = vector.broadcast %354 : vector<1x128xf32> to vector<16x128xf32>
    %356 = arith.mulf %353, %355 : vector<16x128xf32>
    %357 = vector.extract_strided_slice %352 {offsets = [0, 128], sizes = [16, 128], strides = [1, 1]} : vector<16x384xf32> to vector<16x128xf32>
    %358 = vector.extract_strided_slice %351 {offsets = [0, 128], sizes = [1, 128], strides = [1, 1]} : vector<3x384xf32> to vector<1x128xf32>
    %359 = vector.broadcast %358 : vector<1x128xf32> to vector<16x128xf32>
    %360 = arith.mulf %357, %359 : vector<16x128xf32>
    %361 = arith.addf %356, %360 : vector<16x128xf32>
    %362 = vector.extract_strided_slice %352 {offsets = [0, 256], sizes = [16, 128], strides = [1, 1]} : vector<16x384xf32> to vector<16x128xf32>
    %363 = vector.extract_strided_slice %351 {offsets = [0, 256], sizes = [1, 128], strides = [1, 1]} : vector<3x384xf32> to vector<1x128xf32>
    %364 = vector.broadcast %363 : vector<1x128xf32> to vector<16x128xf32>
    %365 = arith.mulf %362, %364 : vector<16x128xf32>
    %366 = arith.addf %361, %365 : vector<16x128xf32>
    %c127 = arith.constant 127 : index
    %c0_53 = arith.constant 0 : index
    %367 = vector.load %arg6[%c127, %c0_53] : memref<144x384xf32, #tpu.memory_space<vmem>>, vector<16x384xf32>
    %368 = vector.extract_strided_slice %367 {offsets = [0, 0], sizes = [16, 128], strides = [1, 1]} : vector<16x384xf32> to vector<16x128xf32>
    %369 = vector.extract_strided_slice %351 {offsets = [1, 0], sizes = [1, 128], strides = [1, 1]} : vector<3x384xf32> to vector<1x128xf32>
    %370 = vector.broadcast %369 : vector<1x128xf32> to vector<16x128xf32>
    %371 = arith.mulf %368, %370 : vector<16x128xf32>
    %372 = vector.extract_strided_slice %367 {offsets = [0, 128], sizes = [16, 128], strides = [1, 1]} : vector<16x384xf32> to vector<16x128xf32>
    %373 = vector.extract_strided_slice %351 {offsets = [1, 128], sizes = [1, 128], strides = [1, 1]} : vector<3x384xf32> to vector<1x128xf32>
    %374 = vector.broadcast %373 : vector<1x128xf32> to vector<16x128xf32>
    %375 = arith.mulf %372, %374 : vector<16x128xf32>
    %376 = arith.addf %371, %375 : vector<16x128xf32>
    %377 = vector.extract_strided_slice %367 {offsets = [0, 256], sizes = [16, 128], strides = [1, 1]} : vector<16x384xf32> to vector<16x128xf32>
    %378 = vector.extract_strided_slice %351 {offsets = [1, 256], sizes = [1, 128], strides = [1, 1]} : vector<3x384xf32> to vector<1x128xf32>
    %379 = vector.broadcast %378 : vector<1x128xf32> to vector<16x128xf32>
    %380 = arith.mulf %377, %379 : vector<16x128xf32>
    %381 = arith.addf %376, %380 : vector<16x128xf32>
    %c126 = arith.constant 126 : index
    %c0_54 = arith.constant 0 : index
    %382 = vector.load %arg6[%c126, %c0_54] : memref<144x384xf32, #tpu.memory_space<vmem>>, vector<16x384xf32>
    %383 = vector.extract_strided_slice %382 {offsets = [0, 0], sizes = [16, 128], strides = [1, 1]} : vector<16x384xf32> to vector<16x128xf32>
    %384 = vector.extract_strided_slice %351 {offsets = [2, 0], sizes = [1, 128], strides = [1, 1]} : vector<3x384xf32> to vector<1x128xf32>
    %385 = vector.broadcast %384 : vector<1x128xf32> to vector<16x128xf32>
    %386 = arith.mulf %383, %385 : vector<16x128xf32>
    %387 = vector.extract_strided_slice %382 {offsets = [0, 128], sizes = [16, 128], strides = [1, 1]} : vector<16x384xf32> to vector<16x128xf32>
    %388 = vector.extract_strided_slice %351 {offsets = [2, 128], sizes = [1, 128], strides = [1, 1]} : vector<3x384xf32> to vector<1x128xf32>
    %389 = vector.broadcast %388 : vector<1x128xf32> to vector<16x128xf32>
    %390 = arith.mulf %387, %389 : vector<16x128xf32>
    %391 = arith.addf %386, %390 : vector<16x128xf32>
    %392 = vector.extract_strided_slice %382 {offsets = [0, 256], sizes = [16, 128], strides = [1, 1]} : vector<16x384xf32> to vector<16x128xf32>
    %393 = vector.extract_strided_slice %351 {offsets = [2, 256], sizes = [1, 128], strides = [1, 1]} : vector<3x384xf32> to vector<1x128xf32>
    %394 = vector.broadcast %393 : vector<1x128xf32> to vector<16x128xf32>
    %395 = arith.mulf %392, %394 : vector<16x128xf32>
    %396 = arith.addf %391, %395 : vector<16x128xf32>
    %397 = arith.addf %366, %381 : vector<16x128xf32>
    %398 = arith.addf %397, %396 : vector<16x128xf32>
    %c112 = arith.constant 112 : index
    %c0_55 = arith.constant 0 : index
    %399 = vector.load %arg5[%c112, %c0_55] : memref<128x128xf32, #tpu.memory_space<vmem>>, vector<16x128xf32>
    tpu.vector_store %arg5[%c112, %c0_55], %398 {strides = array<i32>} : memref<128x128xf32, #tpu.memory_space<vmem>>, vector<16x128xf32>,
    return
  }
  func.func @transform_0(%arg0: i32) -> (i32, i32) {
    %c0_i32 = arith.constant 0 : i32
    %c0_i32_0 = arith.constant 0 : i32
    return %arg0, %c0_i32 : i32, i32
  }
  func.func @transform_1(%arg0: i32) -> (i32, i32) {
    %c0_i32 = arith.constant 0 : i32
    %c0_i32_0 = arith.constant 0 : i32
    return %arg0, %c0_i32 : i32, i32
  }
  func.func @transform_2(%arg0: i32) -> (i32, i32) {
    %c0_i32 = arith.constant 0 : i32
    %c0_i32_0 = arith.constant 0 : i32
    %c0_i32_1 = arith.constant 0 : i32
    return %c0_i32, %c0_i32_0 : i32, i32
  }
  func.func @transform_3(%arg0: i32) -> (i32, i32) {
    %c0_i32 = arith.constant 0 : i32
    %c0_i32_0 = arith.constant 0 : i32
    %c0_i32_1 = arith.constant 0 : i32
    return %c0_i32, %c0_i32_0 : i32, i32
  }
  func.func @transform_4(%arg0: i32) -> (i32, i32) {
    %c0_i32 = arith.constant 0 : i32
    %c0_i32_0 = arith.constant 0 : i32
    return %arg0, %c0_i32 : i32, i32
  }
}

</mosaic_0001>

<bundles_post_ra>
// kernel: tile.13
= control target key start
LH: loop header
LB: loop body
LE: loop exit
PB: predicated region body
PF: predicated region fallthrough
CT: control target
= control target key end

     0   :  { %s28_s0 = inlined_call_operand.vmem [shape: f32[8], index: 0, kind: input, shape index: {}]   ;;  %s29_s1 = inlined_call_operand.vmem [shape: f32[16,8], index: 1, kind: output, shape index: {}]  }
   0x1   :  { %v4_v0 = vld [vmem:[%s28_s0] ss:$0 sm:$0xff] }
   0x2   :  { %5 = vst [vmem:[%s29_s1] sm:$0xff] %v4_v0 }
   0x3   :  { %8 = vst [vmem:[%s29_s1 + $0x8] sm:$0xff] %v4_v0 }

// kernel: tile.0
= control target key start
LH: loop header
LB: loop body
LE: loop exit
PB: predicated region body
PF: predicated region fallthrough
CT: control target
= control target key end

     0   :  { %s177_s8 = smov 126   ;;  %s178_s9 = smov 127   ;;  %vm3_vm0 = vcmask 7168   ;;  %s328_s0 = inlined_call_operand.vmem [shape: f32[16,8], index: 0, kind: input, shape index: {}]   ;;  %s329_s1 = inlined_call_operand.vmem [shape: f32[1,128], index: 1, kind: output, shape index: {}]  }
   0x1   :  { %v30_v0 = vld [vmem:[%s328_s0] sm:$0xff]   ;;  %s179_s10 = smov 125   ;;  %v142_v1 = vld [vmem:[%s328_s0 + $0x8] sm:$0xff]   ;;  %s180_s20 = smov 124  }
   0x2   :  { %31 = vrot.lane.b32.xlu1 %v30_v0, %s177_s8  ;;  %14 = vrot.lane.b32.xlu0 %v30_v0, %s178_s9  ;;  %4 = vst.msk [vmem:[%s329_s1] ss:$8 sm:$0xf] %vm3_vm0, %v30_v0   ;;  %s181_s21 = smov 123   ;;  %s182_s22 = smov 122  }
   0x3   :  { %48 = vrot.lane.b32.xlu2 %v30_v0, %s179_s10  ;;  %5 = vst.msk [vmem:[%s329_s1] ss:$8 sm:$0xf0] %vm3_vm0, %v30_v0   ;;  %s183_s23 = smov 121  }
   0x4   :  { %133 = vst.msk [vmem:[%s329_s1 + $0x40] ss:$8 sm:$0xf] %vm3_vm0, %v142_v1  }
   0x5   :  { %134 = vst.msk [vmem:[%s329_s1 + $0x40] ss:$8 sm:$0xf0] %vm3_vm0, %v142_v1  }
   0xa   :  { %40 = vrot.lane.b32.xlu1 %v142_v1, %s177_s8  ;;  %23 = vrot.lane.b32.xlu0 %v142_v1, %s178_s9 }
   0xb   :  { %57 = vrot.lane.b32.xlu2 %v142_v1, %s179_s10 }
  0x12   :  { %74 = vrot.lane.b32.xlu1 %v142_v1, %s180_s20  ;;  %65 = vrot.lane.b32.xlu0 %v30_v0, %s180_s20 }
  0x13   :  { %82 = vrot.lane.b32.xlu2 %v30_v0, %s181_s21 }
  0x1a   :  { %99 = vrot.lane.b32.xlu1 %v30_v0, %s182_s22  ;;  %91 = vrot.lane.b32.xlu0 %v142_v1, %s181_s21 }
  0x1b   :  { %108 = vrot.lane.b32.xlu2 %v142_v1, %s182_s22 }
  0x22   :  { %125 = vrot.lane.b32.xlu1 %v142_v1, %s183_s23  ;;  %116 = vrot.lane.b32.xlu0 %v30_v0, %s183_s23 }
  0x5d   :  { %v49_v2 = vpop.permute.xlu2 %48  }
  0x5e   :  { %145 = vst.msk [vmem:[%s329_s1 + $0x3] ss:$8 sm:$0xf] %vm3_vm0, %v49_v2  }
  0x5f   :  { %146 = vst.msk [vmem:[%s329_s1 + $0x3] ss:$8 sm:$0xf0] %vm3_vm0, %v49_v2  }
  0x65   :  { %v58_v3 = vpop.permute.xlu2 %57  }
  0x66   :  { %148 = vst.msk [vmem:[%s329_s1 + $0x43] ss:$8 sm:$0xf] %vm3_vm0, %v58_v3  }
  0x67   :  { %149 = vst.msk [vmem:[%s329_s1 + $0x43] ss:$8 sm:$0xf0] %vm3_vm0, %v58_v3  }
  0x6d   :  { %v83_v4 = vpop.permute.xlu2 %82  }
  0x6e   :  { %155 = vst.msk [vmem:[%s329_s1 + $0x5] ss:$8 sm:$0xf] %vm3_vm0, %v83_v4  }
  0x6f   :  { %156 = vst.msk [vmem:[%s329_s1 + $0x5] ss:$8 sm:$0xf0] %vm3_vm0, %v83_v4  }
  0x74   :  { %v32_v5 = vpop.permute.xlu1 %31   ;;  %v15_v6 = vpop.permute.xlu0 %14  }
  0x75   :  { %140 = vst.msk [vmem:[%s329_s1 + $0x2] ss:$8 sm:$0xf] %vm3_vm0, %v32_v5   ;;  %v109_v7 = vpop.permute.xlu2 %108  }
  0x76   :  { %141 = vst.msk [vmem:[%s329_s1 + $0x2] ss:$8 sm:$0xf0] %vm3_vm0, %v32_v5  }
  0x77   :  { %135 = vst.msk [vmem:[%s329_s1 + $0x1] ss:$8 sm:$0xf] %vm3_vm0, %v15_v6  }
  0x78   :  { %136 = vst.msk [vmem:[%s329_s1 + $0x1] ss:$8 sm:$0xf0] %vm3_vm0, %v15_v6  }
  0x79   :  { %163 = vst.msk [vmem:[%s329_s1 + $0x46] ss:$8 sm:$0xf] %vm3_vm0, %v109_v7  }
  0x7a   :  { %164 = vst.msk [vmem:[%s329_s1 + $0x46] ss:$8 sm:$0xf0] %vm3_vm0, %v109_v7  }
  0x7c   :  { %v41_v8 = vpop.permute.xlu1 %40   ;;  %v24_v9 = vpop.permute.xlu0 %23  }
  0x7d   :  { %143 = vst.msk [vmem:[%s329_s1 + $0x42] ss:$8 sm:$0xf] %vm3_vm0, %v41_v8  }
  0x7e   :  { %144 = vst.msk [vmem:[%s329_s1 + $0x42] ss:$8 sm:$0xf0] %vm3_vm0, %v41_v8  }
  0x7f   :  { %138 = vst.msk [vmem:[%s329_s1 + $0x41] ss:$8 sm:$0xf] %vm3_vm0, %v24_v9  }
  0x80   :  { %139 = vst.msk [vmem:[%s329_s1 + $0x41] ss:$8 sm:$0xf0] %vm3_vm0, %v24_v9  }
  0x84   :  { %v75_v10 = vpop.permute.xlu1 %74   ;;  %v66_v11 = vpop.permute.xlu0 %65  }
  0x85   :  { %153 = vst.msk [vmem:[%s329_s1 + $0x44] ss:$8 sm:$0xf] %vm3_vm0, %v75_v10  }
  0x86   :  { %154 = vst.msk [vmem:[%s329_s1 + $0x44] ss:$8 sm:$0xf0] %vm3_vm0, %v75_v10  }
  0x87   :  { %150 = vst.msk [vmem:[%s329_s1 + $0x4] ss:$8 sm:$0xf] %vm3_vm0, %v66_v11  }
  0x88   :  { %151 = vst.msk [vmem:[%s329_s1 + $0x4] ss:$8 sm:$0xf0] %vm3_vm0, %v66_v11  }
  0x8c   :  { %v100_v12 = vpop.permute.xlu1 %99   ;;  %v92_v13 = vpop.permute.xlu0 %91  }
  0x8d   :  { %160 = vst.msk [vmem:[%s329_s1 + $0x6] ss:$8 sm:$0xf] %vm3_vm0, %v100_v12  }
  0x8e   :  { %161 = vst.msk [vmem:[%s329_s1 + $0x6] ss:$8 sm:$0xf0] %vm3_vm0, %v100_v12  }
  0x8f   :  { %158 = vst.msk [vmem:[%s329_s1 + $0x45] ss:$8 sm:$0xf] %vm3_vm0, %v92_v13  }
  0x90   :  { %159 = vst.msk [vmem:[%s329_s1 + $0x45] ss:$8 sm:$0xf0] %vm3_vm0, %v92_v13  }
  0x94   :  { %v126_v14 = vpop.permute.xlu1 %125   ;;  %v117_v15 = vpop.permute.xlu0 %116  }
  0x95   :  { %168 = vst.msk [vmem:[%s329_s1 + $0x47] ss:$8 sm:$0xf] %vm3_vm0, %v126_v14  }
  0x96   :  { %169 = vst.msk [vmem:[%s329_s1 + $0x47] ss:$8 sm:$0xf0] %vm3_vm0, %v126_v14  }
  0x97   :  { %165 = vst.msk [vmem:[%s329_s1 + $0x7] ss:$8 sm:$0xf] %vm3_vm0, %v117_v15  }
  0x98   :  { %166 = vst.msk [vmem:[%s329_s1 + $0x7] ss:$8 sm:$0xf0] %vm3_vm0, %v117_v15  }

// kernel: dense_conv2d_light.1
= control target key start
LH: loop header
LB: loop body
LE: loop exit
PB: predicated region body
PF: predicated region fallthrough
CT: control target
= control target key end

     0   :  { %s7176_s15 = smov 0   ;;  %s10817_s0 = inlined_call_operand.vmem [shape: f32[288,193], index: 0, kind: input, shape index: {}]   ;;  %s10818_s1 = inlined_call_operand.vmem [shape: f32[48,28], index: 1, kind: input, shape index: {}]   ;;  %s10819_s2 = inlined_call_operand.vmem [shape: f32[193,384], index: 2, kind: input, shape index: {}]   ;;  %s10820_s3 = inlined_call_operand.vmem [shape: f32[28,384], index: 3, kind: input, shape index: {}]   ;;  %s10821_s4 = inlined_call_operand.vmem [shape: f32[256,128], index: 4, kind: output, shape index: {}]  }
   0x1 LB: > { %s7182_s16 = sadd.s32 4294967295, %s7149_s15   ;;  %p7079_p0 = scmp.ge.s32.totalorder %s7149_s15, 1  ;;  %s7149_s15 = sphi %s7176_s15, %s14_s15  }
   0x2   : > { %p175_p1 = scmp.lt.s32.totalorder %s7149_s15, 3 }
   0x4   : > { %p176_p2 = pnand %p7079_p0, %p175_p1 }
   0x6   : > { %179 = sbr.rel (%p176_p2) target bundleno = 1704 (0x6a8), region = 36 }
   0xb   : > { %v307_v0 = vld [vmem:[%s10819_s2 + $0x168] sm:$0xff]  ;;  %v304_v1 = vld [vmem:[%s10819_s2 + $0x150] sm:$0xff]  ;;  %v301_v2 = vld [vmem:[%s10819_s2 + $0x138] sm:$0xff]  ;;  %s207_s23 = smul.u32 18, %s7182_s16  ;;  %vm392_vm0 = vcmask 1040384   ;;  %vm337_vm1 = vcmask 531456  }
   0xc   : > { %v7196_v3 = vand.u32 4294901760, %v307_v0  ;;  %v7198_v4 = vand.u32 4294901760, %v304_v1  ;;  %v7200_v5 = vand.u32 4294901760, %v301_v2  ;;  %v298_v6 = vld [vmem:[%s10819_s2 + $0x120] sm:$0xff]  ;;  %v295_v7 = vld [vmem:[%s10819_s2 + $0x108] sm:$0xff]  ;;  %v292_v8 = vld [vmem:[%s10819_s2 + $0xf0] sm:$0xff] }
   0xd   : > { %v7211_v9 = vand.u32 4294901760, %v298_v6  ;;  %v7213_v10 = vand.u32 4294901760, %v295_v7  ;;  %v7215_v11 = vand.u32 4294901760, %v292_v8  ;;  %v289_v12 = vld [vmem:[%s10819_s2 + $0xd8] sm:$0xff]  ;;  %v286_v13 = vld [vmem:[%s10819_s2 + $0xc0] sm:$0xff]  ;;  %v283_v18 = vld [vmem:[%s10819_s2 + $0xa8] sm:$0xff] }
   0xe   : > { %403 = vmatpush.msra.mxu0 %v7196_v3  ;;  %v7225_v14 = vsub.f32 %v307_v0, %v7196_v3  ;;  %888 = vmatpush.msra.mxu3 %v7196_v3  ;;  %v7229_v15 = vsub.f32 %v304_v1, %v7198_v4  ;;  %v7232_v16 = vsub.f32 %v301_v2, %v7200_v5  ;;  %v7234_v17 = vand.u32 4294901760, %v289_v12  ;;  %p208_p3 = scmp.lt.s32.totalorder %s207_s23, 35  ;;  %v280_v26 = vld [vmem:[%s10819_s2 + $0x90] sm:$0xff]  ;;  %v277_v36 = vld [vmem:[%s10819_s2 + $0x78] sm:$0xff]  ;;  %v274_v43 = vld [vmem:[%s10819_s2 + $0x60] sm:$0xff]  ;;  %s214_s10 = smul.u32 3, %s7182_s16 }
   0xf   : > { %v7242_v19 = vsub.f32 %v298_v6, %v7211_v9  ;;  %v7245_v20 = vsub.f32 %v295_v7, %v7213_v10  ;;  %v7248_v21 = vsub.f32 %v292_v8, %v7215_v11  ;;  %v7255_v25 = vand.u32 4294901760, %v286_v13  ;;  %v271_v47 = vld [vmem:[%s10819_s2 + $0x48] sm:$0xff]  ;;  %v268_v56 = vld [vmem:[%s10819_s2 + $0x30] sm:$0xff]  ;;  %v265_v62 = vld [vmem:[%s10819_s2 + $0x18] sm:$0xff]  ;;  %s7083_s7 = sshll.u32 %s7182_s16, 4 }
  0x10   : > { %405 = vmatpush.msra.mxu0 %v7198_v4  ;;  %750 = vmatpush.msra.mxu2 %v7225_v14  ;;  %v581_v22 = vand.u32 4294901760, %v7225_v14  ;;  %v587_v23 = vand.u32 4294901760, %v7229_v15  ;;  %v593_v24 = vand.u32 4294901760, %v7232_v16  ;;  %s11827_s23 = smov (!%p208_p3, %s207_s23), 35  ;;  %v7267_v28 = vsub.f32 %v289_v12, %v7234_v17  ;;  %v334_v63 = vld [vmem:[%s10819_s2 + $0x240] sm:$0x1] }
  0x11   : > { %890 = vmatpush.msra.mxu3 %v7198_v4  ;;  %v599_v27 = vand.u32 4294901760, %v7242_v19  ;;  %v7269_v29 = vand.u32 4294901760, %v283_v18  ;;  %v605_v33 = vand.u32 4294901760, %v7245_v20  ;;  %v7284_v34 = vand.u32 4294901760, %v280_v26  ;;  %s7087_s14 = sshll.u32 %s11827_s23, 4  ;;  %p215_p4 = scmp.lt.s32.totalorder %s214_s10, 5 }
  0x12   : > { %407 = vmatpush.msra.mxu0 %v7200_v5  ;;  %753 = vmatpush.msra.mxu2 %v7229_v15  ;;  %v582_v30 = vsub.f32 %v7225_v14, %v581_v22  ;;  %v588_v31 = vsub.f32 %v7229_v15, %v587_v23  ;;  %v594_v32 = vsub.f32 %v7232_v16, %v593_v24  ;;  %v611_v35 = vand.u32 4294901760, %v7248_v21  ;;  %s7319_s23 = scalar_lea.vmem %s10817_s0, %s7087_s14  ;;  %p10554_p5 = scmp.lt.s32.totalorder %s7083_s7, 31 }
  0x13   : > { %892 = vmatpush.msra.mxu3 %v7200_v5  ;;  %v600_v39 = vsub.f32 %v7242_v19, %v599_v27  ;;  %v7297_v40 = vsub.f32 %v286_v13, %v7255_v25  ;;  %v7301_v41 = vsub.f32 %v283_v18, %v7269_v29  ;;  %v10831_v42 = vand.u32 4294901760, %v7267_v28  ;;  %v226_v57 = vld [vmem:[%s7319_s23] sm:$0xff]  ;;  %s11829_s10 = smov (!%p215_p4, %s214_s10), 5 }
  0x14   : > { %409 = vmatpush.msra.mxu0 %v7211_v9  ;;  %756 = vmatpush.msra.mxu2 %v7232_v16  ;;  %v583_v37 = vand.u32 4294901760, %v582_v30  ;;  %v589_v38 = vand.u32 4294901760, %v588_v31  ;;  %v595_v44 = vand.u32 4294901760, %v594_v32  ;;  %v606_v45 = vsub.f32 %v7245_v20, %v605_v33  ;;  %v262_v13 = vld [vmem:[%s10819_s2] sm:$0xff]  ;;  %v228_v32 = vld [vmem:[%s7319_s23 + $0x10] sm:$0xff]  ;;  %s7082_s11 = sshll.u32 %s11829_s10, 3 }
  0x15   : > { %894 = vmatpush.msra.mxu3 %v7211_v9  ;;  %v7311_v46 = vand.u32 4294901760, %v277_v36  ;;  %v612_v48 = vsub.f32 %v7248_v21, %v611_v35  ;;  %v7327_v49 = vsub.f32 %v280_v26, %v7284_v34  ;;  %v601_v50 = vand.u32 4294901760, %v600_v39  ;;  %s218_s14 = scalar_lea.vmem %s10818_s1, %s7082_s11  ;;  %s11831_s7 = smov (!%p10554_p5, %s7083_s7), 31 }
  0x16   : > { %411 = vmatpush.msra.mxu0 %v7213_v10  ;;  %584 = vmatpush.msra.mxu1 %v583_v37  ;;  %v7330_v51 = vand.u32 4294901760, %v274_v43  ;;  %v10827_v52 = vand.u32 4294901760, %v7297_v40  ;;  %v618_v53 = vsub.f32 %v7267_v28, %v10831_v42  ;;  %v7338_v54 = vand.u32 4294901760, %v271_v47  ;;  %s7084_s16 = sshll.u32 %s11831_s7, 3 }
  0x17   : > { %759 = vmatpush.msra.mxu2 %v7242_v19  ;;  %896 = vmatpush.msra.mxu3 %v7213_v10  ;;  %v10826_v55 = vand.u32 4294901760, %v7301_v41  ;;  %v607_v58 = vand.u32 4294901760, %v606_v45  ;;  %v7347_v59 = vsub.f32 %v277_v36, %v7311_v46  ;;  %v613_v60 = vand.u32 4294901760, %v612_v48  ;;  %v331_v45 = vld [vmem:[%s10819_s2 + $0x228] sm:$0xff]  ;;  %v236_v19 = vld [vmem:[%s7319_s23 + $0x50] sm:$0xff]  ;;  %s10598_s11 = scalar_lea.vmem %s10821_s4, %s7084_s16 }
  0x18   : > { %413 = vmatpush.msra.mxu0 %v7215_v11  ;;  %590 = vmatpush.msra.mxu1 %v589_v38  ;;  %v10824_v61 = vand.u32 4294901760, %v7327_v49  ;;  %v624_v0 = vsub.f32 %v7297_v40, %v10827_v52  ;;  %v7363_v1 = vsub.f32 %v274_v43, %v7330_v51  ;;  %v7365_v2 = vand.u32 4294901760, %v268_v56 }
  0x19   : > { %762 = vmatpush.msra.mxu2 %v7245_v20  ;;  %898 = vmatpush.msra.mxu3 %v7215_v11  ;;  %v7367_v6 = vand.u32 4294901760, %v226_v57  ;;  %v619_v7 = vand.u32 4294901760, %v618_v53  ;;  %v630_v8 = vsub.f32 %v7301_v41, %v10826_v55  ;;  %v7375_v12 = vsub.f32 %v271_v47, %v7338_v54 }
  0x1a   : > { %415 = vmatpush.msra.mxu0 %v7234_v17  ;;  %596 = vmatpush.msra.mxu1 %v595_v44  ;;  %v7381_v18 = vand.u32 4294901760, %v265_v62  ;;  %v10823_v26 = vand.u32 4294901760, %v7347_v59  ;;  %v394_v31 = vsel %vm392_vm0, %v334_v63, 0  ;;  %v636_v36 = vsub.f32 %v7327_v49, %v10824_v61 }
  0x1b   : > { %765 = vmatpush.msra.mxu2 %v7248_v21  ;;  %900 = vmatpush.msra.mxu3 %v7234_v17  ;;  %11209 = vst [vmem:[#allocation4_spill] sm:$0xff] %v7367_v6  ;;  %v7385_v30 = vsub.f32 %v226_v57, %v7367_v6  ;;  %v7394_v37 = vand.u32 4294901760, %v394_v31  ;;  %v625_v38 = vand.u32 4294901760, %v624_v0  ;;  %v7398_v39 = vsub.f32 %v268_v56, %v7365_v2 }
  0x1c   : > { %417 = vmatpush.msra.mxu0 %v7255_v25  ;;  %602 = vmatpush.msra.mxu1 %v601_v50  ;;  %v7400_v43 = vand.u32 4294901760, %v262_v13  ;;  %v10822_v44 = vand.u32 4294901760, %v7363_v1  ;;  %v631_v47 = vand.u32 4294901760, %v630_v8  ;;  %v7414_v53 = vand.u32 4294901760, %v228_v32 }
  0x1d   : > { %768 = vmatpush.msra.mxu2 %v7267_v28  ;;  %902 = vmatpush.msra.mxu3 %v7255_v25  ;;  %11210 = vst [vmem:[#allocation5_spill] sm:$0xff] %v7385_v30  ;;  %v7409_v48 = vand.u32 4294901760, %v7385_v30  ;;  %v7412_v50 = vsub.f32 %v394_v31, %v7394_v37  ;;  %v642_v56 = vsub.f32 %v7347_v59, %v10823_v26  ;;  %v637_v63 = vand.u32 4294901760, %v636_v36  ;;  %v230_v26 = vld [vmem:[%s7319_s23 + $0x20] sm:$0xff] }
  0x1e   : > { %419 = vmatpush.msra.mxu0 %v7269_v29  ;;  %608 = vmatpush.msra.mxu1 %v607_v58  ;;  %11212 = vst [vmem:[#allocation7_spill] sm:$0xff] %v7414_v53  ;;  %v7421_v57 = vsub.f32 %v265_v62, %v7381_v18  ;;  %v10825_v58 = vand.u32 4294901760, %v7375_v12  ;;  %v648_v0 = vsub.f32 %v7363_v1, %v10822_v44  ;;  %vm5416_vm2 = vcmask 1043456  }
  0x1f   : > { %771 = vmatpush.msra.mxu2 %v7297_v40  ;;  %904 = vmatpush.msra.mxu3 %v7269_v29  ;;  %11211 = vst [vmem:[#allocation6_spill] sm:$0xff] %v7409_v48  ;;  %v7433_v62 = vsub.f32 %v262_v13, %v7400_v43  ;;  %v437_v31 = vsub.f32 %v7385_v30, %v7409_v48  ;;  %v10829_v36 = vand.u32 4294901760, %v7412_v50  ;;  %v643_v13 = vand.u32 4294901760, %v642_v56 }
  0x20   : > { %421 = vmatpush.msra.mxu0 %v7284_v34  ;;  %614 = vmatpush.msra.mxu1 %v613_v60  ;;  %v7424_v60 = vand.u32 4294901760, %v331_v45  ;;  %v10830_v44 = vand.u32 4294901760, %v7421_v57  ;;  %vm5406_vm3 = vcmask 228352   ;;  %vm6262_vm4 = vcmask 1041408  }
  0x21   : > { %774 = vmatpush.msra.mxu2 %v7301_v41  ;;  %906 = vmatpush.msra.mxu3 %v7284_v34  ;;  %v10833_v56 = vand.u32 4294901760, %v7433_v62  ;;  %v1450_v55 = vsub.f32 %v7412_v50, %v10829_v36 }
  0x22   : > { %423 = vmatpush.msra.mxu0 %v7311_v46  ;;  %620 = vmatpush.msra.mxu1 %v619_v7  ;;  %v10828_v7 = vand.u32 4294901760, %v7398_v39  ;;  %v7437_v8 = vsub.f32 %v331_v45, %v7424_v60  ;;  %v654_v45 = vsub.f32 %v7375_v12, %v10825_v58  ;;  %v7463_v58 = vand.u32 4294901760, %v437_v31 }
  0x23   : > { %777 = vmatpush.msra.mxu2 %v7327_v49  ;;  %908 = vmatpush.msra.mxu3 %v7311_v46 }
  0x24   : > { %425 = vmatpush.msra.mxu0 %v7330_v51  ;;  %626 = vmatpush.msra.mxu1 %v625_v38  ;;  %v7445_v38 = vsub.f32 %v228_v32, %v7414_v53  ;;  %v10832_v61 = vand.u32 4294901760, %v7437_v8  ;;  %v649_v32 = vand.u32 4294901760, %v648_v0  ;;  %11214 = vst [vmem:[#allocation9_spill] sm:$0xff] %v7463_v58  ;;  %v655_v0 = vand.u32 4294901760, %v654_v45 }
  0x25   : > { %780 = vmatpush.msra.mxu2 %v7347_v59  ;;  %910 = vmatpush.msra.mxu3 %v7330_v51  ;;  %v1451_v45 = vand.u32 4294901760, %v1450_v55 }
  0x26   : > { %11213 = vst [vmem:[#allocation8_spill] sm:$0xff] %v7445_v38  ;;  %427 = vmatpush.msra.mxu0 %v7338_v54  ;;  %632 = vmatpush.msra.mxu1 %v631_v47  ;;  %v660_v47 = vsub.f32 %v7398_v39, %v10828_v7  ;;  %v7469_v52 = vand.u32 4294901760, %v7445_v38  ;;  %v666_v7 = vsub.f32 %v7421_v57, %v10830_v44 }
  0x27   : > { %783 = vmatpush.msra.mxu2 %v7363_v1  ;;  %912 = vmatpush.msra.mxu3 %v7338_v54  ;;  %v1456_v31 = vsub.f32 %v7437_v8, %v10832_v61 }
  0x28   : > { %429 = vmatpush.msra.mxu0 %v7365_v2  ;;  %638 = vmatpush.msra.mxu1 %v637_v63  ;;  %11215 = vst [vmem:[#allocation10_spill] sm:$0xff] %v7469_v52  ;;  %v7471_v63 = vand.u32 4294901760, %v230_v26  ;;  %v661_v36 = vand.u32 4294901760, %v660_v47  ;;  %v445_v44 = vsub.f32 %v7445_v38, %v7469_v52  ;;  %v232_v47 = vld [vmem:[%s7319_s23 + $0x30] sm:$0xff] }
  0x29   : > { %786 = vmatpush.msra.mxu2 %v7375_v12  ;;  %914 = vmatpush.msra.mxu3 %v7365_v2  ;;  %v1457_v61 = vand.u32 4294901760, %v1456_v31 }
  0x2a   : > { %11216 = vst [vmem:[#allocation11_spill] sm:$0xff] %v7471_v63  ;;  %431 = vmatpush.msra.mxu0 %v7381_v18  ;;  %644 = vmatpush.msra.mxu1 %v643_v13  ;;  %v672_v13 = vsub.f32 %v7433_v62, %v10833_v56  ;;  %v7491_v42 = vsub.f32 %v230_v26, %v7471_v63  ;;  %v328_v56 = vld [vmem:[%s10819_s2 + $0x210] sm:$0xff]  ;;  %v7502_v26 = vand.u32 4294901760, %v445_v44 }
  0x2b   : > { %789 = vmatpush.msra.mxu2 %v7398_v39  ;;  %916 = vmatpush.msra.mxu3 %v7381_v18  ;;  %v7509_v31 = vand.u32 4294901760, %v328_v56 }
  0x2c   : > { %433 = vmatpush.msra.mxu0 %v7400_v43  ;;  %650 = vmatpush.msra.mxu1 %v649_v32  ;;  %11217 = vst [vmem:[#allocation12_spill] sm:$0xff] %v7491_v42  ;;  %v667_v32 = vand.u32 4294901760, %v666_v7  ;;  %v673_v55 = vand.u32 4294901760, %v672_v13  ;;  %v7505_v7 = vand.u32 4294901760, %v7491_v42 }
  0x2d   : > { %792 = vmatpush.msra.mxu2 %v7421_v57  ;;  %439 = vmatmul.f32.vlgmr.msra.gmra.mxu0 %v7463_v58  ;;  %11218 = vst [vmem:[#allocation13_spill] sm:$0xff] %v7502_v26 }
  0x2e   : > { %656 = vmatpush.msra.mxu1 %v655_v0  ;;  %918 = vmatpush.msra.mxu3 %v7400_v43  ;;  %11219 = vst [vmem:[#allocation14_spill] sm:$0xff] %v7505_v7  ;;  %v7507_v0 = vand.u32 4294901760, %v232_v47  ;;  %v453_v44 = vsub.f32 %v7491_v42, %v7505_v7 }
  0x2f   : > { %795 = vmatpush.msra.mxu2 %v7433_v62  ;;  %922 = vmatmul.f32.vlgmr.msra.gmra.mxu3 %v7409_v48 }
  0x30   : > { %798 = vmatmul.f32.vlgmr.msra.gmra.mxu2 %v7385_v30  ;;  %662 = vmatpush.msra.mxu1 %v661_v36  ;;  %11220 = vst [vmem:[#allocation15_spill] sm:$0xff] %v7507_v0  ;;  %v7515_v36 = vsub.f32 %v328_v56, %v7509_v31  ;;  %v7524_v14 = vsub.f32 %v232_v47, %v7507_v0 }
  0x31   : > { %1278 = vmatpush.msrb.mxu2 %v7394_v37  ;;  %1452 = vmatpush.msrb.mxu3 %v1451_v45  ;;  %v11232_v45 = vand.u32 4294901760, %v7301_v41 }
  0x32   : > { %668 = vmatpush.msra.mxu1 %v667_v32  ;;  %1031 = vmatpush.msrb.mxu0 %v581_v22  ;;  %11221 = vst [vmem:[#allocation16_spill] sm:$0xff] %v7524_v14  ;;  %v10837_v22 = vand.u32 4294901760, %v7515_v36 }
  0x33   : > { %1280 = vmatpush.msrb.mxu2 %v7424_v60  ;;  %1458 = vmatpush.msrb.mxu3 %v1457_v61  ;;  %v234_v61 = vld [vmem:[%s7319_s23 + $0x40] sm:$0xff] }
  0x34   : > { %674 = vmatpush.msra.mxu1 %v673_v55  ;;  %1035 = vmatpush.msrb.mxu0 %v587_v23  ;;  %v1462_v15 = vsub.f32 %v7515_v36, %v10837_v22  ;;  %v7538_v23 = vand.u32 4294901760, %v453_v44  ;;  %v7543_v56 = vand.u32 4294901760, %v234_v61  ;;  %v11237_v55 = vand.u32 4294901760, %v7347_v59  ;;  %v250_v22 = vld [vmem:[%s7319_s23 + $0xc0] sm:$0xff] }
  0x35   : > { %447 = vmatmul.f32.gmra.mxu0 %v7502_v26  ;;  %676 = vmatmul.f32.vlgmr.msra.gmra.mxu1 %v7367_v6  ;;  %v11238_v44 = vand.u32 4294901760, %v7363_v1  ;;  %v11240_v59 = vand.u32 4294901760, %v7375_v12 }
  0x36   : > { %1166 = vmatpush.msrb.mxu1 %v7196_v3  ;;  %1282 = vmatpush.msrb.mxu2 %v7509_v31  ;;  %11222 = vst [vmem:[#allocation17_spill] sm:$0xff] %v7538_v23  ;;  %v7541_v3 = vand.u32 4294901760, %v7524_v14  ;;  %v1463_v13 = vand.u32 4294901760, %v1462_v15  ;;  %v7556_v16 = vsub.f32 %v234_v61, %v7543_v56 }
  0x37   : > { %928 = vmatmul.f32.gmra.mxu3 %v7469_v52  ;;  %1039 = vmatpush.msrb.mxu0 %v593_v24  ;;  %11224 = vst [vmem:[#allocation19_spill] sm:$0xff] %v7543_v56  ;;  %v11229_v24 = vand.u32 4294901760, %v7267_v28 }
  0x38   : > { %803 = vmatmul.f32.gmra.mxu2 %v7445_v38  ;;  %1168 = vmatpush.msrb.mxu1 %v7198_v4  ;;  %11223 = vst [vmem:[#allocation18_spill] sm:$0xff] %v7541_v3  ;;  %v461_v4 = vsub.f32 %v7524_v14, %v7541_v3  ;;  %v7571_v20 = vand.u32 4294901760, %v7556_v16 }
  0x39   : > { %1043 = vmatpush.msrb.mxu0 %v599_v27  ;;  %1464 = vmatpush.msrb.mxu3 %v1463_v13  ;;  %11225 = vst [vmem:[#allocation20_spill] sm:$0xff] %v7556_v16  ;;  %v11244_v13 = vand.u32 4294901760, %v7398_v39 }
  0x3a   : > { %1170 = vmatpush.msrb.mxu1 %v7200_v5  ;;  %v325_v5 = vld [vmem:[%s10819_s2 + $0x1f8] sm:$0xff]  ;;  %11227 = vst [vmem:[#allocation22_spill] sm:$0xff] %v7571_v20  ;;  %v469_v28 = vsub.f32 %v7556_v16, %v7571_v20 }
  0x3b   : > { %1047 = vmatpush.msrb.mxu0 %v605_v33  ;;  %v7575_v21 = vand.u32 4294901760, %v325_v5 }
  0x3c   : > { %1172 = vmatpush.msrb.mxu1 %v7211_v9  ;;  %v7568_v9 = vand.u32 4294901760, %v461_v4  ;;  %v7606_v32 = vand.u32 4294901760, %v469_v28 }
  0x3d   : > { %455 = vmatmul.f32.gmra.mxu0 %v7538_v23  ;;  %680 = vmatmul.f32.gmra.mxu1 %v7414_v53  ;;  %v7582_v27 = vsub.f32 %v325_v5, %v7575_v21  ;;  %v242_v5 = vld [vmem:[%s7319_s23 + $0x80] sm:$0xff] }
  0x3e   : > { %1174 = vmatpush.msrb.mxu1 %v7213_v10  ;;  %1051 = vmatpush.msrb.mxu0 %v611_v35  ;;  %11226 = vst [vmem:[#allocation21_spill] sm:$0xff] %v7568_v9  ;;  %v7573_v10 = vand.u32 4294901760, %v236_v19  ;;  %v238_v35 = vld [vmem:[%s7319_s23 + $0x60] sm:$0xff] }
  0x3f   : > { %934 = vmatmul.f32.gmra.mxu3 %v7505_v7  ;;  %1284 = vmatpush.msrb.mxu2 %v7575_v21  ;;  %11234 = vst [vmem:[#allocation25_spill] sm:$0xff] %v7606_v32  ;;  %v7611_v41 = vand.u32 4294901760, %v238_v35 }
  0x40   : > { %808 = vmatmul.f32.gmra.mxu2 %v7491_v42  ;;  %1176 = vmatpush.msrb.mxu1 %v7215_v11  ;;  %11228 = vst [vmem:[#allocation23_spill] sm:$0xff] %v7573_v10  ;;  %v11230_v11 = vand.u32 4294901760, %v7297_v40  ;;  %v7592_v33 = vsub.f32 %v236_v19, %v7573_v10  ;;  %v11233_v40 = vand.u32 4294901760, %v7327_v49 }
  0x41   : > { %1055 = vmatpush.msrb.mxu0 %v11229_v24  ;;  %11236 = vst [vmem:[#allocation27_spill] sm:$0xff] %v7611_v41  ;;  %v7624_v61 = vsub.f32 %v238_v35, %v7611_v41  ;;  %v11247_v24 = vand.u32 4294901760, %v7433_v62 }
  0x42   : > { %1178 = vmatpush.msrb.mxu1 %v7234_v17  ;;  %11231 = vst [vmem:[#allocation24_spill] sm:$0xff] %v7592_v33  ;;  %v10836_v17 = vand.u32 4294901760, %v7582_v27  ;;  %v7609_v47 = vand.u32 4294901760, %v7592_v33 }
  0x43   : > { %1059 = vmatpush.msrb.mxu0 %v11230_v11  ;;  %11239 = vst [vmem:[#allocation28_spill] sm:$0xff] %v7624_v61  ;;  %v7639_v15 = vand.u32 4294901760, %v7624_v61  ;;  %v7679_v11 = vand.u32 4294901760, %v242_v5 }
  0x44   : > { %1180 = vmatpush.msrb.mxu1 %v7255_v25  ;;  %v1468_v25 = vsub.f32 %v7582_v27, %v10836_v17  ;;  %11235 = vst [vmem:[#allocation26_spill] sm:$0xff] %v7609_v47  ;;  %v477_v49 = vsub.f32 %v7592_v33, %v7609_v47 }
  0x45   : > { %463 = vmatmul.f32.gmra.mxu0 %v7568_v9  ;;  %684 = vmatmul.f32.gmra.mxu1 %v7471_v63  ;;  %11242 = vst [vmem:[#allocation30_spill] sm:$0xff] %v7639_v15  ;;  %v485_v39 = vsub.f32 %v7624_v61, %v7639_v15  ;;  %v7690_v35 = vsub.f32 %v242_v5, %v7679_v11 }
  0x46   : > { %1063 = vmatpush.msrb.mxu0 %v11232_v45  ;;  %1182 = vmatpush.msrb.mxu1 %v7269_v29  ;;  %v1469_v29 = vand.u32 4294901760, %v1468_v25  ;;  %v7636_v1 = vand.u32 4294901760, %v477_v49  ;;  %11250 = vst [vmem:[#allocation35_spill] sm:$0xff] %v7679_v11  ;;  %v244_v45 = vld [vmem:[%s7319_s23 + $0x90] sm:$0xff]  ;;  %v319_v25 = vld [vmem:[%s10819_s2 + $0x1c8] sm:$0xff] }
  0x47   : > { %940 = vmatmul.f32.gmra.mxu3 %v7541_v3  ;;  %11251 = vst [vmem:[#allocation36_spill] sm:$0xff] %v7690_v35 }
  0x48   : > { %813 = vmatmul.f32.gmra.mxu2 %v7524_v14  ;;  %1067 = vmatpush.msrb.mxu0 %v11233_v40  ;;  %11241 = vst [vmem:[#allocation29_spill] sm:$0xff] %v7636_v1 }
  0x49   : > { %1184 = vmatpush.msrb.mxu1 %v7284_v34  ;;  %1470 = vmatpush.msrb.mxu3 %v1469_v29  ;;  %v240_v34 = vld [vmem:[%s7319_s23 + $0x70] sm:$0xff]  ;;  %v7704_v29 = vand.u32 4294901760, %v7690_v35 }
  0x4a   : > { %1071 = vmatpush.msrb.mxu0 %v11237_v55  ;;  %v7706_v55 = vand.u32 4294901760, %v244_v45 }
  0x4b   : > { %1186 = vmatpush.msrb.mxu1 %v7311_v46  ;;  %v322_v46 = vld [vmem:[%s10819_s2 + $0x1e0] sm:$0xff]  ;;  %11253 = vst [vmem:[#allocation38_spill] sm:$0xff] %v7704_v29 }
  0x4c   : > { %1075 = vmatpush.msrb.mxu0 %v11238_v44  ;;  %v7643_v12 = vand.u32 4294901760, %v322_v46  ;;  %11254 = vst [vmem:[#allocation39_spill] sm:$0xff] %v7706_v55  ;;  %v7708_v44 = vand.u32 4294901760, %v319_v25 }
  0x4d   : > { %471 = vmatmul.f32.gmra.mxu0 %v7606_v32  ;;  %688 = vmatmul.f32.gmra.mxu1 %v7507_v0 }
  0x4e   : > { %1188 = vmatpush.msrb.mxu1 %v7330_v51  ;;  %1079 = vmatpush.msrb.mxu0 %v11240_v59  ;;  %v7641_v51 = vand.u32 4294901760, %v240_v34  ;;  %v7650_v4 = vsub.f32 %v322_v46, %v7643_v12  ;;  %v7713_v49 = vsub.f32 %v319_v25, %v7708_v44  ;;  %v7721_v59 = vsub.f32 %v244_v45, %v7706_v55  ;;  %v248_v45 = vld [vmem:[%s7319_s23 + $0xb0] sm:$0xff] }
  0x4f   : > { %946 = vmatmul.f32.gmra.mxu3 %v7571_v20  ;;  %1286 = vmatpush.msrb.mxu2 %v7643_v12  ;;  %v316_v25 = vld [vmem:[%s10819_s2 + $0x1b0] sm:$0xff] }
  0x50   : > { %818 = vmatmul.f32.gmra.mxu2 %v7556_v16  ;;  %1190 = vmatpush.msrb.mxu1 %v7338_v54  ;;  %11243 = vst [vmem:[#allocation31_spill] sm:$0xff] %v7641_v51  ;;  %v11245_v54 = vand.u32 4294901760, %v7421_v57  ;;  %v7660_v19 = vsub.f32 %v240_v34, %v7641_v51  ;;  %v7674_v57 = vand.u32 4294901760, %v485_v39  ;;  %v501_v34 = vsub.f32 %v7690_v35, %v7704_v29 }
  0x51   : > { %1083 = vmatpush.msrb.mxu0 %v11244_v13  ;;  %1288 = vmatpush.msrb.mxu2 %v7708_v44  ;;  %11255 = vst [vmem:[#allocation40_spill] sm:$0xff] %v7721_v59  ;;  %v10834_v46 = vand.u32 4294901760, %v7713_v49  ;;  %v246_v13 = vld [vmem:[%s7319_s23 + $0xa0] sm:$0xff]  ;;  %v7734_v5 = vand.u32 4294901760, %v7721_v59 }
  0x52   : > { %1192 = vmatpush.msrb.mxu1 %v7365_v2  ;;  %11246 = vst [vmem:[#allocation32_spill] sm:$0xff] %v7660_v19  ;;  %v10835_v2 = vand.u32 4294901760, %v7650_v4  ;;  %v7677_v62 = vand.u32 4294901760, %v7660_v19  ;;  %v7731_v39 = vand.u32 4294901760, %v501_v34 }
  0x53   : > { %1087 = vmatpush.msrb.mxu0 %v11245_v54  ;;  %11248 = vst [vmem:[#allocation33_spill] sm:$0xff] %v7674_v57  ;;  %v1480_v54 = vsub.f32 %v7713_v49, %v10834_v46  ;;  %v7758_v46 = vand.u32 4294901760, %v316_v25 }
  0x54   : > { %1194 = vmatpush.msrb.mxu1 %v7381_v18  ;;  %v1474_v18 = vsub.f32 %v7650_v4, %v10835_v2  ;;  %11249 = vst [vmem:[#allocation34_spill] sm:$0xff] %v7677_v62  ;;  %v493_v28 = vsub.f32 %v7660_v19, %v7677_v62 }
  0x55   : > { %479 = vmatmul.f32.gmra.mxu0 %v7636_v1  ;;  %692 = vmatmul.f32.gmra.mxu1 %v7543_v56  ;;  %11256 = vst [vmem:[#allocation41_spill] sm:$0xff] %v7731_v39 }
  0x56   : > { %1091 = vmatpush.msrb.mxu0 %v11247_v24  ;;  %1196 = vmatpush.msrb.mxu1 %v7400_v43  ;;  %v1475_v43 = vand.u32 4294901760, %v1474_v18  ;;  %v7701_v40 = vand.u32 4294901760, %v493_v28  ;;  %11257 = vst [vmem:[#allocation42_spill] sm:$0xff] %v7734_v5  ;;  %v7736_v24 = vand.u32 4294901760, %v246_v13  ;;  %v1481_v18 = vand.u32 4294901760, %v1480_v54 }
  0x57   : > { %952 = vmatmul.f32.gmra.mxu3 %v7609_v47  ;;  %1290 = vmatpush.msrb.mxu2 %v7758_v46  ;;  %v11285_v47 = vand.u32 4294901760, %v7515_v36 }
  0x58   : > { %1583 = vmatpush.msra.mxu0 %v7412_v50  ;;  %823 = vmatmul.f32.gmra.mxu2 %v7592_v33  ;;  %11252 = vst [vmem:[#allocation37_spill] sm:$0xff] %v7701_v40  ;;  %v7743_v28 = vsub.f32 %v246_v13, %v7736_v24  ;;  %v7762_v13 = vsub.f32 %v316_v25, %v7758_v46  ;;  %v11281_v33 = vand.u32 4294901760, %v7437_v8 }
  0x59   : > { %1707 = vmatpush.msra.mxu1 %v7394_v37  ;;  %1476 = vmatpush.msrb.mxu3 %v1475_v43  ;;  %11258 = vst [vmem:[#allocation43_spill] sm:$0xff] %v7736_v24  ;;  %v509_v43 = vsub.f32 %v7721_v59, %v7734_v5 }
  0x5a   : > { %1586 = vmatpush.msra.mxu0 %v7437_v8  ;;  %11259 = vst [vmem:[#allocation44_spill] sm:$0xff] %v7743_v28  ;;  %v7754_v54 = vand.u32 4294901760, %v7743_v28  ;;  %v10846_v17 = vand.u32 4294901760, %v7762_v13  ;;  %v11286_v8 = vand.u32 4294901760, %v7582_v27 }
  0x5b   : > { %1709 = vmatpush.msra.mxu1 %v7424_v60  ;;  %1482 = vmatpush.msrb.mxu3 %v1481_v18  ;;  %v7751_v34 = vand.u32 4294901760, %v509_v43  ;;  %v7756_v18 = vand.u32 4294901760, %v248_v45 }
  0x5c   : > { %1589 = vmatpush.msra.mxu0 %v7515_v36  ;;  %11261 = vst [vmem:[#allocation46_spill] sm:$0xff] %v7754_v54  ;;  %v517_v43 = vsub.f32 %v7743_v28, %v7754_v54  ;;  %v1486_v25 = vsub.f32 %v7762_v13, %v10846_v17  ;;  %v11288_v36 = vand.u32 4294901760, %v7650_v4 }
  0x5d   : > { %1711 = vmatpush.msra.mxu1 %v7509_v31  ;;  %487 = vmatmul.f32.gmra.mxu0 %v7674_v57  ;;  %11260 = vst [vmem:[#allocation45_spill] sm:$0xff] %v7751_v34  ;;  %v7770_v2 = vsub.f32 %v248_v45, %v7756_v18  ;;  %v7785_v45 = vand.u32 4294901760, %v250_v22  ;;  %v258_v57 = vld [vmem:[%s7319_s23 + $0x100] sm:$0xff] }
  0x5e   : > { %696 = vmatmul.f32.gmra.mxu1 %v7573_v10  ;;  %1592 = vmatpush.msra.mxu0 %v7582_v27  ;;  %11262 = vst [vmem:[#allocation47_spill] sm:$0xff] %v7756_v18 }
  0x5f   : > { %1713 = vmatpush.msra.mxu1 %v7575_v21  ;;  %958 = vmatmul.f32.gmra.mxu3 %v7639_v15  ;;  %11263 = vst [vmem:[#allocation48_spill] sm:$0xff] %v7770_v2  ;;  %v7792_v17 = vsub.f32 %v250_v22, %v7785_v45 }
  0x60   : > { %828 = vmatmul.f32.gmra.mxu2 %v7624_v61  ;;  %1595 = vmatpush.msra.mxu0 %v7650_v4  ;;  %11266 = vst [vmem:[#allocation51_spill] sm:$0xff] %v7785_v45 }
  0x61   : > { %1715 = vmatpush.msra.mxu1 %v7643_v12  ;;  %11267 = vst [vmem:[#allocation52_spill] sm:$0xff] %v7792_v17 }
  0x62   : > { %1598 = vmatpush.msra.mxu0 %v7713_v49 }
  0x63   : > { %1717 = vmatpush.msra.mxu1 %v7708_v44 }
  0x64   : > { %1601 = vmatpush.msra.mxu0 %v7762_v13 }
  0x65   : > { %495 = vmatmul.f32.gmra.mxu0 %v7701_v40  ;;  %1719 = vmatpush.msra.mxu1 %v7758_v46 }
  0x66   : > { %700 = vmatmul.f32.gmra.mxu1 %v7611_v41 }
  0x67   : > { %964 = vmatmul.f32.gmra.mxu3 %v7677_v62 }
  0x68   : > { %833 = vmatmul.f32.gmra.mxu2 %v7660_v19  ;;  %v254_v19 = vld [vmem:[%s7319_s23 + $0xe0] sm:$0xff] }
  0x6d   : > { %503 = vmatmul.f32.gmra.mxu0 %v7731_v39 }
  0x6e   : > { %704 = vmatmul.f32.gmra.mxu1 %v7641_v51 }
  0x6f   : > { %970 = vmatmul.f32.gmra.mxu3 %v7704_v29  ;;  %v1487_v29 = vand.u32 4294901760, %v1486_v25  ;;  %v7803_v25 = vand.u32 4294901760, %v7792_v17 }
  0x70   : > { %838 = vmatmul.f32.gmra.mxu2 %v7690_v35  ;;  %v7783_v35 = vand.u32 4294901760, %v7770_v2 }
  0x71   : > { %1488 = vmatpush.msrb.mxu3 %v1487_v29  ;;  %v313_v29 = vld [vmem:[%s10819_s2 + $0x198] sm:$0xff]  ;;  %11269 = vst [vmem:[#allocation54_spill] sm:$0xff] %v7803_v25 }
  0x72   : > { %11265 = vst [vmem:[#allocation50_spill] sm:$0xff] %v7783_v35  ;;  %v7807_v39 = vand.u32 4294901760, %v313_v29 }
  0x74   : > { %1292 = vmatpush.msrb.mxu2 %v7807_v39  ;;  %v7811_v22 = vsub.f32 %v313_v29, %v7807_v39  ;;  %1721 = vmatpush.msra.mxu1 %v7807_v39 }
  0x75   : > { %511 = vmatmul.f32.gmra.mxu0 %v7751_v34  ;;  %v7780_v34 = vand.u32 4294901760, %v517_v43 }
  0x76   : > { %708 = vmatmul.f32.gmra.mxu1 %v7679_v11  ;;  %1604 = vmatpush.msra.mxu0 %v7811_v22 }
  0x77   : > { %976 = vmatmul.f32.gmra.mxu3 %v7734_v5  ;;  %11264 = vst [vmem:[#allocation49_spill] sm:$0xff] %v7780_v34  ;;  %v525_v5 = vsub.f32 %v7770_v2, %v7783_v35 }
  0x78   : > { %843 = vmatmul.f32.gmra.mxu2 %v7721_v59  ;;  %v252_v59 = vld [vmem:[%s7319_s23 + $0xd0] sm:$0xff] }
  0x79   : > { %v7800_v43 = vand.u32 4294901760, %v525_v5  ;;  %v533_v5 = vsub.f32 %v7792_v17, %v7803_v25 }
  0x7b   : > { %11268 = vst [vmem:[#allocation53_spill] sm:$0xff] %v7800_v43 }
  0x7d   : > { %519 = vmatmul.f32.gmra.mxu0 %v7780_v34  ;;  %v7805_v34 = vand.u32 4294901760, %v252_v59 }
  0x7e   : > { %712 = vmatmul.f32.gmra.mxu1 %v7706_v55 }
  0x7f   : > { %982 = vmatmul.f32.gmra.mxu3 %v7754_v54  ;;  %11270 = vst [vmem:[#allocation55_spill] sm:$0xff] %v7805_v34  ;;  %v10867_v54 = vand.u32 4294901760, %v7811_v22 }
  0x80   : > { %848 = vmatmul.f32.gmra.mxu2 %v7743_v28  ;;  %v7819_v28 = vsub.f32 %v252_v59, %v7805_v34  ;;  %v7834_v59 = vand.u32 4294901760, %v254_v19 }
  0x81   : > { %v1492_v29 = vsub.f32 %v7811_v22, %v10867_v54 }
  0x82   : > { %11271 = vst [vmem:[#allocation56_spill] sm:$0xff] %v7819_v28  ;;  %v7832_v62 = vand.u32 4294901760, %v7819_v28  ;;  %v7841_v54 = vsub.f32 %v254_v19, %v7834_v59 }
  0x83   : > { %11274 = vst [vmem:[#allocation59_spill] sm:$0xff] %v7834_v59  ;;  %v1493_v40 = vand.u32 4294901760, %v1492_v29 }
  0x84   : > { %11273 = vst [vmem:[#allocation58_spill] sm:$0xff] %v7832_v62  ;;  %v7852_v29 = vand.u32 4294901760, %v7841_v54 }
  0x85   : > { %527 = vmatmul.f32.gmra.mxu0 %v7800_v43  ;;  %v7829_v43 = vand.u32 4294901760, %v533_v5  ;;  %1494 = vmatpush.msrb.mxu3 %v1493_v40  ;;  %11275 = vst [vmem:[#allocation60_spill] sm:$0xff] %v7841_v54  ;;  %v310_v40 = vld [vmem:[%s10819_s2 + $0x180] sm:$0xff] }
  0x86   : > { %716 = vmatmul.f32.gmra.mxu1 %v7736_v24  ;;  %11277 = vst [vmem:[#allocation62_spill] sm:$0xff] %v7852_v29  ;;  %v1293_v61 = vand.u32 4294901760, %v310_v40 }
  0x87   : > { %988 = vmatmul.f32.gmra.mxu3 %v7783_v35  ;;  %11272 = vst [vmem:[#allocation57_spill] sm:$0xff] %v7829_v43  ;;  %v541_v35 = vsub.f32 %v7819_v28, %v7832_v62 }
  0x88   : > { %853 = vmatmul.f32.gmra.mxu2 %v7770_v2  ;;  %v256_v2 = vld [vmem:[%s7319_s23 + $0xf0] sm:$0xff]  ;;  %v1496_v19 = vsub.f32 %v310_v40, %v1293_v61  ;;  %1723 = vmatpush.msra.mxu1 %v1293_v61 }
  0x89   : > { %v7849_v5 = vand.u32 4294901760, %v541_v35  ;;  %1294 = vmatpush.msrb.mxu2 %v1293_v61  ;;  %v549_v35 = vsub.f32 %v7841_v54, %v7852_v29 }
  0x8a   : > { %v1497_v15 = vand.u32 4294901760, %v1496_v19  ;;  %1607 = vmatpush.msra.mxu0 %v1496_v19 }
  0x8b   : > { %11276 = vst [vmem:[#allocation61_spill] sm:$0xff] %v7849_v5 }
  0x8d   : > { %535 = vmatmul.f32.gmra.mxu0 %v7829_v43  ;;  %v7854_v43 = vand.u32 4294901760, %v256_v2 }
  0x8e   : > { %720 = vmatmul.f32.gmra.mxu1 %v7756_v18 }
  0x8f   : > { %994 = vmatmul.f32.gmra.mxu3 %v7803_v25  ;;  %11278 = vst [vmem:[#allocation63_spill] sm:$0xff] %v7854_v43  ;;  %v11279_v25 = vand.u32 4294901760, %v7412_v50  ;;  %v1498_v50 = vsub.f32 %v1496_v19, %v1497_v15 }
  0x90   : > { %858 = vmatmul.f32.gmra.mxu2 %v7792_v17  ;;  %v7863_v17 = vsub.f32 %v256_v2, %v7854_v43 }
  0x91   : > { %1843 = vmatpush.msra.mxu2 %v11279_v25  ;;  %v7870_v25 = vand.u32 4294901760, %v549_v35  ;;  %v1499_v2 = vand.u32 4294901760, %v1498_v50  ;;  %v260_v35 = vld [vmem:[%s7319_s23 + $0x110] sm:$0xff]  ;;  %v227_v50 = vld [vmem:[%s7319_s23 + $0x8] sm:$0xff] }
  0x92   : > { %11280 = vst [vmem:[#allocation64_spill] sm:$0xff] %v7863_v17  ;;  %v7873_v40 = vand.u32 4294901760, %v7863_v17 }
  0x93   : > { %1847 = vmatpush.msra.mxu2 %v11281_v33  ;;  %11282 = vst [vmem:[#allocation65_spill] sm:$0xff] %v7870_v25  ;;  %1500 = vmatpush.msrb.mxu3 %v1499_v2 }
  0x94   : > { %11283 = vst [vmem:[#allocation66_spill] sm:$0xff] %v7873_v40  ;;  %v557_v33 = vsub.f32 %v7863_v17, %v7873_v40 }
  0x95   : > { %543 = vmatmul.f32.gmra.mxu0 %v7849_v5  ;;  %v7875_v5 = vand.u32 4294901760, %v258_v57  ;;  %1851 = vmatpush.msra.mxu2 %v11285_v47  ;;  %v7901_v47 = vand.u32 4294901760, %v260_v35 }
  0x96   : > { %724 = vmatmul.f32.gmra.mxu1 %v7785_v45  ;;  %1957 = vmatpush.msra.mxu3 %v7394_v37  ;;  %v7896_v37 = vand.u32 4294901760, %v557_v33 }
  0x97   : > { %1000 = vmatmul.f32.gmra.mxu3 %v7832_v62  ;;  %11284 = vst [vmem:[#allocation67_spill] sm:$0xff] %v7875_v5  ;;  %1855 = vmatpush.msra.mxu2 %v11286_v8  ;;  %v7887_v19 = vsub.f32 %v258_v57, %v7875_v5  ;;  %v11292_v57 = vand.u32 4294901760, %v7713_v49  ;;  %v7914_v4 = vsub.f32 %v260_v35, %v7901_v47 }
  0x98   : > { %863 = vmatmul.f32.gmra.mxu2 %v7819_v28  ;;  %1959 = vmatpush.msra.mxu3 %v7424_v60  ;;  %11289 = vst [vmem:[#allocation69_spill] sm:$0xff] %v7896_v37  ;;  %v11293_v60 = vand.u32 4294901760, %v7762_v13  ;;  %v339_v13 = vsel %vm337_vm1, %v227_v50, 0 }
  0x99   : > { %11287 = vst [vmem:[#allocation68_spill] sm:$0xff] %v7887_v19  ;;  %1859 = vmatpush.msra.mxu2 %v11288_v36  ;;  %v7899_v27 = vand.u32 4294901760, %v7887_v19  ;;  %v7926_v49 = vand.u32 4294901760, %v7914_v4 }
  0x9a   : > { %1961 = vmatpush.msra.mxu3 %v7509_v31  ;;  %11291 = vst [vmem:[#allocation71_spill] sm:$0xff] %v7901_v47 }
  0x9b   : > { %11290 = vst [vmem:[#allocation70_spill] sm:$0xff] %v7899_v27  ;;  %1863 = vmatpush.msra.mxu2 %v11292_v57  ;;  %v565_v31 = vsub.f32 %v7887_v19, %v7899_v27 }
  0x9c   : > { %1963 = vmatpush.msra.mxu3 %v7575_v21  ;;  %11294 = vst [vmem:[#allocation72_spill] sm:$0xff] %v7914_v4  ;;  %v11295_v21 = vand.u32 4294901760, %v7811_v22  ;;  %v229_v22 = vld [vmem:[%s7319_s23 + $0x18] sm:$0xff] }
  0x9d   : > { %551 = vmatmul.f32.gmra.mxu0 %v7870_v25  ;;  %1867 = vmatpush.msra.mxu2 %v11293_v60  ;;  %11297 = vst [vmem:[#allocation74_spill] sm:$0xff] %v7926_v49 }
  0x9e   : > { %728 = vmatmul.f32.gmra.mxu1 %v7805_v34  ;;  %1965 = vmatpush.msra.mxu3 %v7643_v12  ;;  %v7923_v12 = vand.u32 4294901760, %v565_v31 }
  0x9f   : > { %1006 = vmatmul.f32.gmra.mxu3 %v7852_v29  ;;  %1871 = vmatpush.msra.mxu2 %v11295_v21  ;;  %v231_v21 = vld [vmem:[%s7319_s23 + $0x28] sm:$0xff] }
  0xa0   : > { %868 = vmatmul.f32.gmra.mxu2 %v7841_v54  ;;  %1967 = vmatpush.msra.mxu3 %v7708_v44  ;;  %11296 = vst [vmem:[#allocation73_spill] sm:$0xff] %v7923_v12  ;;  %v7930_v44 = vand.u32 4294901760, %v339_v13 }
  0xa1   : > { %1875 = vmatpush.msra.mxu2 %v1497_v15 }
  0xa2   : > { %1969 = vmatpush.msra.mxu3 %v7758_v46  ;;  %11298 = vst [vmem:[#allocation75_spill] sm:$0xff] %v7930_v44  ;;  %v573_v46 = vsub.f32 %v7914_v4, %v7926_v49  ;;  %v7940_v15 = vsub.f32 %v339_v13, %v7930_v44 }
  0xa4   : > { %1971 = vmatpush.msra.mxu3 %v7807_v39  ;;  %11299 = vst [vmem:[#allocation76_spill] sm:$0xff] %v7940_v15  ;;  %v7942_v39 = vand.u32 4294901760, %v573_v46  ;;  %v7946_v60 = vand.u32 4294901760, %v7940_v15 }
  0xa5   : > { %559 = vmatmul.f32.gmra.mxu0 %v7896_v37 }
  0xa6   : > { %732 = vmatmul.f32.gmra.mxu1 %v7834_v59  ;;  %1973 = vmatpush.msra.mxu3 %v1293_v61  ;;  %11300 = vst [vmem:[#allocation77_spill] sm:$0xff] %v7942_v39  ;;  %v342_v61 = vsel %vm337_vm1, %v229_v22, 0  ;;  %v345_v22 = vsel %vm337_vm1, %v231_v21, 0 }
  0xa7   : > { %1012 = vmatmul.f32.gmra.mxu3 %v7873_v40  ;;  %11301 = vst [vmem:[#allocation78_spill] sm:$0xff] %v7946_v60  ;;  %v7948_v31 = vand.u32 4294901760, %v342_v61 }
  0xa8   : > { %873 = vmatmul.f32.gmra.mxu2 %v7863_v17 }
  0xa9   : > { %11302 = vst [vmem:[#allocation79_spill] sm:$0xff] %v7948_v31  ;;  %v7960_v46 = vsub.f32 %v342_v61, %v7948_v31  ;;  %v233_v61 = vld [vmem:[%s7319_s23 + $0x38] sm:$0xff] }
  0xaa   : > { %v440_v2 = vpop.f32.mrf.mxu0 }
  0xab   : > { %11303 = vst [vmem:[#allocation80_spill] sm:$0xff] %v7960_v46 }
  0xad   : > { %567 = vmatmul.f32.gmra.mxu0 %v7923_v12 }
  0xae   : > { %736 = vmatmul.f32.gmra.mxu1 %v7854_v43 }
  0xaf   : > { %1018 = vmatmul.f32.gmra.mxu3 %v7899_v27 }
  0xb0   : > { %878 = vmatmul.f32.gmra.mxu2 %v7887_v19 }
  0xb2   : > { %v448_v8 = vpop.f32.mrf.mxu0  ;;  %v677_v33 = vpop.f32.mrf.mxu1 }
  0xb3   : > { %v678_v35 = vadd.f32 %v677_v33, %v440_v2  ;;  %v799_v36 = vpop.f32.mrf.mxu2  ;;  %v923_v57 = vpop.f32.mrf.mxu3  ;;  %v1298_v2 = vsub.f32 %v7940_v15, %v7946_v60 }
  0xb5   : > { %v800_v50 = vadd.f32 %v799_v36, %v678_v35  ;;  %575 = vmatmul.f32.gmra.mxu0 %v7942_v39 }
  0xb6   : > { %740 = vmatmul.f32.gmra.mxu1 %v7875_v5 }
  0xb7   : > { %v7953_v13 = vadd.f32 %v923_v57, %v800_v50  ;;  %1024 = vmatmul.f32.gmra.mxu3 %v7926_v49  ;;  %v7963_v57 = vand.u32 4294901760, %v1298_v2  ;;  %v7966_v50 = vand.u32 4294901760, %v7960_v46  ;;  %v7968_v49 = vand.u32 4294901760, %v345_v22 }
  0xb8   : > { %883 = vmatmul.f32.gmra.mxu2 %v7914_v4 }
  0xb9   : > { %11304 = vst [vmem:[#allocation81_spill] sm:$0xff] %v7963_v57  ;;  %v7980_v21 = vsub.f32 %v345_v22, %v7968_v49  ;;  %v235_v22 = vld [vmem:[%s7319_s23 + $0x48] sm:$0xff] }
  0xba   : > { %v456_v33 = vpop.f32.mrf.mxu0  ;;  %v681_v35 = vpop.f32.mrf.mxu1  ;;  %11305 = vst [vmem:[#allocation82_spill] sm:$0xff] %v7966_v50 }
  0xbb   : > { %v682_v36 = vadd.f32 %v681_v35, %v448_v8  ;;  %v804_v39 = vpop.f32.mrf.mxu2  ;;  %v929_v19 = vpop.f32.mrf.mxu3  ;;  %11306 = vst [vmem:[#allocation83_spill] sm:$0xff] %v7968_v49  ;;  %v1306_v8 = vsub.f32 %v7960_v46, %v7966_v50 }
  0xbc   : > { %11307 = vst [vmem:[#allocation84_spill] sm:$0xff] %v7980_v21 }
  0xbd   : > { %v805_v4 = vadd.f32 %v804_v39, %v682_v36  ;;  %1093 = vmatmul.f32.vlgmr.msrb.gmra.mxu0 %v7367_v6  ;;  %v348_v39 = vsel %vm337_vm1, %v233_v61, 0 }
  0xbe   : > { %744 = vmatmul.f32.gmra.mxu1 %v7901_v47  ;;  %v7988_v40 = vand.u32 4294901760, %v348_v39 }
  0xbf   : > { %v7973_v27 = vadd.f32 %v929_v19, %v805_v4  ;;  %1502 = vmatmul.f32.vlgmr.msrb.gmra.mxu3 %v7930_v44  ;;  %v7983_v19 = vand.u32 4294901760, %v1306_v8  ;;  %v7986_v4 = vand.u32 4294901760, %v7980_v21 }
  0xc0   : > { %1300 = vmatmul.f32.vlgmr.msrb.gmra.mxu2 %v7963_v57  ;;  %11310 = vst [vmem:[#allocation87_spill] sm:$0xff] %v7988_v40  ;;  %v8000_v61 = vsub.f32 %v348_v39, %v7988_v40  ;;  %v237_v39 = vld [vmem:[%s7319_s23 + $0x58] sm:$0xff] }
  0xc1   : > { %11308 = vst [vmem:[#allocation85_spill] sm:$0xff] %v7983_v19 }
  0xc2   : > { %v464_v2 = vpop.f32.mrf.mxu0  ;;  %v685_v35 = vpop.f32.mrf.mxu1  ;;  %11309 = vst [vmem:[#allocation86_spill] sm:$0xff] %v7986_v4 }
  0xc3   : > { %v686_v36 = vadd.f32 %v685_v35, %v456_v33  ;;  %v809_v12 = vpop.f32.mrf.mxu2  ;;  %v935_v17 = vpop.f32.mrf.mxu3  ;;  %v1314_v33 = vsub.f32 %v7980_v21, %v7986_v4  ;;  %11311 = vst [vmem:[#allocation88_spill] sm:$0xff] %v8000_v61 }
  0xc5   : > { %v810_v57 = vadd.f32 %v809_v12, %v686_v36  ;;  %1097 = vmatmul.f32.gmra.mxu0 %v7414_v53  ;;  %v351_v12 = vsel %vm337_vm1, %v235_v22, 0 }
  0xc6   : > { %1198 = vmatmul.f32.vlgmr.msrb.gmra.mxu1 %v7367_v6  ;;  %v8008_v25 = vand.u32 4294901760, %v351_v12 }
  0xc7   : > { %v7993_v37 = vadd.f32 %v935_v17, %v810_v57  ;;  %1506 = vmatmul.f32.gmra.mxu3 %v7948_v31  ;;  %v8003_v17 = vand.u32 4294901760, %v1314_v33  ;;  %v8006_v57 = vand.u32 4294901760, %v8000_v61 }
  0xc8   : > { %1308 = vmatmul.f32.gmra.mxu2 %v7983_v19  ;;  %11314 = vst [vmem:[#allocation91_spill] sm:$0xff] %v8008_v25  ;;  %v8020_v22 = vsub.f32 %v351_v12, %v8008_v25  ;;  %v239_v12 = vld [vmem:[%s7319_s23 + $0x68] sm:$0xff] }
  0xc9   : > { %11312 = vst [vmem:[#allocation89_spill] sm:$0xff] %v8003_v17 }
  0xca   : > { %v472_v8 = vpop.f32.mrf.mxu0  ;;  %v689_v35 = vpop.f32.mrf.mxu1  ;;  %11313 = vst [vmem:[#allocation90_spill] sm:$0xff] %v8006_v57 }
  0xcb   : > { %v690_v36 = vadd.f32 %v689_v35, %v464_v2  ;;  %v814_v54 = vpop.f32.mrf.mxu2  ;;  %v941_v29 = vpop.f32.mrf.mxu3  ;;  %v1322_v2 = vsub.f32 %v8000_v61, %v8006_v57  ;;  %11315 = vst [vmem:[#allocation92_spill] sm:$0xff] %v8020_v22 }
  0xcd   : > { %v815_v19 = vadd.f32 %v814_v54, %v690_v36  ;;  %1101 = vmatmul.f32.gmra.mxu0 %v7471_v63  ;;  %v354_v54 = vsel %vm337_vm1, %v237_v39, 0 }
  0xce   : > { %1202 = vmatmul.f32.gmra.mxu1 %v7414_v53  ;;  %v8028_v16 = vand.u32 4294901760, %v354_v54 }
  0xcf   : > { %v8013_v28 = vadd.f32 %v941_v29, %v815_v19  ;;  %1510 = vmatmul.f32.gmra.mxu3 %v7968_v49  ;;  %v8023_v29 = vand.u32 4294901760, %v1322_v2  ;;  %v8026_v19 = vand.u32 4294901760, %v8020_v22 }
  0xd0   : > { %1316 = vmatmul.f32.gmra.mxu2 %v8003_v17  ;;  %11318 = vst [vmem:[#allocation95_spill] sm:$0xff] %v8028_v16  ;;  %v8040_v39 = vsub.f32 %v354_v54, %v8028_v16  ;;  %v241_v54 = vld [vmem:[%s7319_s23 + $0x78] sm:$0xff] }
  0xd1   : > { %11316 = vst [vmem:[#allocation93_spill] sm:$0xff] %v8023_v29 }
  0xd2   : > { %v480_v33 = vpop.f32.mrf.mxu0  ;;  %v693_v35 = vpop.f32.mrf.mxu1  ;;  %11317 = vst [vmem:[#allocation94_spill] sm:$0xff] %v8026_v19 }
  0xd3   : > { %v694_v36 = vadd.f32 %v693_v35, %v472_v8  ;;  %v819_v62 = vpop.f32.mrf.mxu2  ;;  %v947_v1 = vpop.f32.mrf.mxu3  ;;  %v1330_v8 = vsub.f32 %v8020_v22, %v8026_v19  ;;  %11319 = vst [vmem:[#allocation96_spill] sm:$0xff] %v8040_v39 }
  0xd5   : > { %v820_v17 = vadd.f32 %v819_v62, %v694_v36  ;;  %1105 = vmatmul.f32.gmra.mxu0 %v7507_v0  ;;  %v357_v62 = vsel %vm337_vm1, %v239_v12, 0 }
  0xd6   : > { %1206 = vmatmul.f32.gmra.mxu1 %v7471_v63  ;;  %v8048_v3 = vand.u32 4294901760, %v357_v62 }
  0xd7   : > { %v8033_v20 = vadd.f32 %v947_v1, %v820_v17  ;;  %1514 = vmatmul.f32.gmra.mxu3 %v7988_v40  ;;  %v8043_v1 = vand.u32 4294901760, %v1330_v8  ;;  %v8046_v17 = vand.u32 4294901760, %v8040_v39 }
  0xd8   : > { %1324 = vmatmul.f32.gmra.mxu2 %v8023_v29  ;;  %11322 = vst [vmem:[#allocation99_spill] sm:$0xff] %v8048_v3  ;;  %v8060_v12 = vsub.f32 %v357_v62, %v8048_v3  ;;  %v243_v62 = vld [vmem:[%s7319_s23 + $0x88] sm:$0xff] }
  0xd9   : > { %11320 = vst [vmem:[#allocation97_spill] sm:$0xff] %v8043_v1 }
  0xda   : > { %v488_v2 = vpop.f32.mrf.mxu0  ;;  %11321 = vst [vmem:[#allocation98_spill] sm:$0xff] %v8046_v17 }
  0xdb   : > { %v697_v35 = vpop.f32.mrf.mxu1  ;;  %v824_v32 = vpop.f32.mrf.mxu2  ;;  %11323 = vst [vmem:[#allocation100_spill] sm:$0xff] %v8060_v12 }
  0xdc   : > { %v698_v36 = vadd.f32 %v697_v35, %v480_v33  ;;  %v953_v14 = vpop.f32.mrf.mxu3  ;;  %v1338_v33 = vsub.f32 %v8040_v39, %v8046_v17 }
  0xdd   : > { %1109 = vmatmul.f32.gmra.mxu0 %v7543_v56 }
  0xde   : > { %v825_v29 = vadd.f32 %v824_v32, %v698_v36  ;;  %1210 = vmatmul.f32.gmra.mxu1 %v7507_v0  ;;  %v360_v32 = vsel %vm337_vm1, %v241_v54, 0 }
  0xdf   : > { %1518 = vmatmul.f32.gmra.mxu3 %v8008_v25  ;;  %v8068_v42 = vand.u32 4294901760, %v360_v32 }
  0xe0   : > { %v8053_v63 = vadd.f32 %v953_v14, %v825_v29  ;;  %1332 = vmatmul.f32.gmra.mxu2 %v8043_v1  ;;  %v8063_v14 = vand.u32 4294901760, %v1338_v33  ;;  %v8066_v29 = vand.u32 4294901760, %v8060_v12 }
  0xe1   : > { %11326 = vst [vmem:[#allocation103_spill] sm:$0xff] %v8068_v42  ;;  %v8080_v54 = vsub.f32 %v360_v32, %v8068_v42  ;;  %v245_v32 = vld [vmem:[%s7319_s23 + $0x98] sm:$0xff] }
  0xe2   : > { %v496_v8 = vpop.f32.mrf.mxu0  ;;  %11324 = vst [vmem:[#allocation101_spill] sm:$0xff] %v8063_v14 }
  0xe3   : > { %v701_v35 = vpop.f32.mrf.mxu1  ;;  %v829_v0 = vpop.f32.mrf.mxu2  ;;  %11325 = vst [vmem:[#allocation102_spill] sm:$0xff] %v8066_v29 }
  0xe4   : > { %v702_v36 = vadd.f32 %v701_v35, %v488_v2  ;;  %v959_v9 = vpop.f32.mrf.mxu3  ;;  %v1346_v2 = vsub.f32 %v8060_v12, %v8066_v29  ;;  %11327 = vst [vmem:[#allocation104_spill] sm:$0xff] %v8080_v54 }
  0xe5   : > { %1113 = vmatmul.f32.gmra.mxu0 %v7573_v10 }
  0xe6   : > { %v830_v1 = vadd.f32 %v829_v0, %v702_v36  ;;  %1214 = vmatmul.f32.gmra.mxu1 %v7543_v56  ;;  %v363_v0 = vsel %vm337_vm1, %v243_v62, 0 }
  0xe7   : > { %1522 = vmatmul.f32.gmra.mxu3 %v8028_v16  ;;  %v8088_v23 = vand.u32 4294901760, %v363_v0 }
  0xe8   : > { %v8073_v7 = vadd.f32 %v959_v9, %v830_v1  ;;  %1340 = vmatmul.f32.gmra.mxu2 %v8063_v14  ;;  %v8083_v9 = vand.u32 4294901760, %v1346_v2  ;;  %v8086_v1 = vand.u32 4294901760, %v8080_v54 }
  0xe9   : > { %11330 = vst [vmem:[#allocation107_spill] sm:$0xff] %v8088_v23  ;;  %v8100_v62 = vsub.f32 %v363_v0, %v8088_v23  ;;  %v247_v0 = vld [vmem:[%s7319_s23 + $0xa8] sm:$0xff] }
  0xea   : > { %v504_v33 = vpop.f32.mrf.mxu0  ;;  %11328 = vst [vmem:[#allocation105_spill] sm:$0xff] %v8083_v9 }
  0xeb   : > { %v705_v35 = vpop.f32.mrf.mxu1  ;;  %v834_v56 = vpop.f32.mrf.mxu2  ;;  %11329 = vst [vmem:[#allocation106_spill] sm:$0xff] %v8086_v1 }
  0xec   : > { %v706_v36 = vadd.f32 %v705_v35, %v496_v8  ;;  %v965_v53 = vpop.f32.mrf.mxu3  ;;  %v1354_v8 = vsub.f32 %v8080_v54, %v8086_v1  ;;  %11331 = vst [vmem:[#allocation108_spill] sm:$0xff] %v8100_v62 }
  0xed   : > { %1117 = vmatmul.f32.gmra.mxu0 %v7611_v41 }
  0xee   : > { %v835_v14 = vadd.f32 %v834_v56, %v706_v36  ;;  %1218 = vmatmul.f32.gmra.mxu1 %v7573_v10  ;;  %v366_v56 = vsel %vm337_vm1, %v245_v32, 0 }
  0xef   : > { %1526 = vmatmul.f32.gmra.mxu3 %v8048_v3  ;;  %v8108_v6 = vand.u32 4294901760, %v366_v56 }
  0xf0   : > { %v8093_v38 = vadd.f32 %v965_v53, %v835_v14  ;;  %1348 = vmatmul.f32.gmra.mxu2 %v8083_v9  ;;  %v8103_v53 = vand.u32 4294901760, %v1354_v8  ;;  %v8106_v14 = vand.u32 4294901760, %v8100_v62 }
  0xf1   : > { %11334 = vst [vmem:[#allocation111_spill] sm:$0xff] %v8108_v6  ;;  %v8120_v32 = vsub.f32 %v366_v56, %v8108_v6  ;;  %v249_v56 = vld [vmem:[%s7319_s23 + $0xb8] sm:$0xff] }
  0xf2   : > { %v512_v2 = vpop.f32.mrf.mxu0  ;;  %11332 = vst [vmem:[#allocation109_spill] sm:$0xff] %v8103_v53 }
  0xf3   : > { %v709_v35 = vpop.f32.mrf.mxu1  ;;  %v839_v10 = vpop.f32.mrf.mxu2  ;;  %11333 = vst [vmem:[#allocation110_spill] sm:$0xff] %v8106_v14 }
  0xf4   : > { %v710_v36 = vadd.f32 %v709_v35, %v504_v33  ;;  %v971_v52 = vpop.f32.mrf.mxu3  ;;  %v1362_v33 = vsub.f32 %v8100_v62, %v8106_v14  ;;  %11335 = vst [vmem:[#allocation112_spill] sm:$0xff] %v8120_v32 }
  0xf5   : > { %1121 = vmatmul.f32.gmra.mxu0 %v7641_v51 }
  0xf6   : > { %v840_v9 = vadd.f32 %v839_v10, %v710_v36  ;;  %1222 = vmatmul.f32.gmra.mxu1 %v7611_v41  ;;  %v369_v10 = vsel %vm337_vm1, %v247_v0, 0 }
  0xf7   : > { %1530 = vmatmul.f32.gmra.mxu3 %v8068_v42  ;;  %v8128_v48 = vand.u32 4294901760, %v369_v10 }
  0xf8   : > { %v8113_v26 = vadd.f32 %v971_v52, %v840_v9  ;;  %1356 = vmatmul.f32.gmra.mxu2 %v8103_v53  ;;  %v8123_v52 = vand.u32 4294901760, %v1362_v33  ;;  %v8126_v9 = vand.u32 4294901760, %v8120_v32 }
  0xf9   : > { %11338 = vst [vmem:[#allocation115_spill] sm:$0xff] %v8128_v48  ;;  %v8140_v0 = vsub.f32 %v369_v10, %v8128_v48  ;;  %v251_v10 = vld [vmem:[%s7319_s23 + $0xc8] sm:$0xff] }
  0xfa   : > { %v520_v8 = vpop.f32.mrf.mxu0  ;;  %11336 = vst [vmem:[#allocation113_spill] sm:$0xff] %v8123_v52 }
  0xfb   : > { %v713_v35 = vpop.f32.mrf.mxu1  ;;  %v844_v41 = vpop.f32.mrf.mxu2  ;;  %11337 = vst [vmem:[#allocation114_spill] sm:$0xff] %v8126_v9 }
  0xfc   : > { %v714_v36 = vadd.f32 %v713_v35, %v512_v2  ;;  %v977_v30 = vpop.f32.mrf.mxu3  ;;  %v1370_v2 = vsub.f32 %v8120_v32, %v8126_v9  ;;  %11339 = vst [vmem:[#allocation116_spill] sm:$0xff] %v8140_v0 }
  0xfd   : > { %1125 = vmatmul.f32.gmra.mxu0 %v7679_v11 }
  0xfe   : > { %v845_v53 = vadd.f32 %v844_v41, %v714_v36  ;;  %1226 = vmatmul.f32.gmra.mxu1 %v7641_v51  ;;  %v372_v41 = vsel %vm337_vm1, %v249_v56, 0 }
  0xff   : > { %1534 = vmatmul.f32.gmra.mxu3 %v8088_v23  ;;  %v8148_v23 = vand.u32 4294901760, %v372_v41 }
 0x100   : > { %v8133_v58 = vadd.f32 %v977_v30, %v845_v53  ;;  %1364 = vmatmul.f32.gmra.mxu2 %v8123_v52  ;;  %v8143_v30 = vand.u32 4294901760, %v1370_v2  ;;  %v8146_v53 = vand.u32 4294901760, %v8140_v0 }
 0x101   : > { %11342 = vst [vmem:[#allocation119_spill] sm:$0xff] %v8148_v23  ;;  %v8160_v56 = vsub.f32 %v372_v41, %v8148_v23  ;;  %v253_v41 = vld [vmem:[%s7319_s23 + $0xd8] sm:$0xff] }
 0x102   : > { %v528_v33 = vpop.f32.mrf.mxu0  ;;  %11340 = vst [vmem:[#allocation117_spill] sm:$0xff] %v8143_v30 }
 0x103   : > { %v717_v35 = vpop.f32.mrf.mxu1  ;;  %v849_v51 = vpop.f32.mrf.mxu2  ;;  %11341 = vst [vmem:[#allocation118_spill] sm:$0xff] %v8146_v53 }
 0x104   : > { %v718_v36 = vadd.f32 %v717_v35, %v520_v8  ;;  %v983_v14 = vpop.f32.mrf.mxu3  ;;  %v1378_v8 = vsub.f32 %v8140_v0, %v8146_v53  ;;  %11343 = vst [vmem:[#allocation120_spill] sm:$0xff] %v8160_v56 }
 0x105   : > { %1129 = vmatmul.f32.gmra.mxu0 %v7706_v55 }
 0x106   : > { %v850_v52 = vadd.f32 %v849_v51, %v718_v36  ;;  %1230 = vmatmul.f32.gmra.mxu1 %v7679_v11  ;;  %v375_v51 = vsel %vm337_vm1, %v251_v10, 0 }
 0x107   : > { %1538 = vmatmul.f32.gmra.mxu3 %v8108_v6  ;;  %v8168_v6 = vand.u32 4294901760, %v375_v51 }
 0x108   : > { %v8153_v9 = vadd.f32 %v983_v14, %v850_v52  ;;  %1372 = vmatmul.f32.gmra.mxu2 %v8143_v30  ;;  %v8163_v14 = vand.u32 4294901760, %v1378_v8  ;;  %v8166_v52 = vand.u32 4294901760, %v8160_v56 }
 0x109   : > { %11346 = vst [vmem:[#allocation123_spill] sm:$0xff] %v8168_v6  ;;  %v8180_v10 = vsub.f32 %v375_v51, %v8168_v6  ;;  %v255_v51 = vld [vmem:[%s7319_s23 + $0xe8] sm:$0xff] }
 0x10a   : > { %v536_v2 = vpop.f32.mrf.mxu0  ;;  %11344 = vst [vmem:[#allocation121_spill] sm:$0xff] %v8163_v14 }
 0x10b   : > { %v721_v35 = vpop.f32.mrf.mxu1  ;;  %v854_v11 = vpop.f32.mrf.mxu2  ;;  %11345 = vst [vmem:[#allocation122_spill] sm:$0xff] %v8166_v52 }
 0x10c   : > { %v722_v36 = vadd.f32 %v721_v35, %v528_v33  ;;  %v989_v32 = vpop.f32.mrf.mxu3  ;;  %v1386_v33 = vsub.f32 %v8160_v56, %v8166_v52  ;;  %11347 = vst [vmem:[#allocation124_spill] sm:$0xff] %v8180_v10 }
 0x10d   : > { %1133 = vmatmul.f32.gmra.mxu0 %v7736_v24 }
 0x10e   : > { %v855_v30 = vadd.f32 %v854_v11, %v722_v36  ;;  %1234 = vmatmul.f32.gmra.mxu1 %v7706_v55  ;;  %v378_v11 = vsel %vm337_vm1, %v253_v41, 0 }
 0x10f   : > { %1542 = vmatmul.f32.gmra.mxu3 %v8128_v48  ;;  %v8188_v48 = vand.u32 4294901760, %v378_v11 }
 0x110   : > { %v8173_v53 = vadd.f32 %v989_v32, %v855_v30  ;;  %1380 = vmatmul.f32.gmra.mxu2 %v8163_v14  ;;  %v8183_v32 = vand.u32 4294901760, %v1386_v33  ;;  %v8186_v30 = vand.u32 4294901760, %v8180_v10 }
 0x111   : > { %11350 = vst [vmem:[#allocation127_spill] sm:$0xff] %v8188_v48  ;;  %v8200_v41 = vsub.f32 %v378_v11, %v8188_v48  ;;  %v257_v11 = vld [vmem:[%s7319_s23 + $0xf8] sm:$0xff] }
 0x112   : > { %v544_v8 = vpop.f32.mrf.mxu0  ;;  %11348 = vst [vmem:[#allocation125_spill] sm:$0xff] %v8183_v32 }
 0x113   : > { %v725_v35 = vpop.f32.mrf.mxu1  ;;  %v859_v55 = vpop.f32.mrf.mxu2  ;;  %11349 = vst [vmem:[#allocation126_spill] sm:$0xff] %v8186_v30 }
 0x114   : > { %v726_v36 = vadd.f32 %v725_v35, %v536_v2  ;;  %v995_v0 = vpop.f32.mrf.mxu3  ;;  %v1394_v2 = vsub.f32 %v8180_v10, %v8186_v30  ;;  %11351 = vst [vmem:[#allocation128_spill] sm:$0xff] %v8200_v41 }
 0x115   : > { %1137 = vmatmul.f32.gmra.mxu0 %v7756_v18 }
 0x116   : > { %v860_v14 = vadd.f32 %v859_v55, %v726_v36  ;;  %1238 = vmatmul.f32.gmra.mxu1 %v7736_v24  ;;  %v381_v55 = vsel %vm337_vm1, %v255_v51, 0 }
 0x117   : > { %1546 = vmatmul.f32.gmra.mxu3 %v8148_v23  ;;  %v8208_v23 = vand.u32 4294901760, %v381_v55 }
 0x118   : > { %v8193_v52 = vadd.f32 %v995_v0, %v860_v14  ;;  %1388 = vmatmul.f32.gmra.mxu2 %v8183_v32  ;;  %v8203_v0 = vand.u32 4294901760, %v1394_v2  ;;  %v8206_v14 = vand.u32 4294901760, %v8200_v41 }
 0x119   : > { %11354 = vst [vmem:[#allocation131_spill] sm:$0xff] %v8208_v23  ;;  %v8220_v51 = vsub.f32 %v381_v55, %v8208_v23  ;;  %v259_v55 = vld [vmem:[%s7319_s23 + $0x108] sm:$0xff] }
 0x11a   : > { %v552_v33 = vpop.f32.mrf.mxu0  ;;  %11352 = vst [vmem:[#allocation129_spill] sm:$0xff] %v8203_v0 }
 0x11b   : > { %v729_v35 = vpop.f32.mrf.mxu1  ;;  %v864_v24 = vpop.f32.mrf.mxu2  ;;  %11353 = vst [vmem:[#allocation130_spill] sm:$0xff] %v8206_v14 }
 0x11c   : > { %v730_v36 = vadd.f32 %v729_v35, %v544_v8  ;;  %v1001_v56 = vpop.f32.mrf.mxu3  ;;  %v1402_v8 = vsub.f32 %v8200_v41, %v8206_v14  ;;  %11355 = vst [vmem:[#allocation132_spill] sm:$0xff] %v8220_v51 }
 0x11d   : > { %1141 = vmatmul.f32.gmra.mxu0 %v7785_v45 }
 0x11e   : > { %v865_v32 = vadd.f32 %v864_v24, %v730_v36  ;;  %1242 = vmatmul.f32.gmra.mxu1 %v7756_v18  ;;  %v384_v24 = vsel %vm337_vm1, %v257_v11, 0 }
 0x11f   : > { %1550 = vmatmul.f32.gmra.mxu3 %v8168_v6  ;;  %v8228_v6 = vand.u32 4294901760, %v384_v24 }
 0x120   : > { %v8213_v30 = vadd.f32 %v1001_v56, %v865_v32  ;;  %1396 = vmatmul.f32.gmra.mxu2 %v8203_v0  ;;  %v8223_v56 = vand.u32 4294901760, %v1402_v8  ;;  %v8226_v32 = vand.u32 4294901760, %v8220_v51 }
 0x121   : > { %11358 = vst [vmem:[#allocation135_spill] sm:$0xff] %v8228_v6  ;;  %v8240_v11 = vsub.f32 %v384_v24, %v8228_v6  ;;  %v261_v24 = vld [vmem:[%s7319_s23 + $0x118] sm:$0xff] }
 0x122   : > { %v560_v2 = vpop.f32.mrf.mxu0  ;;  %11356 = vst [vmem:[#allocation133_spill] sm:$0xff] %v8223_v56 }
 0x123   : > { %v733_v35 = vpop.f32.mrf.mxu1  ;;  %v869_v18 = vpop.f32.mrf.mxu2  ;;  %11357 = vst [vmem:[#allocation134_spill] sm:$0xff] %v8226_v32 }
 0x124   : > { %v734_v36 = vadd.f32 %v733_v35, %v552_v33  ;;  %v1007_v10 = vpop.f32.mrf.mxu3  ;;  %v1410_v33 = vsub.f32 %v8220_v51, %v8226_v32  ;;  %11359 = vst [vmem:[#allocation136_spill] sm:$0xff] %v8240_v11 }
 0x125   : > { %1145 = vmatmul.f32.gmra.mxu0 %v7805_v34 }
 0x126   : > { %v870_v0 = vadd.f32 %v869_v18, %v734_v36  ;;  %1246 = vmatmul.f32.gmra.mxu1 %v7785_v45  ;;  %v387_v18 = vsel %vm337_vm1, %v259_v55, 0 }
 0x127   : > { %1554 = vmatmul.f32.gmra.mxu3 %v8188_v48  ;;  %v8248_v48 = vand.u32 4294901760, %v387_v18 }
 0x128   : > { %v8233_v14 = vadd.f32 %v1007_v10, %v870_v0  ;;  %1404 = vmatmul.f32.gmra.mxu2 %v8223_v56  ;;  %v8243_v10 = vand.u32 4294901760, %v1410_v33  ;;  %v8246_v0 = vand.u32 4294901760, %v8240_v11  ;;  %v390_v33 = vsel %vm337_vm1, %v261_v24, 0 }
 0x129   : > { %11362 = vst [vmem:[#allocation139_spill] sm:$0xff] %v8248_v48  ;;  %v8260_v55 = vsub.f32 %v387_v18, %v8248_v48  ;;  %v8278_v24 = vand.u32 4294901760, %v390_v33 }
 0x12a   : > { %v568_v8 = vpop.f32.mrf.mxu0  ;;  %11360 = vst [vmem:[#allocation137_spill] sm:$0xff] %v8243_v10 }
 0x12b   : > { %v737_v35 = vpop.f32.mrf.mxu1  ;;  %v874_v45 = vpop.f32.mrf.mxu2  ;;  %11361 = vst [vmem:[#allocation138_spill] sm:$0xff] %v8246_v0 }
 0x12c   : > { %v738_v36 = vadd.f32 %v737_v35, %v560_v2  ;;  %v1013_v41 = vpop.f32.mrf.mxu3  ;;  %v1418_v2 = vsub.f32 %v8240_v11, %v8246_v0  ;;  %11363 = vst [vmem:[#allocation140_spill] sm:$0xff] %v8260_v55  ;;  %v8276_v0 = vand.u32 4294901760, %v8260_v55 }
 0x12d   : > { %1149 = vmatmul.f32.gmra.mxu0 %v7834_v59 }
 0x12e   : > { %v875_v56 = vadd.f32 %v874_v45, %v738_v36  ;;  %1250 = vmatmul.f32.gmra.mxu1 %v7805_v34  ;;  %v308_v45 = vld [vmem:[%s10819_s2 + $0x170] sm:$0xff]  ;;  %v8273_v18 = vand.u32 4294901760, %v1418_v2  ;;  %11366 = vst [vmem:[#allocation143_spill] sm:$0xff] %v8276_v0  ;;  %v1426_v2 = vsub.f32 %v8260_v55, %v8276_v0 }
 0x12f   : > { %1558 = vmatmul.f32.gmra.mxu3 %v8208_v23  ;;  %v8266_v35 = vand.u32 4294901760, %v308_v45 }
 0x130   : > { %v8253_v32 = vadd.f32 %v1013_v41, %v875_v56  ;;  %1412 = vmatmul.f32.gmra.mxu2 %v8243_v10  ;;  %11365 = vst [vmem:[#allocation142_spill] sm:$0xff] %v8273_v18 }
 0x131   : > { %11364 = vst [vmem:[#allocation141_spill] sm:$0xff] %v8266_v35  ;;  %v8269_v10 = vsub.f32 %v308_v45, %v8266_v35  ;;  %2533 = vmatpush.msrb.mxu3 %v8266_v35  ;;  %2048 = vmatpush.msrb.mxu0 %v8266_v35  ;;  %v8290_v45 = vsub.f32 %v390_v33, %v8278_v24  ;;  %v8302_v33 = vand.u32 4294901760, %v1426_v2 }
 0x132   : > { %v576_v41 = vpop.f32.mrf.mxu0 }
 0x133   : > { %v741_v56 = vpop.f32.mrf.mxu1  ;;  %v879_v34 = vpop.f32.mrf.mxu2  ;;  %2395 = vmatpush.msrb.mxu2 %v8269_v10  ;;  %11367 = vst [vmem:[#allocation144_spill] sm:$0xff] %v8290_v45 }
 0x134   : > { %v742_v36 = vadd.f32 %v741_v56, %v568_v8  ;;  %v1019_v23 = vpop.f32.mrf.mxu3  ;;  %11368 = vst [vmem:[#allocation145_spill] sm:$0xff] %v8302_v33 }
 0x135   : > { %1153 = vmatmul.f32.gmra.mxu0 %v7854_v43 }
 0x136   : > { %v880_v11 = vadd.f32 %v879_v34, %v742_v36  ;;  %1254 = vmatmul.f32.gmra.mxu1 %v7834_v59  ;;  %v305_v34 = vld [vmem:[%s10819_s2 + $0x158] sm:$0xff] }
 0x137   : > { %1562 = vmatmul.f32.gmra.mxu3 %v8228_v6  ;;  %v8295_v56 = vand.u32 4294901760, %v305_v34 }
 0x138   : > { %v8283_v8 = vadd.f32 %v1019_v23, %v880_v11  ;;  %1420 = vmatmul.f32.gmra.mxu2 %v8273_v18  ;;  %v8305_v18 = vand.u32 4294901760, %v8290_v45 }
 0x139   : > { %v8298_v6 = vsub.f32 %v305_v34, %v8295_v56  ;;  %2535 = vmatpush.msrb.mxu3 %v8295_v56  ;;  %2050 = vmatpush.msrb.mxu0 %v8295_v56  ;;  %v302_v34 = vld [vmem:[%s10819_s2 + $0x140] sm:$0xff] }
 0x13a   : > { %v1094_v59 = vpop.f32.mrf.mxu0  ;;  %11369 = vst [vmem:[#allocation146_spill] sm:$0xff] %v8305_v18  ;;  %v1434_v2 = vsub.f32 %v8290_v45, %v8305_v18 }
 0x13b   : > { %v745_v36 = vpop.f32.mrf.mxu1  ;;  %v884_v11 = vpop.f32.mrf.mxu2  ;;  %2398 = vmatpush.msrb.mxu2 %v8298_v6 }
 0x13c   : > { %v746_v23 = vadd.f32 %v745_v36, %v576_v41  ;;  %v1025_v35 = vpop.f32.mrf.mxu3  ;;  %v1095_v36 = vadd.f32 %v1094_v59, %v7953_v13 }
 0x13d   : > { %1157 = vmatmul.f32.gmra.mxu0 %v7875_v5 }
 0x13e   : > { %v885_v0 = vadd.f32 %v884_v11, %v746_v23  ;;  %1258 = vmatmul.f32.gmra.mxu1 %v7854_v43  ;;  %v8320_v23 = vand.u32 4294901760, %v302_v34 }
 0x13f   : > { %1566 = vmatmul.f32.gmra.mxu3 %v8248_v48 }
 0x140   : > { %v8310_v41 = vadd.f32 %v1025_v35, %v885_v0  ;;  %1428 = vmatmul.f32.gmra.mxu2 %v8302_v33  ;;  %v8323_v48 = vsub.f32 %v302_v34, %v8320_v23  ;;  %2537 = vmatpush.msrb.mxu3 %v8320_v23  ;;  %v8327_v33 = vand.u32 4294901760, %v1434_v2 }
 0x141   : > { %2052 = vmatpush.msrb.mxu0 %v8320_v23 }
 0x142   : > { %v1098_v11 = vpop.f32.mrf.mxu0  ;;  %11370 = vst [vmem:[#allocation147_spill] sm:$0xff] %v8327_v33  ;;  %2401 = vmatpush.msrb.mxu2 %v8323_v48 }
 0x143   : > { %v1199_v43 = vpop.f32.mrf.mxu1  ;;  %v1301_v0 = vpop.f32.mrf.mxu2  ;;  %v1099_v13 = vadd.f32 %v1098_v11, %v7973_v27  ;;  %v299_v27 = vld [vmem:[%s10819_s2 + $0x128] sm:$0xff]  ;;  %v11074_v11 = vand.u32 4294901760, %v8298_v6 }
 0x144   : > { %v1200_v55 = vadd.f32 %v1199_v43, %v1095_v36  ;;  %v1503_v35 = vpop.f32.mrf.mxu3  ;;  %v11071_v43 = vand.u32 4294901760, %v8269_v10 }
 0x145   : > { %1161 = vmatmul.f32.gmra.mxu0 %v7901_v47 }
 0x146   : > { %v1302_v18 = vadd.f32 %v1301_v0, %v1200_v55  ;;  %1262 = vmatmul.f32.gmra.mxu1 %v7875_v5  ;;  %v2227_v55 = vsub.f32 %v8269_v10, %v11071_v43 }
 0x147   : > { %1570 = vmatmul.f32.gmra.mxu3 %v8278_v24 }
 0x148   : > { %v8332_v59 = vadd.f32 %v1503_v35, %v1302_v18  ;;  %1436 = vmatmul.f32.gmra.mxu2 %v8327_v33  ;;  %v2228_v45 = vand.u32 4294901760, %v2227_v55  ;;  %v11373_v33 = vld [vmem:[#allocation110_spill] sm:$0xff] }
 0x14a   : > { %v1102_v2 = vpop.f32.mrf.mxu0  ;;  %2229 = vmatpush.msrb.mxu1 %v2228_v45  ;;  %v2233_v45 = vsub.f32 %v8298_v6, %v11074_v11 }
 0x14b   : > { %v1203_v34 = vpop.f32.mrf.mxu1  ;;  %v1309_v0 = vpop.f32.mrf.mxu2  ;;  %v1103_v55 = vadd.f32 %v1102_v2, %v7993_v37 }
 0x14c   : > { %v1204_v36 = vadd.f32 %v1203_v34, %v1099_v13  ;;  %v1507_v5 = vpop.f32.mrf.mxu3  ;;  %v8351_v13 = vand.u32 4294901760, %v299_v27 }
 0x14d   : > { %1610 = vmatmul.f32.vlgmr.msra.gmra.mxu0 %v7940_v15  ;;  %v2234_v15 = vand.u32 4294901760, %v2233_v45 }
 0x14e   : > { %v1310_v18 = vadd.f32 %v1309_v0, %v1204_v36  ;;  %1266 = vmatmul.f32.gmra.mxu1 %v7901_v47  ;;  %v8358_v36 = vsub.f32 %v299_v27, %v8351_v13  ;;  %2539 = vmatpush.msrb.mxu3 %v8351_v13  ;;  %v296_v27 = vld [vmem:[%s10819_s2 + $0x110] sm:$0xff] }
 0x14f   : > { %1975 = vmatmul.f32.vlgmr.msra.gmra.mxu3 %v7930_v44  ;;  %2054 = vmatpush.msrb.mxu0 %v8351_v13  ;;  %v8373_v45 = vand.u32 4294901760, %v296_v27 }
 0x150   : > { %v8343_v35 = vadd.f32 %v1507_v5, %v1310_v18  ;;  %1877 = vmatmul.f32.vlgmr.msra.gmra.mxu2 %v7930_v44  ;;  %2235 = vmatpush.msrb.mxu1 %v2234_v15 }
 0x151   : > { %2404 = vmatpush.msrb.mxu2 %v8358_v36  ;;  %2541 = vmatpush.msrb.mxu3 %v8373_v45 }
 0x152   : > { %v1106_v5 = vpop.f32.mrf.mxu0  ;;  %2056 = vmatpush.msrb.mxu0 %v8373_v45 }
 0x153   : > { %v1207_v34 = vpop.f32.mrf.mxu1  ;;  %v1317_v18 = vpop.f32.mrf.mxu2 }
 0x154   : > { %v1208_v0 = vadd.f32 %v1207_v34, %v1103_v55  ;;  %v1511_v43 = vpop.f32.mrf.mxu3  ;;  %v11079_v55 = vand.u32 4294901760, %v8323_v48  ;;  %v1107_v34 = vadd.f32 %v1106_v5, %v8013_v28 }
 0x155   : > { %1615 = vmatmul.f32.gmra.mxu0 %v7960_v46 }
 0x156   : > { %v1318_v37 = vadd.f32 %v1317_v18, %v1208_v0  ;;  %1727 = vmatmul.f32.vlgmr.msra.gmra.mxu1 %v7946_v60  ;;  %v2239_v15 = vsub.f32 %v8323_v48, %v11079_v55  ;;  %v8380_v18 = vsub.f32 %v296_v27, %v8373_v45  ;;  %v293_v27 = vld [vmem:[%s10819_s2 + $0xf8] sm:$0xff] }
 0x157   : > { %1979 = vmatmul.f32.gmra.mxu3 %v7948_v31 }
 0x158   : > { %v8365_v2 = vadd.f32 %v1511_v43, %v1318_v37  ;;  %1881 = vmatmul.f32.gmra.mxu2 %v7948_v31  ;;  %v2240_v46 = vand.u32 4294901760, %v2239_v15  ;;  %v8395_v15 = vand.u32 4294901760, %v293_v27  ;;  %v11386_v31 = vld [vmem:[#allocation127_spill] sm:$0xff] }
 0x159   : > { %2407 = vmatpush.msrb.mxu2 %v8380_v18 }
 0x15a   : > { %v1110_v43 = vpop.f32.mrf.mxu0  ;;  %2241 = vmatpush.msrb.mxu1 %v2240_v46  ;;  %2543 = vmatpush.msrb.mxu3 %v8395_v15 }
 0x15b   : > { %v1211_v0 = vpop.f32.mrf.mxu1  ;;  %v1325_v11 = vpop.f32.mrf.mxu2  ;;  %2058 = vmatpush.msrb.mxu0 %v8395_v15 }
 0x15c   : > { %v1212_v37 = vadd.f32 %v1211_v0, %v1107_v34  ;;  %v1515_v60 = vpop.f32.mrf.mxu3  ;;  %v11084_v34 = vand.u32 4294901760, %v8358_v36 }
 0x15d   : > { %1620 = vmatmul.f32.gmra.mxu0 %v7980_v21 }
 0x15e   : > { %v1326_v28 = vadd.f32 %v1325_v11, %v1212_v37  ;;  %1733 = vmatmul.f32.gmra.mxu1 %v7966_v50  ;;  %v1111_v11 = vadd.f32 %v1110_v43, %v8033_v20  ;;  %v2245_v46 = vsub.f32 %v8358_v36, %v11084_v34  ;;  %v8402_v37 = vsub.f32 %v293_v27, %v8395_v15  ;;  %v290_v27 = vld [vmem:[%s10819_s2 + $0xe0] sm:$0xff] }
 0x15f   : > { %1983 = vmatmul.f32.gmra.mxu3 %v7968_v49 }
 0x160   : > { %v8387_v5 = vadd.f32 %v1515_v60, %v1326_v28  ;;  %1885 = vmatmul.f32.gmra.mxu2 %v7968_v49  ;;  %v2246_v21 = vand.u32 4294901760, %v2245_v46  ;;  %v11089_v46 = vand.u32 4294901760, %v8380_v18  ;;  %v11385_v49 = vld [vmem:[#allocation126_spill] sm:$0xff] }
 0x161   : > { %2410 = vmatpush.msrb.mxu2 %v8402_v37 }
 0x162   : > { %v1114_v60 = vpop.f32.mrf.mxu0  ;;  %2247 = vmatpush.msrb.mxu1 %v2246_v21 }
 0x163   : > { %v1215_v0 = vpop.f32.mrf.mxu1  ;;  %v1333_v55 = vpop.f32.mrf.mxu2 }
 0x164   : > { %v1216_v28 = vadd.f32 %v1215_v0, %v1111_v11  ;;  %v1519_v50 = vpop.f32.mrf.mxu3  ;;  %v8416_v11 = vand.u32 4294901760, %v290_v27 }
 0x165   : > { %1625 = vmatmul.f32.gmra.mxu0 %v8000_v61 }
 0x166   : > { %v1334_v20 = vadd.f32 %v1333_v55, %v1216_v28  ;;  %1739 = vmatmul.f32.gmra.mxu1 %v7986_v4  ;;  %v1115_v55 = vadd.f32 %v1114_v60, %v8053_v63  ;;  %v8421_v21 = vsub.f32 %v290_v27, %v8416_v11  ;;  %2545 = vmatpush.msrb.mxu3 %v8416_v11  ;;  %v287_v27 = vld [vmem:[%s10819_s2 + $0xc8] sm:$0xff] }
 0x167   : > { %1987 = vmatmul.f32.gmra.mxu3 %v7988_v40  ;;  %2060 = vmatpush.msrb.mxu0 %v8416_v11 }
 0x168   : > { %v8409_v43 = vadd.f32 %v1519_v50, %v1334_v20  ;;  %1889 = vmatmul.f32.gmra.mxu2 %v7988_v40  ;;  %v2251_v50 = vsub.f32 %v8380_v18, %v11089_v46  ;;  %v266_v40 = vld [vmem:[%s10819_s2 + $0x20] sm:$0xff] }
 0x169   : > { %2413 = vmatpush.msrb.mxu2 %v8421_v21 }
 0x16a   : > { %v1118_v0 = vpop.f32.mrf.mxu0  ;;  %v2252_v61 = vand.u32 4294901760, %v2251_v50 }
 0x16b   : > { %v1219_v28 = vpop.f32.mrf.mxu1  ;;  %v1341_v34 = vpop.f32.mrf.mxu2 }
 0x16c   : > { %v1220_v20 = vadd.f32 %v1219_v28, %v1115_v55  ;;  %v1523_v4 = vpop.f32.mrf.mxu3  ;;  %2253 = vmatpush.msrb.mxu1 %v2252_v61  ;;  %v8438_v55 = vand.u32 4294901760, %v287_v27  ;;  %v11094_v28 = vand.u32 4294901760, %v8402_v37 }
 0x16d   : > { %1630 = vmatmul.f32.gmra.mxu0 %v8020_v22 }
 0x16e   : > { %v1342_v63 = vadd.f32 %v1341_v34, %v1220_v20  ;;  %1745 = vmatmul.f32.gmra.mxu1 %v8006_v57  ;;  %v1119_v34 = vadd.f32 %v1118_v0, %v8073_v7  ;;  %v8443_v61 = vsub.f32 %v287_v27, %v8438_v55  ;;  %2547 = vmatpush.msrb.mxu3 %v8438_v55  ;;  %v284_v27 = vld [vmem:[%s10819_s2 + $0xb0] sm:$0xff] }
 0x16f   : > { %1991 = vmatmul.f32.gmra.mxu3 %v8008_v25  ;;  %2062 = vmatpush.msrb.mxu0 %v8438_v55 }
 0x170   : > { %v8431_v60 = vadd.f32 %v1523_v4, %v1342_v63  ;;  %1893 = vmatmul.f32.gmra.mxu2 %v8008_v25  ;;  %v2257_v4 = vsub.f32 %v8402_v37, %v11094_v28  ;;  %v11382_v25 = vld [vmem:[#allocation122_spill] sm:$0xff] }
 0x171   : > { %2416 = vmatpush.msrb.mxu2 %v8443_v61 }
 0x172   : > { %v1122_v50 = vpop.f32.mrf.mxu0  ;;  %v2258_v22 = vand.u32 4294901760, %v2257_v4 }
 0x173   : > { %v1223_v20 = vpop.f32.mrf.mxu1  ;;  %v1349_v46 = vpop.f32.mrf.mxu2 }
 0x174   : > { %v1224_v63 = vadd.f32 %v1223_v20, %v1119_v34  ;;  %v1527_v57 = vpop.f32.mrf.mxu3  ;;  %2259 = vmatpush.msrb.mxu1 %v2258_v22  ;;  %v11099_v34 = vand.u32 4294901760, %v8421_v21  ;;  %v1123_v20 = vadd.f32 %v1122_v50, %v8093_v38 }
 0x175   : > { %1635 = vmatmul.f32.gmra.mxu0 %v8040_v39 }
 0x176   : > { %v1350_v7 = vadd.f32 %v1349_v46, %v1224_v63  ;;  %1751 = vmatmul.f32.gmra.mxu1 %v8026_v19  ;;  %v8462_v46 = vand.u32 4294901760, %v284_v27 }
 0x177   : > { %1995 = vmatmul.f32.gmra.mxu3 %v8028_v16 }
 0x178   : > { %v8453_v0 = vadd.f32 %v1527_v57, %v1350_v7  ;;  %1897 = vmatmul.f32.gmra.mxu2 %v8028_v16  ;;  %v2263_v57 = vsub.f32 %v8421_v21, %v11099_v34  ;;  %v8468_v19 = vsub.f32 %v284_v27, %v8462_v46  ;;  %2549 = vmatpush.msrb.mxu3 %v8462_v46  ;;  %v281_v27 = vld [vmem:[%s10819_s2 + $0x98] sm:$0xff] }
 0x179   : > { %2064 = vmatpush.msrb.mxu0 %v8462_v46  ;;  %v269_v16 = vld [vmem:[%s10819_s2 + $0x38] sm:$0xff] }
 0x17a   : > { %v1126_v4 = vpop.f32.mrf.mxu0  ;;  %v2264_v39 = vand.u32 4294901760, %v2263_v57  ;;  %2419 = vmatpush.msrb.mxu2 %v8468_v19 }
 0x17b   : > { %v1227_v63 = vpop.f32.mrf.mxu1  ;;  %v1357_v7 = vpop.f32.mrf.mxu2 }
 0x17c   : > { %v1228_v22 = vadd.f32 %v1227_v63, %v1123_v20  ;;  %v1531_v28 = vpop.f32.mrf.mxu3  ;;  %2265 = vmatpush.msrb.mxu1 %v2264_v39  ;;  %v1127_v20 = vadd.f32 %v1126_v4, %v8113_v26  ;;  %v8483_v63 = vand.u32 4294901760, %v281_v27  ;;  %v11108_v4 = vand.u32 4294901760, %v8443_v61 }
 0x17d   : > { %1640 = vmatmul.f32.gmra.mxu0 %v8060_v12 }
 0x17e   : > { %v1358_v38 = vadd.f32 %v1357_v7, %v1228_v22  ;;  %1757 = vmatmul.f32.gmra.mxu1 %v8046_v17  ;;  %v8486_v39 = vsub.f32 %v281_v27, %v8483_v63  ;;  %2551 = vmatpush.msrb.mxu3 %v8483_v63  ;;  %v2269_v27 = vsub.f32 %v8443_v61, %v11108_v4 }
 0x17f   : > { %1999 = vmatmul.f32.gmra.mxu3 %v8048_v3  ;;  %2066 = vmatpush.msrb.mxu0 %v8483_v63 }
 0x180   : > { %v8475_v50 = vadd.f32 %v1531_v28, %v1358_v38  ;;  %1901 = vmatmul.f32.gmra.mxu2 %v8048_v3  ;;  %v278_v38 = vld [vmem:[%s10819_s2 + $0x80] sm:$0xff]  ;;  %v11379_v3 = vld [vmem:[#allocation118_spill] sm:$0xff] }
 0x181   : > { %2422 = vmatpush.msrb.mxu2 %v8486_v39 }
 0x182   : > { %v1130_v57 = vpop.f32.mrf.mxu0 }
 0x183   : > { %v1231_v22 = vpop.f32.mrf.mxu1  ;;  %v1365_v34 = vpop.f32.mrf.mxu2 }
 0x184   : > { %v1232_v7 = vadd.f32 %v1231_v22, %v1127_v20  ;;  %v1535_v17 = vpop.f32.mrf.mxu3  ;;  %v8505_v20 = vand.u32 4294901760, %v278_v38 }
 0x185   : > { %1645 = vmatmul.f32.gmra.mxu0 %v8080_v54  ;;  %v2270_v54 = vand.u32 4294901760, %v2269_v27  ;;  %v11118_v27 = vand.u32 4294901760, %v8468_v19 }
 0x186   : > { %v1366_v28 = vadd.f32 %v1365_v34, %v1232_v7  ;;  %1763 = vmatmul.f32.gmra.mxu1 %v8066_v29  ;;  %v1131_v34 = vadd.f32 %v1130_v57, %v8133_v58  ;;  %v8508_v12 = vsub.f32 %v278_v38, %v8505_v20  ;;  %2553 = vmatpush.msrb.mxu3 %v8505_v20 }
 0x187   : > { %2003 = vmatmul.f32.gmra.mxu3 %v8068_v42  ;;  %2068 = vmatpush.msrb.mxu0 %v8505_v20 }
 0x188   : > { %v8493_v26 = vadd.f32 %v1535_v17, %v1366_v28  ;;  %1905 = vmatmul.f32.gmra.mxu2 %v8068_v42  ;;  %2271 = vmatpush.msrb.mxu1 %v2270_v54 }
 0x189   : > { %2425 = vmatpush.msrb.mxu2 %v8508_v12 }
 0x18a   : > { %v1134_v17 = vpop.f32.mrf.mxu0 }
 0x18b   : > { %v1235_v22 = vpop.f32.mrf.mxu1  ;;  %v1373_v28 = vpop.f32.mrf.mxu2  ;;  %v1135_v38 = vadd.f32 %v1134_v17, %v8153_v9  ;;  %v275_v9 = vld [vmem:[%s10819_s2 + $0x68] sm:$0xff]  ;;  %v11119_v17 = vand.u32 4294901760, %v8486_v39 }
 0x18c   : > { %v1236_v7 = vadd.f32 %v1235_v22, %v1131_v34  ;;  %v1539_v29 = vpop.f32.mrf.mxu3  ;;  %v11371_v34 = vld [vmem:[#allocation107_spill] sm:$0xff]  ;;  %v2275_v22 = vsub.f32 %v8468_v19, %v11118_v27 }
 0x18d   : > { %1650 = vmatmul.f32.gmra.mxu0 %v8100_v62 }
 0x18e   : > { %v1374_v58 = vadd.f32 %v1373_v28, %v1236_v7  ;;  %1769 = vmatmul.f32.gmra.mxu1 %v8086_v1  ;;  %v2276_v62 = vand.u32 4294901760, %v2275_v22 }
 0x18f   : > { %2007 = vmatmul.f32.gmra.mxu3 %v11371_v34 }
 0x190   : > { %v8515_v57 = vadd.f32 %v1539_v29, %v1374_v58  ;;  %1909 = vmatmul.f32.gmra.mxu2 %v11371_v34  ;;  %v11372_v58 = vld [vmem:[#allocation112_spill] sm:$0xff]  ;;  %2277 = vmatpush.msrb.mxu1 %v2276_v62  ;;  %v11374_v34 = vld [vmem:[#allocation111_spill] sm:$0xff]  ;;  %v2281_v62 = vsub.f32 %v8486_v39, %v11119_v17 }
 0x192   : > { %v1138_v7 = vpop.f32.mrf.mxu0 }
 0x193   : > { %v1239_v28 = vpop.f32.mrf.mxu1  ;;  %v1381_v54 = vpop.f32.mrf.mxu2 }
 0x194   : > { %v1240_v4 = vadd.f32 %v1239_v28, %v1135_v38  ;;  %v1543_v1 = vpop.f32.mrf.mxu3  ;;  %v8534_v38 = vand.u32 4294901760, %v275_v9 }
 0x195   : > { %1655 = vmatmul.f32.gmra.mxu0 %v11372_v58  ;;  %v11376_v58 = vld [vmem:[#allocation114_spill] sm:$0xff] }
 0x196   : > { %v1382_v29 = vadd.f32 %v1381_v54, %v1240_v4  ;;  %1775 = vmatmul.f32.gmra.mxu1 %v11373_v33  ;;  %v1139_v4 = vadd.f32 %v1138_v7, %v8173_v53  ;;  %v8541_v28 = vsub.f32 %v275_v9, %v8534_v38  ;;  %2555 = vmatpush.msrb.mxu3 %v8534_v38  ;;  %v2282_v33 = vand.u32 4294901760, %v2281_v62  ;;  %v11375_v7 = vld [vmem:[#allocation116_spill] sm:$0xff]  ;;  %v11377_v9 = vld [vmem:[#allocation115_spill] sm:$0xff] }
 0x197   : > { %2011 = vmatmul.f32.gmra.mxu3 %v11374_v34  ;;  %2070 = vmatpush.msrb.mxu0 %v8534_v38 }
 0x198   : > { %v8526_v42 = vadd.f32 %v1543_v1, %v1382_v29  ;;  %1913 = vmatmul.f32.gmra.mxu2 %v11374_v34  ;;  %2283 = vmatpush.msrb.mxu1 %v2282_v33  ;;  %v272_v34 = vld [vmem:[%s10819_s2 + $0x50] sm:$0xff] }
 0x199   : > { %2428 = vmatpush.msrb.mxu2 %v8541_v28  ;;  %v8556_v62 = vand.u32 4294901760, %v272_v34 }
 0x19a   : > { %v1142_v1 = vpop.f32.mrf.mxu0 }
 0x19b   : > { %v1243_v22 = vpop.f32.mrf.mxu1  ;;  %v1389_v29 = vpop.f32.mrf.mxu2  ;;  %2557 = vmatpush.msrb.mxu3 %v8556_v62  ;;  %2072 = vmatpush.msrb.mxu0 %v8556_v62 }
 0x19c   : > { %v1244_v54 = vadd.f32 %v1243_v22, %v1139_v4  ;;  %v1547_v27 = vpop.f32.mrf.mxu3  ;;  %v11124_v4 = vand.u32 4294901760, %v8508_v12  ;;  %v1143_v22 = vadd.f32 %v1142_v1, %v8193_v52  ;;  %v11378_v1 = vld [vmem:[#allocation120_spill] sm:$0xff] }
 0x19d   : > { %1660 = vmatmul.f32.gmra.mxu0 %v11375_v7 }
 0x19e   : > { %v1390_v53 = vadd.f32 %v1389_v29, %v1244_v54  ;;  %1781 = vmatmul.f32.gmra.mxu1 %v11376_v58  ;;  %v2287_v33 = vsub.f32 %v8508_v12, %v11124_v4  ;;  %v8563_v29 = vsub.f32 %v272_v34, %v8556_v62  ;;  %v11380_v34 = vld [vmem:[#allocation119_spill] sm:$0xff] }
 0x19f   : > { %2015 = vmatmul.f32.gmra.mxu3 %v11377_v9 }
 0x1a0   : > { %v8548_v17 = vadd.f32 %v1547_v27, %v1390_v53  ;;  %1917 = vmatmul.f32.gmra.mxu2 %v11377_v9  ;;  %v2288_v9 = vand.u32 4294901760, %v2287_v33  ;;  %v8578_v33 = vand.u32 4294901760, %v269_v16 }
 0x1a1   : > { %2431 = vmatpush.msrb.mxu2 %v8563_v29 }
 0x1a2   : > { %v1146_v27 = vpop.f32.mrf.mxu0  ;;  %2289 = vmatpush.msrb.mxu1 %v2288_v9  ;;  %2559 = vmatpush.msrb.mxu3 %v8578_v33 }
 0x1a3   : > { %v1247_v54 = vpop.f32.mrf.mxu1  ;;  %v1397_v58 = vpop.f32.mrf.mxu2  ;;  %2074 = vmatpush.msrb.mxu0 %v8578_v33 }
 0x1a4   : > { %v1248_v53 = vadd.f32 %v1247_v54, %v1143_v22  ;;  %v1551_v7 = vpop.f32.mrf.mxu3  ;;  %v11130_v22 = vand.u32 4294901760, %v8541_v28 }
 0x1a5   : > { %1665 = vmatmul.f32.gmra.mxu0 %v11378_v1 }
 0x1a6   : > { %v1398_v52 = vadd.f32 %v1397_v58, %v1248_v53  ;;  %1787 = vmatmul.f32.gmra.mxu1 %v11379_v3  ;;  %v1147_v58 = vadd.f32 %v1146_v27, %v8213_v30  ;;  %v2293_v9 = vsub.f32 %v8541_v28, %v11130_v22  ;;  %v8585_v53 = vsub.f32 %v269_v16, %v8578_v33  ;;  %v11381_v27 = vld [vmem:[#allocation124_spill] sm:$0xff]  ;;  %v11383_v16 = vld [vmem:[#allocation123_spill] sm:$0xff] }
 0x1a7   : > { %2019 = vmatmul.f32.gmra.mxu3 %v11380_v34 }
 0x1a8   : > { %v8570_v4 = vadd.f32 %v1551_v7, %v1398_v52  ;;  %1921 = vmatmul.f32.gmra.mxu2 %v11380_v34  ;;  %v2294_v34 = vand.u32 4294901760, %v2293_v9  ;;  %v11138_v9 = vand.u32 4294901760, %v8563_v29 }
 0x1a9   : > { %2434 = vmatpush.msrb.mxu2 %v8585_v53 }
 0x1aa   : > { %v1150_v7 = vpop.f32.mrf.mxu0  ;;  %2295 = vmatpush.msrb.mxu1 %v2294_v34 }
 0x1ab   : > { %v1251_v54 = vpop.f32.mrf.mxu1  ;;  %v1405_v3 = vpop.f32.mrf.mxu2 }
 0x1ac   : > { %v1252_v52 = vadd.f32 %v1251_v54, %v1147_v58  ;;  %v1555_v1 = vpop.f32.mrf.mxu3  ;;  %v8599_v58 = vand.u32 4294901760, %v266_v40 }
 0x1ad   : > { %1670 = vmatmul.f32.gmra.mxu0 %v11381_v27 }
 0x1ae   : > { %v1406_v30 = vadd.f32 %v1405_v3, %v1252_v52  ;;  %1793 = vmatmul.f32.gmra.mxu1 %v11382_v25  ;;  %v1151_v3 = vadd.f32 %v1150_v7, %v8233_v14  ;;  %v8604_v34 = vsub.f32 %v266_v40, %v8599_v58  ;;  %2561 = vmatpush.msrb.mxu3 %v8599_v58  ;;  %v11384_v7 = vld [vmem:[#allocation128_spill] sm:$0xff] }
 0x1af   : > { %2023 = vmatmul.f32.gmra.mxu3 %v11383_v16  ;;  %2076 = vmatpush.msrb.mxu0 %v8599_v58 }
 0x1b0   : > { %v8592_v22 = vadd.f32 %v1555_v1, %v1406_v30  ;;  %1925 = vmatmul.f32.gmra.mxu2 %v11383_v16  ;;  %v2299_v1 = vsub.f32 %v8563_v29, %v11138_v9 }
 0x1b1   : > { %2437 = vmatpush.msrb.mxu2 %v8604_v34 }
 0x1b2   : > { %v1154_v54 = vpop.f32.mrf.mxu0  ;;  %v2300_v16 = vand.u32 4294901760, %v2299_v1  ;;  %v263_v1 = vld [vmem:[%s10819_s2 + $0x8] sm:$0xff] }
 0x1b3   : > { %v1255_v52 = vpop.f32.mrf.mxu1  ;;  %v1413_v25 = vpop.f32.mrf.mxu2  ;;  %v1155_v9 = vadd.f32 %v1154_v54, %v8253_v32  ;;  %v8622_v44 = vand.u32 4294901760, %v263_v1 }
 0x1b4   : > { %v1256_v30 = vadd.f32 %v1255_v52, %v1151_v3  ;;  %v1559_v27 = vpop.f32.mrf.mxu3  ;;  %2301 = vmatpush.msrb.mxu1 %v2300_v16 }
 0x1b5   : > { %1675 = vmatmul.f32.gmra.mxu0 %v11384_v7  ;;  %v8628_v32 = vsub.f32 %v263_v1, %v8622_v44  ;;  %2563 = vmatpush.msrb.mxu3 %v8622_v44 }
 0x1b6   : > { %v1414_v14 = vadd.f32 %v1413_v25, %v1256_v30  ;;  %1799 = vmatmul.f32.gmra.mxu1 %v11385_v49  ;;  %2078 = vmatpush.msrb.mxu0 %v8622_v44 }
 0x1b7   : > { %2027 = vmatmul.f32.gmra.mxu3 %v11386_v31  ;;  %2440 = vmatpush.msrb.mxu2 %v8628_v32 }
 0x1b8   : > { %v8614_v40 = vadd.f32 %v1559_v27, %v1414_v14  ;;  %1929 = vmatmul.f32.gmra.mxu2 %v11386_v31  ;;  %v11141_v27 = vand.u32 4294901760, %v8585_v53  ;;  %v11387_v14 = vld [vmem:[#allocation130_spill] sm:$0xff] }
 0x1ba   : > { %v1158_v3 = vpop.f32.mrf.mxu0  ;;  %v2305_v54 = vsub.f32 %v8585_v53, %v11141_v27  ;;  %v11390_v27 = vand.u32 4294901760, %v8269_v10 }
 0x1bb   : > { %v1259_v52 = vpop.f32.mrf.mxu1  ;;  %v1421_v30 = vpop.f32.mrf.mxu2 }
 0x1bc   : > { %v1260_v25 = vadd.f32 %v1259_v52, %v1155_v9  ;;  %v1563_v7 = vpop.f32.mrf.mxu3  ;;  %v11144_v9 = vand.u32 4294901760, %v8604_v34  ;;  %2676 = vmatpush.msra.mxu0 %v11390_v27 }
 0x1bd   : > { %1680 = vmatmul.f32.gmra.mxu0 %v8220_v51  ;;  %v1159_v51 = vadd.f32 %v1158_v3, %v8283_v8 }
 0x1be   : > { %v1422_v16 = vadd.f32 %v1421_v30, %v1260_v25  ;;  %1805 = vmatmul.f32.gmra.mxu1 %v11387_v14  ;;  %v11389_v25 = vld [vmem:[#allocation131_spill] sm:$0xff]  ;;  %v2306_v30 = vand.u32 4294901760, %v2305_v54  ;;  %v2311_v1 = vsub.f32 %v8604_v34, %v11144_v9  ;;  %v11149_v14 = vand.u32 4294901760, %v8628_v32 }
 0x1bf   : > { %2031 = vmatmul.f32.gmra.mxu3 %v11389_v25 }
 0x1c0   : > { %v8636_v52 = vadd.f32 %v1563_v7, %v1422_v16  ;;  %1933 = vmatmul.f32.gmra.mxu2 %v11389_v25  ;;  %2307 = vmatpush.msrb.mxu1 %v2306_v30  ;;  %v335_v7 = vld [vmem:[%s10819_s2 + $0x248] sm:$0x1]  ;;  %v2312_v16 = vand.u32 4294901760, %v2311_v1  ;;  %v2317_v54 = vsub.f32 %v8628_v32, %v11149_v14  ;;  %v11391_v25 = vand.u32 4294901760, %v8298_v6 }
 0x1c1   : > { %v397_v31 = vsel %vm392_vm0, %v335_v7, 0  ;;  %v11392_v1 = vand.u32 4294901760, %v8323_v48  ;;  %v11394_v14 = vld [vmem:[#allocation134_spill] sm:$0xff]  ;;  %v11397_v48 = vand.u32 4294901760, %v8358_v36  ;;  %v11399_v36 = vand.u32 4294901760, %v8402_v37  ;;  %v332_v37 = vld [vmem:[%s10819_s2 + $0x230] sm:$0xff] }
 0x1c2   : > { %11388 = vst [vmem:[#allocation148_spill] sm:$0xff] %v8636_v52  ;;  %v1162_v9 = vpop.f32.mrf.mxu0  ;;  %2680 = vmatpush.msra.mxu0 %v11391_v25  ;;  %v8657_v3 = vand.u32 4294901760, %v397_v31  ;;  %2313 = vmatpush.msrb.mxu1 %v2312_v16  ;;  %v2318_v30 = vand.u32 4294901760, %v2317_v54  ;;  %v11393_v52 = vld [vmem:[#allocation136_spill] sm:$0xff]  ;;  %v11396_v25 = vld [vmem:[#allocation141_spill] sm:$0xff] }
 0x1c3   : > { %v1263_v49 = vpop.f32.mrf.mxu1  ;;  %v1429_v27 = vpop.f32.mrf.mxu2  ;;  %v1163_v16 = vadd.f32 %v1162_v9, %v8310_v41  ;;  %v11400_v9 = vld [vmem:[#allocation140_spill] sm:$0xff] }
 0x1c4   : > { %v1264_v10 = vadd.f32 %v1263_v49, %v1159_v51  ;;  %v1567_v8 = vpop.f32.mrf.mxu3  ;;  %2684 = vmatpush.msra.mxu0 %v11392_v1  ;;  %v8664_v7 = vsub.f32 %v397_v31, %v8657_v3  ;;  %2923 = vmatpush.msra.mxu2 %v8657_v3  ;;  %v11395_v49 = vld [vmem:[#allocation135_spill] sm:$0xff] }
 0x1c5   : > { %1685 = vmatmul.f32.gmra.mxu0 %v11393_v52  ;;  %2319 = vmatpush.msrb.mxu1 %v2318_v30 }
 0x1c6   : > { %v1430_v47 = vadd.f32 %v1429_v27, %v1264_v10  ;;  %1811 = vmatmul.f32.gmra.mxu1 %v11394_v14  ;;  %v11153_v51 = vand.u32 4294901760, %v8664_v7  ;;  %2688 = vmatpush.msra.mxu0 %v11397_v48  ;;  %v11398_v10 = vand.u32 4294901760, %v8380_v18  ;;  %v11402_v18 = vld [vmem:[#allocation139_spill] sm:$0xff]  ;;  %v11403_v48 = vand.u32 4294901760, %v8421_v21 }
 0x1c7   : > { %2035 = vmatmul.f32.gmra.mxu3 %v11395_v49  ;;  %2811 = vmatpush.msra.mxu1 %v11396_v25  ;;  %v11401_v25 = vld [vmem:[#allocation138_spill] sm:$0xff] }
 0x1c8   : > { %v8667_v6 = vadd.f32 %v1567_v8, %v1430_v47  ;;  %1937 = vmatmul.f32.gmra.mxu2 %v11395_v49  ;;  %v3095_v31 = vsub.f32 %v8664_v7, %v11153_v51  ;;  %2692 = vmatpush.msra.mxu0 %v11398_v10  ;;  %v11439_v51 = vld [vmem:[#allocation33_spill] sm:$0xff] }
 0x1c9   : > { %2813 = vmatpush.msra.mxu1 %v8295_v56 }
 0x1ca   : > { %v1611_v54 = vpop.f32.mrf.mxu0  ;;  %v3096_v1 = vand.u32 4294901760, %v3095_v31  ;;  %2696 = vmatpush.msra.mxu0 %v11399_v36  ;;  %v11409_v36 = vand.u32 4294901760, %v8508_v12  ;;  %v11413_v12 = vand.u32 4294901760, %v8563_v29 }
 0x1cb   : > { %v1267_v47 = vpop.f32.mrf.mxu1  ;;  %v1437_v8 = vpop.f32.mrf.mxu2  ;;  %2815 = vmatpush.msra.mxu1 %v8320_v23  ;;  %v1612_v23 = vadd.f32 %v1611_v54, %v8332_v59  ;;  %v11406_v54 = vld [vmem:[#allocation144_spill] sm:$0xff] }
 0x1cc   : > { %v1268_v27 = vadd.f32 %v1267_v47, %v1163_v16  ;;  %v1571_v30 = vpop.f32.mrf.mxu3  ;;  %3097 = vmatpush.msra.mxu3 %v3096_v1  ;;  %2700 = vmatpush.msra.mxu0 %v11403_v48  ;;  %v11404_v16 = vand.u32 4294901760, %v8443_v61  ;;  %v8701_v47 = vand.u32 4294901760, %v332_v37 }
 0x1cd   : > { %1690 = vmatmul.f32.gmra.mxu0 %v11400_v9  ;;  %2817 = vmatpush.msra.mxu1 %v8351_v13 }
 0x1ce   : > { %v1438_v41 = vadd.f32 %v1437_v8, %v1268_v27  ;;  %1817 = vmatmul.f32.gmra.mxu1 %v11401_v25  ;;  %2704 = vmatpush.msra.mxu0 %v11404_v16  ;;  %v8708_v59 = vsub.f32 %v332_v37, %v8701_v47  ;;  %v11407_v8 = vld [vmem:[#allocation143_spill] sm:$0xff]  ;;  %v11410_v16 = vand.u32 4294901760, %v8541_v28 }
 0x1cf   : > { %2039 = vmatmul.f32.gmra.mxu3 %v11402_v18  ;;  %2819 = vmatpush.msra.mxu1 %v8373_v45  ;;  %v11405_v45 = vand.u32 4294901760, %v8468_v19 }
 0x1d0   : > { %v8688_v56 = vadd.f32 %v1571_v30, %v1438_v41  ;;  %1941 = vmatmul.f32.gmra.mxu2 %v11402_v18  ;;  %v11408_v30 = vand.u32 4294901760, %v8486_v39 }
 0x1d1   : > { %2821 = vmatpush.msra.mxu1 %v8395_v15  ;;  %2708 = vmatpush.msra.mxu0 %v11405_v45  ;;  %v11152_v15 = vand.u32 4294901760, %v8708_v59 }
 0x1d2   : > { %v1616_v13 = vpop.f32.mrf.mxu0  ;;  %2925 = vmatpush.msra.mxu2 %v8701_v47 }
 0x1d3   : > { %v1728_v31 = vpop.f32.mrf.mxu1  ;;  %v1878_v10 = vpop.f32.mrf.mxu2  ;;  %2823 = vmatpush.msra.mxu1 %v8416_v11  ;;  %2712 = vmatpush.msra.mxu0 %v11408_v30  ;;  %v3101_v11 = vsub.f32 %v8708_v59, %v11152_v15  ;;  %v1617_v1 = vadd.f32 %v1616_v13, %v8343_v35  ;;  %v11411_v35 = vld [vmem:[#allocation146_spill] sm:$0xff]  ;;  %v11412_v13 = vld [vmem:[#allocation9_spill] sm:$0xff] }
 0x1d4   : > { %v1729_v21 = vadd.f32 %v1728_v31, %v1612_v23  ;;  %v1976_v27 = vpop.f32.mrf.mxu3  ;;  %v11414_v31 = vld [vmem:[#allocation6_spill] sm:$0xff] }
 0x1d5   : > { %1695 = vmatmul.f32.gmra.mxu0 %v11406_v54  ;;  %2825 = vmatpush.msra.mxu1 %v8438_v55  ;;  %v3102_v41 = vand.u32 4294901760, %v3101_v11  ;;  %v11437_v15 = vld [vmem:[#allocation26_spill] sm:$0xff] }
 0x1d6   : > { %v1879_v61 = vadd.f32 %v1878_v10, %v1729_v21  ;;  %1823 = vmatmul.f32.gmra.mxu1 %v11407_v8  ;;  %2716 = vmatpush.msra.mxu0 %v11409_v36  ;;  %v11415_v21 = vld [vmem:[#allocation5_spill] sm:$0xff]  ;;  %v11421_v36 = vld [vmem:[#allocation10_spill] sm:$0xff] }
 0x1d7   : > { %2043 = vmatmul.f32.gmra.mxu3 %v8278_v24  ;;  %2827 = vmatpush.msra.mxu1 %v8462_v46 }
 0x1d8   : > { %v1977_v19 = vadd.f32 %v1976_v27, %v1879_v61  ;;  %1945 = vmatmul.f32.gmra.mxu2 %v8278_v24  ;;  %2720 = vmatpush.msra.mxu0 %v11410_v16  ;;  %v11423_v16 = vld [vmem:[#allocation17_spill] sm:$0xff] }
 0x1d9   : > { %2829 = vmatpush.msra.mxu1 %v8483_v63  ;;  %3103 = vmatpush.msra.mxu3 %v3102_v41 }
 0x1da   : > { %5337 = vst [vmem:[#allocation2 + $0xb0] sm:$0xff] %v1977_v19  ;;  %v1621_v55 = vpop.f32.mrf.mxu0  ;;  %2724 = vmatpush.msra.mxu0 %v11413_v12  ;;  %v11419_v19 = vld [vmem:[#allocation4_spill] sm:$0xff] }
 0x1db   : > { %v1734_v39 = vpop.f32.mrf.mxu1  ;;  %v1882_v23 = vpop.f32.mrf.mxu2  ;;  %2831 = vmatpush.msra.mxu1 %v8505_v20  ;;  %v1622_v28 = vadd.f32 %v1621_v55, %v8365_v2  ;;  %v11416_v20 = vand.u32 4294901760, %v8585_v53  ;;  %v11418_v53 = vld [vmem:[#allocation13_spill] sm:$0xff] }
 0x1dc   : > { %v1735_v48 = vadd.f32 %v1734_v39, %v1617_v1  ;;  %v1980_v37 = vpop.f32.mrf.mxu3 }
 0x1dd   : > { %2084 = vmatmul.f32.vlgmr.msrb.gmra.mxu0 %v11412_v13  ;;  %2833 = vmatpush.msra.mxu1 %v8534_v38  ;;  %v329_v38 = vld [vmem:[%s10819_s2 + $0x218] sm:$0xff] }
 0x1de   : > { %v1883_v46 = vadd.f32 %v1882_v23, %v1735_v48  ;;  %1829 = vmatmul.f32.gmra.mxu1 %v11411_v35  ;;  %2728 = vmatpush.msra.mxu0 %v11416_v20  ;;  %v8745_v30 = vand.u32 4294901760, %v329_v38 }
 0x1df   : > { %2567 = vmatmul.f32.vlgmr.msrb.gmra.mxu3 %v11414_v31  ;;  %2835 = vmatpush.msra.mxu1 %v8556_v62  ;;  %v11417_v62 = vand.u32 4294901760, %v8604_v34 }
 0x1e0   : > { %v1981_v63 = vadd.f32 %v1980_v37, %v1883_v46  ;;  %2443 = vmatmul.f32.vlgmr.msrb.gmra.mxu2 %v11415_v21  ;;  %v8753_v11 = vsub.f32 %v329_v38, %v8745_v30  ;;  %v11424_v46 = vld [vmem:[#allocation7_spill] sm:$0xff] }
 0x1e1   : > { %2837 = vmatpush.msra.mxu1 %v8578_v33  ;;  %2732 = vmatpush.msra.mxu0 %v11417_v62  ;;  %v11420_v33 = vand.u32 4294901760, %v8628_v32 }
 0x1e2   : > { %5340 = vst [vmem:[#allocation2 + $0x48] sm:$0xff] %v1981_v63  ;;  %v1626_v10 = vpop.f32.mrf.mxu0  ;;  %2927 = vmatpush.msra.mxu2 %v8745_v30  ;;  %v11150_v34 = vand.u32 4294901760, %v8753_v11  ;;  %v11425_v63 = vld [vmem:[#allocation14_spill] sm:$0xff] }
 0x1e3   : > { %v1740_v27 = vpop.f32.mrf.mxu1  ;;  %v1886_v45 = vpop.f32.mrf.mxu2  ;;  %2839 = vmatpush.msra.mxu1 %v8599_v58  ;;  %2736 = vmatpush.msra.mxu0 %v11420_v33  ;;  %v11422_v58 = vld [vmem:[#allocation8_spill] sm:$0xff]  ;;  %v1627_v55 = vadd.f32 %v1626_v10, %v8387_v5  ;;  %v326_v10 = vld [vmem:[%s10819_s2 + $0x200] sm:$0xff] }
 0x1e4   : > { %v1741_v29 = vadd.f32 %v1740_v27, %v1622_v28  ;;  %v1984_v61 = vpop.f32.mrf.mxu3  ;;  %v3107_v39 = vsub.f32 %v8753_v11, %v11150_v34  ;;  %v11426_v28 = vld [vmem:[#allocation12_spill] sm:$0xff]  ;;  %v11427_v33 = vld [vmem:[#allocation21_spill] sm:$0xff] }
 0x1e5   : > { %2092 = vmatmul.f32.gmra.mxu0 %v11418_v53  ;;  %2841 = vmatpush.msra.mxu1 %v8622_v44  ;;  %v11434_v34 = vld [vmem:[#allocation20_spill] sm:$0xff] }
 0x1e6   : > { %v1887_v2 = vadd.f32 %v1886_v45, %v1741_v29  ;;  %2321 = vmatmul.f32.vlgmr.msrb.gmra.mxu1 %v11419_v19  ;;  %3228 = vmatpush.msrb.mxu0 %v8664_v7  ;;  %v3108_v37 = vand.u32 4294901760, %v3107_v39  ;;  %v8780_v29 = vand.u32 4294901760, %v326_v10 }
 0x1e7   : > { %2573 = vmatmul.f32.gmra.mxu3 %v11421_v36  ;;  %3352 = vmatpush.msrb.mxu1 %v8657_v3 }
 0x1e8   : > { %v1985_v1 = vadd.f32 %v1984_v61, %v1887_v2  ;;  %2448 = vmatmul.f32.gmra.mxu2 %v11422_v58  ;;  %3231 = vmatpush.msrb.mxu0 %v8708_v59  ;;  %v8784_v2 = vsub.f32 %v326_v10, %v8780_v29  ;;  %v11475_v58 = vld [vmem:[#allocation55_spill] sm:$0xff] }
 0x1e9   : > { %3354 = vmatpush.msrb.mxu1 %v8701_v47  ;;  %3109 = vmatpush.msra.mxu3 %v3108_v37 }
 0x1ea   : > { %5343 = vst [vmem:[#allocation2 + $0x40] sm:$0xff] %v1985_v1  ;;  %v1631_v32 = vpop.f32.mrf.mxu0  ;;  %3234 = vmatpush.msrb.mxu0 %v8753_v11  ;;  %2929 = vmatpush.msra.mxu2 %v8780_v29  ;;  %v11428_v1 = vld [vmem:[#allocation11_spill] sm:$0xff] }
 0x1eb   : > { %v1746_v41 = vpop.f32.mrf.mxu1  ;;  %v1890_v23 = vpop.f32.mrf.mxu2  ;;  %3356 = vmatpush.msrb.mxu1 %v8745_v30  ;;  %v1632_v20 = vadd.f32 %v1631_v32, %v8409_v43  ;;  %v11429_v32 = vld [vmem:[#allocation18_spill] sm:$0xff] }
 0x1ec   : > { %v1747_v48 = vadd.f32 %v1746_v41, %v1627_v55  ;;  %v1988_v44 = vpop.f32.mrf.mxu3  ;;  %v11151_v55 = vand.u32 4294901760, %v8784_v2  ;;  %3237 = vmatpush.msrb.mxu0 %v8784_v2  ;;  %v11430_v41 = vld [vmem:[#allocation16_spill] sm:$0xff] }
 0x1ed   : > { %2100 = vmatmul.f32.gmra.mxu0 %v11423_v16  ;;  %3358 = vmatpush.msrb.mxu1 %v8780_v29  ;;  %v11474_v16 = vld [vmem:[#allocation65_spill] sm:$0xff] }
 0x1ee   : > { %v1891_v5 = vadd.f32 %v1890_v23, %v1747_v48  ;;  %2325 = vmatmul.f32.gmra.mxu1 %v11424_v46  ;;  %v3113_v48 = vsub.f32 %v8784_v2, %v11151_v55 }
 0x1ef   : > { %2579 = vmatmul.f32.gmra.mxu3 %v11425_v63  ;;  %v11473_v63 = vand.u32 4294901760, %v8708_v59  ;;  %v11479_v59 = vand.u32 4294901760, %v8784_v2 }
 0x1f0   : > { %v1989_v12 = vadd.f32 %v1988_v44, %v1891_v5  ;;  %2453 = vmatmul.f32.gmra.mxu2 %v11426_v28  ;;  %v3114_v5 = vand.u32 4294901760, %v3113_v48  ;;  %v11462_v28 = vld [vmem:[#allocation48_spill] sm:$0xff] }
 0x1f2   : > { %5346 = vst [vmem:[#allocation2 + $0x110] sm:$0xff] %v1989_v12  ;;  %v1636_v27 = vpop.f32.mrf.mxu0  ;;  %3115 = vmatpush.msra.mxu3 %v3114_v5  ;;  %v11435_v5 = vld [vmem:[#allocation29_spill] sm:$0xff] }
 0x1f3   : > { %v1752_v38 = vpop.f32.mrf.mxu1  ;;  %v1894_v61 = vpop.f32.mrf.mxu2  ;;  %v1637_v23 = vadd.f32 %v1636_v27, %v8431_v60 }
 0x1f4   : > { %v1753_v45 = vadd.f32 %v1752_v38, %v1632_v20  ;;  %v1992_v62 = vpop.f32.mrf.mxu3 }
 0x1f5   : > { %2108 = vmatmul.f32.gmra.mxu0 %v11427_v33 }
 0x1f6   : > { %v1895_v43 = vadd.f32 %v1894_v61, %v1753_v45  ;;  %2329 = vmatmul.f32.gmra.mxu1 %v11428_v1  ;;  %v11431_v45 = vld [vmem:[#allocation25_spill] sm:$0xff]  ;;  %v11432_v61 = vld [vmem:[#allocation15_spill] sm:$0xff] }
 0x1f7   : > { %2585 = vmatmul.f32.gmra.mxu3 %v11429_v32  ;;  %v11454_v32 = vld [vmem:[#allocation40_spill] sm:$0xff] }
 0x1f8   : > { %v1993_v39 = vadd.f32 %v1992_v62, %v1895_v43  ;;  %2458 = vmatmul.f32.gmra.mxu2 %v11430_v41  ;;  %v11433_v43 = vld [vmem:[#allocation22_spill] sm:$0xff] }
 0x1fa   : > { %5349 = vst [vmem:[#allocation2 + $0x148] sm:$0xff] %v1993_v39  ;;  %v1641_v44 = vpop.f32.mrf.mxu0 }
 0x1fb   : > { %v1758_v37 = vpop.f32.mrf.mxu1  ;;  %v1898_v20 = vpop.f32.mrf.mxu2  ;;  %v1642_v60 = vadd.f32 %v1641_v44, %v8453_v0  ;;  %v323_v0 = vld [vmem:[%s10819_s2 + $0x1e8] sm:$0xff] }
 0x1fc   : > { %v1759_v12 = vadd.f32 %v1758_v37, %v1637_v23  ;;  %v1996_v10 = vpop.f32.mrf.mxu3 }
 0x1fd   : > { %2116 = vmatmul.f32.gmra.mxu0 %v11431_v45  ;;  %v11445_v45 = vld [vmem:[#allocation34_spill] sm:$0xff] }
 0x1fe   : > { %v1899_v38 = vadd.f32 %v1898_v20, %v1759_v12  ;;  %2333 = vmatmul.f32.gmra.mxu1 %v11432_v61  ;;  %v11436_v12 = vld [vmem:[#allocation19_spill] sm:$0xff] }
 0x1ff   : > { %2591 = vmatmul.f32.gmra.mxu3 %v11433_v43 }
 0x200   : > { %v1997_v62 = vadd.f32 %v1996_v10, %v1899_v38  ;;  %2463 = vmatmul.f32.gmra.mxu2 %v11434_v34  ;;  %v11438_v10 = vld [vmem:[#allocation24_spill] sm:$0xff]  ;;  %v8810_v38 = vand.u32 4294901760, %v323_v0 }
 0x202   : > { %5352 = vst [vmem:[#allocation2 + $0xd8] sm:$0xff] %v1997_v62  ;;  %v1646_v27 = vpop.f32.mrf.mxu0  ;;  %2931 = vmatpush.msra.mxu2 %v8810_v38  ;;  %3360 = vmatpush.msrb.mxu1 %v8810_v38 }
 0x203   : > { %v1764_v39 = vpop.f32.mrf.mxu1  ;;  %v1902_v23 = vpop.f32.mrf.mxu2  ;;  %v1647_v44 = vadd.f32 %v1646_v27, %v8475_v50 }
 0x204   : > { %v1765_v48 = vadd.f32 %v1764_v39, %v1642_v60  ;;  %v2000_v37 = vpop.f32.mrf.mxu3 }
 0x205   : > { %2124 = vmatmul.f32.gmra.mxu0 %v11435_v5 }
 0x206   : > { %v1903_v55 = vadd.f32 %v1902_v23, %v1765_v48  ;;  %2337 = vmatmul.f32.gmra.mxu1 %v11436_v12 }
 0x207   : > { %2597 = vmatmul.f32.gmra.mxu3 %v11437_v15 }
 0x208   : > { %v2001_v20 = vadd.f32 %v2000_v37, %v1903_v55  ;;  %2468 = vmatmul.f32.gmra.mxu2 %v11438_v10  ;;  %v8814_v55 = vsub.f32 %v323_v0, %v8810_v38  ;;  %v11440_v10 = vld [vmem:[#allocation23_spill] sm:$0xff]  ;;  %v11442_v0 = vld [vmem:[#allocation28_spill] sm:$0xff] }
 0x20a   : > { %5355 = vst [vmem:[#allocation2 + $0x138] sm:$0xff] %v2001_v20  ;;  %v1651_v62 = vpop.f32.mrf.mxu0  ;;  %v11154_v50 = vand.u32 4294901760, %v8814_v55  ;;  %3240 = vmatpush.msrb.mxu0 %v8814_v55  ;;  %v11441_v20 = vld [vmem:[#allocation30_spill] sm:$0xff] }
 0x20b   : > { %v1770_v60 = vpop.f32.mrf.mxu1  ;;  %v1906_v48 = vpop.f32.mrf.mxu2 }
 0x20c   : > { %v1771_v39 = vadd.f32 %v1770_v60, %v1647_v44  ;;  %v2004_v23 = vpop.f32.mrf.mxu3  ;;  %v3119_v44 = vsub.f32 %v8814_v55, %v11154_v50  ;;  %v1652_v60 = vadd.f32 %v1651_v62, %v8493_v26  ;;  %v11446_v50 = vld [vmem:[#allocation32_spill] sm:$0xff] }
 0x20d   : > { %2132 = vmatmul.f32.gmra.mxu0 %v11439_v51 }
 0x20e   : > { %v1907_v37 = vadd.f32 %v1906_v48, %v1771_v39  ;;  %2341 = vmatmul.f32.gmra.mxu1 %v11440_v10  ;;  %v3120_v39 = vand.u32 4294901760, %v3119_v44 }
 0x20f   : > { %2603 = vmatmul.f32.gmra.mxu3 %v11441_v20 }
 0x210   : > { %v2005_v27 = vadd.f32 %v2004_v23, %v1907_v37  ;;  %2473 = vmatmul.f32.gmra.mxu2 %v11442_v0  ;;  %3121 = vmatpush.msra.mxu3 %v3120_v39  ;;  %v11443_v23 = vld [vmem:[#allocation37_spill] sm:$0xff]  ;;  %v11444_v37 = vld [vmem:[#allocation27_spill] sm:$0xff] }
 0x212   : > { %5358 = vst [vmem:[#allocation2 + $0x158] sm:$0xff] %v2005_v27  ;;  %v1656_v48 = vpop.f32.mrf.mxu0 }
 0x213   : > { %v1776_v51 = vpop.f32.mrf.mxu1  ;;  %v1910_v5 = vpop.f32.mrf.mxu2  ;;  %v1657_v26 = vadd.f32 %v1656_v48, %v8515_v57 }
 0x214   : > { %v1777_v15 = vadd.f32 %v1776_v51, %v1652_v60  ;;  %v2008_v34 = vpop.f32.mrf.mxu3  ;;  %v320_v51 = vld [vmem:[%s10819_s2 + $0x1d0] sm:$0xff] }
 0x215   : > { %2140 = vmatmul.f32.gmra.mxu0 %v11443_v23  ;;  %v8835_v44 = vand.u32 4294901760, %v320_v51 }
 0x216   : > { %v1911_v43 = vadd.f32 %v1910_v5, %v1777_v15  ;;  %2345 = vmatmul.f32.gmra.mxu1 %v11444_v37 }
 0x217   : > { %2609 = vmatmul.f32.gmra.mxu3 %v11445_v45  ;;  %2933 = vmatpush.msra.mxu2 %v8835_v44 }
 0x218   : > { %v2009_v20 = vadd.f32 %v2008_v34, %v1911_v43  ;;  %2478 = vmatmul.f32.gmra.mxu2 %v11446_v50  ;;  %v8839_v34 = vsub.f32 %v320_v51, %v8835_v44  ;;  %3362 = vmatpush.msrb.mxu1 %v8835_v44  ;;  %v11447_v43 = vld [vmem:[#allocation41_spill] sm:$0xff] }
 0x21a   : > { %5361 = vst [vmem:[#allocation2 + $0x80] sm:$0xff] %v2009_v20  ;;  %v1661_v62 = vpop.f32.mrf.mxu0  ;;  %v11448_v20 = vld [vmem:[#allocation31_spill] sm:$0xff]  ;;  %v11155_v39 = vand.u32 4294901760, %v8839_v34  ;;  %3243 = vmatpush.msrb.mxu0 %v8839_v34 }
 0x21b   : > { %v1782_v27 = vpop.f32.mrf.mxu1  ;;  %v1914_v5 = vpop.f32.mrf.mxu2  ;;  %v1662_v50 = vadd.f32 %v1661_v62, %v8526_v42 }
 0x21c   : > { %v1783_v15 = vadd.f32 %v1782_v27, %v1657_v26  ;;  %v2012_v60 = vpop.f32.mrf.mxu3  ;;  %v11449_v26 = vld [vmem:[#allocation38_spill] sm:$0xff]  ;;  %v11450_v27 = vld [vmem:[#allocation36_spill] sm:$0xff]  ;;  %v3125_v51 = vsub.f32 %v8839_v34, %v11155_v39 }
 0x21d   : > { %2148 = vmatmul.f32.gmra.mxu0 %v11447_v43 }
 0x21e   : > { %v1915_v57 = vadd.f32 %v1914_v5, %v1783_v15  ;;  %2349 = vmatmul.f32.gmra.mxu1 %v11448_v20  ;;  %v3126_v43 = vand.u32 4294901760, %v3125_v51 }
 0x21f   : > { %2615 = vmatmul.f32.gmra.mxu3 %v11449_v26  ;;  %v11453_v26 = vld [vmem:[#allocation42_spill] sm:$0xff] }
 0x220   : > { %v2013_v48 = vadd.f32 %v2012_v60, %v1915_v57  ;;  %2483 = vmatmul.f32.gmra.mxu2 %v11450_v27  ;;  %3127 = vmatpush.msra.mxu3 %v3126_v43  ;;  %v11451_v60 = vld [vmem:[#allocation45_spill] sm:$0xff]  ;;  %v11452_v57 = vld [vmem:[#allocation35_spill] sm:$0xff] }
 0x222   : > { %5364 = vst [vmem:[#allocation2] sm:$0xff] %v2013_v48  ;;  %v1666_v15 = vpop.f32.mrf.mxu0 }
 0x223   : > { %v1788_v5 = vpop.f32.mrf.mxu1  ;;  %v1918_v23 = vpop.f32.mrf.mxu2  ;;  %v1667_v42 = vadd.f32 %v1666_v15, %v8548_v17 }
 0x224   : > { %v1789_v45 = vadd.f32 %v1788_v5, %v1662_v50  ;;  %v2016_v0 = vpop.f32.mrf.mxu3  ;;  %v317_v50 = vld [vmem:[%s10819_s2 + $0x1b8] sm:$0xff] }
 0x225   : > { %2156 = vmatmul.f32.gmra.mxu0 %v11451_v60  ;;  %v8860_v43 = vand.u32 4294901760, %v317_v50 }
 0x226   : > { %v1919_v41 = vadd.f32 %v1918_v23, %v1789_v45  ;;  %2353 = vmatmul.f32.gmra.mxu1 %v11452_v57 }
 0x227   : > { %2621 = vmatmul.f32.gmra.mxu3 %v11453_v26  ;;  %2935 = vmatpush.msra.mxu2 %v8860_v43 }
 0x228   : > { %v2017_v27 = vadd.f32 %v2016_v0, %v1919_v41  ;;  %2488 = vmatmul.f32.gmra.mxu2 %v11454_v32  ;;  %v8864_v41 = vsub.f32 %v317_v50, %v8860_v43  ;;  %3364 = vmatpush.msrb.mxu1 %v8860_v43  ;;  %v11455_v0 = vld [vmem:[#allocation49_spill] sm:$0xff] }
 0x22a   : > { %5367 = vst [vmem:[#allocation2 + $0x1a8] sm:$0xff] %v2017_v27  ;;  %v1671_v62 = vpop.f32.mrf.mxu0  ;;  %v11456_v27 = vld [vmem:[#allocation39_spill] sm:$0xff]  ;;  %v11156_v15 = vand.u32 4294901760, %v8864_v41  ;;  %3246 = vmatpush.msrb.mxu0 %v8864_v41 }
 0x22b   : > { %v1794_v48 = vpop.f32.mrf.mxu1  ;;  %v1922_v23 = vpop.f32.mrf.mxu2  ;;  %v1672_v39 = vadd.f32 %v1671_v62, %v8570_v4 }
 0x22c   : > { %v1795_v45 = vadd.f32 %v1794_v48, %v1667_v42  ;;  %v2020_v51 = vpop.f32.mrf.mxu3  ;;  %v11457_v42 = vld [vmem:[#allocation46_spill] sm:$0xff]  ;;  %v11458_v48 = vld [vmem:[#allocation44_spill] sm:$0xff]  ;;  %v3131_v50 = vsub.f32 %v8864_v41, %v11156_v15 }
 0x22d   : > { %2164 = vmatmul.f32.gmra.mxu0 %v11455_v0 }
 0x22e   : > { %v1923_v17 = vadd.f32 %v1922_v23, %v1795_v45  ;;  %2357 = vmatmul.f32.gmra.mxu1 %v11456_v27  ;;  %v3132_v0 = vand.u32 4294901760, %v3131_v50 }
 0x22f   : > { %2627 = vmatmul.f32.gmra.mxu3 %v11457_v42  ;;  %v11461_v42 = vld [vmem:[#allocation50_spill] sm:$0xff] }
 0x230   : > { %v2021_v5 = vadd.f32 %v2020_v51, %v1923_v17  ;;  %2493 = vmatmul.f32.gmra.mxu2 %v11458_v48  ;;  %3133 = vmatpush.msra.mxu3 %v3132_v0  ;;  %v11459_v51 = vld [vmem:[#allocation53_spill] sm:$0xff]  ;;  %v11460_v17 = vld [vmem:[#allocation43_spill] sm:$0xff] }
 0x232   : > { %5370 = vst [vmem:[#allocation2 + $0xa0] sm:$0xff] %v2021_v5  ;;  %v1676_v45 = vpop.f32.mrf.mxu0 }
 0x233   : > { %v1800_v23 = vpop.f32.mrf.mxu1  ;;  %v1926_v26 = vpop.f32.mrf.mxu2  ;;  %v1677_v4 = vadd.f32 %v1676_v45, %v8592_v22 }
 0x234   : > { %v1801_v32 = vadd.f32 %v1800_v23, %v1672_v39  ;;  %v2024_v60 = vpop.f32.mrf.mxu3  ;;  %v314_v39 = vld [vmem:[%s10819_s2 + $0x1a0] sm:$0xff] }
 0x235   : > { %2172 = vmatmul.f32.gmra.mxu0 %v11459_v51  ;;  %v8885_v0 = vand.u32 4294901760, %v314_v39 }
 0x236   : > { %v1927_v33 = vadd.f32 %v1926_v26, %v1801_v32  ;;  %2361 = vmatmul.f32.gmra.mxu1 %v11460_v17 }
 0x237   : > { %2633 = vmatmul.f32.gmra.mxu3 %v11461_v42  ;;  %2937 = vmatpush.msra.mxu2 %v8885_v0 }
 0x238   : > { %v2025_v48 = vadd.f32 %v2024_v60, %v1927_v33  ;;  %2498 = vmatmul.f32.gmra.mxu2 %v11462_v28  ;;  %v8889_v33 = vsub.f32 %v314_v39, %v8885_v0  ;;  %3366 = vmatpush.msrb.mxu1 %v8885_v0  ;;  %v11463_v60 = vld [vmem:[#allocation57_spill] sm:$0xff] }
 0x23a   : > { %5373 = vst [vmem:[#allocation2 + $0xc0] sm:$0xff] %v2025_v48  ;;  %v1681_v62 = vpop.f32.mrf.mxu0  ;;  %v11464_v48 = vld [vmem:[#allocation47_spill] sm:$0xff]  ;;  %v11157_v45 = vand.u32 4294901760, %v8889_v33  ;;  %3249 = vmatpush.msrb.mxu0 %v8889_v33 }
 0x23b   : > { %v1806_v5 = vpop.f32.mrf.mxu1  ;;  %v1930_v26 = vpop.f32.mrf.mxu2  ;;  %v1682_v15 = vadd.f32 %v1681_v62, %v8614_v40  ;;  %v11469_v62 = vld [vmem:[#allocation58_spill] sm:$0xff] }
 0x23c   : > { %v1807_v32 = vadd.f32 %v1806_v5, %v1677_v4  ;;  %v2028_v50 = vpop.f32.mrf.mxu3  ;;  %v11465_v4 = vld [vmem:[#allocation54_spill] sm:$0xff]  ;;  %v11466_v5 = vld [vmem:[#allocation52_spill] sm:$0xff]  ;;  %v3137_v39 = vsub.f32 %v8889_v33, %v11157_v45 }
 0x23d   : > { %2180 = vmatmul.f32.gmra.mxu0 %v11463_v60 }
 0x23e   : > { %v1931_v22 = vadd.f32 %v1930_v26, %v1807_v32  ;;  %2365 = vmatmul.f32.gmra.mxu1 %v11464_v48  ;;  %v3138_v60 = vand.u32 4294901760, %v3137_v39 }
 0x23f   : > { %2639 = vmatmul.f32.gmra.mxu3 %v11465_v4  ;;  %v11468_v4 = vld [vmem:[#allocation51_spill] sm:$0xff] }
 0x240   : > { %v2029_v23 = vadd.f32 %v2028_v50, %v1931_v22  ;;  %2503 = vmatmul.f32.gmra.mxu2 %v11466_v5  ;;  %3139 = vmatpush.msra.mxu3 %v3138_v60  ;;  %v311_v50 = vld [vmem:[%s10819_s2 + $0x188] sm:$0xff]  ;;  %v11467_v5 = vld [vmem:[#allocation61_spill] sm:$0xff]  ;;  %v11471_v60 = vld [vmem:[#allocation148_spill] sm:$0xff] }
 0x241   : > { %v8907_v45 = vand.u32 4294901760, %v311_v50 }
 0x242   : > { %5376 = vst [vmem:[#allocation2 + $0xf0] sm:$0xff] %v2029_v23  ;;  %v1686_v32 = vpop.f32.mrf.mxu0  ;;  %v11470_v23 = vld [vmem:[#allocation56_spill] sm:$0xff] }
 0x243   : > { %v1812_v26 = vpop.f32.mrf.mxu1  ;;  %v1934_v42 = vpop.f32.mrf.mxu2  ;;  %2939 = vmatpush.msra.mxu2 %v8907_v45  ;;  %3368 = vmatpush.msrb.mxu1 %v8907_v45  ;;  %v1687_v39 = vadd.f32 %v1686_v32, %v11471_v60  ;;  %v11477_v60 = vld [vmem:[#allocation62_spill] sm:$0xff] }
 0x244   : > { %v1813_v28 = vadd.f32 %v1812_v26, %v1682_v15  ;;  %v2032_v51 = vpop.f32.mrf.mxu3  ;;  %v3141_v15 = vsub.f32 %v311_v50, %v8907_v45 }
 0x245   : > { %2188 = vmatmul.f32.gmra.mxu0 %v11467_v5 }
 0x246   : > { %v1935_v22 = vadd.f32 %v1934_v42, %v1813_v28  ;;  %2369 = vmatmul.f32.gmra.mxu1 %v11468_v4  ;;  %v11472_v28 = vand.u32 4294901760, %v8664_v7  ;;  %3252 = vmatpush.msrb.mxu0 %v3141_v15  ;;  %v11476_v7 = vand.u32 4294901760, %v8753_v11 }
 0x247   : > { %2645 = vmatmul.f32.gmra.mxu3 %v11469_v62 }
 0x248   : > { %v2033_v40 = vadd.f32 %v2032_v51, %v1935_v22  ;;  %2508 = vmatmul.f32.gmra.mxu2 %v11470_v23  ;;  %v3142_v51 = vand.u32 4294901760, %v3141_v15 }
 0x249   : > { %3488 = vmatpush.msrb.mxu2 %v11472_v28  ;;  %v11478_v28 = vld [vmem:[#allocation60_spill] sm:$0xff] }
 0x24a   : > { %5379 = vst [vmem:[#allocation2 + $0xf8] sm:$0xff] %v2033_v40  ;;  %v1691_v42 = vpop.f32.mrf.mxu0  ;;  %v3143_v50 = vsub.f32 %v3141_v15, %v3142_v51 }
 0x24b   : > { %v1818_v26 = vpop.f32.mrf.mxu1  ;;  %v1938_v62 = vpop.f32.mrf.mxu2  ;;  %3492 = vmatpush.msrb.mxu2 %v11473_v63 }
 0x24c   : > { %v1819_v22 = vadd.f32 %v1818_v26, %v1687_v39  ;;  %v2036_v5 = vpop.f32.mrf.mxu3  ;;  %v3144_v32 = vand.u32 4294901760, %v3143_v50  ;;  %v1692_v39 = vadd.f32 %v1691_v42, %v8667_v6  ;;  %v11482_v6 = vld [vmem:[#allocation59_spill] sm:$0xff]  ;;  %v11484_v42 = vld [vmem:[#allocation66_spill] sm:$0xff]  ;;  %v11485_v50 = vld [vmem:[#allocation64_spill] sm:$0xff] }
 0x24d   : > { %2196 = vmatmul.f32.gmra.mxu0 %v11474_v16  ;;  %3496 = vmatpush.msrb.mxu2 %v11476_v7 }
 0x24e   : > { %v1939_v23 = vadd.f32 %v1938_v62, %v1819_v22  ;;  %2373 = vmatmul.f32.gmra.mxu1 %v11475_v58  ;;  %3145 = vmatpush.msra.mxu3 %v3144_v32  ;;  %v11481_v22 = vld [vmem:[#allocation69_spill] sm:$0xff] }
 0x24f   : > { %2651 = vmatmul.f32.gmra.mxu3 %v11477_v60  ;;  %3500 = vmatpush.msrb.mxu2 %v11479_v59 }
 0x250   : > { %v2037_v40 = vadd.f32 %v2036_v5, %v1939_v23  ;;  %2513 = vmatmul.f32.gmra.mxu2 %v11478_v28  ;;  %3602 = vmatpush.msrb.mxu3 %v8657_v3  ;;  %v11480_v5 = vand.u32 4294901760, %v8814_v55  ;;  %v11483_v3 = vand.u32 4294901760, %v8839_v34  ;;  %v11486_v55 = vand.u32 4294901760, %v8864_v41 }
 0x252   : > { %5382 = vst [vmem:[#allocation2 + $0x60] sm:$0xff] %v2037_v40  ;;  %v1696_v63 = vpop.f32.mrf.mxu0  ;;  %3604 = vmatpush.msrb.mxu3 %v8701_v47  ;;  %3504 = vmatpush.msrb.mxu2 %v11480_v5  ;;  %v11492_v5 = vld [vmem:[#allocation77_spill] sm:$0xff] }
 0x253   : > { %v1824_v62 = vpop.f32.mrf.mxu1  ;;  %v1942_v26 = vpop.f32.mrf.mxu2  ;;  %v1697_v47 = vadd.f32 %v1696_v63, %v8688_v56  ;;  %v11489_v56 = vld [vmem:[#allocation63_spill] sm:$0xff]  ;;  %v11490_v63 = vld [vmem:[#allocation70_spill] sm:$0xff] }
 0x254   : > { %v1825_v15 = vadd.f32 %v1824_v62, %v1692_v39  ;;  %v2040_v11 = vpop.f32.mrf.mxu3  ;;  %3606 = vmatpush.msrb.mxu3 %v8745_v30  ;;  %3508 = vmatpush.msrb.mxu2 %v11483_v3  ;;  %v11487_v39 = vand.u32 4294901760, %v8889_v33  ;;  %v11495_v3 = vld [vmem:[#allocation72_spill] sm:$0xff] }
 0x255   : > { %2204 = vmatmul.f32.gmra.mxu0 %v11481_v22 }
 0x256   : > { %v1943_v23 = vadd.f32 %v1942_v26, %v1825_v15  ;;  %2377 = vmatmul.f32.gmra.mxu1 %v11482_v6  ;;  %3608 = vmatpush.msrb.mxu3 %v8780_v29  ;;  %v11488_v29 = vld [vmem:[#allocation73_spill] sm:$0xff] }
 0x257   : > { %2657 = vmatmul.f32.gmra.mxu3 %v11484_v42  ;;  %3512 = vmatpush.msrb.mxu2 %v11486_v55 }
 0x258   : > { %v2041_v2 = vadd.f32 %v2040_v11, %v1943_v23  ;;  %2518 = vmatmul.f32.gmra.mxu2 %v11485_v50  ;;  %3610 = vmatpush.msrb.mxu3 %v8810_v38  ;;  %v11491_v38 = vld [vmem:[#allocation68_spill] sm:$0xff]  ;;  %v11494_v23 = vld [vmem:[#allocation74_spill] sm:$0xff] }
 0x259   : > { %3516 = vmatpush.msrb.mxu2 %v11487_v39 }
 0x25a   : > { %5385 = vst [vmem:[#allocation2 + $0x38] sm:$0xff] %v2041_v2  ;;  %v2085_v7 = vpop.f32.mrf.mxu0  ;;  %3612 = vmatpush.msrb.mxu3 %v8835_v44 }
 0x25b   : > { %v1830_v32 = vpop.f32.mrf.mxu1  ;;  %v1946_v34 = vpop.f32.mrf.mxu2  ;;  %3520 = vmatpush.msrb.mxu2 %v3142_v51 }
 0x25c   : > { %v1831_v30 = vadd.f32 %v1830_v32, %v1697_v47  ;;  %v2044_v40 = vpop.f32.mrf.mxu3  ;;  %3614 = vmatpush.msrb.mxu3 %v8860_v43  ;;  %v11493_v43 = vld [vmem:[#allocation67_spill] sm:$0xff] }
 0x25d   : > { %2212 = vmatmul.f32.gmra.mxu0 %v11488_v29 }
 0x25e   : > { %v1947_v59 = vadd.f32 %v1946_v34, %v1831_v30  ;;  %2381 = vmatmul.f32.gmra.mxu1 %v11489_v56  ;;  %3616 = vmatpush.msrb.mxu3 %v8885_v0  ;;  %v11497_v34 = vld [vmem:[#allocation75_spill] sm:$0xff] }
 0x25f   : > { %2663 = vmatmul.f32.gmra.mxu3 %v11490_v63 }
 0x260   : > { %v2045_v41 = vadd.f32 %v2044_v40, %v1947_v59  ;;  %2523 = vmatmul.f32.gmra.mxu2 %v11491_v38  ;;  %3618 = vmatpush.msrb.mxu3 %v8907_v45  ;;  %v11498_v40 = vld [vmem:[#allocation81_spill] sm:$0xff] }
 0x262   : > { %5388 = vst [vmem:[#allocation2 + $0xe0] sm:$0xff] %v2045_v41  ;;  %v2093_v33 = vpop.f32.mrf.mxu0 }
 0x263   : > { %v2322_v62 = vpop.f32.mrf.mxu1  ;;  %v2444_v15 = vpop.f32.mrf.mxu2 }
 0x264   : > { %v2323_v44 = vadd.f32 %v2322_v62, %v2085_v7  ;;  %v2568_v26 = vpop.f32.mrf.mxu3  ;;  %v11496_v7 = vld [vmem:[#allocation71_spill] sm:$0xff] }
 0x265   : > { %2220 = vmatmul.f32.gmra.mxu0 %v11492_v5 }
 0x266   : > { %v2445_v11 = vadd.f32 %v2444_v15, %v2323_v44  ;;  %2385 = vmatmul.f32.gmra.mxu1 %v11493_v43 }
 0x267   : > { %2669 = vmatmul.f32.gmra.mxu3 %v11494_v23 }
 0x268   : > { %v8956_v51 = vadd.f32 %v2568_v26, %v2445_v11  ;;  %2528 = vmatmul.f32.gmra.mxu2 %v11495_v3  ;;  %v11499_v26 = vld [vmem:[#allocation79_spill] sm:$0xff]  ;;  %v11500_v11 = vld [vmem:[#allocation85_spill] sm:$0xff] }
 0x26a   : > { %v2101_v0 = vpop.f32.mrf.mxu0 }
 0x26b   : > { %v2326_v2 = vpop.f32.mrf.mxu1  ;;  %v2449_v55 = vpop.f32.mrf.mxu2 }
 0x26c   : > { %v2327_v47 = vadd.f32 %v2326_v2, %v2093_v33  ;;  %v2574_v32 = vpop.f32.mrf.mxu3 }
 0x26d   : > { %2738 = vmatmul.f32.vlgmr.msra.gmra.mxu0 %v11419_v19 }
 0x26e   : > { %v2450_v45 = vadd.f32 %v2449_v55, %v2327_v47  ;;  %2389 = vmatmul.f32.gmra.mxu1 %v11496_v7 }
 0x26f   : > { %3147 = vmatmul.f32.vlgmr.msra.gmra.mxu3 %v11497_v34 }
 0x270   : > { %v8962_v30 = vadd.f32 %v2574_v32, %v2450_v45  ;;  %2945 = vmatmul.f32.vlgmr.msra.gmra.mxu2 %v11498_v40 }
 0x272   : > { %v2109_v39 = vpop.f32.mrf.mxu0 }
 0x273   : > { %v2330_v59 = vpop.f32.mrf.mxu1  ;;  %v2454_v62 = vpop.f32.mrf.mxu2 }
 0x274   : > { %v2331_v41 = vadd.f32 %v2330_v59, %v2101_v0  ;;  %v2580_v44 = vpop.f32.mrf.mxu3  ;;  %v11501_v59 = vld [vmem:[#allocation83_spill] sm:$0xff] }
 0x275   : > { %2742 = vmatmul.f32.gmra.mxu0 %v11424_v46 }
 0x276   : > { %v2455_v15 = vadd.f32 %v2454_v62, %v2331_v41  ;;  %2843 = vmatmul.f32.vlgmr.msra.gmra.mxu1 %v11419_v19  ;;  %v11502_v41 = vld [vmem:[#allocation89_spill] sm:$0xff] }
 0x277   : > { %3151 = vmatmul.f32.gmra.mxu3 %v11499_v26 }
 0x278   : > { %v8968_v33 = vadd.f32 %v2580_v44, %v2455_v15  ;;  %2953 = vmatmul.f32.gmra.mxu2 %v11500_v11 }
 0x27a   : > { %v2117_v2 = vpop.f32.mrf.mxu0 }
 0x27b   : > { %v2334_v47 = vpop.f32.mrf.mxu1  ;;  %v2459_v32 = vpop.f32.mrf.mxu2 }
 0x27c   : > { %v2335_v55 = vadd.f32 %v2334_v47, %v2109_v39  ;;  %v2586_v45 = vpop.f32.mrf.mxu3  ;;  %v11503_v47 = vld [vmem:[#allocation87_spill] sm:$0xff] }
 0x27d   : > { %2746 = vmatmul.f32.gmra.mxu0 %v11428_v1 }
 0x27e   : > { %v2460_v40 = vadd.f32 %v2459_v32, %v2335_v55  ;;  %2847 = vmatmul.f32.gmra.mxu1 %v11424_v46 }
 0x27f   : > { %3155 = vmatmul.f32.gmra.mxu3 %v11501_v59 }
 0x280   : > { %v8974_v0 = vadd.f32 %v2586_v45, %v2460_v40  ;;  %2961 = vmatmul.f32.gmra.mxu2 %v11502_v41  ;;  %v11504_v40 = vld [vmem:[#allocation93_spill] sm:$0xff] }
 0x282   : > { %v2125_v62 = vpop.f32.mrf.mxu0 }
 0x283   : > { %v2338_v44 = vpop.f32.mrf.mxu1  ;;  %v2464_v11 = vpop.f32.mrf.mxu2 }
 0x284   : > { %v2339_v15 = vadd.f32 %v2338_v44, %v2117_v2  ;;  %v2592_v3 = vpop.f32.mrf.mxu3  ;;  %v11505_v2 = vld [vmem:[#allocation91_spill] sm:$0xff] }
 0x285   : > { %2750 = vmatmul.f32.gmra.mxu0 %v11432_v61 }
 0x286   : > { %v2465_v23 = vadd.f32 %v2464_v11, %v2339_v15  ;;  %2851 = vmatmul.f32.gmra.mxu1 %v11428_v1 }
 0x287   : > { %3159 = vmatmul.f32.gmra.mxu3 %v11503_v47 }
 0x288   : > { %v8980_v39 = vadd.f32 %v2592_v3, %v2465_v23  ;;  %2969 = vmatmul.f32.gmra.mxu2 %v11504_v40  ;;  %v11506_v23 = vld [vmem:[#allocation97_spill] sm:$0xff] }
 0x28a   : > { %v2133_v55 = vpop.f32.mrf.mxu0 }
 0x28b   : > { %v2342_v32 = vpop.f32.mrf.mxu1  ;;  %v2469_v41 = vpop.f32.mrf.mxu2 }
 0x28c   : > { %v2343_v45 = vadd.f32 %v2342_v32, %v2125_v62  ;;  %v2598_v5 = vpop.f32.mrf.mxu3  ;;  %v11507_v62 = vld [vmem:[#allocation95_spill] sm:$0xff] }
 0x28d   : > { %2754 = vmatmul.f32.gmra.mxu0 %v11436_v12 }
 0x28e   : > { %v2470_v38 = vadd.f32 %v2469_v41, %v2343_v45  ;;  %2855 = vmatmul.f32.gmra.mxu1 %v11432_v61 }
 0x28f   : > { %3163 = vmatmul.f32.gmra.mxu3 %v11505_v2 }
 0x290   : > { %v8986_v11 = vadd.f32 %v2598_v5, %v2470_v38  ;;  %2977 = vmatmul.f32.gmra.mxu2 %v11506_v23  ;;  %v11508_v38 = vld [vmem:[#allocation101_spill] sm:$0xff] }
 0x292   : > { %v2141_v3 = vpop.f32.mrf.mxu0 }
 0x293   : > { %v2346_v44 = vpop.f32.mrf.mxu1  ;;  %v2474_v40 = vpop.f32.mrf.mxu2 }
 0x294   : > { %v2347_v15 = vadd.f32 %v2346_v44, %v2133_v55  ;;  %v2604_v63 = vpop.f32.mrf.mxu3  ;;  %v11509_v55 = vld [vmem:[#allocation99_spill] sm:$0xff] }
 0x295   : > { %2758 = vmatmul.f32.gmra.mxu0 %v11440_v10 }
 0x296   : > { %v2475_v29 = vadd.f32 %v2474_v40, %v2347_v15  ;;  %2859 = vmatmul.f32.gmra.mxu1 %v11436_v12 }
 0x297   : > { %3167 = vmatmul.f32.gmra.mxu3 %v11507_v62 }
 0x298   : > { %v8992_v41 = vadd.f32 %v2604_v63, %v2475_v29  ;;  %2985 = vmatmul.f32.gmra.mxu2 %v11508_v38  ;;  %v11510_v29 = vld [vmem:[#allocation105_spill] sm:$0xff] }
 0x29a   : > { %v2149_v5 = vpop.f32.mrf.mxu0 }
 0x29b   : > { %v2350_v32 = vpop.f32.mrf.mxu1  ;;  %v2479_v23 = vpop.f32.mrf.mxu2 }
 0x29c   : > { %v2351_v45 = vadd.f32 %v2350_v32, %v2141_v3  ;;  %v2610_v50 = vpop.f32.mrf.mxu3  ;;  %v11511_v3 = vld [vmem:[#allocation103_spill] sm:$0xff] }
 0x29d   : > { %2762 = vmatmul.f32.gmra.mxu0 %v11444_v37 }
 0x29e   : > { %v2480_v42 = vadd.f32 %v2479_v23, %v2351_v45  ;;  %2863 = vmatmul.f32.gmra.mxu1 %v11440_v10 }
 0x29f   : > { %3171 = vmatmul.f32.gmra.mxu3 %v11509_v55 }
 0x2a0   : > { %v8998_v40 = vadd.f32 %v2610_v50, %v2480_v42  ;;  %2993 = vmatmul.f32.gmra.mxu2 %v11510_v29  ;;  %v11512_v42 = vld [vmem:[#allocation109_spill] sm:$0xff] }
 0x2a2   : > { %v2157_v63 = vpop.f32.mrf.mxu0 }
 0x2a3   : > { %v2354_v44 = vpop.f32.mrf.mxu1  ;;  %v2484_v38 = vpop.f32.mrf.mxu2 }
 0x2a4   : > { %v2355_v15 = vadd.f32 %v2354_v44, %v2149_v5  ;;  %v2616_v22 = vpop.f32.mrf.mxu3  ;;  %v11513_v5 = vld [vmem:[#allocation107_spill] sm:$0xff] }
 0x2a5   : > { %2766 = vmatmul.f32.gmra.mxu0 %v11448_v20 }
 0x2a6   : > { %v2485_v28 = vadd.f32 %v2484_v38, %v2355_v15  ;;  %2867 = vmatmul.f32.gmra.mxu1 %v11444_v37 }
 0x2a7   : > { %3175 = vmatmul.f32.gmra.mxu3 %v11511_v3 }
 0x2a8   : > { %v9004_v23 = vadd.f32 %v2616_v22, %v2485_v28  ;;  %3001 = vmatmul.f32.gmra.mxu2 %v11512_v42  ;;  %v11514_v28 = vld [vmem:[#allocation113_spill] sm:$0xff] }
 0x2aa   : > { %v2165_v50 = vpop.f32.mrf.mxu0 }
 0x2ab   : > { %v2358_v32 = vpop.f32.mrf.mxu1  ;;  %v2489_v29 = vpop.f32.mrf.mxu2 }
 0x2ac   : > { %v2359_v45 = vadd.f32 %v2358_v32, %v2157_v63  ;;  %v2622_v60 = vpop.f32.mrf.mxu3  ;;  %v11515_v63 = vld [vmem:[#allocation111_spill] sm:$0xff] }
 0x2ad   : > { %2770 = vmatmul.f32.gmra.mxu0 %v11452_v57 }
 0x2ae   : > { %v2490_v16 = vadd.f32 %v2489_v29, %v2359_v45  ;;  %2871 = vmatmul.f32.gmra.mxu1 %v11448_v20 }
 0x2af   : > { %3179 = vmatmul.f32.gmra.mxu3 %v11513_v5 }
 0x2b0   : > { %v9010_v38 = vadd.f32 %v2622_v60, %v2490_v16  ;;  %3009 = vmatmul.f32.gmra.mxu2 %v11514_v28  ;;  %v11516_v16 = vld [vmem:[#allocation117_spill] sm:$0xff] }
 0x2b2   : > { %v2173_v22 = vpop.f32.mrf.mxu0 }
 0x2b3   : > { %v2362_v44 = vpop.f32.mrf.mxu1  ;;  %v2494_v42 = vpop.f32.mrf.mxu2 }
 0x2b4   : > { %v2363_v15 = vadd.f32 %v2362_v44, %v2165_v50  ;;  %v2628_v37 = vpop.f32.mrf.mxu3  ;;  %v11517_v50 = vld [vmem:[#allocation115_spill] sm:$0xff] }
 0x2b5   : > { %2774 = vmatmul.f32.gmra.mxu0 %v11456_v27 }
 0x2b6   : > { %v2495_v10 = vadd.f32 %v2494_v42, %v2363_v15  ;;  %2875 = vmatmul.f32.gmra.mxu1 %v11452_v57 }
 0x2b7   : > { %3183 = vmatmul.f32.gmra.mxu3 %v11515_v63 }
 0x2b8   : > { %v9016_v29 = vadd.f32 %v2628_v37, %v2495_v10  ;;  %3017 = vmatmul.f32.gmra.mxu2 %v11516_v16  ;;  %v11518_v10 = vld [vmem:[#allocation121_spill] sm:$0xff] }
 0x2ba   : > { %v2181_v60 = vpop.f32.mrf.mxu0 }
 0x2bb   : > { %v2366_v32 = vpop.f32.mrf.mxu1  ;;  %v2499_v28 = vpop.f32.mrf.mxu2 }
 0x2bc   : > { %v2367_v45 = vadd.f32 %v2366_v32, %v2173_v22  ;;  %v2634_v20 = vpop.f32.mrf.mxu3  ;;  %v11519_v22 = vld [vmem:[#allocation119_spill] sm:$0xff] }
 0x2bd   : > { %2778 = vmatmul.f32.gmra.mxu0 %v11460_v17 }
 0x2be   : > { %v2500_v12 = vadd.f32 %v2499_v28, %v2367_v45  ;;  %2879 = vmatmul.f32.gmra.mxu1 %v11456_v27 }
 0x2bf   : > { %3187 = vmatmul.f32.gmra.mxu3 %v11517_v50 }
 0x2c0   : > { %v9022_v42 = vadd.f32 %v2634_v20, %v2500_v12  ;;  %3025 = vmatmul.f32.gmra.mxu2 %v11518_v10  ;;  %v11520_v12 = vld [vmem:[#allocation125_spill] sm:$0xff] }
 0x2c2   : > { %v2189_v37 = vpop.f32.mrf.mxu0 }
 0x2c3   : > { %v2370_v44 = vpop.f32.mrf.mxu1  ;;  %v2504_v16 = vpop.f32.mrf.mxu2 }
 0x2c4   : > { %v2371_v15 = vadd.f32 %v2370_v44, %v2181_v60  ;;  %v2640_v57 = vpop.f32.mrf.mxu3  ;;  %v11521_v60 = vld [vmem:[#allocation123_spill] sm:$0xff] }
 0x2c5   : > { %2782 = vmatmul.f32.gmra.mxu0 %v11464_v48 }
 0x2c6   : > { %v2505_v61 = vadd.f32 %v2504_v16, %v2371_v15  ;;  %2883 = vmatmul.f32.gmra.mxu1 %v11460_v17 }
 0x2c7   : > { %3191 = vmatmul.f32.gmra.mxu3 %v11519_v22 }
 0x2c8   : > { %v9028_v28 = vadd.f32 %v2640_v57, %v2505_v61  ;;  %3033 = vmatmul.f32.gmra.mxu2 %v11520_v12  ;;  %v11522_v61 = vld [vmem:[#allocation129_spill] sm:$0xff] }
 0x2ca   : > { %v2197_v20 = vpop.f32.mrf.mxu0 }
 0x2cb   : > { %v2374_v32 = vpop.f32.mrf.mxu1  ;;  %v2509_v10 = vpop.f32.mrf.mxu2 }
 0x2cc   : > { %v2375_v45 = vadd.f32 %v2374_v32, %v2189_v37  ;;  %v2646_v27 = vpop.f32.mrf.mxu3  ;;  %v11523_v37 = vld [vmem:[#allocation127_spill] sm:$0xff] }
 0x2cd   : > { %2786 = vmatmul.f32.gmra.mxu0 %v11468_v4 }
 0x2ce   : > { %v2510_v1 = vadd.f32 %v2509_v10, %v2375_v45  ;;  %2887 = vmatmul.f32.gmra.mxu1 %v11464_v48 }
 0x2cf   : > { %3195 = vmatmul.f32.gmra.mxu3 %v11521_v60 }
 0x2d0   : > { %v9034_v16 = vadd.f32 %v2646_v27, %v2510_v1  ;;  %3041 = vmatmul.f32.gmra.mxu2 %v11522_v61  ;;  %v11524_v1 = vld [vmem:[#allocation133_spill] sm:$0xff] }
 0x2d2   : > { %v2205_v57 = vpop.f32.mrf.mxu0 }
 0x2d3   : > { %v2378_v44 = vpop.f32.mrf.mxu1  ;;  %v2514_v12 = vpop.f32.mrf.mxu2 }
 0x2d4   : > { %v2379_v15 = vadd.f32 %v2378_v44, %v2197_v20  ;;  %v2652_v17 = vpop.f32.mrf.mxu3  ;;  %v11525_v20 = vld [vmem:[#allocation131_spill] sm:$0xff] }
 0x2d5   : > { %2790 = vmatmul.f32.gmra.mxu0 %v11475_v58 }
 0x2d6   : > { %v2515_v46 = vadd.f32 %v2514_v12, %v2379_v15  ;;  %2891 = vmatmul.f32.gmra.mxu1 %v11468_v4 }
 0x2d7   : > { %3199 = vmatmul.f32.gmra.mxu3 %v11523_v37 }
 0x2d8   : > { %v9040_v10 = vadd.f32 %v2652_v17, %v2515_v46  ;;  %3049 = vmatmul.f32.gmra.mxu2 %v11524_v1  ;;  %v11526_v46 = vld [vmem:[#allocation137_spill] sm:$0xff]  ;;  %v309_v17 = vld [vmem:[%s10819_s2 + $0x178] sm:$0xff] }
 0x2d9   : > { %v9053_v44 = vand.u32 4294901760, %v309_v17 }
 0x2da   : > { %v2213_v27 = vpop.f32.mrf.mxu0 }
 0x2db   : > { %v2382_v32 = vpop.f32.mrf.mxu1  ;;  %v2519_v61 = vpop.f32.mrf.mxu2  ;;  %v9056_v1 = vsub.f32 %v309_v17, %v9053_v44  ;;  %4178 = vmatpush.msra.mxu3 %v9053_v44  ;;  %3693 = vmatpush.msra.mxu0 %v9053_v44  ;;  %v306_v17 = vld [vmem:[%s10819_s2 + $0x160] sm:$0xff] }
 0x2dc   : > { %v2383_v45 = vadd.f32 %v2382_v32, %v2205_v57  ;;  %v2658_v48 = vpop.f32.mrf.mxu3 }
 0x2dd   : > { %2794 = vmatmul.f32.gmra.mxu0 %v11482_v6  ;;  %4040 = vmatpush.msra.mxu2 %v9056_v1 }
 0x2de   : > { %v2520_v36 = vadd.f32 %v2519_v61, %v2383_v45  ;;  %2895 = vmatmul.f32.gmra.mxu1 %v11475_v58 }
 0x2df   : > { %3203 = vmatmul.f32.gmra.mxu3 %v11525_v20 }
 0x2e0   : > { %v9046_v12 = vadd.f32 %v2658_v48, %v2520_v36  ;;  %3057 = vmatmul.f32.gmra.mxu2 %v11526_v46 }
 0x2e2   : > { %v2221_v57 = vpop.f32.mrf.mxu0 }
 0x2e3   : > { %v2386_v15 = vpop.f32.mrf.mxu1  ;;  %v2524_v61 = vpop.f32.mrf.mxu2 }
 0x2e4   : > { %v2387_v32 = vadd.f32 %v2386_v15, %v2213_v27  ;;  %v2664_v45 = vpop.f32.mrf.mxu3  ;;  %v11527_v27 = vld [vmem:[#allocation142_spill] sm:$0xff]  ;;  %v9070_v15 = vand.u32 4294901760, %v306_v17 }
 0x2e5   : > { %2798 = vmatmul.f32.gmra.mxu0 %v11489_v56 }
 0x2e6   : > { %v2525_v36 = vadd.f32 %v2524_v61, %v2387_v32  ;;  %2899 = vmatmul.f32.gmra.mxu1 %v11482_v6  ;;  %v9073_v6 = vsub.f32 %v306_v17, %v9070_v15  ;;  %4180 = vmatpush.msra.mxu3 %v9070_v15 }
 0x2e7   : > { %3207 = vmatmul.f32.gmra.mxu3 %v11395_v49  ;;  %3695 = vmatpush.msra.mxu0 %v9070_v15 }
 0x2e8   : > { %v9063_v48 = vadd.f32 %v2664_v45, %v2525_v36  ;;  %3065 = vmatmul.f32.gmra.mxu2 %v11527_v27 }
 0x2e9   : > { %4043 = vmatpush.msra.mxu2 %v9073_v6 }
 0x2ea   : > { %v2739_v32 = vpop.f32.mrf.mxu0 }
 0x2eb   : > { %v2390_v46 = vpop.f32.mrf.mxu1  ;;  %v2529_v58 = vpop.f32.mrf.mxu2  ;;  %v2740_v17 = vadd.f32 %v2739_v32, %v8956_v51  ;;  %v11175_v32 = vand.u32 4294901760, %v9056_v1 }
 0x2ec   : > { %v2391_v61 = vadd.f32 %v2390_v46, %v2221_v57  ;;  %v2670_v4 = vpop.f32.mrf.mxu3  ;;  %v11528_v46 = vld [vmem:[#allocation145_spill] sm:$0xff]  ;;  %v303_v57 = vld [vmem:[%s10819_s2 + $0x148] sm:$0xff] }
 0x2ed   : > { %2802 = vmatmul.f32.gmra.mxu0 %v11493_v43  ;;  %v9088_v27 = vand.u32 4294901760, %v303_v57 }
 0x2ee   : > { %v2530_v45 = vadd.f32 %v2529_v58, %v2391_v61  ;;  %2903 = vmatmul.f32.gmra.mxu1 %v11489_v56 }
 0x2ef   : > { %3211 = vmatmul.f32.gmra.mxu3 %v11402_v18  ;;  %3697 = vmatpush.msra.mxu0 %v9088_v27 }
 0x2f0   : > { %v9080_v36 = vadd.f32 %v2670_v4, %v2530_v45  ;;  %3073 = vmatmul.f32.gmra.mxu2 %v11528_v46  ;;  %v9091_v4 = vsub.f32 %v303_v57, %v9088_v27  ;;  %4182 = vmatpush.msra.mxu3 %v9088_v27 }
 0x2f2   : > { %v2743_v58 = vpop.f32.mrf.mxu0  ;;  %4046 = vmatpush.msra.mxu2 %v9091_v4 }
 0x2f3   : > { %v2844_v61 = vpop.f32.mrf.mxu1  ;;  %v2946_v56 = vpop.f32.mrf.mxu2  ;;  %v2744_v57 = vadd.f32 %v2743_v58, %v8962_v30  ;;  %v300_v30 = vld [vmem:[%s10819_s2 + $0x130] sm:$0xff]  ;;  %v11176_v58 = vand.u32 4294901760, %v9073_v6 }
 0x2f4   : > { %v2845_v19 = vadd.f32 %v2844_v61, %v2740_v17  ;;  %v3148_v53 = vpop.f32.mrf.mxu3  ;;  %v11529_v17 = vld [vmem:[#allocation147_spill] sm:$0xff] }
 0x2f5   : > { %2806 = vmatmul.f32.gmra.mxu0 %v11496_v7 }
 0x2f6   : > { %v2947_v45 = vadd.f32 %v2946_v56, %v2845_v19  ;;  %2907 = vmatmul.f32.gmra.mxu1 %v11493_v43  ;;  %v3872_v19 = vsub.f32 %v9056_v1, %v11175_v32 }
 0x2f7   : > { %3215 = vmatmul.f32.gmra.mxu3 %v8278_v24 }
 0x2f8   : > { %v9098_v51 = vadd.f32 %v3148_v53, %v2947_v45  ;;  %3081 = vmatmul.f32.gmra.mxu2 %v11529_v17  ;;  %v3873_v31 = vand.u32 4294901760, %v3872_v19  ;;  %v11530_v45 = vld [vmem:[#allocation76_spill] sm:$0xff]  ;;  %v11532_v17 = vld [vmem:[#allocation78_spill] sm:$0xff] }
 0x2fa   : > { %v2747_v56 = vpop.f32.mrf.mxu0  ;;  %3874 = vmatpush.msra.mxu1 %v3873_v31  ;;  %v3878_v31 = vsub.f32 %v9073_v6, %v11176_v58 }
 0x2fb   : > { %v2848_v61 = vpop.f32.mrf.mxu1  ;;  %v2954_v43 = vpop.f32.mrf.mxu2 }
 0x2fc   : > { %v2849_v46 = vadd.f32 %v2848_v61, %v2744_v57  ;;  %v3152_v21 = vpop.f32.mrf.mxu3  ;;  %v9117_v57 = vand.u32 4294901760, %v300_v30 }
 0x2fd   : > { %3255 = vmatmul.f32.vlgmr.msrb.gmra.mxu0 %v11530_v45  ;;  %v3879_v45 = vand.u32 4294901760, %v3878_v31 }
 0x2fe   : > { %v2955_v53 = vadd.f32 %v2954_v43, %v2849_v46  ;;  %2911 = vmatmul.f32.gmra.mxu1 %v11496_v7  ;;  %v2748_v43 = vadd.f32 %v2747_v56, %v8968_v33  ;;  %v9124_v19 = vsub.f32 %v300_v30, %v9117_v57  ;;  %4184 = vmatpush.msra.mxu3 %v9117_v57  ;;  %v11531_v56 = vld [vmem:[#allocation80_spill] sm:$0xff]  ;;  %v11537_v7 = vld [vmem:[#allocation86_spill] sm:$0xff] }
 0x2ff   : > { %3620 = vmatmul.f32.vlgmr.msrb.gmra.mxu3 %v11497_v34  ;;  %3699 = vmatpush.msra.mxu0 %v9117_v57  ;;  %v297_v30 = vld [vmem:[%s10819_s2 + $0x118] sm:$0xff] }
 0x300   : > { %v9109_v13 = vadd.f32 %v3152_v21, %v2955_v53  ;;  %3522 = vmatmul.f32.vlgmr.msrb.gmra.mxu2 %v11497_v34  ;;  %3880 = vmatpush.msra.mxu1 %v3879_v45  ;;  %v9139_v31 = vand.u32 4294901760, %v297_v30  ;;  %v11534_v34 = vld [vmem:[#allocation82_spill] sm:$0xff] }
 0x301   : > { %4049 = vmatpush.msra.mxu2 %v9124_v19 }
 0x302   : > { %v2751_v21 = vpop.f32.mrf.mxu0  ;;  %4186 = vmatpush.msra.mxu3 %v9139_v31  ;;  %3701 = vmatpush.msra.mxu0 %v9139_v31 }
 0x303   : > { %v2852_v46 = vpop.f32.mrf.mxu1  ;;  %v2962_v53 = vpop.f32.mrf.mxu2 }
 0x304   : > { %v2853_v61 = vadd.f32 %v2852_v46, %v2748_v43  ;;  %v3156_v32 = vpop.f32.mrf.mxu3  ;;  %v11179_v43 = vand.u32 4294901760, %v9091_v4  ;;  %v2752_v46 = vadd.f32 %v2751_v21, %v8974_v0  ;;  %v11533_v21 = vld [vmem:[#allocation84_spill] sm:$0xff] }
 0x305   : > { %3260 = vmatmul.f32.gmra.mxu0 %v11531_v56 }
 0x306   : > { %v2963_v33 = vadd.f32 %v2962_v53, %v2853_v61  ;;  %3372 = vmatmul.f32.vlgmr.msrb.gmra.mxu1 %v11532_v17  ;;  %v3884_v45 = vsub.f32 %v9091_v4, %v11179_v43  ;;  %v9146_v53 = vsub.f32 %v297_v30, %v9139_v31  ;;  %v294_v30 = vld [vmem:[%s10819_s2 + $0x100] sm:$0xff] }
 0x307   : > { %3624 = vmatmul.f32.gmra.mxu3 %v11499_v26 }
 0x308   : > { %v9131_v58 = vadd.f32 %v3156_v32, %v2963_v33  ;;  %3526 = vmatmul.f32.gmra.mxu2 %v11499_v26  ;;  %v3885_v26 = vand.u32 4294901760, %v3884_v45  ;;  %v9161_v45 = vand.u32 4294901760, %v294_v30 }
 0x309   : > { %4052 = vmatpush.msra.mxu2 %v9146_v53 }
 0x30a   : > { %v2755_v32 = vpop.f32.mrf.mxu0  ;;  %3886 = vmatpush.msra.mxu1 %v3885_v26  ;;  %4188 = vmatpush.msra.mxu3 %v9161_v45 }
 0x30b   : > { %v2856_v61 = vpop.f32.mrf.mxu1  ;;  %v2970_v17 = vpop.f32.mrf.mxu2  ;;  %3703 = vmatpush.msra.mxu0 %v9161_v45 }
 0x30c   : > { %v2857_v33 = vadd.f32 %v2856_v61, %v2752_v46  ;;  %v3160_v56 = vpop.f32.mrf.mxu3  ;;  %v11182_v46 = vand.u32 4294901760, %v9124_v19 }
 0x30d   : > { %3265 = vmatmul.f32.gmra.mxu0 %v11533_v21 }
 0x30e   : > { %v2971_v0 = vadd.f32 %v2970_v17, %v2857_v33  ;;  %3378 = vmatmul.f32.gmra.mxu1 %v11534_v34  ;;  %v2756_v17 = vadd.f32 %v2755_v32, %v8980_v39  ;;  %v3890_v26 = vsub.f32 %v9124_v19, %v11182_v46  ;;  %v9168_v33 = vsub.f32 %v294_v30, %v9161_v45  ;;  %v11536_v32 = vld [vmem:[#allocation88_spill] sm:$0xff]  ;;  %v291_v30 = vld [vmem:[%s10819_s2 + $0xe8] sm:$0xff] }
 0x30f   : > { %3628 = vmatmul.f32.gmra.mxu3 %v11501_v59 }
 0x310   : > { %v9153_v43 = vadd.f32 %v3160_v56, %v2971_v0  ;;  %3530 = vmatmul.f32.gmra.mxu2 %v11501_v59  ;;  %v3891_v59 = vand.u32 4294901760, %v3890_v26  ;;  %v11184_v26 = vand.u32 4294901760, %v9146_v53 }
 0x311   : > { %4055 = vmatpush.msra.mxu2 %v9168_v33 }
 0x312   : > { %11535 = vst [vmem:[#allocation136_spill] sm:$0xff] %v9153_v43  ;;  %v2759_v56 = vpop.f32.mrf.mxu0  ;;  %3892 = vmatpush.msra.mxu1 %v3891_v59 }
 0x313   : > { %v2860_v61 = vpop.f32.mrf.mxu1  ;;  %v2978_v34 = vpop.f32.mrf.mxu2 }
 0x314   : > { %v2861_v0 = vadd.f32 %v2860_v61, %v2756_v17  ;;  %v3164_v21 = vpop.f32.mrf.mxu3  ;;  %v9182_v17 = vand.u32 4294901760, %v291_v30 }
 0x315   : > { %3270 = vmatmul.f32.gmra.mxu0 %v11536_v32 }
 0x316   : > { %v2979_v39 = vadd.f32 %v2978_v34, %v2861_v0  ;;  %3384 = vmatmul.f32.gmra.mxu1 %v11537_v7  ;;  %v2760_v34 = vadd.f32 %v2759_v56, %v8986_v11  ;;  %v9187_v59 = vsub.f32 %v291_v30, %v9182_v17  ;;  %4190 = vmatpush.msra.mxu3 %v9182_v17  ;;  %v11539_v56 = vld [vmem:[#allocation92_spill] sm:$0xff] }
 0x317   : > { %3632 = vmatmul.f32.gmra.mxu3 %v11503_v47  ;;  %3705 = vmatpush.msra.mxu0 %v9182_v17 }
 0x318   : > { %v9175_v46 = vadd.f32 %v3164_v21, %v2979_v39  ;;  %3534 = vmatmul.f32.gmra.mxu2 %v11503_v47  ;;  %v3896_v21 = vsub.f32 %v9146_v53, %v11184_v26  ;;  %v288_v26 = vld [vmem:[%s10819_s2 + $0xd0] sm:$0xff] }
 0x319   : > { %4058 = vmatpush.msra.mxu2 %v9187_v59 }
 0x31a   : > { %11538 = vst [vmem:[#allocation134_spill] sm:$0xff] %v9175_v46  ;;  %v2763_v61 = vpop.f32.mrf.mxu0  ;;  %v3897_v47 = vand.u32 4294901760, %v3896_v21  ;;  %v11540_v46 = vld [vmem:[#allocation90_spill] sm:$0xff] }
 0x31b   : > { %v2864_v0 = vpop.f32.mrf.mxu1  ;;  %v2986_v7 = vpop.f32.mrf.mxu2 }
 0x31c   : > { %v2865_v39 = vadd.f32 %v2864_v0, %v2760_v34  ;;  %v3168_v32 = vpop.f32.mrf.mxu3  ;;  %3898 = vmatpush.msra.mxu1 %v3897_v47  ;;  %v9204_v34 = vand.u32 4294901760, %v288_v26  ;;  %v11186_v0 = vand.u32 4294901760, %v9168_v33 }
 0x31d   : > { %3275 = vmatmul.f32.gmra.mxu0 %v11539_v56 }
 0x31e   : > { %v2987_v11 = vadd.f32 %v2986_v7, %v2865_v39  ;;  %3390 = vmatmul.f32.gmra.mxu1 %v11540_v46  ;;  %v2764_v7 = vadd.f32 %v2763_v61, %v8992_v41  ;;  %v9209_v47 = vsub.f32 %v288_v26, %v9204_v34  ;;  %4192 = vmatpush.msra.mxu3 %v9204_v34  ;;  %v11542_v61 = vld [vmem:[#allocation96_spill] sm:$0xff] }
 0x31f   : > { %3636 = vmatmul.f32.gmra.mxu3 %v11505_v2  ;;  %3707 = vmatpush.msra.mxu0 %v9204_v34 }
 0x320   : > { %v9197_v30 = vadd.f32 %v3168_v32, %v2987_v11  ;;  %3538 = vmatmul.f32.gmra.mxu2 %v11505_v2  ;;  %v3902_v32 = vsub.f32 %v9168_v33, %v11186_v0 }
 0x321   : > { %4061 = vmatpush.msra.mxu2 %v9209_v47 }
 0x322   : > { %11541 = vst [vmem:[#allocation135_spill] sm:$0xff] %v9197_v30  ;;  %v2767_v21 = vpop.f32.mrf.mxu0  ;;  %v3903_v2 = vand.u32 4294901760, %v3902_v32  ;;  %v11543_v30 = vld [vmem:[#allocation94_spill] sm:$0xff] }
 0x323   : > { %v2868_v39 = vpop.f32.mrf.mxu1  ;;  %v2994_v46 = vpop.f32.mrf.mxu2  ;;  %v2768_v32 = vadd.f32 %v2767_v21, %v8998_v40  ;;  %v11545_v21 = vld [vmem:[#allocation100_spill] sm:$0xff] }
 0x324   : > { %v2869_v11 = vadd.f32 %v2868_v39, %v2764_v7  ;;  %v3172_v56 = vpop.f32.mrf.mxu3  ;;  %3904 = vmatpush.msra.mxu1 %v3903_v2  ;;  %v285_v7 = vld [vmem:[%s10819_s2 + $0xb8] sm:$0xff]  ;;  %v11188_v39 = vand.u32 4294901760, %v9187_v59 }
 0x325   : > { %3280 = vmatmul.f32.gmra.mxu0 %v11542_v61 }
 0x326   : > { %v2995_v41 = vadd.f32 %v2994_v46, %v2869_v11  ;;  %3396 = vmatmul.f32.gmra.mxu1 %v11543_v30  ;;  %v9228_v46 = vand.u32 4294901760, %v285_v7  ;;  %v3908_v2 = vsub.f32 %v9187_v59, %v11188_v39 }
 0x327   : > { %3640 = vmatmul.f32.gmra.mxu3 %v11507_v62 }
 0x328   : > { %v9219_v26 = vadd.f32 %v3172_v56, %v2995_v41  ;;  %3542 = vmatmul.f32.gmra.mxu2 %v11507_v62  ;;  %v9234_v61 = vsub.f32 %v285_v7, %v9228_v46  ;;  %4194 = vmatpush.msra.mxu3 %v9228_v46  ;;  %v3909_v62 = vand.u32 4294901760, %v3908_v2 }
 0x329   : > { %3709 = vmatpush.msra.mxu0 %v9228_v46 }
 0x32a   : > { %11544 = vst [vmem:[#allocation141_spill] sm:$0xff] %v9219_v26  ;;  %v2771_v11 = vpop.f32.mrf.mxu0  ;;  %v11546_v26 = vld [vmem:[#allocation98_spill] sm:$0xff]  ;;  %4064 = vmatpush.msra.mxu2 %v9234_v61  ;;  %3910 = vmatpush.msra.mxu1 %v3909_v62 }
 0x32b   : > { %v2872_v0 = vpop.f32.mrf.mxu1  ;;  %v3002_v41 = vpop.f32.mrf.mxu2  ;;  %v2772_v7 = vadd.f32 %v2771_v11, %v9004_v23  ;;  %v11191_v11 = vand.u32 4294901760, %v9209_v47 }
 0x32c   : > { %v2873_v56 = vadd.f32 %v2872_v0, %v2768_v32  ;;  %v3176_v30 = vpop.f32.mrf.mxu3  ;;  %v282_v0 = vld [vmem:[%s10819_s2 + $0xa0] sm:$0xff] }
 0x32d   : > { %3285 = vmatmul.f32.gmra.mxu0 %v11545_v21  ;;  %v9249_v32 = vand.u32 4294901760, %v282_v0 }
 0x32e   : > { %v3003_v40 = vadd.f32 %v3002_v41, %v2873_v56  ;;  %3402 = vmatmul.f32.gmra.mxu1 %v11546_v26 }
 0x32f   : > { %3644 = vmatmul.f32.gmra.mxu3 %v11509_v55  ;;  %v9252_v62 = vsub.f32 %v282_v0, %v9249_v32  ;;  %3711 = vmatpush.msra.mxu0 %v9249_v32  ;;  %v279_v0 = vld [vmem:[%s10819_s2 + $0x88] sm:$0xff] }
 0x330   : > { %v9241_v39 = vadd.f32 %v3176_v30, %v3003_v40  ;;  %3546 = vmatmul.f32.gmra.mxu2 %v11509_v55  ;;  %4196 = vmatpush.msra.mxu3 %v9249_v32  ;;  %v11548_v40 = vld [vmem:[#allocation104_spill] sm:$0xff]  ;;  %v11549_v55 = vld [vmem:[#allocation102_spill] sm:$0xff] }
 0x331   : > { %4067 = vmatpush.msra.mxu2 %v9252_v62 }
 0x332   : > { %11547 = vst [vmem:[#allocation140_spill] sm:$0xff] %v9241_v39  ;;  %v2775_v2 = vpop.f32.mrf.mxu0  ;;  %v11552_v39 = vld [vmem:[#allocation106_spill] sm:$0xff] }
 0x333   : > { %v2876_v56 = vpop.f32.mrf.mxu1  ;;  %v3010_v26 = vpop.f32.mrf.mxu2 }
 0x334   : > { %v2877_v41 = vadd.f32 %v2876_v56, %v2772_v7  ;;  %v3180_v21 = vpop.f32.mrf.mxu3  ;;  %v3914_v7 = vsub.f32 %v9209_v47, %v11191_v11  ;;  %v9271_v56 = vand.u32 4294901760, %v279_v0 }
 0x335   : > { %3290 = vmatmul.f32.gmra.mxu0 %v11548_v40 }
 0x336   : > { %v3011_v30 = vadd.f32 %v3010_v26, %v2877_v41  ;;  %3408 = vmatmul.f32.gmra.mxu1 %v11549_v55  ;;  %v2776_v26 = vadd.f32 %v2775_v2, %v9010_v38  ;;  %4198 = vmatpush.msra.mxu3 %v9271_v56  ;;  %v11551_v2 = vld [vmem:[#allocation108_spill] sm:$0xff] }
 0x337   : > { %3648 = vmatmul.f32.gmra.mxu3 %v11511_v3  ;;  %3713 = vmatpush.msra.mxu0 %v9271_v56 }
 0x338   : > { %v9259_v23 = vadd.f32 %v3180_v21, %v3011_v30  ;;  %3550 = vmatmul.f32.gmra.mxu2 %v11511_v3  ;;  %v9274_v3 = vsub.f32 %v279_v0, %v9271_v56 }
 0x33a   : > { %11550 = vst [vmem:[#allocation138_spill] sm:$0xff] %v9259_v23  ;;  %v2779_v21 = vpop.f32.mrf.mxu0  ;;  %v3915_v23 = vand.u32 4294901760, %v3914_v7  ;;  %4070 = vmatpush.msra.mxu2 %v9274_v3 }
 0x33b   : > { %v2880_v41 = vpop.f32.mrf.mxu1  ;;  %v3018_v55 = vpop.f32.mrf.mxu2  ;;  %v2780_v0 = vadd.f32 %v2779_v21, %v9016_v29  ;;  %v276_v29 = vld [vmem:[%s10819_s2 + $0x70] sm:$0xff]  ;;  %v11193_v21 = vand.u32 4294901760, %v9252_v62 }
 0x33c   : > { %v2881_v30 = vadd.f32 %v2880_v41, %v2776_v26  ;;  %v3184_v40 = vpop.f32.mrf.mxu3  ;;  %3916 = vmatpush.msra.mxu1 %v3915_v23  ;;  %v11192_v26 = vand.u32 4294901760, %v9234_v61 }
 0x33d   : > { %3295 = vmatmul.f32.gmra.mxu0 %v11551_v2 }
 0x33e   : > { %v3019_v38 = vadd.f32 %v3018_v55, %v2881_v30  ;;  %3414 = vmatmul.f32.gmra.mxu1 %v11552_v39  ;;  %v3920_v55 = vsub.f32 %v9234_v61, %v11192_v26 }
 0x33f   : > { %3652 = vmatmul.f32.gmra.mxu3 %v11513_v5 }
 0x340   : > { %v9281_v11 = vadd.f32 %v3184_v40, %v3019_v38  ;;  %3554 = vmatmul.f32.gmra.mxu2 %v11513_v5  ;;  %v3921_v2 = vand.u32 4294901760, %v3920_v55  ;;  %v11554_v38 = vld [vmem:[#allocation112_spill] sm:$0xff]  ;;  %v11562_v5 = vld [vmem:[#allocation122_spill] sm:$0xff] }
 0x342   : > { %11553 = vst [vmem:[#allocation139_spill] sm:$0xff] %v9281_v11  ;;  %v2783_v7 = vpop.f32.mrf.mxu0  ;;  %v11555_v11 = vld [vmem:[#allocation110_spill] sm:$0xff]  ;;  %3922 = vmatpush.msra.mxu1 %v3921_v2  ;;  %v3926_v2 = vsub.f32 %v9252_v62, %v11193_v21 }
 0x343   : > { %v2884_v41 = vpop.f32.mrf.mxu1  ;;  %v3026_v23 = vpop.f32.mrf.mxu2  ;;  %v2784_v55 = vadd.f32 %v2783_v7, %v9022_v42  ;;  %v11556_v7 = vld [vmem:[#allocation116_spill] sm:$0xff] }
 0x344   : > { %v2885_v30 = vadd.f32 %v2884_v41, %v2780_v0  ;;  %v3188_v39 = vpop.f32.mrf.mxu3  ;;  %v9300_v0 = vand.u32 4294901760, %v276_v29 }
 0x345   : > { %3300 = vmatmul.f32.gmra.mxu0 %v11554_v38  ;;  %v11557_v38 = vld [vmem:[#allocation114_spill] sm:$0xff] }
 0x346   : > { %v3027_v40 = vadd.f32 %v3026_v23, %v2885_v30  ;;  %3420 = vmatmul.f32.gmra.mxu1 %v11555_v11  ;;  %v9307_v30 = vsub.f32 %v276_v29, %v9300_v0  ;;  %4200 = vmatpush.msra.mxu3 %v9300_v0  ;;  %v3927_v11 = vand.u32 4294901760, %v3926_v2  ;;  %v273_v29 = vld [vmem:[%s10819_s2 + $0x58] sm:$0xff] }
 0x347   : > { %3656 = vmatmul.f32.gmra.mxu3 %v11515_v63  ;;  %3715 = vmatpush.msra.mxu0 %v9300_v0  ;;  %v9322_v2 = vand.u32 4294901760, %v273_v29 }
 0x348   : > { %v9292_v43 = vadd.f32 %v3188_v39, %v3027_v40  ;;  %3558 = vmatmul.f32.gmra.mxu2 %v11515_v63  ;;  %3928 = vmatpush.msra.mxu1 %v3927_v11  ;;  %v11559_v63 = vld [vmem:[#allocation118_spill] sm:$0xff] }
 0x349   : > { %4073 = vmatpush.msra.mxu2 %v9307_v30  ;;  %4202 = vmatpush.msra.mxu3 %v9322_v2 }
 0x34a   : > { %v2787_v39 = vpop.f32.mrf.mxu0  ;;  %3717 = vmatpush.msra.mxu0 %v9322_v2 }
 0x34b   : > { %v2888_v41 = vpop.f32.mrf.mxu1  ;;  %v3034_v40 = vpop.f32.mrf.mxu2 }
 0x34c   : > { %v2889_v23 = vadd.f32 %v2888_v41, %v2784_v55  ;;  %v3192_v26 = vpop.f32.mrf.mxu3  ;;  %v11196_v55 = vand.u32 4294901760, %v9274_v3  ;;  %v2788_v41 = vadd.f32 %v2787_v39, %v9028_v28  ;;  %v11558_v39 = vld [vmem:[#allocation120_spill] sm:$0xff] }
 0x34d   : > { %3305 = vmatmul.f32.gmra.mxu0 %v11556_v7 }
 0x34e   : > { %v3035_v42 = vadd.f32 %v3034_v40, %v2889_v23  ;;  %3426 = vmatmul.f32.gmra.mxu1 %v11557_v38  ;;  %v3932_v11 = vsub.f32 %v9274_v3, %v11196_v55  ;;  %v9329_v40 = vsub.f32 %v273_v29, %v9322_v2  ;;  %v270_v29 = vld [vmem:[%s10819_s2 + $0x40] sm:$0xff] }
 0x34f   : > { %3660 = vmatmul.f32.gmra.mxu3 %v11517_v50 }
 0x350   : > { %v9314_v21 = vadd.f32 %v3192_v26, %v3035_v42  ;;  %3562 = vmatmul.f32.gmra.mxu2 %v11517_v50  ;;  %v3933_v50 = vand.u32 4294901760, %v3932_v11  ;;  %v9344_v11 = vand.u32 4294901760, %v270_v29 }
 0x351   : > { %4076 = vmatpush.msra.mxu2 %v9329_v40 }
 0x352   : > { %v2791_v26 = vpop.f32.mrf.mxu0  ;;  %3934 = vmatpush.msra.mxu1 %v3933_v50  ;;  %4204 = vmatpush.msra.mxu3 %v9344_v11 }
 0x353   : > { %v2892_v23 = vpop.f32.mrf.mxu1  ;;  %v3042_v38 = vpop.f32.mrf.mxu2  ;;  %3719 = vmatpush.msra.mxu0 %v9344_v11 }
 0x354   : > { %v2893_v42 = vadd.f32 %v2892_v23, %v2788_v41  ;;  %v3196_v7 = vpop.f32.mrf.mxu3  ;;  %v11199_v41 = vand.u32 4294901760, %v9307_v30 }
 0x355   : > { %3310 = vmatmul.f32.gmra.mxu0 %v11558_v39 }
 0x356   : > { %v3043_v28 = vadd.f32 %v3042_v38, %v2893_v42  ;;  %3432 = vmatmul.f32.gmra.mxu1 %v11559_v63  ;;  %v2792_v38 = vadd.f32 %v2791_v26, %v9034_v16  ;;  %v3938_v50 = vsub.f32 %v9307_v30, %v11199_v41  ;;  %v9351_v42 = vsub.f32 %v270_v29, %v9344_v11  ;;  %v11561_v26 = vld [vmem:[#allocation124_spill] sm:$0xff]  ;;  %v267_v29 = vld [vmem:[%s10819_s2 + $0x28] sm:$0xff] }
 0x357   : > { %3664 = vmatmul.f32.gmra.mxu3 %v11519_v22 }
 0x358   : > { %v9336_v55 = vadd.f32 %v3196_v7, %v3043_v28  ;;  %3566 = vmatmul.f32.gmra.mxu2 %v11519_v22  ;;  %v3939_v22 = vand.u32 4294901760, %v3938_v50  ;;  %v11201_v50 = vand.u32 4294901760, %v9329_v40 }
 0x359   : > { %4079 = vmatpush.msra.mxu2 %v9351_v42 }
 0x35a   : > { %11560 = vst [vmem:[#allocation144_spill] sm:$0xff] %v9336_v55  ;;  %v2795_v7 = vpop.f32.mrf.mxu0  ;;  %3940 = vmatpush.msra.mxu1 %v3939_v22 }
 0x35b   : > { %v2896_v23 = vpop.f32.mrf.mxu1  ;;  %v3050_v63 = vpop.f32.mrf.mxu2 }
 0x35c   : > { %v2897_v28 = vadd.f32 %v2896_v23, %v2792_v38  ;;  %v3200_v39 = vpop.f32.mrf.mxu3  ;;  %v9365_v38 = vand.u32 4294901760, %v267_v29 }
 0x35d   : > { %3315 = vmatmul.f32.gmra.mxu0 %v11561_v26 }
 0x35e   : > { %v3051_v16 = vadd.f32 %v3050_v63, %v2897_v28  ;;  %3438 = vmatmul.f32.gmra.mxu1 %v11562_v5  ;;  %v2796_v63 = vadd.f32 %v2795_v7, %v9040_v10  ;;  %v9370_v22 = vsub.f32 %v267_v29, %v9365_v38  ;;  %4206 = vmatpush.msra.mxu3 %v9365_v38  ;;  %v11564_v7 = vld [vmem:[#allocation128_spill] sm:$0xff] }
 0x35f   : > { %3668 = vmatmul.f32.gmra.mxu3 %v11521_v60  ;;  %3721 = vmatpush.msra.mxu0 %v9365_v38 }
 0x360   : > { %v9358_v41 = vadd.f32 %v3200_v39, %v3051_v16  ;;  %3570 = vmatmul.f32.gmra.mxu2 %v11521_v60  ;;  %v3944_v39 = vsub.f32 %v9329_v40, %v11201_v50 }
 0x361   : > { %4082 = vmatpush.msra.mxu2 %v9370_v22 }
 0x362   : > { %11563 = vst [vmem:[#allocation143_spill] sm:$0xff] %v9358_v41  ;;  %v2799_v23 = vpop.f32.mrf.mxu0  ;;  %v3945_v60 = vand.u32 4294901760, %v3944_v39  ;;  %v11565_v41 = vld [vmem:[#allocation126_spill] sm:$0xff]  ;;  %v264_v39 = vld [vmem:[%s10819_s2 + $0x10] sm:$0xff] }
 0x363   : > { %v2900_v28 = vpop.f32.mrf.mxu1  ;;  %v3058_v5 = vpop.f32.mrf.mxu2  ;;  %v2800_v50 = vadd.f32 %v2799_v23, %v9046_v12  ;;  %v9388_v55 = vand.u32 4294901760, %v264_v39 }
 0x364   : > { %v2901_v16 = vadd.f32 %v2900_v28, %v2796_v63  ;;  %v3204_v26 = vpop.f32.mrf.mxu3  ;;  %3946 = vmatpush.msra.mxu1 %v3945_v60  ;;  %v11202_v60 = vand.u32 4294901760, %v9351_v42 }
 0x365   : > { %3320 = vmatmul.f32.gmra.mxu0 %v11564_v7  ;;  %v9394_v12 = vsub.f32 %v264_v39, %v9388_v55  ;;  %4208 = vmatpush.msra.mxu3 %v9388_v55 }
 0x366   : > { %v3059_v10 = vadd.f32 %v3058_v5, %v2901_v16  ;;  %3444 = vmatmul.f32.gmra.mxu1 %v11565_v41  ;;  %v11567_v41 = vld [vmem:[#allocation130_spill] sm:$0xff]  ;;  %v3950_v23 = vsub.f32 %v9351_v42, %v11202_v60  ;;  %3723 = vmatpush.msra.mxu0 %v9388_v55  ;;  %v11569_v60 = vand.u32 4294901760, %v9056_v1 }
 0x367   : > { %3672 = vmatmul.f32.gmra.mxu3 %v11523_v37  ;;  %4085 = vmatpush.msra.mxu2 %v9394_v12 }
 0x368   : > { %v9380_v29 = vadd.f32 %v3204_v26, %v3059_v10  ;;  %3574 = vmatmul.f32.gmra.mxu2 %v11523_v37  ;;  %v11566_v10 = vld [vmem:[#allocation132_spill] sm:$0xff]  ;;  %4321 = vmatpush.msrb.mxu0 %v11569_v60 }
 0x36a   : > { %v2803_v63 = vpop.f32.mrf.mxu0 }
 0x36b   : > { %v2904_v28 = vpop.f32.mrf.mxu1  ;;  %v3066_v16 = vpop.f32.mrf.mxu2 }
 0x36c   : > { %v2905_v5 = vadd.f32 %v2904_v28, %v2800_v50  ;;  %v3208_v7 = vpop.f32.mrf.mxu3  ;;  %v11203_v50 = vand.u32 4294901760, %v9370_v22 }
 0x36d   : > { %3325 = vmatmul.f32.gmra.mxu0 %v11566_v10 }
 0x36e   : > { %v3067_v26 = vadd.f32 %v3066_v16, %v2905_v5  ;;  %3450 = vmatmul.f32.gmra.mxu1 %v11567_v41  ;;  %v3951_v5 = vand.u32 4294901760, %v3950_v23  ;;  %v3956_v39 = vsub.f32 %v9370_v22, %v11203_v50  ;;  %v3961_v16 = vand.u32 4294901760, %v9394_v12 }
 0x36f   : > { %3676 = vmatmul.f32.gmra.mxu3 %v11525_v20  ;;  %v2804_v41 = vadd.f32 %v2803_v63, %v9063_v48 }
 0x370   : > { %v9402_v28 = vadd.f32 %v3208_v7, %v3067_v26  ;;  %3578 = vmatmul.f32.gmra.mxu2 %v11525_v20  ;;  %3952 = vmatpush.msra.mxu1 %v3951_v5  ;;  %v336_v7 = vld [vmem:[%s10819_s2 + $0x250] sm:$0x1]  ;;  %v3957_v26 = vand.u32 4294901760, %v3956_v39  ;;  %v3962_v23 = vsub.f32 %v9394_v12, %v3961_v16  ;;  %v11570_v20 = vand.u32 4294901760, %v9073_v6 }
 0x371   : > { %v400_v37 = vsel %vm392_vm0, %v336_v7, 0  ;;  %v11571_v39 = vand.u32 4294901760, %v9091_v4  ;;  %v11572_v4 = vand.u32 4294901760, %v9124_v19  ;;  %v11574_v19 = vand.u32 4294901760, %v9168_v33  ;;  %v333_v33 = vld [vmem:[%s10819_s2 + $0x238] sm:$0xff] }
 0x372   : > { %11568 = vst [vmem:[#allocation146_spill] sm:$0xff] %v9402_v28  ;;  %v2807_v50 = vpop.f32.mrf.mxu0  ;;  %4325 = vmatpush.msrb.mxu0 %v11570_v20  ;;  %v9423_v63 = vand.u32 4294901760, %v400_v37  ;;  %3958 = vmatpush.msra.mxu1 %v3957_v26  ;;  %v3963_v5 = vand.u32 4294901760, %v3962_v23  ;;  %v11573_v26 = vand.u32 4294901760, %v9146_v53  ;;  %v11575_v53 = vand.u32 4294901760, %v9187_v59 }
 0x373   : > { %v2908_v10 = vpop.f32.mrf.mxu1  ;;  %v3074_v60 = vpop.f32.mrf.mxu2 }
 0x374   : > { %v2909_v1 = vadd.f32 %v2908_v10, %v2804_v41  ;;  %v3212_v48 = vpop.f32.mrf.mxu3  ;;  %4329 = vmatpush.msrb.mxu0 %v11571_v39  ;;  %v9430_v7 = vsub.f32 %v400_v37, %v9423_v63  ;;  %4568 = vmatpush.msrb.mxu2 %v9423_v63  ;;  %v2808_v41 = vadd.f32 %v2807_v50, %v9080_v36  ;;  %v11576_v50 = vand.u32 4294901760, %v9209_v47 }
 0x375   : > { %3330 = vmatmul.f32.gmra.mxu0 %v11393_v52  ;;  %3964 = vmatpush.msra.mxu1 %v3963_v5  ;;  %v9467_v5 = vand.u32 4294901760, %v333_v33 }
 0x376   : > { %v3075_v28 = vadd.f32 %v3074_v60, %v2909_v1  ;;  %3456 = vmatmul.f32.gmra.mxu1 %v11394_v14  ;;  %v4739_v20 = vand.u32 4294901760, %v9430_v7  ;;  %4333 = vmatpush.msrb.mxu0 %v11572_v4 }
 0x377   : > { %3680 = vmatmul.f32.gmra.mxu3 %v11395_v49  ;;  %4456 = vmatpush.msrb.mxu1 %v9053_v44 }
 0x378   : > { %v9433_v6 = vadd.f32 %v3212_v48, %v3075_v28  ;;  %3582 = vmatmul.f32.gmra.mxu2 %v11395_v49  ;;  %v4740_v37 = vsub.f32 %v9430_v7, %v4739_v20  ;;  %4337 = vmatpush.msrb.mxu0 %v11573_v26 }
 0x379   : > { %4458 = vmatpush.msrb.mxu1 %v9070_v15  ;;  %4570 = vmatpush.msrb.mxu2 %v9467_v5 }
 0x37a   : > { %v3256_v28 = vpop.f32.mrf.mxu0  ;;  %v4741_v60 = vand.u32 4294901760, %v4740_v37  ;;  %4341 = vmatpush.msrb.mxu0 %v11574_v19  ;;  %v11584_v19 = vld [vmem:[#allocation5_spill] sm:$0xff] }
 0x37b   : > { %v2912_v10 = vpop.f32.mrf.mxu1  ;;  %v3082_v44 = vpop.f32.mrf.mxu2  ;;  %4460 = vmatpush.msrb.mxu1 %v9088_v27  ;;  %v3257_v27 = vadd.f32 %v3256_v28, %v9098_v51  ;;  %v9474_v51 = vsub.f32 %v333_v33, %v9467_v5 }
 0x37c   : > { %v2913_v23 = vadd.f32 %v2912_v10, %v2808_v41  ;;  %v3216_v1 = vpop.f32.mrf.mxu3  ;;  %4742 = vmatpush.msrb.mxu3 %v4741_v60  ;;  %4345 = vmatpush.msrb.mxu0 %v11575_v53  ;;  %v11578_v41 = vand.u32 4294901760, %v9252_v62  ;;  %v11579_v10 = vand.u32 4294901760, %v9274_v3  ;;  %v11582_v3 = vand.u32 4294901760, %v9329_v40  ;;  %v11583_v60 = vld [vmem:[#allocation6_spill] sm:$0xff] }
 0x37d   : > { %3335 = vmatmul.f32.gmra.mxu0 %v11400_v9  ;;  %4462 = vmatpush.msrb.mxu1 %v9117_v57 }
 0x37e   : > { %v3083_v36 = vadd.f32 %v3082_v44, %v2913_v23  ;;  %3462 = vmatmul.f32.gmra.mxu1 %v11401_v25  ;;  %4349 = vmatpush.msrb.mxu0 %v11576_v50 }
 0x37f   : > { %3684 = vmatmul.f32.gmra.mxu3 %v11402_v18  ;;  %4464 = vmatpush.msrb.mxu1 %v9139_v31  ;;  %v11577_v31 = vand.u32 4294901760, %v9234_v61 }
 0x380   : > { %v9454_v15 = vadd.f32 %v3216_v1, %v3083_v36  ;;  %3586 = vmatmul.f32.gmra.mxu2 %v11402_v18  ;;  %v11580_v1 = vand.u32 4294901760, %v9307_v30 }
 0x381   : > { %4466 = vmatpush.msrb.mxu1 %v9161_v45  ;;  %4353 = vmatpush.msrb.mxu0 %v11577_v31  ;;  %v4745_v45 = vand.u32 4294901760, %v9474_v51 }
 0x382   : > { %v3261_v57 = vpop.f32.mrf.mxu0 }
 0x383   : > { %v3373_v48 = vpop.f32.mrf.mxu1  ;;  %v3523_v39 = vpop.f32.mrf.mxu2  ;;  %4468 = vmatpush.msrb.mxu1 %v9182_v17  ;;  %4357 = vmatpush.msrb.mxu0 %v11578_v41  ;;  %v4746_v17 = vsub.f32 %v9474_v51, %v4745_v45  ;;  %v3262_v37 = vadd.f32 %v3261_v57, %v9109_v13  ;;  %v11581_v13 = vld [vmem:[#allocation9_spill] sm:$0xff]  ;;  %v11588_v57 = vld [vmem:[#allocation4_spill] sm:$0xff] }
 0x384   : > { %v3374_v59 = vadd.f32 %v3373_v48, %v3257_v27  ;;  %v3621_v4 = vpop.f32.mrf.mxu3 }
 0x385   : > { %3340 = vmatmul.f32.gmra.mxu0 %v11406_v54  ;;  %4470 = vmatpush.msrb.mxu1 %v9204_v34  ;;  %v4747_v28 = vand.u32 4294901760, %v4746_v17 }
 0x386   : > { %v3524_v47 = vadd.f32 %v3523_v39, %v3374_v59  ;;  %3468 = vmatmul.f32.gmra.mxu1 %v11407_v8  ;;  %4361 = vmatpush.msrb.mxu0 %v11579_v10  ;;  %v11589_v59 = vld [vmem:[#allocation10_spill] sm:$0xff]  ;;  %v11591_v39 = vld [vmem:[#allocation136_spill] sm:$0xff]  ;;  %v11593_v10 = vld [vmem:[#allocation7_spill] sm:$0xff] }
 0x387   : > { %3688 = vmatmul.f32.gmra.mxu3 %v8278_v24  ;;  %4472 = vmatpush.msrb.mxu1 %v9228_v46 }
 0x388   : > { %v3622_v61 = vadd.f32 %v3621_v4, %v3524_v47  ;;  %3590 = vmatmul.f32.gmra.mxu2 %v8278_v24  ;;  %4365 = vmatpush.msrb.mxu0 %v11580_v1 }
 0x389   : > { %4474 = vmatpush.msrb.mxu1 %v9249_v32  ;;  %4748 = vmatpush.msrb.mxu3 %v4747_v28  ;;  %v11595_v28 = vld [vmem:[#allocation12_spill] sm:$0xff] }
 0x38a   : > { %5338 = vst [vmem:[#allocation2 + $0xd0] sm:$0xff] %v3622_v61  ;;  %v3266_v34 = vpop.f32.mrf.mxu0  ;;  %4369 = vmatpush.msrb.mxu0 %v11582_v3 }
 0x38b   : > { %v3379_v62 = vpop.f32.mrf.mxu1  ;;  %v3527_v23 = vpop.f32.mrf.mxu2  ;;  %4476 = vmatpush.msrb.mxu1 %v9271_v56  ;;  %v3267_v30 = vadd.f32 %v3266_v34, %v9131_v58  ;;  %v11585_v56 = vand.u32 4294901760, %v9351_v42  ;;  %v11587_v42 = vld [vmem:[#allocation13_spill] sm:$0xff] }
 0x38c   : > { %v3380_v26 = vadd.f32 %v3379_v62, %v3262_v37  ;;  %v3625_v44 = vpop.f32.mrf.mxu3  ;;  %v11592_v37 = vld [vmem:[#allocation17_spill] sm:$0xff]  ;;  %v11594_v62 = vld [vmem:[#allocation14_spill] sm:$0xff] }
 0x38d   : > { %3729 = vmatmul.f32.vlgmr.msra.gmra.mxu0 %v11581_v13  ;;  %4478 = vmatpush.msrb.mxu1 %v9300_v0  ;;  %v330_v0 = vld [vmem:[%s10819_s2 + $0x220] sm:$0xff] }
 0x38e   : > { %v3528_v46 = vadd.f32 %v3527_v23, %v3380_v26  ;;  %3474 = vmatmul.f32.gmra.mxu1 %v11411_v35  ;;  %4373 = vmatpush.msrb.mxu0 %v11585_v56  ;;  %v9511_v50 = vand.u32 4294901760, %v330_v0  ;;  %v11596_v26 = vld [vmem:[#allocation134_spill] sm:$0xff]  ;;  %v11597_v56 = vld [vmem:[#allocation21_spill] sm:$0xff] }
 0x38f   : > { %4212 = vmatmul.f32.vlgmr.msra.gmra.mxu3 %v11583_v60  ;;  %4480 = vmatpush.msrb.mxu1 %v9322_v2  ;;  %v11586_v2 = vand.u32 4294901760, %v9370_v22 }
 0x390   : > { %v3626_v32 = vadd.f32 %v3625_v44, %v3528_v46  ;;  %4088 = vmatmul.f32.vlgmr.msra.gmra.mxu2 %v11584_v19  ;;  %v9519_v48 = vsub.f32 %v330_v0, %v9511_v50  ;;  %v327_v44 = vld [vmem:[%s10819_s2 + $0x208] sm:$0xff] }
 0x391   : > { %4482 = vmatpush.msrb.mxu1 %v9344_v11  ;;  %4377 = vmatpush.msrb.mxu0 %v11586_v2  ;;  %v9546_v13 = vand.u32 4294901760, %v327_v44  ;;  %v11601_v2 = vld [vmem:[#allocation135_spill] sm:$0xff] }
 0x392   : > { %5341 = vst [vmem:[#allocation2 + $0x160] sm:$0xff] %v3626_v32  ;;  %v3271_v36 = vpop.f32.mrf.mxu0  ;;  %4572 = vmatpush.msrb.mxu2 %v9511_v50  ;;  %v4751_v22 = vand.u32 4294901760, %v9519_v48 }
 0x393   : > { %v3385_v53 = vpop.f32.mrf.mxu1  ;;  %v3531_v27 = vpop.f32.mrf.mxu2  ;;  %4484 = vmatpush.msrb.mxu1 %v9365_v38  ;;  %4381 = vmatpush.msrb.mxu0 %v3961_v16  ;;  %v11590_v38 = vld [vmem:[#allocation8_spill] sm:$0xff]  ;;  %v3272_v4 = vadd.f32 %v3271_v36, %v11591_v39  ;;  %v9550_v19 = vsub.f32 %v327_v44, %v9546_v13  ;;  %v11598_v36 = vld [vmem:[#allocation11_spill] sm:$0xff]  ;;  %v11607_v44 = vld [vmem:[#allocation29_spill] sm:$0xff] }
 0x394   : > { %v3386_v40 = vadd.f32 %v3385_v53, %v3267_v30  ;;  %v3629_v33 = vpop.f32.mrf.mxu3  ;;  %v4752_v31 = vsub.f32 %v9519_v48, %v4751_v22  ;;  %4574 = vmatpush.msrb.mxu2 %v9546_v13 }
 0x395   : > { %3737 = vmatmul.f32.gmra.mxu0 %v11587_v42  ;;  %4486 = vmatpush.msrb.mxu1 %v9388_v55  ;;  %v4757_v53 = vand.u32 4294901760, %v9550_v19 }
 0x396   : > { %v3532_v58 = vadd.f32 %v3531_v27, %v3386_v40  ;;  %3966 = vmatmul.f32.vlgmr.msra.gmra.mxu1 %v11588_v57  ;;  %4873 = vmatpush.msra.mxu0 %v9430_v7  ;;  %v4753_v61 = vand.u32 4294901760, %v4752_v31  ;;  %v11599_v40 = vld [vmem:[#allocation18_spill] sm:$0xff]  ;;  %v11600_v27 = vld [vmem:[#allocation16_spill] sm:$0xff] }
 0x397   : > { %4218 = vmatmul.f32.gmra.mxu3 %v11589_v59  ;;  %4997 = vmatpush.msra.mxu1 %v9423_v63 }
 0x398   : > { %v3630_v11 = vadd.f32 %v3629_v33, %v3532_v58  ;;  %4093 = vmatmul.f32.gmra.mxu2 %v11590_v38  ;;  %4876 = vmatpush.msra.mxu0 %v9474_v51  ;;  %v4758_v33 = vsub.f32 %v9550_v19, %v4757_v53 }
 0x399   : > { %4999 = vmatpush.msra.mxu1 %v9467_v5  ;;  %4754 = vmatpush.msrb.mxu3 %v4753_v61  ;;  %v11606_v61 = vld [vmem:[#allocation141_spill] sm:$0xff] }
 0x39a   : > { %5344 = vst [vmem:[#allocation2 + $0x178] sm:$0xff] %v3630_v11  ;;  %v3276_v12 = vpop.f32.mrf.mxu0  ;;  %4879 = vmatpush.msra.mxu0 %v9519_v48  ;;  %v4759_v59 = vand.u32 4294901760, %v4758_v33 }
 0x39b   : > { %v3391_v16 = vpop.f32.mrf.mxu1  ;;  %v3535_v41 = vpop.f32.mrf.mxu2  ;;  %5001 = vmatpush.msra.mxu1 %v9511_v50  ;;  %v3277_v23 = vadd.f32 %v3276_v12, %v11596_v26  ;;  %v11602_v12 = vld [vmem:[#allocation25_spill] sm:$0xff] }
 0x39c   : > { %v3392_v47 = vadd.f32 %v3391_v16, %v3272_v4  ;;  %v3633_v55 = vpop.f32.mrf.mxu3  ;;  %4882 = vmatpush.msra.mxu0 %v9550_v19  ;;  %4760 = vmatpush.msrb.mxu3 %v4759_v59  ;;  %v11603_v16 = vld [vmem:[#allocation15_spill] sm:$0xff]  ;;  %v11612_v59 = vld [vmem:[#allocation33_spill] sm:$0xff]  ;;  %v11655_v19 = vld [vmem:[#allocation66_spill] sm:$0xff] }
 0x39d   : > { %3745 = vmatmul.f32.gmra.mxu0 %v11592_v37  ;;  %5003 = vmatpush.msra.mxu1 %v9546_v13 }
 0x39e   : > { %v3536_v17 = vadd.f32 %v3535_v41, %v3392_v47  ;;  %3970 = vmatmul.f32.gmra.mxu1 %v11593_v10  ;;  %v11604_v41 = vld [vmem:[#allocation22_spill] sm:$0xff] }
 0x39f   : > { %4224 = vmatmul.f32.gmra.mxu3 %v11594_v62 }
 0x3a0   : > { %v3634_v34 = vadd.f32 %v3633_v55, %v3536_v17  ;;  %4098 = vmatmul.f32.gmra.mxu2 %v11595_v28  ;;  %v11605_v55 = vld [vmem:[#allocation20_spill] sm:$0xff] }
 0x3a2   : > { %5347 = vst [vmem:[#allocation2 + $0x90] sm:$0xff] %v3634_v34  ;;  %v3281_v1 = vpop.f32.mrf.mxu0 }
 0x3a3   : > { %v3397_v46 = vpop.f32.mrf.mxu1  ;;  %v3539_v32 = vpop.f32.mrf.mxu2  ;;  %v3282_v58 = vadd.f32 %v3281_v1, %v11601_v2  ;;  %v11608_v1 = vld [vmem:[#allocation19_spill] sm:$0xff] }
 0x3a4   : > { %v3398_v3 = vadd.f32 %v3397_v46, %v3277_v23  ;;  %v3637_v60 = vpop.f32.mrf.mxu3 }
 0x3a5   : > { %3753 = vmatmul.f32.gmra.mxu0 %v11597_v56 }
 0x3a6   : > { %v3540_v30 = vadd.f32 %v3539_v32, %v3398_v3  ;;  %3974 = vmatmul.f32.gmra.mxu1 %v11598_v36  ;;  %v11609_v3 = vld [vmem:[#allocation26_spill] sm:$0xff]  ;;  %v11610_v32 = vld [vmem:[#allocation24_spill] sm:$0xff] }
 0x3a7   : > { %4230 = vmatmul.f32.gmra.mxu3 %v11599_v40 }
 0x3a8   : > { %v3638_v0 = vadd.f32 %v3637_v60, %v3540_v30  ;;  %4103 = vmatmul.f32.gmra.mxu2 %v11600_v27  ;;  %v324_v60 = vld [vmem:[%s10819_s2 + $0x1f0] sm:$0xff]  ;;  %v11611_v30 = vld [vmem:[#allocation140_spill] sm:$0xff] }
 0x3aa   : > { %5350 = vst [vmem:[#allocation2 + $0x100] sm:$0xff] %v3638_v0  ;;  %v3286_v42 = vpop.f32.mrf.mxu0  ;;  %v9576_v0 = vand.u32 4294901760, %v324_v60 }
 0x3ab   : > { %v3403_v11 = vpop.f32.mrf.mxu1  ;;  %v3543_v39 = vpop.f32.mrf.mxu2  ;;  %v3287_v17 = vadd.f32 %v3286_v42, %v11606_v61 }
 0x3ac   : > { %v3404_v38 = vadd.f32 %v3403_v11, %v3282_v58  ;;  %v3641_v4 = vpop.f32.mrf.mxu3  ;;  %4576 = vmatpush.msrb.mxu2 %v9576_v0  ;;  %v9580_v42 = vsub.f32 %v324_v60, %v9576_v0  ;;  %5005 = vmatpush.msra.mxu1 %v9576_v0  ;;  %v11621_v60 = vld [vmem:[#allocation139_spill] sm:$0xff] }
 0x3ad   : > { %3761 = vmatmul.f32.gmra.mxu0 %v11602_v12 }
 0x3ae   : > { %v3544_v31 = vadd.f32 %v3543_v39, %v3404_v38  ;;  %3978 = vmatmul.f32.gmra.mxu1 %v11603_v16  ;;  %v11613_v38 = vld [vmem:[#allocation23_spill] sm:$0xff]  ;;  %v4763_v39 = vand.u32 4294901760, %v9580_v42  ;;  %4885 = vmatpush.msra.mxu0 %v9580_v42 }
 0x3af   : > { %4236 = vmatmul.f32.gmra.mxu3 %v11604_v41  ;;  %v11616_v41 = vld [vmem:[#allocation138_spill] sm:$0xff] }
 0x3b0   : > { %v3642_v47 = vadd.f32 %v3641_v4, %v3544_v31  ;;  %4108 = vmatmul.f32.gmra.mxu2 %v11605_v55  ;;  %v11614_v31 = vld [vmem:[#allocation30_spill] sm:$0xff]  ;;  %v4764_v12 = vsub.f32 %v9580_v42, %v4763_v39 }
 0x3b2   : > { %5353 = vst [vmem:[#allocation2 + $0x180] sm:$0xff] %v3642_v47  ;;  %v3291_v37 = vpop.f32.mrf.mxu0  ;;  %v11615_v47 = vld [vmem:[#allocation28_spill] sm:$0xff]  ;;  %v4765_v61 = vand.u32 4294901760, %v4764_v12  ;;  %v11623_v12 = vld [vmem:[#allocation31_spill] sm:$0xff] }
 0x3b3   : > { %v3409_v34 = vpop.f32.mrf.mxu1  ;;  %v3547_v28 = vpop.f32.mrf.mxu2  ;;  %v3292_v56 = vadd.f32 %v3291_v37, %v11611_v30 }
 0x3b4   : > { %v3410_v62 = vadd.f32 %v3409_v34, %v3287_v17  ;;  %v3645_v26 = vpop.f32.mrf.mxu3  ;;  %4766 = vmatpush.msrb.mxu3 %v4765_v61  ;;  %v11625_v61 = vld [vmem:[#allocation36_spill] sm:$0xff] }
 0x3b5   : > { %3769 = vmatmul.f32.gmra.mxu0 %v11607_v44  ;;  %v11618_v44 = vld [vmem:[#allocation27_spill] sm:$0xff] }
 0x3b6   : > { %v3548_v23 = vadd.f32 %v3547_v28, %v3410_v62  ;;  %3982 = vmatmul.f32.gmra.mxu1 %v11608_v1 }
 0x3b7   : > { %4242 = vmatmul.f32.gmra.mxu3 %v11609_v3  ;;  %v11619_v3 = vld [vmem:[#allocation34_spill] sm:$0xff] }
 0x3b8   : > { %v3646_v46 = vadd.f32 %v3645_v26, %v3548_v23  ;;  %4113 = vmatmul.f32.gmra.mxu2 %v11610_v32  ;;  %v11617_v23 = vld [vmem:[#allocation37_spill] sm:$0xff]  ;;  %v11620_v32 = vld [vmem:[#allocation32_spill] sm:$0xff] }
 0x3ba   : > { %5356 = vst [vmem:[#allocation2 + $0x78] sm:$0xff] %v3646_v46  ;;  %v3296_v40 = vpop.f32.mrf.mxu0 }
 0x3bb   : > { %v3415_v27 = vpop.f32.mrf.mxu1  ;;  %v3551_v2 = vpop.f32.mrf.mxu2  ;;  %v3297_v55 = vadd.f32 %v3296_v40, %v11616_v41 }
 0x3bc   : > { %v3416_v33 = vadd.f32 %v3415_v27, %v3292_v56  ;;  %v3649_v58 = vpop.f32.mrf.mxu3  ;;  %v321_v56 = vld [vmem:[%s10819_s2 + $0x1d8] sm:$0xff] }
 0x3bd   : > { %3777 = vmatmul.f32.gmra.mxu0 %v11612_v59 }
 0x3be   : > { %v3552_v11 = vadd.f32 %v3551_v2, %v3416_v33  ;;  %3986 = vmatmul.f32.gmra.mxu1 %v11613_v38  ;;  %v9601_v33 = vand.u32 4294901760, %v321_v56 }
 0x3bf   : > { %4248 = vmatmul.f32.gmra.mxu3 %v11614_v31  ;;  %v11622_v31 = vld [vmem:[#allocation41_spill] sm:$0xff] }
 0x3c0   : > { %v3650_v4 = vadd.f32 %v3649_v58, %v3552_v11  ;;  %4118 = vmatmul.f32.gmra.mxu2 %v11615_v47  ;;  %v9605_v59 = vsub.f32 %v321_v56, %v9601_v33  ;;  %5007 = vmatpush.msra.mxu1 %v9601_v33  ;;  %v11628_v56 = vld [vmem:[#allocation42_spill] sm:$0xff] }
 0x3c1   : > { %4578 = vmatpush.msrb.mxu2 %v9601_v33 }
 0x3c2   : > { %5359 = vst [vmem:[#allocation2 + $0x98] sm:$0xff] %v3650_v4  ;;  %v3301_v17 = vpop.f32.mrf.mxu0  ;;  %v4769_v47 = vand.u32 4294901760, %v9605_v59  ;;  %4888 = vmatpush.msra.mxu0 %v9605_v59 }
 0x3c3   : > { %v3421_v37 = vpop.f32.mrf.mxu1  ;;  %v3555_v62 = vpop.f32.mrf.mxu2  ;;  %v3302_v30 = vadd.f32 %v3301_v17, %v11621_v60  ;;  %v11627_v60 = vld [vmem:[#allocation35_spill] sm:$0xff] }
 0x3c4   : > { %v3422_v34 = vadd.f32 %v3421_v37, %v3297_v55  ;;  %v3653_v28 = vpop.f32.mrf.mxu3  ;;  %v11624_v55 = vld [vmem:[#allocation38_spill] sm:$0xff]  ;;  %v4770_v17 = vsub.f32 %v9605_v59, %v4769_v47 }
 0x3c5   : > { %3785 = vmatmul.f32.gmra.mxu0 %v11617_v23 }
 0x3c6   : > { %v3556_v26 = vadd.f32 %v3555_v62, %v3422_v34  ;;  %3990 = vmatmul.f32.gmra.mxu1 %v11618_v44 }
 0x3c7   : > { %4254 = vmatmul.f32.gmra.mxu3 %v11619_v3 }
 0x3c8   : > { %v3654_v46 = vadd.f32 %v3653_v28, %v3556_v26  ;;  %4123 = vmatmul.f32.gmra.mxu2 %v11620_v32  ;;  %v4771_v28 = vand.u32 4294901760, %v4770_v17  ;;  %v11626_v32 = vld [vmem:[#allocation45_spill] sm:$0xff]  ;;  %v11631_v17 = vld [vmem:[#allocation39_spill] sm:$0xff] }
 0x3ca   : > { %5362 = vst [vmem:[#allocation2 + $0xa8] sm:$0xff] %v3654_v46  ;;  %v3306_v40 = vpop.f32.mrf.mxu0  ;;  %4772 = vmatpush.msrb.mxu3 %v4771_v28  ;;  %v11633_v28 = vld [vmem:[#allocation44_spill] sm:$0xff] }
 0x3cb   : > { %v3427_v27 = vpop.f32.mrf.mxu1  ;;  %v3559_v58 = vpop.f32.mrf.mxu2  ;;  %v3307_v37 = vadd.f32 %v3306_v40, %v9292_v43  ;;  %v318_v40 = vld [vmem:[%s10819_s2 + $0x1c0] sm:$0xff] }
 0x3cc   : > { %v3428_v2 = vadd.f32 %v3427_v27, %v3302_v30  ;;  %v3657_v11 = vpop.f32.mrf.mxu3  ;;  %v11629_v27 = vld [vmem:[#allocation40_spill] sm:$0xff] }
 0x3cd   : > { %3793 = vmatmul.f32.gmra.mxu0 %v11622_v31 }
 0x3ce   : > { %v3560_v4 = vadd.f32 %v3559_v58, %v3428_v2  ;;  %3994 = vmatmul.f32.gmra.mxu1 %v11623_v12 }
 0x3cf   : > { %4260 = vmatmul.f32.gmra.mxu3 %v11624_v55 }
 0x3d0   : > { %v3658_v41 = vadd.f32 %v3657_v11, %v3560_v4  ;;  %4128 = vmatmul.f32.gmra.mxu2 %v11625_v61  ;;  %v9626_v11 = vand.u32 4294901760, %v318_v40  ;;  %v11630_v61 = vld [vmem:[#allocation49_spill] sm:$0xff] }
 0x3d2   : > { %5365 = vst [vmem:[#allocation2 + $0x168] sm:$0xff] %v3658_v41  ;;  %v3311_v34 = vpop.f32.mrf.mxu0  ;;  %4580 = vmatpush.msrb.mxu2 %v9626_v11  ;;  %v9630_v55 = vsub.f32 %v318_v40, %v9626_v11  ;;  %5009 = vmatpush.msra.mxu1 %v9626_v11 }
 0x3d3   : > { %v3433_v62 = vpop.f32.mrf.mxu1  ;;  %v3563_v23 = vpop.f32.mrf.mxu2  ;;  %v3312_v43 = vadd.f32 %v3311_v34, %v9314_v21 }
 0x3d4   : > { %v3434_v26 = vadd.f32 %v3433_v62, %v3307_v37  ;;  %v3661_v46 = vpop.f32.mrf.mxu3  ;;  %v4775_v37 = vand.u32 4294901760, %v9630_v55  ;;  %4891 = vmatpush.msra.mxu0 %v9630_v55  ;;  %v11632_v62 = vld [vmem:[#allocation46_spill] sm:$0xff] }
 0x3d5   : > { %3801 = vmatmul.f32.gmra.mxu0 %v11626_v32 }
 0x3d6   : > { %v3564_v3 = vadd.f32 %v3563_v23, %v3434_v26  ;;  %3998 = vmatmul.f32.gmra.mxu1 %v11627_v60  ;;  %v4776_v26 = vsub.f32 %v9630_v55, %v4775_v37  ;;  %v11634_v23 = vld [vmem:[#allocation144_spill] sm:$0xff] }
 0x3d7   : > { %4266 = vmatmul.f32.gmra.mxu3 %v11628_v56 }
 0x3d8   : > { %v3662_v30 = vadd.f32 %v3661_v46, %v3564_v3  ;;  %4133 = vmatmul.f32.gmra.mxu2 %v11629_v27 }
 0x3da   : > { %5368 = vst [vmem:[#allocation2 + $0x140] sm:$0xff] %v3662_v30  ;;  %v3316_v2 = vpop.f32.mrf.mxu0  ;;  %v4777_v30 = vand.u32 4294901760, %v4776_v26 }
 0x3db   : > { %v3439_v58 = vpop.f32.mrf.mxu1  ;;  %v3567_v31 = vpop.f32.mrf.mxu2  ;;  %v3317_v46 = vadd.f32 %v3316_v2, %v11634_v23 }
 0x3dc   : > { %v3440_v4 = vadd.f32 %v3439_v58, %v3312_v43  ;;  %v3665_v41 = vpop.f32.mrf.mxu3  ;;  %4778 = vmatpush.msrb.mxu3 %v4777_v30  ;;  %v11635_v58 = vld [vmem:[#allocation53_spill] sm:$0xff] }
 0x3dd   : > { %3809 = vmatmul.f32.gmra.mxu0 %v11630_v61  ;;  %v11639_v61 = vld [vmem:[#allocation143_spill] sm:$0xff] }
 0x3de   : > { %v3568_v21 = vadd.f32 %v3567_v31, %v3440_v4  ;;  %4002 = vmatmul.f32.gmra.mxu1 %v11631_v17  ;;  %v11636_v4 = vld [vmem:[#allocation43_spill] sm:$0xff] }
 0x3df   : > { %4272 = vmatmul.f32.gmra.mxu3 %v11632_v62 }
 0x3e0   : > { %v3666_v34 = vadd.f32 %v3665_v41, %v3568_v21  ;;  %4138 = vmatmul.f32.gmra.mxu2 %v11633_v28  ;;  %v11637_v41 = vld [vmem:[#allocation50_spill] sm:$0xff]  ;;  %v11638_v21 = vld [vmem:[#allocation48_spill] sm:$0xff] }
 0x3e2   : > { %5371 = vst [vmem:[#allocation2 + $0x170] sm:$0xff] %v3666_v34  ;;  %v3321_v3 = vpop.f32.mrf.mxu0  ;;  %v315_v34 = vld [vmem:[%s10819_s2 + $0x1a8] sm:$0xff] }
 0x3e3   : > { %v3445_v32 = vpop.f32.mrf.mxu1  ;;  %v3571_v27 = vpop.f32.mrf.mxu2  ;;  %v3322_v2 = vadd.f32 %v3321_v3, %v11639_v61  ;;  %v9651_v26 = vand.u32 4294901760, %v315_v34 }
 0x3e4   : > { %v3446_v56 = vadd.f32 %v3445_v32, %v3317_v46  ;;  %v3669_v43 = vpop.f32.mrf.mxu3 }
 0x3e5   : > { %3817 = vmatmul.f32.gmra.mxu0 %v11635_v58  ;;  %4582 = vmatpush.msrb.mxu2 %v9651_v26  ;;  %v9655_v30 = vsub.f32 %v315_v34, %v9651_v26  ;;  %v11642_v58 = vld [vmem:[#allocation54_spill] sm:$0xff] }
 0x3e6   : > { %v3572_v40 = vadd.f32 %v3571_v27, %v3446_v56  ;;  %4006 = vmatmul.f32.gmra.mxu1 %v11636_v4  ;;  %v11640_v56 = vld [vmem:[#allocation57_spill] sm:$0xff]  ;;  %v11641_v27 = vld [vmem:[#allocation47_spill] sm:$0xff] }
 0x3e7   : > { %4278 = vmatmul.f32.gmra.mxu3 %v11637_v41  ;;  %5011 = vmatpush.msra.mxu1 %v9651_v26 }
 0x3e8   : > { %v3670_v31 = vadd.f32 %v3669_v43, %v3572_v40  ;;  %4143 = vmatmul.f32.gmra.mxu2 %v11638_v21  ;;  %v11206_v43 = vand.u32 4294901760, %v9655_v30  ;;  %4894 = vmatpush.msra.mxu0 %v9655_v30 }
 0x3ea   : > { %5374 = vst [vmem:[#allocation2 + $0x190] sm:$0xff] %v3670_v31  ;;  %v3326_v62 = vpop.f32.mrf.mxu0  ;;  %v11643_v31 = vld [vmem:[#allocation52_spill] sm:$0xff]  ;;  %v4782_v41 = vsub.f32 %v9655_v30, %v11206_v43  ;;  %v11650_v43 = vld [vmem:[#allocation55_spill] sm:$0xff] }
 0x3eb   : > { %v3451_v28 = vpop.f32.mrf.mxu1  ;;  %v3575_v46 = vpop.f32.mrf.mxu2  ;;  %v3327_v21 = vadd.f32 %v3326_v62, %v9380_v29  ;;  %v11646_v62 = vld [vmem:[#allocation58_spill] sm:$0xff] }
 0x3ec   : > { %v3452_v23 = vadd.f32 %v3451_v28, %v3322_v2  ;;  %v3673_v32 = vpop.f32.mrf.mxu3  ;;  %v4783_v34 = vand.u32 4294901760, %v4782_v41  ;;  %v11647_v41 = vld [vmem:[#allocation56_spill] sm:$0xff] }
 0x3ed   : > { %3825 = vmatmul.f32.gmra.mxu0 %v11640_v56  ;;  %v11644_v56 = vld [vmem:[#allocation61_spill] sm:$0xff] }
 0x3ee   : > { %v3576_v3 = vadd.f32 %v3575_v46, %v3452_v23  ;;  %4010 = vmatmul.f32.gmra.mxu1 %v11641_v27  ;;  %4784 = vmatpush.msrb.mxu3 %v4783_v34 }
 0x3ef   : > { %4284 = vmatmul.f32.gmra.mxu3 %v11642_v58  ;;  %v11645_v58 = vld [vmem:[#allocation51_spill] sm:$0xff] }
 0x3f0   : > { %v3674_v40 = vadd.f32 %v3673_v32, %v3576_v3  ;;  %4148 = vmatmul.f32.gmra.mxu2 %v11643_v31  ;;  %v312_v32 = vld [vmem:[%s10819_s2 + $0x190] sm:$0xff] }
 0x3f1   : > { %v9673_v31 = vand.u32 4294901760, %v312_v32 }
 0x3f2   : > { %5377 = vst [vmem:[#allocation2 + $0x150] sm:$0xff] %v3674_v40  ;;  %v3331_v61 = vpop.f32.mrf.mxu0 }
 0x3f3   : > { %v3457_v2 = vpop.f32.mrf.mxu1  ;;  %v3579_v23 = vpop.f32.mrf.mxu2  ;;  %4584 = vmatpush.msrb.mxu2 %v9673_v31  ;;  %v4786_v40 = vsub.f32 %v312_v32, %v9673_v31  ;;  %5013 = vmatpush.msra.mxu1 %v9673_v31 }
 0x3f4   : > { %v3458_v28 = vadd.f32 %v3457_v2, %v3327_v21  ;;  %v3677_v46 = vpop.f32.mrf.mxu3  ;;  %v11648_v21 = vld [vmem:[#allocation146_spill] sm:$0xff] }
 0x3f5   : > { %3833 = vmatmul.f32.gmra.mxu0 %v11644_v56  ;;  %v3332_v2 = vadd.f32 %v3331_v61, %v11648_v21  ;;  %5133 = vmatpush.msra.mxu2 %v4739_v20  ;;  %v11651_v20 = vld [vmem:[#allocation62_spill] sm:$0xff] }
 0x3f6   : > { %v3580_v3 = vadd.f32 %v3579_v23, %v3458_v28  ;;  %4014 = vmatmul.f32.gmra.mxu1 %v11645_v58  ;;  %4897 = vmatpush.msra.mxu0 %v4786_v40  ;;  %v4787_v23 = vand.u32 4294901760, %v4786_v40 }
 0x3f7   : > { %4290 = vmatmul.f32.gmra.mxu3 %v11646_v62  ;;  %5137 = vmatpush.msra.mxu2 %v4745_v45 }
 0x3f8   : > { %v3678_v29 = vadd.f32 %v3677_v46, %v3580_v3  ;;  %4153 = vmatmul.f32.gmra.mxu2 %v11647_v41  ;;  %v4788_v32 = vsub.f32 %v4786_v40, %v4787_v23  ;;  %v11649_v41 = vld [vmem:[#allocation65_spill] sm:$0xff] }
 0x3f9   : > { %5141 = vmatpush.msra.mxu2 %v4751_v22 }
 0x3fa   : > { %5380 = vst [vmem:[#allocation2 + $0x18] sm:$0xff] %v3678_v29  ;;  %v3336_v34 = vpop.f32.mrf.mxu0  ;;  %v4789_v61 = vand.u32 4294901760, %v4788_v32  ;;  %v11652_v29 = vld [vmem:[#allocation60_spill] sm:$0xff] }
 0x3fb   : > { %v3463_v28 = vpop.f32.mrf.mxu1  ;;  %v3583_v3 = vpop.f32.mrf.mxu2  ;;  %v3337_v21 = vadd.f32 %v3336_v34, %v9433_v6  ;;  %5145 = vmatpush.msra.mxu2 %v4757_v53  ;;  %v11654_v6 = vld [vmem:[#allocation59_spill] sm:$0xff]  ;;  %v11656_v53 = vld [vmem:[#allocation64_spill] sm:$0xff]  ;;  %v11657_v34 = vand.u32 4294901760, %v9655_v30 }
 0x3fc   : > { %v3464_v46 = vadd.f32 %v3463_v28, %v3332_v2  ;;  %v3681_v56 = vpop.f32.mrf.mxu3  ;;  %4790 = vmatpush.msrb.mxu3 %v4789_v61  ;;  %v11653_v28 = vld [vmem:[#allocation69_spill] sm:$0xff]  ;;  %v11664_v61 = vld [vmem:[#allocation74_spill] sm:$0xff] }
 0x3fd   : > { %3841 = vmatmul.f32.gmra.mxu0 %v11649_v41  ;;  %5149 = vmatpush.msra.mxu2 %v4763_v39  ;;  %v11662_v41 = vld [vmem:[#allocation77_spill] sm:$0xff] }
 0x3fe   : > { %v3584_v62 = vadd.f32 %v3583_v3, %v3464_v46  ;;  %4018 = vmatmul.f32.gmra.mxu1 %v11650_v43  ;;  %5247 = vmatpush.msra.mxu3 %v9423_v63 }
 0x3ff   : > { %4296 = vmatmul.f32.gmra.mxu3 %v11651_v20  ;;  %5153 = vmatpush.msra.mxu2 %v4769_v47 }
 0x400   : > { %v3682_v7 = vadd.f32 %v3681_v56, %v3584_v62  ;;  %4158 = vmatmul.f32.gmra.mxu2 %v11652_v29  ;;  %5249 = vmatpush.msra.mxu3 %v9467_v5 }
 0x401   : > { %5157 = vmatpush.msra.mxu2 %v4775_v37  ;;  %v11660_v37 = vld [vmem:[#allocation70_spill] sm:$0xff] }
 0x402   : > { %5383 = vst [vmem:[#allocation2 + $0x70] sm:$0xff] %v3682_v7  ;;  %v3341_v51 = vpop.f32.mrf.mxu0  ;;  %5251 = vmatpush.msra.mxu3 %v9511_v50  ;;  %v11665_v7 = vld [vmem:[#allocation72_spill] sm:$0xff] }
 0x403   : > { %v3469_v45 = vpop.f32.mrf.mxu1  ;;  %v3587_v2 = vpop.f32.mrf.mxu2  ;;  %v3342_v5 = vadd.f32 %v3341_v51, %v9454_v15  ;;  %5161 = vmatpush.msra.mxu2 %v11657_v34  ;;  %v11659_v15 = vld [vmem:[#allocation63_spill] sm:$0xff] }
 0x404   : > { %v3470_v40 = vadd.f32 %v3469_v45, %v3337_v21  ;;  %v3685_v48 = vpop.f32.mrf.mxu3  ;;  %5253 = vmatpush.msra.mxu3 %v9546_v13  ;;  %v11658_v13 = vld [vmem:[#allocation73_spill] sm:$0xff]  ;;  %v11666_v45 = vld [vmem:[#allocation71_spill] sm:$0xff] }
 0x405   : > { %3849 = vmatmul.f32.gmra.mxu0 %v11653_v28  ;;  %5165 = vmatpush.msra.mxu2 %v4787_v23 }
 0x406   : > { %v3588_v22 = vadd.f32 %v3587_v2, %v3470_v40  ;;  %4022 = vmatmul.f32.gmra.mxu1 %v11654_v6  ;;  %5255 = vmatpush.msra.mxu3 %v9576_v0  ;;  %v11661_v0 = vld [vmem:[#allocation68_spill] sm:$0xff]  ;;  %v11667_v2 = vld [vmem:[#allocation75_spill] sm:$0xff] }
 0x407   : > { %4302 = vmatmul.f32.gmra.mxu3 %v11655_v19 }
 0x408   : > { %v3686_v63 = vadd.f32 %v3685_v48, %v3588_v22  ;;  %4163 = vmatmul.f32.gmra.mxu2 %v11656_v53  ;;  %5257 = vmatpush.msra.mxu3 %v9601_v33  ;;  %v11668_v48 = vld [vmem:[#allocation81_spill] sm:$0xff] }
 0x40a   : > { %5386 = vst [vmem:[#allocation2 + $0x20] sm:$0xff] %v3686_v63  ;;  %v3730_v39 = vpop.f32.mrf.mxu0  ;;  %5259 = vmatpush.msra.mxu3 %v9626_v11  ;;  %v11663_v11 = vld [vmem:[#allocation67_spill] sm:$0xff] }
 0x40b   : > { %v3475_v42 = vpop.f32.mrf.mxu1  ;;  %v3591_v59 = vpop.f32.mrf.mxu2 }
 0x40c   : > { %v3476_v50 = vadd.f32 %v3475_v42, %v3342_v5  ;;  %v3689_v47 = vpop.f32.mrf.mxu3  ;;  %5261 = vmatpush.msra.mxu3 %v9651_v26 }
 0x40d   : > { %3857 = vmatmul.f32.gmra.mxu0 %v11658_v13 }
 0x40e   : > { %v3592_v46 = vadd.f32 %v3591_v59, %v3476_v50  ;;  %4026 = vmatmul.f32.gmra.mxu1 %v11659_v15  ;;  %5263 = vmatpush.msra.mxu3 %v9673_v31  ;;  %v11670_v50 = vld [vmem:[#allocation85_spill] sm:$0xff] }
 0x40f   : > { %4308 = vmatmul.f32.gmra.mxu3 %v11660_v37 }
 0x410   : > { %v3690_v55 = vadd.f32 %v3689_v47, %v3592_v46  ;;  %4168 = vmatmul.f32.gmra.mxu2 %v11661_v0  ;;  %v11671_v0 = vld [vmem:[#allocation83_spill] sm:$0xff] }
 0x412   : > { %5389 = vst [vmem:[#allocation2 + $0x120] sm:$0xff] %v3690_v55  ;;  %v3738_v30 = vpop.f32.mrf.mxu0 }
 0x413   : > { %v3967_v3 = vpop.f32.mrf.mxu1  ;;  %v4089_v56 = vpop.f32.mrf.mxu2 }
 0x414   : > { %v3968_v33 = vadd.f32 %v3967_v3, %v3730_v39  ;;  %v4213_v32 = vpop.f32.mrf.mxu3  ;;  %v11669_v39 = vld [vmem:[#allocation79_spill] sm:$0xff] }
 0x415   : > { %3865 = vmatmul.f32.gmra.mxu0 %v11662_v41 }
 0x416   : > { %v4090_v62 = vadd.f32 %v4089_v56, %v3968_v33  ;;  %4030 = vmatmul.f32.gmra.mxu1 %v11663_v11 }
 0x417   : > { %4314 = vmatmul.f32.gmra.mxu3 %v11664_v61  ;;  %v11673_v61 = vld [vmem:[#allocation87_spill] sm:$0xff] }
 0x418   : > { %v9722_v23 = vadd.f32 %v4213_v32, %v4090_v62  ;;  %4173 = vmatmul.f32.gmra.mxu2 %v11665_v7 }
 0x41a   : > { %v3746_v26 = vpop.f32.mrf.mxu0 }
 0x41b   : > { %v3971_v20 = vpop.f32.mrf.mxu1  ;;  %v4094_v21 = vpop.f32.mrf.mxu2 }
 0x41c   : > { %v3972_v29 = vadd.f32 %v3971_v20, %v3738_v30  ;;  %v4219_v51 = vpop.f32.mrf.mxu3 }
 0x41d   : > { %4383 = vmatmul.f32.vlgmr.msrb.gmra.mxu0 %v11588_v57 }
 0x41e   : > { %v4095_v31 = vadd.f32 %v4094_v21, %v3972_v29  ;;  %4034 = vmatmul.f32.gmra.mxu1 %v11666_v45 }
 0x41f   : > { %4792 = vmatmul.f32.vlgmr.msrb.gmra.mxu3 %v11667_v2 }
 0x420   : > { %v9728_v40 = vadd.f32 %v4219_v51, %v4095_v31  ;;  %4590 = vmatmul.f32.vlgmr.msrb.gmra.mxu2 %v11668_v48  ;;  %v11675_v48 = vld [vmem:[#allocation91_spill] sm:$0xff] }
 0x422   : > { %v3754_v22 = vpop.f32.mrf.mxu0 }
 0x423   : > { %v3975_v28 = vpop.f32.mrf.mxu1  ;;  %v4099_v19 = vpop.f32.mrf.mxu2 }
 0x424   : > { %v3976_v63 = vadd.f32 %v3975_v28, %v3746_v26  ;;  %v4225_v53 = vpop.f32.mrf.mxu3 }
 0x425   : > { %4387 = vmatmul.f32.gmra.mxu0 %v11593_v10 }
 0x426   : > { %v4100_v5 = vadd.f32 %v4099_v19, %v3976_v63  ;;  %4488 = vmatmul.f32.vlgmr.msrb.gmra.mxu1 %v11588_v57  ;;  %v11672_v57 = vld [vmem:[#allocation89_spill] sm:$0xff] }
 0x427   : > { %4796 = vmatmul.f32.gmra.mxu3 %v11669_v39 }
 0x428   : > { %v9734_v42 = vadd.f32 %v4225_v53, %v4100_v5  ;;  %4598 = vmatmul.f32.gmra.mxu2 %v11670_v50 }
 0x42a   : > { %v3762_v59 = vpop.f32.mrf.mxu0 }
 0x42b   : > { %v3979_v47 = vpop.f32.mrf.mxu1  ;;  %v4104_v46 = vpop.f32.mrf.mxu2 }
 0x42c   : > { %v3980_v34 = vadd.f32 %v3979_v47, %v3754_v22  ;;  %v4231_v13 = vpop.f32.mrf.mxu3 }
 0x42d   : > { %4391 = vmatmul.f32.gmra.mxu0 %v11598_v36 }
 0x42e   : > { %v4105_v55 = vadd.f32 %v4104_v46, %v3980_v34  ;;  %4492 = vmatmul.f32.gmra.mxu1 %v11593_v10  ;;  %v11674_v10 = vld [vmem:[#allocation93_spill] sm:$0xff] }
 0x42f   : > { %4800 = vmatmul.f32.gmra.mxu3 %v11671_v0 }
 0x430   : > { %v9740_v37 = vadd.f32 %v4231_v13, %v4105_v55  ;;  %4606 = vmatmul.f32.gmra.mxu2 %v11672_v57 }
 0x432   : > { %v3770_v30 = vpop.f32.mrf.mxu0 }
 0x433   : > { %v3983_v3 = vpop.f32.mrf.mxu1  ;;  %v4109_v56 = vpop.f32.mrf.mxu2 }
 0x434   : > { %v3984_v33 = vadd.f32 %v3983_v3, %v3762_v59  ;;  %v4237_v32 = vpop.f32.mrf.mxu3  ;;  %v11677_v59 = vld [vmem:[#allocation95_spill] sm:$0xff] }
 0x435   : > { %4395 = vmatmul.f32.gmra.mxu0 %v11603_v16  ;;  %v11679_v3 = vld [vmem:[#allocation99_spill] sm:$0xff] }
 0x436   : > { %v4110_v62 = vadd.f32 %v4109_v56, %v3984_v33  ;;  %4496 = vmatmul.f32.gmra.mxu1 %v11598_v36  ;;  %v11676_v36 = vld [vmem:[#allocation97_spill] sm:$0xff] }
 0x437   : > { %4804 = vmatmul.f32.gmra.mxu3 %v11673_v61 }
 0x438   : > { %v9746_v41 = vadd.f32 %v4237_v32, %v4110_v62  ;;  %4614 = vmatmul.f32.gmra.mxu2 %v11674_v10 }
 0x43a   : > { %v3778_v7 = vpop.f32.mrf.mxu0 }
 0x43b   : > { %v3987_v26 = vpop.f32.mrf.mxu1  ;;  %v4114_v29 = vpop.f32.mrf.mxu2 }
 0x43c   : > { %v3988_v20 = vadd.f32 %v3987_v26, %v3770_v30  ;;  %v4243_v21 = vpop.f32.mrf.mxu3 }
 0x43d   : > { %4399 = vmatmul.f32.gmra.mxu0 %v11608_v1 }
 0x43e   : > { %v4115_v51 = vadd.f32 %v4114_v29, %v3988_v20  ;;  %4500 = vmatmul.f32.gmra.mxu1 %v11603_v16  ;;  %v11678_v16 = vld [vmem:[#allocation101_spill] sm:$0xff]  ;;  %v11681_v20 = vld [vmem:[#allocation103_spill] sm:$0xff] }
 0x43f   : > { %4808 = vmatmul.f32.gmra.mxu3 %v11675_v48 }
 0x440   : > { %v9752_v31 = vadd.f32 %v4243_v21, %v4115_v51  ;;  %4622 = vmatmul.f32.gmra.mxu2 %v11676_v36 }
 0x442   : > { %v3786_v22 = vpop.f32.mrf.mxu0 }
 0x443   : > { %v3991_v28 = vpop.f32.mrf.mxu1  ;;  %v4119_v19 = vpop.f32.mrf.mxu2 }
 0x444   : > { %v3992_v63 = vadd.f32 %v3991_v28, %v3778_v7  ;;  %v4249_v53 = vpop.f32.mrf.mxu3 }
 0x445   : > { %4403 = vmatmul.f32.gmra.mxu0 %v11613_v38 }
 0x446   : > { %v4120_v5 = vadd.f32 %v4119_v19, %v3992_v63  ;;  %4504 = vmatmul.f32.gmra.mxu1 %v11608_v1  ;;  %v11680_v1 = vld [vmem:[#allocation105_spill] sm:$0xff]  ;;  %v11683_v19 = vld [vmem:[#allocation107_spill] sm:$0xff] }
 0x447   : > { %4812 = vmatmul.f32.gmra.mxu3 %v11677_v59 }
 0x448   : > { %v9758_v50 = vadd.f32 %v4249_v53, %v4120_v5  ;;  %4630 = vmatmul.f32.gmra.mxu2 %v11678_v16 }
 0x44a   : > { %v3794_v47 = vpop.f32.mrf.mxu0 }
 0x44b   : > { %v3995_v34 = vpop.f32.mrf.mxu1  ;;  %v4124_v13 = vpop.f32.mrf.mxu2 }
 0x44c   : > { %v3996_v46 = vadd.f32 %v3995_v34, %v3786_v22  ;;  %v4255_v55 = vpop.f32.mrf.mxu3 }
 0x44d   : > { %4407 = vmatmul.f32.gmra.mxu0 %v11618_v44 }
 0x44e   : > { %v4125_v57 = vadd.f32 %v4124_v13, %v3996_v46  ;;  %4508 = vmatmul.f32.gmra.mxu1 %v11613_v38  ;;  %v11682_v38 = vld [vmem:[#allocation109_spill] sm:$0xff] }
 0x44f   : > { %4816 = vmatmul.f32.gmra.mxu3 %v11679_v3 }
 0x450   : > { %v9764_v30 = vadd.f32 %v4255_v55, %v4125_v57  ;;  %4638 = vmatmul.f32.gmra.mxu2 %v11680_v1  ;;  %v11685_v55 = vld [vmem:[#allocation111_spill] sm:$0xff] }
 0x452   : > { %v3802_v33 = vpop.f32.mrf.mxu0 }
 0x453   : > { %v3999_v56 = vpop.f32.mrf.mxu1  ;;  %v4129_v62 = vpop.f32.mrf.mxu2 }
 0x454   : > { %v4000_v32 = vadd.f32 %v3999_v56, %v3794_v47  ;;  %v4261_v10 = vpop.f32.mrf.mxu3 }
 0x455   : > { %4411 = vmatmul.f32.gmra.mxu0 %v11623_v12 }
 0x456   : > { %v4130_v7 = vadd.f32 %v4129_v62, %v4000_v32  ;;  %4512 = vmatmul.f32.gmra.mxu1 %v11618_v44  ;;  %v11684_v44 = vld [vmem:[#allocation113_spill] sm:$0xff] }
 0x457   : > { %4820 = vmatmul.f32.gmra.mxu3 %v11681_v20 }
 0x458   : > { %v9770_v26 = vadd.f32 %v4261_v10, %v4130_v7  ;;  %4646 = vmatmul.f32.gmra.mxu2 %v11682_v38  ;;  %v11687_v7 = vld [vmem:[#allocation115_spill] sm:$0xff] }
 0x45a   : > { %v3810_v29 = vpop.f32.mrf.mxu0 }
 0x45b   : > { %v4003_v21 = vpop.f32.mrf.mxu1  ;;  %v4134_v36 = vpop.f32.mrf.mxu2 }
 0x45c   : > { %v4004_v51 = vadd.f32 %v4003_v21, %v3802_v33  ;;  %v4267_v22 = vpop.f32.mrf.mxu3 }
 0x45d   : > { %4415 = vmatmul.f32.gmra.mxu0 %v11627_v60 }
 0x45e   : > { %v4135_v28 = vadd.f32 %v4134_v36, %v4004_v51  ;;  %4516 = vmatmul.f32.gmra.mxu1 %v11623_v12  ;;  %v11686_v12 = vld [vmem:[#allocation117_spill] sm:$0xff] }
 0x45f   : > { %4824 = vmatmul.f32.gmra.mxu3 %v11683_v19 }
 0x460   : > { %v9776_v63 = vadd.f32 %v4267_v22, %v4135_v28  ;;  %4654 = vmatmul.f32.gmra.mxu2 %v11684_v44  ;;  %v11689_v44 = vld [vmem:[#allocation119_spill] sm:$0xff] }
 0x462   : > { %v3818_v53 = vpop.f32.mrf.mxu0 }
 0x463   : > { %v4007_v5 = vpop.f32.mrf.mxu1  ;;  %v4139_v47 = vpop.f32.mrf.mxu2 }
 0x464   : > { %v4008_v16 = vadd.f32 %v4007_v5, %v3810_v29  ;;  %v4273_v34 = vpop.f32.mrf.mxu3 }
 0x465   : > { %4419 = vmatmul.f32.gmra.mxu0 %v11631_v17 }
 0x466   : > { %v4140_v46 = vadd.f32 %v4139_v47, %v4008_v16  ;;  %4520 = vmatmul.f32.gmra.mxu1 %v11627_v60  ;;  %v11688_v60 = vld [vmem:[#allocation121_spill] sm:$0xff] }
 0x467   : > { %4828 = vmatmul.f32.gmra.mxu3 %v11685_v55 }
 0x468   : > { %v9782_v13 = vadd.f32 %v4273_v34, %v4140_v46  ;;  %4662 = vmatmul.f32.gmra.mxu2 %v11686_v12 }
 0x46a   : > { %v3826_v57 = vpop.f32.mrf.mxu0 }
 0x46b   : > { %v4011_v1 = vpop.f32.mrf.mxu1  ;;  %v4144_v56 = vpop.f32.mrf.mxu2 }
 0x46c   : > { %v4012_v33 = vadd.f32 %v4011_v1, %v3818_v53  ;;  %v4279_v32 = vpop.f32.mrf.mxu3 }
 0x46d   : > { %4423 = vmatmul.f32.gmra.mxu0 %v11636_v4 }
 0x46e   : > { %v4145_v62 = vadd.f32 %v4144_v56, %v4012_v33  ;;  %4524 = vmatmul.f32.gmra.mxu1 %v11631_v17  ;;  %v11690_v17 = vld [vmem:[#allocation125_spill] sm:$0xff] }
 0x46f   : > { %4832 = vmatmul.f32.gmra.mxu3 %v11687_v7 }
 0x470   : > { %v9788_v10 = vadd.f32 %v4279_v32, %v4145_v62  ;;  %4670 = vmatmul.f32.gmra.mxu2 %v11688_v60 }
 0x472   : > { %v3834_v38 = vpop.f32.mrf.mxu0 }
 0x473   : > { %v4015_v29 = vpop.f32.mrf.mxu1  ;;  %v4149_v51 = vpop.f32.mrf.mxu2 }
 0x474   : > { %v4016_v21 = vadd.f32 %v4015_v29, %v3826_v57  ;;  %v4285_v36 = vpop.f32.mrf.mxu3  ;;  %v11691_v57 = vld [vmem:[#allocation123_spill] sm:$0xff] }
 0x475   : > { %4427 = vmatmul.f32.gmra.mxu0 %v11641_v27  ;;  %v11693_v29 = vld [vmem:[#allocation127_spill] sm:$0xff] }
 0x476   : > { %v4150_v22 = vadd.f32 %v4149_v51, %v4016_v21  ;;  %4528 = vmatmul.f32.gmra.mxu1 %v11636_v4  ;;  %v11692_v4 = vld [vmem:[#allocation129_spill] sm:$0xff] }
 0x477   : > { %4836 = vmatmul.f32.gmra.mxu3 %v11689_v44 }
 0x478   : > { %v9794_v28 = vadd.f32 %v4285_v36, %v4150_v22  ;;  %4678 = vmatmul.f32.gmra.mxu2 %v11690_v17 }
 0x47a   : > { %v3842_v53 = vpop.f32.mrf.mxu0 }
 0x47b   : > { %v4019_v5 = vpop.f32.mrf.mxu1  ;;  %v4154_v47 = vpop.f32.mrf.mxu2 }
 0x47c   : > { %v4020_v16 = vadd.f32 %v4019_v5, %v3834_v38  ;;  %v4291_v34 = vpop.f32.mrf.mxu3 }
 0x47d   : > { %4431 = vmatmul.f32.gmra.mxu0 %v11645_v58 }
 0x47e   : > { %v4155_v46 = vadd.f32 %v4154_v47, %v4020_v16  ;;  %4532 = vmatmul.f32.gmra.mxu1 %v11641_v27  ;;  %v11694_v27 = vld [vmem:[#allocation133_spill] sm:$0xff]  ;;  %v11695_v16 = vld [vmem:[#allocation131_spill] sm:$0xff]  ;;  %v5403_v47 = vld [vmem:[%s10820_s3 + $0x48] sm:$0xf] }
 0x47f   : > { %4840 = vmatmul.f32.gmra.mxu3 %v11691_v57 }
 0x480   : > { %v9800_v12 = vadd.f32 %v4291_v34, %v4155_v46  ;;  %4686 = vmatmul.f32.gmra.mxu2 %v11692_v4  ;;  %v5418_v34 = vsel %vm5416_vm2, %v5403_v47, 0 }
 0x482   : > { %v3850_v1 = vpop.f32.mrf.mxu0 }
 0x483   : > { %v4023_v33 = vpop.f32.mrf.mxu1  ;;  %v4159_v32 = vpop.f32.mrf.mxu2 }
 0x484   : > { %v4024_v56 = vadd.f32 %v4023_v33, %v3842_v53  ;;  %v4297_v62 = vpop.f32.mrf.mxu3 }
 0x485   : > { %4435 = vmatmul.f32.gmra.mxu0 %v11650_v43 }
 0x486   : > { %v4160_v60 = vadd.f32 %v4159_v32, %v4024_v56  ;;  %4536 = vmatmul.f32.gmra.mxu1 %v11645_v58  ;;  %v11696_v58 = vld [vmem:[#allocation137_spill] sm:$0xff] }
 0x487   : > { %4844 = vmatmul.f32.gmra.mxu3 %v11693_v29 }
 0x488   : > { %v9806_v38 = vadd.f32 %v4297_v62, %v4160_v60  ;;  %4694 = vmatmul.f32.gmra.mxu2 %v11694_v27 }
 0x48a   : > { %v3858_v21 = vpop.f32.mrf.mxu0 }
 0x48b   : > { %v4027_v51 = vpop.f32.mrf.mxu1  ;;  %v4164_v22 = vpop.f32.mrf.mxu2 }
 0x48c   : > { %v4028_v36 = vadd.f32 %v4027_v51, %v3850_v1  ;;  %v4303_v17 = vpop.f32.mrf.mxu3  ;;  %v9820_v1 = vand.u32 4294901760, %v5418_v34 }
 0x48d   : > { %4439 = vmatmul.f32.gmra.mxu0 %v11654_v6 }
 0x48e   : > { %v4165_v5 = vadd.f32 %v4164_v22, %v4028_v36  ;;  %4540 = vmatmul.f32.gmra.mxu1 %v11650_v43  ;;  %7088 = vmatpush.msrb.mxu2 %v9820_v1  ;;  %v9824_v32 = vsub.f32 %v5418_v34, %v9820_v1 }
 0x48f   : > { %4848 = vmatmul.f32.gmra.mxu3 %v11695_v16  ;;  %5439 = vmatpush.msrb.mxu0 %v9820_v1 }
 0x490   : > { %v9812_v53 = vadd.f32 %v4303_v17, %v4165_v5  ;;  %4702 = vmatmul.f32.gmra.mxu2 %v11696_v58  ;;  %v5485_v60 = vand.u32 4294901760, %v9824_v32 }
 0x492   : > { %v3866_v46 = vpop.f32.mrf.mxu0  ;;  %v5486_v51 = vsub.f32 %v9824_v32, %v5485_v60 }
 0x493   : > { %v4031_v4 = vpop.f32.mrf.mxu1  ;;  %v4169_v56 = vpop.f32.mrf.mxu2 }
 0x494   : > { %v4032_v33 = vadd.f32 %v4031_v4, %v3858_v21  ;;  %v4309_v43 = vpop.f32.mrf.mxu3  ;;  %v11697_v21 = vld [vmem:[#allocation142_spill] sm:$0xff]  ;;  %v5487_v17 = vand.u32 4294901760, %v5486_v51  ;;  %v11698_v4 = vld [vmem:[#allocation145_spill] sm:$0xff] }
 0x495   : > { %4443 = vmatmul.f32.gmra.mxu0 %v11659_v15 }
 0x496   : > { %v4170_v62 = vadd.f32 %v4169_v56, %v4032_v33  ;;  %4544 = vmatmul.f32.gmra.mxu1 %v11654_v6  ;;  %7092 = vmatpush.msrb.mxu3 %v5487_v17 }
 0x497   : > { %4852 = vmatmul.f32.gmra.mxu3 %v11395_v49  ;;  %5488 = vmatpush.msrb.mxu1 %v5487_v17 }
 0x498   : > { %v9830_v27 = vadd.f32 %v4309_v43, %v4170_v62  ;;  %4710 = vmatmul.f32.gmra.mxu2 %v11697_v21 }
 0x49a   : > { %v4384_v22 = vpop.f32.mrf.mxu0 }
 0x49b   : > { %v4035_v36 = vpop.f32.mrf.mxu1  ;;  %v4174_v58 = vpop.f32.mrf.mxu2  ;;  %v4385_v33 = vadd.f32 %v4384_v22, %v9722_v23 }
 0x49c   : > { %v4036_v5 = vadd.f32 %v4035_v36, %v3866_v46  ;;  %v4315_v47 = vpop.f32.mrf.mxu3 }
 0x49d   : > { %4447 = vmatmul.f32.gmra.mxu0 %v11663_v11 }
 0x49e   : > { %v4175_v6 = vadd.f32 %v4174_v58, %v4036_v5  ;;  %4548 = vmatmul.f32.gmra.mxu1 %v11659_v15  ;;  %v11699_v15 = vld [vmem:[#allocation147_spill] sm:$0xff] }
 0x49f   : > { %4856 = vmatmul.f32.gmra.mxu3 %v11402_v18 }
 0x4a0   : > { %v9839_v34 = vadd.f32 %v4315_v47, %v4175_v6  ;;  %4718 = vmatmul.f32.gmra.mxu2 %v11698_v4  ;;  %v11700_v4 = vld [vmem:[#allocation76_spill] sm:$0xff] }
 0x4a2   : > { %v4388_v56 = vpop.f32.mrf.mxu0 }
 0x4a3   : > { %v4489_v43 = vpop.f32.mrf.mxu1  ;;  %v4591_v62 = vpop.f32.mrf.mxu2  ;;  %v4389_v17 = vadd.f32 %v4388_v56, %v9728_v40 }
 0x4a4   : > { %v4490_v46 = vadd.f32 %v4489_v43, %v4385_v33  ;;  %v4793_v21 = vpop.f32.mrf.mxu3 }
 0x4a5   : > { %4451 = vmatmul.f32.gmra.mxu0 %v11666_v45 }
 0x4a6   : > { %v4592_v51 = vadd.f32 %v4591_v62, %v4490_v46  ;;  %4552 = vmatmul.f32.gmra.mxu1 %v11663_v11 }
 0x4a7   : > { %4860 = vmatmul.f32.gmra.mxu3 %v8278_v24 }
 0x4a8   : > { %v9846_v36 = vadd.f32 %v4793_v21, %v4592_v51  ;;  %4726 = vmatmul.f32.gmra.mxu2 %v11699_v15  ;;  %v11701_v51 = vld [vmem:[#allocation80_spill] sm:$0xff]  ;;  %v11702_v15 = vld [vmem:[#allocation78_spill] sm:$0xff] }
 0x4aa   : > { %v4392_v5 = vpop.f32.mrf.mxu0 }
 0x4ab   : > { %v4493_v23 = vpop.f32.mrf.mxu1  ;;  %v4599_v58 = vpop.f32.mrf.mxu2  ;;  %v4393_v11 = vadd.f32 %v4392_v5, %v9734_v42 }
 0x4ac   : > { %v4494_v22 = vadd.f32 %v4493_v23, %v4389_v17  ;;  %v4797_v47 = vpop.f32.mrf.mxu3 }
 0x4ad   : > { %4900 = vmatmul.f32.vlgmr.msra.gmra.mxu0 %v11700_v4 }
 0x4ae   : > { %v4600_v6 = vadd.f32 %v4599_v58, %v4494_v22  ;;  %4556 = vmatmul.f32.gmra.mxu1 %v11666_v45 }
 0x4af   : > { %5265 = vmatmul.f32.vlgmr.msra.gmra.mxu3 %v11667_v2 }
 0x4b0   : > { %v9853_v33 = vadd.f32 %v4797_v47, %v4600_v6  ;;  %5167 = vmatmul.f32.vlgmr.msra.gmra.mxu2 %v11667_v2  ;;  %v5400_v2 = vld [vmem:[%s10820_s3 + $0x30] sm:$0xff] }
 0x4b1   : > { %v9867_v42 = vand.u32 4294901760, %v5400_v2 }
 0x4b2   : > { %v4396_v43 = vpop.f32.mrf.mxu0 }
 0x4b3   : > { %v4497_v40 = vpop.f32.mrf.mxu1  ;;  %v4607_v46 = vpop.f32.mrf.mxu2  ;;  %v4397_v17 = vadd.f32 %v4396_v43, %v9740_v37  ;;  %7089 = vmatpush.msrb.mxu2 %v9867_v42  ;;  %v9872_v22 = vsub.f32 %v5400_v2, %v9867_v42  ;;  %5441 = vmatpush.msrb.mxu0 %v9867_v42 }
 0x4b4   : > { %v4498_v56 = vadd.f32 %v4497_v40, %v4393_v11  ;;  %v4801_v62 = vpop.f32.mrf.mxu3  ;;  %v11704_v40 = vld [vmem:[#allocation82_spill] sm:$0xff] }
 0x4b5   : > { %4905 = vmatmul.f32.gmra.mxu0 %v11701_v51  ;;  %v5491_v4 = vand.u32 4294901760, %v9872_v22 }
 0x4b6   : > { %v4608_v21 = vadd.f32 %v4607_v46, %v4498_v56  ;;  %5017 = vmatmul.f32.vlgmr.msra.gmra.mxu1 %v11702_v15 }
 0x4b7   : > { %5269 = vmatmul.f32.gmra.mxu3 %v11669_v39  ;;  %v5492_v37 = vsub.f32 %v9872_v22, %v5491_v4 }
 0x4b8   : > { %v9860_v45 = vadd.f32 %v4801_v62, %v4608_v21  ;;  %5171 = vmatmul.f32.gmra.mxu2 %v11669_v39  ;;  %v11703_v39 = vld [vmem:[#allocation84_spill] sm:$0xff] }
 0x4b9   : > { %v5493_v56 = vand.u32 4294901760, %v5492_v37  ;;  %v11707_v37 = vld [vmem:[#allocation92_spill] sm:$0xff] }
 0x4ba   : > { %v4400_v5 = vpop.f32.mrf.mxu0 }
 0x4bb   : > { %v4501_v23 = vpop.f32.mrf.mxu1  ;;  %v4615_v47 = vpop.f32.mrf.mxu2  ;;  %v4401_v46 = vadd.f32 %v4400_v5, %v9746_v41  ;;  %7093 = vmatpush.msrb.mxu3 %v5493_v56  ;;  %5494 = vmatpush.msrb.mxu1 %v5493_v56  ;;  %v11708_v56 = vld [vmem:[#allocation90_spill] sm:$0xff] }
 0x4bc   : > { %v4502_v58 = vadd.f32 %v4501_v23, %v4397_v17  ;;  %v4805_v6 = vpop.f32.mrf.mxu3  ;;  %v11705_v23 = vld [vmem:[#allocation88_spill] sm:$0xff] }
 0x4bd   : > { %4910 = vmatmul.f32.gmra.mxu0 %v11703_v39 }
 0x4be   : > { %v4616_v11 = vadd.f32 %v4615_v47, %v4502_v58  ;;  %5023 = vmatmul.f32.gmra.mxu1 %v11704_v40  ;;  %v11706_v58 = vld [vmem:[#allocation86_spill] sm:$0xff] }
 0x4bf   : > { %5273 = vmatmul.f32.gmra.mxu3 %v11671_v0 }
 0x4c0   : > { %v9881_v43 = vadd.f32 %v4805_v6, %v4616_v11  ;;  %5175 = vmatmul.f32.gmra.mxu2 %v11671_v0 }
 0x4c2   : > { %v4404_v62 = vpop.f32.mrf.mxu0 }
 0x4c3   : > { %v4505_v21 = vpop.f32.mrf.mxu1  ;;  %v4623_v15 = vpop.f32.mrf.mxu2  ;;  %v4405_v0 = vadd.f32 %v4404_v62, %v9752_v31 }
 0x4c4   : > { %v4506_v51 = vadd.f32 %v4505_v21, %v4401_v46  ;;  %v4809_v2 = vpop.f32.mrf.mxu3 }
 0x4c5   : > { %4915 = vmatmul.f32.gmra.mxu0 %v11705_v23  ;;  %v11710_v23 = vld [vmem:[#allocation94_spill] sm:$0xff] }
 0x4c6   : > { %v4624_v17 = vadd.f32 %v4623_v15, %v4506_v51  ;;  %5029 = vmatmul.f32.gmra.mxu1 %v11706_v58 }
 0x4c7   : > { %5277 = vmatmul.f32.gmra.mxu3 %v11673_v61 }
 0x4c8   : > { %v9888_v47 = vadd.f32 %v4809_v2, %v4624_v17  ;;  %5179 = vmatmul.f32.gmra.mxu2 %v11673_v61  ;;  %v11709_v17 = vld [vmem:[#allocation96_spill] sm:$0xff] }
 0x4ca   : > { %v4408_v41 = vpop.f32.mrf.mxu0 }
 0x4cb   : > { %v4509_v5 = vpop.f32.mrf.mxu1  ;;  %v4631_v11 = vpop.f32.mrf.mxu2  ;;  %v4409_v61 = vadd.f32 %v4408_v41, %v9758_v50 }
 0x4cc   : > { %v4510_v6 = vadd.f32 %v4509_v5, %v4405_v0  ;;  %v4813_v39 = vpop.f32.mrf.mxu3 }
 0x4cd   : > { %4920 = vmatmul.f32.gmra.mxu0 %v11707_v37  ;;  %v11711_v37 = vld [vmem:[#allocation100_spill] sm:$0xff] }
 0x4ce   : > { %v4632_v40 = vadd.f32 %v4631_v11, %v4510_v6  ;;  %5035 = vmatmul.f32.gmra.mxu1 %v11708_v56  ;;  %v11712_v56 = vld [vmem:[#allocation98_spill] sm:$0xff] }
 0x4cf   : > { %5281 = vmatmul.f32.gmra.mxu3 %v11675_v48 }
 0x4d0   : > { %v9895_v46 = vadd.f32 %v4813_v39, %v4632_v40  ;;  %5183 = vmatmul.f32.gmra.mxu2 %v11675_v48  ;;  %v5397_v48 = vld [vmem:[%s10820_s3 + $0x18] sm:$0xff] }
 0x4d1   : > { %v9910_v0 = vand.u32 4294901760, %v5397_v48 }
 0x4d2   : > { %v4412_v21 = vpop.f32.mrf.mxu0 }
 0x4d3   : > { %v4513_v31 = vpop.f32.mrf.mxu1  ;;  %v4639_v51 = vpop.f32.mrf.mxu2  ;;  %v4413_v50 = vadd.f32 %v4412_v21, %v9764_v30  ;;  %7090 = vmatpush.msrb.mxu2 %v9910_v0  ;;  %v9914_v40 = vsub.f32 %v5397_v48, %v9910_v0  ;;  %5443 = vmatpush.msrb.mxu0 %v9910_v0 }
 0x4d4   : > { %v4514_v62 = vadd.f32 %v4513_v31, %v4409_v61  ;;  %v4817_v15 = vpop.f32.mrf.mxu3 }
 0x4d5   : > { %4925 = vmatmul.f32.gmra.mxu0 %v11709_v17  ;;  %v5497_v30 = vand.u32 4294901760, %v9914_v40 }
 0x4d6   : > { %v4640_v2 = vadd.f32 %v4639_v51, %v4514_v62  ;;  %5041 = vmatmul.f32.gmra.mxu1 %v11710_v23 }
 0x4d7   : > { %5285 = vmatmul.f32.gmra.mxu3 %v11677_v59  ;;  %v5498_v21 = vsub.f32 %v9914_v40, %v5497_v30 }
 0x4d8   : > { %v9902_v58 = vadd.f32 %v4817_v15, %v4640_v2  ;;  %5187 = vmatmul.f32.gmra.mxu2 %v11677_v59 }
 0x4d9   : > { %v5499_v62 = vand.u32 4294901760, %v5498_v21  ;;  %v11716_v21 = vld [vmem:[#allocation106_spill] sm:$0xff] }
 0x4da   : > { %v4416_v41 = vpop.f32.mrf.mxu0 }
 0x4db   : > { %v4517_v5 = vpop.f32.mrf.mxu1  ;;  %v4647_v11 = vpop.f32.mrf.mxu2  ;;  %v4417_v31 = vadd.f32 %v4416_v41, %v9770_v26  ;;  %7094 = vmatpush.msrb.mxu3 %v5499_v62  ;;  %5500 = vmatpush.msrb.mxu1 %v5499_v62 }
 0x4dc   : > { %v4518_v6 = vadd.f32 %v4517_v5, %v4413_v50  ;;  %v4821_v39 = vpop.f32.mrf.mxu3  ;;  %v11713_v50 = vld [vmem:[#allocation104_spill] sm:$0xff]  ;;  %v11714_v5 = vld [vmem:[#allocation102_spill] sm:$0xff] }
 0x4dd   : > { %4930 = vmatmul.f32.gmra.mxu0 %v11711_v37 }
 0x4de   : > { %v4648_v59 = vadd.f32 %v4647_v11, %v4518_v6  ;;  %5047 = vmatmul.f32.gmra.mxu1 %v11712_v56  ;;  %v11715_v56 = vld [vmem:[#allocation108_spill] sm:$0xff] }
 0x4df   : > { %5289 = vmatmul.f32.gmra.mxu3 %v11679_v3 }
 0x4e0   : > { %v9920_v61 = vadd.f32 %v4821_v39, %v4648_v59  ;;  %5191 = vmatmul.f32.gmra.mxu2 %v11679_v3 }
 0x4e2   : > { %v4420_v51 = vpop.f32.mrf.mxu0 }
 0x4e3   : > { %v4521_v15 = vpop.f32.mrf.mxu1  ;;  %v4655_v17 = vpop.f32.mrf.mxu2  ;;  %v4421_v3 = vadd.f32 %v4420_v51, %v9776_v63 }
 0x4e4   : > { %v4522_v2 = vadd.f32 %v4521_v15, %v4417_v31  ;;  %v4825_v23 = vpop.f32.mrf.mxu3 }
 0x4e5   : > { %4935 = vmatmul.f32.gmra.mxu0 %v11713_v50 }
 0x4e6   : > { %v4656_v48 = vadd.f32 %v4655_v17, %v4522_v2  ;;  %5053 = vmatmul.f32.gmra.mxu1 %v11714_v5 }
 0x4e7   : > { %5293 = vmatmul.f32.gmra.mxu3 %v11681_v20 }
 0x4e8   : > { %v9930_v6 = vadd.f32 %v4825_v23, %v4656_v48  ;;  %5195 = vmatmul.f32.gmra.mxu2 %v11681_v20  ;;  %v11717_v23 = vld [vmem:[#allocation112_spill] sm:$0xff]  ;;  %v11718_v48 = vld [vmem:[#allocation110_spill] sm:$0xff] }
 0x4ea   : > { %v4424_v26 = vpop.f32.mrf.mxu0 }
 0x4eb   : > { %v4525_v41 = vpop.f32.mrf.mxu1  ;;  %v4663_v39 = vpop.f32.mrf.mxu2  ;;  %v4425_v20 = vadd.f32 %v4424_v26, %v9782_v13 }
 0x4ec   : > { %v4526_v11 = vadd.f32 %v4525_v41, %v4421_v3  ;;  %v4829_v59 = vpop.f32.mrf.mxu3 }
 0x4ed   : > { %4940 = vmatmul.f32.gmra.mxu0 %v11715_v56 }
 0x4ee   : > { %v4664_v37 = vadd.f32 %v4663_v39, %v4526_v11  ;;  %5059 = vmatmul.f32.gmra.mxu1 %v11716_v21  ;;  %v11719_v39 = vld [vmem:[#allocation116_spill] sm:$0xff] }
 0x4ef   : > { %5297 = vmatmul.f32.gmra.mxu3 %v11683_v19 }
 0x4f0   : > { %v9937_v31 = vadd.f32 %v4829_v59, %v4664_v37  ;;  %5199 = vmatmul.f32.gmra.mxu2 %v11683_v19  ;;  %v11720_v59 = vld [vmem:[#allocation114_spill] sm:$0xff] }
 0x4f2   : > { %v4428_v62 = vpop.f32.mrf.mxu0 }
 0x4f3   : > { %v4529_v63 = vpop.f32.mrf.mxu1  ;;  %v4671_v15 = vpop.f32.mrf.mxu2  ;;  %v4429_v19 = vadd.f32 %v4428_v62, %v9788_v10 }
 0x4f4   : > { %v4530_v51 = vadd.f32 %v4529_v63, %v4425_v20  ;;  %v4833_v2 = vpop.f32.mrf.mxu3 }
 0x4f5   : > { %4945 = vmatmul.f32.gmra.mxu0 %v11717_v23  ;;  %v11721_v23 = vld [vmem:[#allocation120_spill] sm:$0xff] }
 0x4f6   : > { %v4672_v17 = vadd.f32 %v4671_v15, %v4530_v51  ;;  %5065 = vmatmul.f32.gmra.mxu1 %v11718_v48 }
 0x4f7   : > { %5301 = vmatmul.f32.gmra.mxu3 %v11685_v55 }
 0x4f8   : > { %v9944_v50 = vadd.f32 %v4833_v2, %v4672_v17  ;;  %5203 = vmatmul.f32.gmra.mxu2 %v11685_v55  ;;  %v5394_v55 = vld [vmem:[%s10820_s3] sm:$0xff] }
 0x4f9   : > { %v5444_v10 = vand.u32 4294901760, %v5394_v55 }
 0x4fa   : > { %v4432_v5 = vpop.f32.mrf.mxu0 }
 0x4fb   : > { %v4533_v13 = vpop.f32.mrf.mxu1  ;;  %v4679_v26 = vpop.f32.mrf.mxu2  ;;  %v4433_v56 = vadd.f32 %v4432_v5, %v9794_v28  ;;  %7091 = vmatpush.msrb.mxu2 %v5444_v10  ;;  %v5502_v62 = vsub.f32 %v5394_v55, %v5444_v10  ;;  %5445 = vmatpush.msrb.mxu0 %v5444_v10  ;;  %v11726_v55 = vld [vmem:[#allocation126_spill] sm:$0xff] }
 0x4fc   : > { %v4534_v3 = vadd.f32 %v4533_v13, %v4429_v19  ;;  %v4837_v41 = vpop.f32.mrf.mxu3 }
 0x4fd   : > { %4950 = vmatmul.f32.gmra.mxu0 %v11719_v39  ;;  %5534 = vmatpush.msra.mxu2 %v9824_v32  ;;  %v5503_v2 = vand.u32 4294901760, %v5502_v62 }
 0x4fe   : > { %v4680_v11 = vadd.f32 %v4679_v26, %v4534_v3  ;;  %5071 = vmatmul.f32.gmra.mxu1 %v11720_v59  ;;  %5614 = vmatpush.msra.mxu0 %v5485_v60  ;;  %v11723_v3 = vld [vmem:[#allocation124_spill] sm:$0xff] }
 0x4ff   : > { %5305 = vmatmul.f32.gmra.mxu3 %v11687_v7  ;;  %v5504_v28 = vsub.f32 %v5502_v62, %v5503_v2  ;;  %5537 = vmatpush.msra.mxu2 %v9872_v22  ;;  %v11725_v59 = vld [vmem:[#allocation128_spill] sm:$0xff] }
 0x500   : > { %v9951_v37 = vadd.f32 %v4837_v41, %v4680_v11  ;;  %5207 = vmatmul.f32.gmra.mxu2 %v11687_v7  ;;  %v11722_v7 = vld [vmem:[#allocation118_spill] sm:$0xff]  ;;  %5618 = vmatpush.msra.mxu0 %v5491_v4 }
 0x501   : > { %v5505_v32 = vand.u32 4294901760, %v5504_v28  ;;  %5540 = vmatpush.msra.mxu2 %v9914_v40  ;;  %v5391_v28 = vld [vmem:[%s218_s14] sm:$0xff] }
 0x502   : > { %v4436_v21 = vpop.f32.mrf.mxu0  ;;  %5622 = vmatpush.msra.mxu0 %v5497_v30  ;;  %v11724_v30 = vld [vmem:[#allocation122_spill] sm:$0xff] }
 0x503   : > { %v4537_v20 = vpop.f32.mrf.mxu1  ;;  %v4687_v51 = vpop.f32.mrf.mxu2  ;;  %v4437_v60 = vadd.f32 %v4436_v21, %v9800_v12  ;;  %7095 = vmatpush.msrb.mxu3 %v5505_v32  ;;  %5506 = vmatpush.msrb.mxu1 %v5505_v32 }
 0x504   : > { %v4538_v63 = vadd.f32 %v4537_v20, %v4433_v56  ;;  %v4841_v15 = vpop.f32.mrf.mxu3  ;;  %5543 = vmatpush.msra.mxu2 %v5502_v62  ;;  %5626 = vmatpush.msra.mxu0 %v5503_v2 }
 0x505   : > { %4955 = vmatmul.f32.gmra.mxu0 %v11721_v23  ;;  %5573 = vmatpush.msra.mxu3 %v9820_v1 }
 0x506   : > { %v4688_v17 = vadd.f32 %v4687_v51, %v4538_v63  ;;  %5077 = vmatmul.f32.gmra.mxu1 %v11722_v7  ;;  %v11727_v63 = vld [vmem:[#allocation132_spill] sm:$0xff]  ;;  %v11728_v51 = vld [vmem:[#allocation130_spill] sm:$0xff] }
 0x507   : > { %5309 = vmatmul.f32.gmra.mxu3 %v11689_v44  ;;  %5653 = vmatpush.msra.mxu1 %v9820_v1 }
 0x508   : > { %v9967_v48 = vadd.f32 %v4841_v15, %v4688_v17  ;;  %5211 = vmatmul.f32.gmra.mxu2 %v11689_v44  ;;  %5575 = vmatpush.msra.mxu3 %v9867_v42 }
 0x509   : > { %5655 = vmatpush.msra.mxu1 %v9867_v42 }
 0x50a   : > { %v4440_v19 = vpop.f32.mrf.mxu0  ;;  %5577 = vmatpush.msra.mxu3 %v9910_v0 }
 0x50b   : > { %v4541_v5 = vpop.f32.mrf.mxu1  ;;  %v4695_v4 = vpop.f32.mrf.mxu2  ;;  %v4441_v1 = vadd.f32 %v4440_v19, %v9806_v38  ;;  %5657 = vmatpush.msra.mxu1 %v9910_v0 }
 0x50c   : > { %v4542_v22 = vadd.f32 %v4541_v5, %v4437_v60  ;;  %v4845_v13 = vpop.f32.mrf.mxu3  ;;  %5579 = vmatpush.msra.mxu3 %v5444_v10  ;;  %v5408_v60 = vsel %vm5406_vm3, %v5391_v28, 0 }
 0x50d   : > { %4960 = vmatmul.f32.gmra.mxu0 %v11723_v3  ;;  %5659 = vmatpush.msra.mxu1 %v5444_v10 }
 0x50e   : > { %v4696_v44 = vadd.f32 %v4695_v4, %v4542_v22  ;;  %5083 = vmatmul.f32.gmra.mxu1 %v11724_v30  ;;  %v10015_v22 = vand.u32 4294901760, %v5408_v60 }
 0x50f   : > { %5313 = vmatmul.f32.gmra.mxu3 %v11691_v57 }
 0x510   : > { %v9981_v12 = vadd.f32 %v4845_v13, %v4696_v44  ;;  %5215 = vmatmul.f32.gmra.mxu2 %v11691_v57 }
 0x512   : > { %v4444_v40 = vpop.f32.mrf.mxu0 }
 0x513   : > { %v4545_v26 = vpop.f32.mrf.mxu1  ;;  %v4703_v11 = vpop.f32.mrf.mxu2  ;;  %v4445_v38 = vadd.f32 %v4444_v40, %v9812_v53 }
 0x514   : > { %v4546_v41 = vadd.f32 %v4545_v26, %v4441_v1  ;;  %v4849_v39 = vpop.f32.mrf.mxu3 }
 0x515   : > { %4965 = vmatmul.f32.gmra.mxu0 %v11725_v59 }
 0x516   : > { %v4704_v42 = vadd.f32 %v4703_v11, %v4546_v41  ;;  %5089 = vmatmul.f32.gmra.mxu1 %v11726_v55 }
 0x517   : > { %5317 = vmatmul.f32.gmra.mxu3 %v11693_v29 }
 0x518   : > { %v9991_v57 = vadd.f32 %v4849_v39, %v4704_v42  ;;  %5219 = vmatmul.f32.gmra.mxu2 %v11693_v29 }
 0x51a   : > { %v4448_v0 = vpop.f32.mrf.mxu0 }
 0x51b   : > { %v4549_v56 = vpop.f32.mrf.mxu1  ;;  %v4711_v20 = vpop.f32.mrf.mxu2  ;;  %v4449_v29 = vadd.f32 %v4448_v0, %v9830_v27 }
 0x51c   : > { %v4550_v21 = vadd.f32 %v4549_v56, %v4445_v38  ;;  %v4853_v10 = vpop.f32.mrf.mxu3 }
 0x51d   : > { %4970 = vmatmul.f32.gmra.mxu0 %v11727_v63 }
 0x51e   : > { %v4712_v62 = vadd.f32 %v4711_v20, %v4550_v21  ;;  %5095 = vmatmul.f32.gmra.mxu1 %v11728_v51 }
 0x51f   : > { %5321 = vmatmul.f32.gmra.mxu3 %v11695_v16 }
 0x520   : > { %v9998_v15 = vadd.f32 %v4853_v10, %v4712_v62  ;;  %5223 = vmatmul.f32.gmra.mxu2 %v11695_v16  ;;  %v5392_v16 = vld [vmem:[%s218_s14 + $0x8] sm:$0xff] }
 0x521   : > { %v5411_v5 = vsel %vm5406_vm3, %v5392_v16, 0 }
 0x522   : > { %v4452_v53 = vpop.f32.mrf.mxu0  ;;  %v10017_v3 = vand.u32 4294901760, %v5411_v5 }
 0x523   : > { %v4553_v2 = vpop.f32.mrf.mxu1  ;;  %v4719_v23 = vpop.f32.mrf.mxu2  ;;  %v4453_v19 = vadd.f32 %v4452_v53, %v9839_v34  ;;  %v5393_v34 = vld [vmem:[%s218_s14 + $0x10] sm:$0xff] }
 0x524   : > { %v4554_v17 = vadd.f32 %v4553_v2, %v4449_v29  ;;  %v4857_v7 = vpop.f32.mrf.mxu3  ;;  %v10029_v40 = vsub.f32 %v5411_v5, %v10017_v3  ;;  %v5414_v41 = vsel %vm5406_vm3, %v5393_v34, 0 }
 0x525   : > { %4975 = vmatmul.f32.gmra.mxu0 %v11393_v52  ;;  %v10045_v0 = vand.u32 4294901760, %v5414_v41 }
 0x526   : > { %v4720_v32 = vadd.f32 %v4719_v23, %v4554_v17  ;;  %5101 = vmatmul.f32.gmra.mxu1 %v11394_v14  ;;  %v5398_v23 = vld [vmem:[%s10820_s3 + $0x20] sm:$0xff] }
 0x527   : > { %5325 = vmatmul.f32.gmra.mxu3 %v11395_v49  ;;  %v10084_v5 = vand.u32 4294901760, %v5398_v23 }
 0x528   : > { %v10009_v27 = vadd.f32 %v4857_v7, %v4720_v32  ;;  %5227 = vmatmul.f32.gmra.mxu2 %v11395_v49  ;;  %v10022_v49 = vsub.f32 %v5408_v60, %v10015_v22 }
 0x52a   : > { %v4901_v52 = vpop.f32.mrf.mxu0 }
 0x52b   : > { %v4557_v4 = vpop.f32.mrf.mxu1  ;;  %v4727_v14 = vpop.f32.mrf.mxu2  ;;  %v4902_v26 = vadd.f32 %v4901_v52, %v9846_v36  ;;  %v10043_v36 = vand.u32 4294901760, %v10029_v40 }
 0x52c   : > { %v4558_v13 = vadd.f32 %v4557_v4, %v4453_v19  ;;  %v4861_v44 = vpop.f32.mrf.mxu3  ;;  %v5395_v4 = vld [vmem:[%s10820_s3 + $0x8] sm:$0xff] }
 0x52d   : > { %4980 = vmatmul.f32.gmra.mxu0 %v11400_v9  ;;  %v10034_v9 = vand.u32 4294901760, %v10022_v49  ;;  %v5457_v63 = vsub.f32 %v10029_v40, %v10043_v36 }
 0x52e   : > { %v4728_v30 = vadd.f32 %v4727_v14, %v4558_v13  ;;  %5107 = vmatmul.f32.gmra.mxu1 %v11401_v25  ;;  %v5404_v25 = vld [vmem:[%s10820_s3 + $0x50] sm:$0xf]  ;;  %v10092_v14 = vand.u32 4294901760, %v5395_v4 }
 0x52f   : > { %5329 = vmatmul.f32.gmra.mxu3 %v11402_v18  ;;  %v5421_v42 = vsel %vm5416_vm2, %v5404_v25, 0  ;;  %v5449_v21 = vsub.f32 %v10022_v49, %v10034_v9  ;;  %v10079_v16 = vand.u32 4294901760, %v5457_v63 }
 0x530   : > { %v10024_v1 = vadd.f32 %v4861_v44, %v4728_v30  ;;  %5231 = vmatmul.f32.gmra.mxu2 %v11402_v18  ;;  %v10040_v38 = vand.u32 4294901760, %v5421_v42  ;;  %v10096_v44 = vsub.f32 %v5398_v23, %v10084_v5 }
 0x531   : > { %v10066_v29 = vand.u32 4294901760, %v5449_v21 }
 0x532   : > { %v4906_v11 = vpop.f32.mrf.mxu0  ;;  %v10052_v20 = vsub.f32 %v5421_v42, %v10040_v38 }
 0x533   : > { %v5018_v39 = vpop.f32.mrf.mxu1  ;;  %v5168_v18 = vpop.f32.mrf.mxu2  ;;  %v4907_v51 = vadd.f32 %v4906_v11, %v9853_v33 }
 0x534   : > { %v5019_v59 = vadd.f32 %v5018_v39, %v4902_v26  ;;  %v5266_v55 = vpop.f32.mrf.mxu3  ;;  %v5732_v62 = vand.u32 4294901760, %v10052_v20 }
 0x535   : > { %4985 = vmatmul.f32.gmra.mxu0 %v11406_v54  ;;  %v10060_v54 = vsub.f32 %v5414_v41, %v10045_v0  ;;  %v5744_v41 = vand.u32 4294901760, %v10096_v44 }
 0x536   : > { %v5169_v56 = vadd.f32 %v5168_v18, %v5019_v59  ;;  %5113 = vmatmul.f32.gmra.mxu1 %v11407_v8  ;;  %v5401_v8 = vld [vmem:[%s10820_s3 + $0x38] sm:$0xff]  ;;  %v5733_v53 = vsub.f32 %v10052_v20, %v5732_v62 }
 0x537   : > { %5333 = vmatmul.f32.gmra.mxu3 %v8278_v24  ;;  %v10082_v60 = vand.u32 4294901760, %v10060_v54  ;;  %v5745_v18 = vsub.f32 %v10096_v44, %v5744_v41 }
 0x538   : > { %v5267_v10 = vadd.f32 %v5266_v55, %v5169_v56  ;;  %5235 = vmatmul.f32.gmra.mxu2 %v8278_v24  ;;  %v10071_v24 = vand.u32 4294901760, %v5401_v8  ;;  %v5734_v19 = vand.u32 4294901760, %v5733_v53 }
 0x539   : > { %v5465_v26 = vsub.f32 %v10060_v54, %v10082_v60  ;;  %v5746_v63 = vand.u32 4294901760, %v5745_v18 }
 0x53a   : > { %5339 = vst [vmem:[#allocation2 + $0x10] sm:$0xff] %v5267_v10  ;;  %v4911_v2 = vpop.f32.mrf.mxu0  ;;  %v10077_v33 = vsub.f32 %v5401_v8, %v10071_v24 }
 0x53b   : > { %v5024_v17 = vpop.f32.mrf.mxu1  ;;  %v5172_v28 = vpop.f32.mrf.mxu2  ;;  %v4912_v25 = vadd.f32 %v4911_v2, %v9860_v45  ;;  %v10120_v10 = vand.u32 4294901760, %v5465_v26 }
 0x53c   : > { %v5025_v7 = vadd.f32 %v5024_v17, %v4907_v51  ;;  %v5270_v32 = vpop.f32.mrf.mxu3  ;;  %v5738_v13 = vand.u32 4294901760, %v10077_v33 }
 0x53d   : > { %5451 = vmatmul.f32.vlgmr.msrb.gmra.mxu0 %v10066_v29 }
 0x53e   : > { %v5173_v52 = vadd.f32 %v5172_v28, %v5025_v7  ;;  %5119 = vmatmul.f32.gmra.mxu1 %v11411_v35  ;;  %5781 = vmatpush.msrb.mxu0 %v10052_v20  ;;  %v5739_v34 = vsub.f32 %v10077_v33, %v5738_v13  ;;  %v10103_v35 = vsub.f32 %v5395_v4, %v10092_v14 }
 0x53f   : > { %5512 = vmatmul.f32.vlgmr.msrb.gmra.mxu3 %v10017_v3 }
 0x540   : > { %v5271_v30 = vadd.f32 %v5270_v32, %v5173_v52  ;;  %5459 = vmatmul.f32.vlgmr.msrb.gmra.mxu2 %v10079_v16  ;;  %5735 = vmatpush.msrb.mxu3 %v5734_v19  ;;  %v5740_v11 = vand.u32 4294901760, %v5739_v34  ;;  %v5750_v39 = vand.u32 4294901760, %v10103_v35  ;;  %v5405_v34 = vld [vmem:[%s10820_s3 + $0x58] sm:$0xf] }
 0x541   : > { %5686 = vmatpush.msrb.mxu2 %v10040_v38  ;;  %5784 = vmatpush.msrb.mxu0 %v10077_v33 }
 0x542   : > { %5342 = vst [vmem:[#allocation2 + $0x128] sm:$0xff] %v5271_v30  ;;  %v4916_v42 = vpop.f32.mrf.mxu0  ;;  %5741 = vmatpush.msrb.mxu3 %v5740_v11  ;;  %v5751_v45 = vsub.f32 %v10103_v35, %v5750_v39 }
 0x543   : > { %v5030_v59 = vpop.f32.mrf.mxu1  ;;  %v5176_v56 = vpop.f32.mrf.mxu2  ;;  %5688 = vmatpush.msrb.mxu2 %v10071_v24  ;;  %5787 = vmatpush.msrb.mxu0 %v10096_v44  ;;  %v4917_v2 = vadd.f32 %v4916_v42, %v9881_v43  ;;  %v5402_v44 = vld [vmem:[%s10820_s3 + $0x40] sm:$0xff] }
 0x544   : > { %v5031_v55 = vadd.f32 %v5030_v59, %v4912_v25  ;;  %v5274_v21 = vpop.f32.mrf.mxu3  ;;  %v5752_v51 = vand.u32 4294901760, %v5751_v45  ;;  %5747 = vmatpush.msrb.mxu3 %v5746_v63  ;;  %v10168_v18 = vand.u32 4294901760, %v5402_v44 }
 0x545   : > { %5628 = vmatmul.f32.vlgmr.msra.gmra.mxu0 %v10015_v22  ;;  %5690 = vmatpush.msrb.mxu2 %v10084_v5 }
 0x546   : > { %v5177_v8 = vadd.f32 %v5176_v56, %v5031_v55  ;;  %5508 = vmatmul.f32.vlgmr.msrb.gmra.mxu1 %v10015_v22  ;;  %5790 = vmatpush.msrb.mxu0 %v10103_v35 }
 0x547   : > { %5820 = vmatpush.msrb.mxu1 %v10040_v38  ;;  %5516 = vmatmul.f32.gmra.mxu3 %v10045_v0 }
 0x548   : > { %v5275_v53 = vadd.f32 %v5274_v21, %v5177_v8  ;;  %5467 = vmatmul.f32.gmra.mxu2 %v10120_v10  ;;  %5753 = vmatpush.msrb.mxu3 %v5752_v51  ;;  %v5396_v8 = vld [vmem:[%s10820_s3 + $0x10] sm:$0xff] }
 0x549   : > { %5692 = vmatpush.msrb.mxu2 %v10092_v14  ;;  %5822 = vmatpush.msrb.mxu1 %v10071_v24 }
 0x54a   : > { %5345 = vst [vmem:[#allocation2 + $0x108] sm:$0xff] %v5275_v53  ;;  %v4921_v17 = vpop.f32.mrf.mxu0 }
 0x54b   : > { %v5036_v23 = vpop.f32.mrf.mxu1  ;;  %v5180_v28 = vpop.f32.mrf.mxu2  ;;  %5824 = vmatpush.msrb.mxu1 %v10084_v5  ;;  %v4922_v4 = vadd.f32 %v4921_v17, %v9888_v47  ;;  %v5424_v47 = vsel %vm5416_vm2, %v5405_v34, 0 }
 0x54c   : > { %v5037_v7 = vadd.f32 %v5036_v23, %v4917_v2  ;;  %v5278_v32 = vpop.f32.mrf.mxu3 }
 0x54d   : > { %5632 = vmatmul.f32.gmra.mxu0 %v10017_v3  ;;  %5826 = vmatpush.msrb.mxu1 %v10092_v14 }
 0x54e   : > { %v5181_v19 = vadd.f32 %v5180_v28, %v5037_v7  ;;  %5661 = vmatmul.f32.vlgmr.msra.gmra.mxu1 %v10015_v22  ;;  %v5938_v28 = vand.u32 4294901760, %v5396_v8 }
 0x54f   : > { %5583 = vmatmul.f32.vlgmr.msra.gmra.mxu3 %v10034_v9 }
 0x550   : > { %v5279_v43 = vadd.f32 %v5278_v32, %v5181_v19  ;;  %5546 = vmatmul.f32.vlgmr.msra.gmra.mxu2 %v10022_v49  ;;  %5900 = vmatpush.msra.mxu3 %v10040_v38  ;;  %v10150_v38 = vand.u32 4294901760, %v5424_v47 }
 0x551   : > { %5861 = vmatpush.msra.mxu2 %v5732_v62 }
 0x552   : > { %5348 = vst [vmem:[#allocation2 + $0x118] sm:$0xff] %v5279_v43  ;;  %v4926_v52 = vpop.f32.mrf.mxu0  ;;  %5902 = vmatpush.msra.mxu3 %v10071_v24  ;;  %5933 = vmatpush.msra.mxu0 %v10150_v38  ;;  %v5978_v33 = vsub.f32 %v5424_v47, %v10150_v38 }
 0x553   : > { %v5042_v30 = vpop.f32.mrf.mxu1  ;;  %v5184_v25 = vpop.f32.mrf.mxu2  ;;  %5865 = vmatpush.msra.mxu2 %v5738_v13  ;;  %v4927_v24 = vadd.f32 %v4926_v52, %v9895_v46  ;;  %v5399_v46 = vld [vmem:[%s10820_s3 + $0x28] sm:$0xff] }
 0x554   : > { %v5043_v26 = vadd.f32 %v5042_v30, %v4922_v4  ;;  %v5282_v11 = vpop.f32.mrf.mxu3  ;;  %5904 = vmatpush.msra.mxu3 %v10084_v5  ;;  %v5979_v35 = vand.u32 4294901760, %v5978_v33  ;;  %v10176_v55 = vand.u32 4294901760, %v5399_v46  ;;  %5935 = vmatpush.msra.mxu0 %v10168_v18  ;;  %v5996_v30 = vsub.f32 %v5396_v8, %v5938_v28 }
 0x555   : > { %5636 = vmatmul.f32.gmra.mxu0 %v10045_v0  ;;  %5869 = vmatpush.msra.mxu2 %v5744_v41 }
 0x556   : > { %v5185_v20 = vadd.f32 %v5184_v25, %v5043_v26  ;;  %5665 = vmatmul.f32.gmra.mxu1 %v10017_v3  ;;  %5906 = vmatpush.msra.mxu3 %v10092_v14  ;;  %v5980_v21 = vsub.f32 %v5978_v33, %v5979_v35  ;;  %v5990_v63 = vsub.f32 %v5399_v46, %v10176_v55  ;;  %v5997_v26 = vand.u32 4294901760, %v5996_v30 }
 0x557   : > { %5589 = vmatmul.f32.gmra.mxu3 %v10043_v36  ;;  %5873 = vmatpush.msra.mxu2 %v5750_v39  ;;  %v5984_v39 = vsub.f32 %v5402_v44, %v10168_v18 }
 0x558   : > { %v5283_v62 = vadd.f32 %v5282_v11, %v5185_v20  ;;  %5551 = vmatmul.f32.gmra.mxu2 %v10029_v40  ;;  %5937 = vmatpush.msra.mxu0 %v10176_v55  ;;  %v5981_v23 = vand.u32 4294901760, %v5980_v21  ;;  %v5991_v7 = vand.u32 4294901760, %v5990_v63  ;;  %v5998_v11 = vsub.f32 %v5996_v30, %v5997_v26 }
 0x559   : > { %v5985_v45 = vand.u32 4294901760, %v5984_v39 }
 0x55a   : > { %5351 = vst [vmem:[#allocation2 + $0x58] sm:$0xff] %v5283_v62  ;;  %v4931_v5 = vpop.f32.mrf.mxu0  ;;  %5982 = vmatpush.msra.mxu1 %v5981_v23  ;;  %v5992_v52 = vsub.f32 %v5990_v63, %v5991_v7  ;;  %5939 = vmatpush.msra.mxu0 %v5938_v28 }
 0x55b   : > { %v5048_v13 = vpop.f32.mrf.mxu1  ;;  %v5188_v42 = vpop.f32.mrf.mxu2  ;;  %v4932_v51 = vadd.f32 %v4931_v5, %v9902_v58  ;;  %v5986_v53 = vsub.f32 %v5984_v39, %v5985_v45 }
 0x55c   : > { %v5049_v41 = vadd.f32 %v5048_v13, %v4927_v24  ;;  %v5286_v59 = vpop.f32.mrf.mxu3  ;;  %v5993_v58 = vand.u32 4294901760, %v5992_v52  ;;  %v5999_v24 = vand.u32 4294901760, %v5998_v11 }
 0x55d   : > { %5793 = vmatmul.f32.vlgmr.msrb.gmra.mxu0 %v10022_v49  ;;  %v5987_v4 = vand.u32 4294901760, %v5986_v53 }
 0x55e   : > { %v5189_v14 = vadd.f32 %v5188_v42, %v5049_v41  ;;  %5669 = vmatmul.f32.gmra.mxu1 %v10045_v0  ;;  %6108 = vmatpush.msrb.mxu0 %v5979_v35 }
 0x55f   : > { %5595 = vmatmul.f32.gmra.mxu3 %v10082_v60  ;;  %5988 = vmatpush.msra.mxu1 %v5987_v4 }
 0x560   : > { %v5287_v56 = vadd.f32 %v5286_v59, %v5189_v14  ;;  %5556 = vmatmul.f32.gmra.mxu2 %v10060_v54  ;;  %6112 = vmatpush.msrb.mxu0 %v5985_v45 }
 0x561   : > { %5994 = vmatpush.msra.mxu1 %v5993_v58 }
 0x562   : > { %5354 = vst [vmem:[#allocation2 + $0x130] sm:$0xff] %v5287_v56  ;;  %v4936_v2 = vpop.f32.mrf.mxu0  ;;  %6116 = vmatpush.msrb.mxu0 %v5991_v7 }
 0x563   : > { %v5054_v17 = vpop.f32.mrf.mxu1  ;;  %v5192_v19 = vpop.f32.mrf.mxu2  ;;  %v4937_v47 = vadd.f32 %v4936_v2, %v9920_v61  ;;  %6000 = vmatpush.msra.mxu1 %v5999_v24 }
 0x564   : > { %v5055_v32 = vadd.f32 %v5054_v17, %v4932_v51  ;;  %v5290_v43 = vpop.f32.mrf.mxu3  ;;  %6120 = vmatpush.msrb.mxu0 %v5997_v26 }
 0x565   : > { %5798 = vmatmul.f32.gmra.mxu0 %v10029_v40 }
 0x566   : > { %v5193_v34 = vadd.f32 %v5192_v19, %v5055_v32  ;;  %5830 = vmatmul.f32.vlgmr.msrb.gmra.mxu1 %v10034_v9 }
 0x567   : > { %5755 = vmatmul.f32.vlgmr.msrb.gmra.mxu3 %v10015_v22  ;;  %6147 = vmatpush.msrb.mxu1 %v10150_v38 }
 0x568   : > { %v5291_v25 = vadd.f32 %v5290_v43, %v5193_v34  ;;  %5698 = vmatmul.f32.vlgmr.msrb.gmra.mxu2 %v10066_v29  ;;  %6067 = vmatpush.msrb.mxu3 %v10150_v38 }
 0x569   : > { %6028 = vmatpush.msrb.mxu2 %v5978_v33  ;;  %6149 = vmatpush.msrb.mxu1 %v10168_v18 }
 0x56a   : > { %5357 = vst [vmem:[#allocation2 + $0x1a0] sm:$0xff] %v5291_v25  ;;  %v4941_v20 = vpop.f32.mrf.mxu0  ;;  %6069 = vmatpush.msrb.mxu3 %v10168_v18 }
 0x56b   : > { %v5060_v62 = vpop.f32.mrf.mxu1  ;;  %v5196_v13 = vpop.f32.mrf.mxu2  ;;  %6031 = vmatpush.msrb.mxu2 %v5984_v39  ;;  %v4942_v33 = vadd.f32 %v4941_v20, %v9930_v6  ;;  %6151 = vmatpush.msrb.mxu1 %v10176_v55 }
 0x56c   : > { %v5061_v5 = vadd.f32 %v5060_v62, %v4937_v47  ;;  %v5294_v44 = vpop.f32.mrf.mxu3  ;;  %6071 = vmatpush.msrb.mxu3 %v10176_v55 }
 0x56d   : > { %5803 = vmatmul.f32.gmra.mxu0 %v10060_v54  ;;  %6034 = vmatpush.msrb.mxu2 %v5990_v63 }
 0x56e   : > { %v5197_v41 = vadd.f32 %v5196_v13, %v5061_v5  ;;  %5836 = vmatmul.f32.gmra.mxu1 %v10043_v36  ;;  %6073 = vmatpush.msrb.mxu3 %v5938_v28 }
 0x56f   : > { %5759 = vmatmul.f32.gmra.mxu3 %v10017_v3  ;;  %6037 = vmatpush.msrb.mxu2 %v5996_v30 }
 0x570   : > { %v5295_v61 = vadd.f32 %v5294_v44, %v5197_v41  ;;  %5706 = vmatmul.f32.gmra.mxu2 %v10079_v16  ;;  %6153 = vmatpush.msrb.mxu1 %v5938_v28 }
 0x572   : > { %5360 = vst [vmem:[#allocation2 + $0xe8] sm:$0xff] %v5295_v61  ;;  %v4946_v42 = vpop.f32.mrf.mxu0 }
 0x573   : > { %v5066_v59 = vpop.f32.mrf.mxu1  ;;  %v5200_v14 = vpop.f32.mrf.mxu2  ;;  %v4947_v6 = vadd.f32 %v4946_v42, %v9937_v31 }
 0x574   : > { %v5067_v46 = vadd.f32 %v5066_v59, %v4942_v33  ;;  %v5298_v38 = vpop.f32.mrf.mxu3 }
 0x575   : > { %5945 = vmatmul.f32.vlgmr.msra.gmra.mxu0 %v10066_v29 }
 0x576   : > { %v5201_v35 = vadd.f32 %v5200_v14, %v5067_v46  ;;  %5842 = vmatmul.f32.gmra.mxu1 %v10082_v60 }
 0x577   : > { %5763 = vmatmul.f32.gmra.mxu3 %v10045_v0 }
 0x578   : > { %v5299_v39 = vadd.f32 %v5298_v38, %v5201_v35  ;;  %5714 = vmatmul.f32.gmra.mxu2 %v10120_v10 }
 0x57a   : > { %5363 = vst [vmem:[#allocation2 + $0x28] sm:$0xff] %v5299_v39  ;;  %v4951_v18 = vpop.f32.mrf.mxu0 }
 0x57b   : > { %v5072_v56 = vpop.f32.mrf.mxu1  ;;  %v5204_v45 = vpop.f32.mrf.mxu2  ;;  %v4952_v8 = vadd.f32 %v4951_v18, %v9944_v50 }
 0x57c   : > { %v5073_v21 = vadd.f32 %v5072_v56, %v4947_v6  ;;  %v5302_v63 = vpop.f32.mrf.mxu3 }
 0x57d   : > { %5953 = vmatmul.f32.gmra.mxu0 %v10079_v16 }
 0x57e   : > { %v5205_v55 = vadd.f32 %v5204_v45, %v5073_v21  ;;  %6002 = vmatmul.f32.vlgmr.msra.gmra.mxu1 %v10015_v22 }
 0x57f   : > { %5908 = vmatmul.f32.vlgmr.msra.gmra.mxu3 %v10015_v22 }
 0x580   : > { %v5303_v29 = vadd.f32 %v5302_v63, %v5205_v55  ;;  %5875 = vmatmul.f32.vlgmr.msra.gmra.mxu2 %v10015_v22 }
 0x582   : > { %5366 = vst [vmem:[#allocation2 + $0xb8] sm:$0xff] %v5303_v29  ;;  %v4956_v31 = vpop.f32.mrf.mxu0 }
 0x583   : > { %v5078_v51 = vpop.f32.mrf.mxu1  ;;  %v5208_v2 = vpop.f32.mrf.mxu2  ;;  %v4957_v16 = vadd.f32 %v4956_v31, %v9951_v37 }
 0x584   : > { %v5079_v53 = vadd.f32 %v5078_v51, %v4952_v8  ;;  %v5306_v17 = vpop.f32.mrf.mxu3 }
 0x585   : > { %5961 = vmatmul.f32.gmra.mxu0 %v10120_v10 }
 0x586   : > { %v5209_v23 = vadd.f32 %v5208_v2, %v5079_v53  ;;  %6006 = vmatmul.f32.gmra.mxu1 %v10017_v3 }
 0x587   : > { %5912 = vmatmul.f32.gmra.mxu3 %v10017_v3 }
 0x588   : > { %v5307_v7 = vadd.f32 %v5306_v17, %v5209_v23  ;;  %5879 = vmatmul.f32.gmra.mxu2 %v10017_v3 }
 0x58a   : > { %5369 = vst [vmem:[#allocation2 + $0x50] sm:$0xff] %v5307_v7  ;;  %v4961_v50 = vpop.f32.mrf.mxu0 }
 0x58b   : > { %v5084_v28 = vpop.f32.mrf.mxu1  ;;  %v5212_v19 = vpop.f32.mrf.mxu2  ;;  %v4962_v10 = vadd.f32 %v4961_v50, %v9967_v48 }
 0x58c   : > { %v5085_v32 = vadd.f32 %v5084_v28, %v4957_v16  ;;  %v5310_v43 = vpop.f32.mrf.mxu3 }
 0x58d   : > { %6122 = vmatmul.f32.vlgmr.msrb.gmra.mxu0 %v10015_v22 }
 0x58e   : > { %v5213_v4 = vadd.f32 %v5212_v19, %v5085_v32  ;;  %6010 = vmatmul.f32.gmra.mxu1 %v10045_v0 }
 0x58f   : > { %5916 = vmatmul.f32.gmra.mxu3 %v10045_v0 }
 0x590   : > { %v5311_v52 = vadd.f32 %v5310_v43, %v5213_v4  ;;  %5883 = vmatmul.f32.gmra.mxu2 %v10045_v0 }
 0x592   : > { %5372 = vst [vmem:[#allocation2 + $0x198] sm:$0xff] %v5311_v52  ;;  %v4966_v37 = vpop.f32.mrf.mxu0 }
 0x593   : > { %v5090_v30 = vpop.f32.mrf.mxu1  ;;  %v5216_v58 = vpop.f32.mrf.mxu2  ;;  %v4967_v47 = vadd.f32 %v4966_v37, %v9981_v12 }
 0x594   : > { %v5091_v34 = vadd.f32 %v5090_v30, %v4962_v10  ;;  %v5314_v26 = vpop.f32.mrf.mxu3 }
 0x595   : > { %6126 = vmatmul.f32.gmra.mxu0 %v10017_v3 }
 0x596   : > { %v5217_v25 = vadd.f32 %v5216_v58, %v5091_v34  ;;  %6155 = vmatmul.f32.vlgmr.msrb.gmra.mxu1 %v10015_v22 }
 0x597   : > { %6077 = vmatmul.f32.vlgmr.msrb.gmra.mxu3 %v10034_v9 }
 0x598   : > { %v5315_v11 = vadd.f32 %v5314_v26, %v5217_v25  ;;  %6040 = vmatmul.f32.vlgmr.msrb.gmra.mxu2 %v10022_v49 }
 0x59a   : > { %5375 = vst [vmem:[#allocation2 + $0xc8] sm:$0xff] %v5315_v11  ;;  %v4971_v48 = vpop.f32.mrf.mxu0 }
 0x59b   : > { %v5096_v20 = vpop.f32.mrf.mxu1  ;;  %v5220_v24 = vpop.f32.mrf.mxu2  ;;  %v4972_v49 = vadd.f32 %v4971_v48, %v9991_v57 }
 0x59c   : > { %v5097_v62 = vadd.f32 %v5096_v20, %v4967_v47  ;;  %v5318_v5 = vpop.f32.mrf.mxu3 }
 0x59d   : > { %6130 = vmatmul.f32.gmra.mxu0 %v10045_v0 }
 0x59e   : > { %v5221_v13 = vadd.f32 %v5220_v24, %v5097_v62  ;;  %6159 = vmatmul.f32.gmra.mxu1 %v10017_v3 }
 0x59f   : > { %6083 = vmatmul.f32.gmra.mxu3 %v10043_v36 }
 0x5a0   : > { %v5319_v22 = vadd.f32 %v5318_v5, %v5221_v13  ;;  %6045 = vmatmul.f32.gmra.mxu2 %v10029_v40 }
 0x5a2   : > { %5378 = vst [vmem:[#allocation2 + $0x30] sm:$0xff] %v5319_v22  ;;  %v4976_v12 = vpop.f32.mrf.mxu0 }
 0x5a3   : > { %v5102_v9 = vpop.f32.mrf.mxu1  ;;  %v5224_v41 = vpop.f32.mrf.mxu2  ;;  %v4977_v3 = vadd.f32 %v4976_v12, %v9998_v15 }
 0x5a4   : > { %v5103_v44 = vadd.f32 %v5102_v9, %v4972_v49  ;;  %v5322_v61 = vpop.f32.mrf.mxu3 }
 0x5a6   : > { %v5225_v33 = vadd.f32 %v5224_v41, %v5103_v44  ;;  %6163 = vmatmul.f32.gmra.mxu1 %v10045_v0 }
 0x5a7   : > { %6089 = vmatmul.f32.gmra.mxu3 %v10082_v60 }
 0x5a8   : > { %v5323_v42 = vadd.f32 %v5322_v61, %v5225_v33  ;;  %6050 = vmatmul.f32.gmra.mxu2 %v10060_v54 }
 0x5aa   : > { %5381 = vst [vmem:[#allocation2 + $0x8] sm:$0xff] %v5323_v42  ;;  %v4981_v46 = vpop.f32.mrf.mxu0 }
 0x5ab   : > { %v5108_v40 = vpop.f32.mrf.mxu1  ;;  %v5228_v57 = vpop.f32.mrf.mxu2  ;;  %v4982_v35 = vadd.f32 %v4981_v46, %v10009_v27 }
 0x5ac   : > { %v5109_v36 = vadd.f32 %v5108_v40, %v4977_v3  ;;  %v5326_v59 = vpop.f32.mrf.mxu3 }
 0x5ae   : > { %v5229_v14 = vadd.f32 %v5228_v57, %v5109_v36 }
 0x5b0   : > { %v5327_v38 = vadd.f32 %v5326_v59, %v5229_v14 }
 0x5b2   : > { %5384 = vst [vmem:[#allocation2 + $0x68] sm:$0xff] %v5327_v38  ;;  %v4986_v56 = vpop.f32.mrf.mxu0 }
 0x5b3   : > { %v5114_v39 = vpop.f32.mrf.mxu1  ;;  %v5232_v6 = vpop.f32.mrf.mxu2  ;;  %v4987_v15 = vadd.f32 %v4986_v56, %v10024_v1 }
 0x5b4   : > { %v5115_v0 = vadd.f32 %v5114_v39, %v4982_v35  ;;  %v5330_v18 = vpop.f32.mrf.mxu3 }
 0x5b6   : > { %v5233_v60 = vadd.f32 %v5232_v6, %v5115_v0 }
 0x5b8   : > { %v5331_v54 = vadd.f32 %v5330_v18, %v5233_v60 }
 0x5ba   : > { %5387 = vst [vmem:[#allocation2 + $0x88] sm:$0xff] %v5331_v54  ;;  %v5452_v51 = vpop.f32.mrf.mxu0 }
 0x5bb   : > { %v5120_v21 = vpop.f32.mrf.mxu1  ;;  %v5236_v63 = vpop.f32.mrf.mxu2 }
 0x5bc   : > { %v5121_v45 = vadd.f32 %v5120_v21, %v4987_v15  ;;  %v5334_v55 = vpop.f32.mrf.mxu3 }
 0x5be   : > { %v5237_v29 = vadd.f32 %v5236_v63, %v5121_v45 }
 0x5c0   : > { %v5335_v8 = vadd.f32 %v5334_v55, %v5237_v29 }
 0x5c2   : > { %5390 = vst [vmem:[#allocation2 + $0x188] sm:$0xff] %v5335_v8  ;;  %v5629_v23 = vpop.f32.mrf.mxu0 }
 0x5c3   : > { %v5460_v31 = vpop.f32.mrf.mxu2  ;;  %v5509_v53 = vpop.f32.mrf.mxu1 }
 0x5c4   : > { %v5513_v27 = vpop.f32.mrf.mxu3  ;;  %v5510_v7 = vadd.f32 %v5509_v53, %v5452_v51  ;;  %v6179_v51 = vld [vmem:[#allocation2 + $0xb0] sm:$0xfc] }
 0x5c5   : > { %v5514_v43 = vadd.f32 %v5513_v27, %v5460_v31  ;;  %v6206_v53 = vld [vmem:[#allocation2 + $0xb0] sm:$0xfe] }
 0x5ca   : > { %v5633_v52 = vpop.f32.mrf.mxu0 }
 0x5cb   : > { %v5468_v2 = vpop.f32.mrf.mxu2  ;;  %v5662_v16 = vpop.f32.mrf.mxu1 }
 0x5cc   : > { %v5517_v17 = vpop.f32.mrf.mxu3 }
 0x5cd   : > { %v5518_v62 = vadd.f32 %v5517_v17, %v5468_v2 }
 0x5d2   : > { %v5637_v48 = vpop.f32.mrf.mxu0 }
 0x5d3   : > { %v5547_v50 = vpop.f32.mrf.mxu2  ;;  %v5666_v34 = vpop.f32.mrf.mxu1 }
 0x5d4   : > { %v5584_v28 = vpop.f32.mrf.mxu3  ;;  %v5548_v1 = vadd.f32 %v5547_v50, %v5510_v7  ;;  %v6209_v7 = vld [vmem:[#allocation2 + $0x40] sm:$0x1] }
 0x5d6   : > { %v5585_v32 = vadd.f32 %v5584_v28, %v5548_v1  ;;  %v6278_v28 = vld [vmem:[#allocation2 + $0x40] sm:$0xf0] }
 0x5d7   : > { %v6305_v1 = vld [vmem:[#allocation2 + $0x40] sm:$0xf8] }
 0x5d8   : > { %v5630_v19 = vadd.f32 %v5629_v23, %v5585_v32  ;;  %v6185_v23 = vld [vmem:[#allocation2 + $0x40] sm:$0x3] }
 0x5da   : > { %v5663_v4 = vadd.f32 %v5662_v16, %v5630_v19  ;;  %v5794_v22 = vpop.f32.mrf.mxu0  ;;  %v7107_v19 = vld [vmem:[#allocation2 + $0x48] sm:$0xff] }
 0x5db   : > { %v5552_v10 = vpop.f32.mrf.mxu2  ;;  %v5670_v20 = vpop.f32.mrf.mxu1 }
 0x5dc   : > { %v5590_v37 = vpop.f32.mrf.mxu3  ;;  %6167 = vst [vmem:[#allocation3 + $0x18] sm:$0xff] %v5663_v4  ;;  %v5553_v30 = vadd.f32 %v5552_v10, %v5514_v43  ;;  %v6329_v10 = vld [vmem:[#allocation2 + $0x40] sm:$0xfc] }
 0x5de   : > { %v5591_v58 = vadd.f32 %v5590_v37, %v5553_v30  ;;  %v6284_v37 = vld [vmem:[#allocation2 + $0x148] sm:$0xf] }
 0x5e0   : > { %v5634_v26 = vadd.f32 %v5633_v52, %v5591_v58 }
 0x5e2   : > { %v5667_v25 = vadd.f32 %v5666_v34, %v5634_v26  ;;  %v5799_v33 = vpop.f32.mrf.mxu0 }
 0x5e3   : > { %v5557_v11 = vpop.f32.mrf.mxu2  ;;  %v5831_v49 = vpop.f32.mrf.mxu1  ;;  %v6176_v21 = vld [vmem:[#allocation3 + $0x18] sm:$0x7]  ;;  %v6275_v63 = vld [vmem:[#allocation3 + $0x18] sm:$0x38]  ;;  %v6384_v27 = vld [vmem:[#allocation3 + $0x18] sm:$0xc0] }
 0x5e4   : > { %v5596_v47 = vpop.f32.mrf.mxu3  ;;  %6170 = vst [vmem:[#allocation3 + $0x30] sm:$0xff] %v5667_v25  ;;  %v5558_v13 = vadd.f32 %v5557_v11, %v5518_v62  ;;  %v6188_v29 = vperm.slane %v6176_v21, 0  ;;  %v6212_v31 = vperm.slane %v6176_v21, 1  ;;  %v6233_v2 = vperm.slane %v6176_v21, 2  ;;  %v6308_v11 = vld [vmem:[#allocation2 + $0x148] sm:$0x7] }
 0x5e5   : > { %v6287_v17 = vperm.slane %v6275_v63, 3  ;;  %v6311_v16 = vperm.slane %v6275_v63, 4  ;;  %v6335_v50 = vperm.slane %v6275_v63, 5  ;;  %v6399_v4 = vperm.slane %v6384_v27, 6  ;;  %v6444_v21 = vld [vmem:[#allocation2 + $0x138] sm:$0xf] }
 0x5e6   : > { %v5597_v12 = vadd.f32 %v5596_v47, %v5558_v13  ;;  %v10251_v32 = vmul.f32 %v6188_v29, %v6179_v51  ;;  %v10253_v43 = vmul.f32 %v7107_v19, %v6188_v29  ;;  %v6423_v52 = vperm.slane %v6384_v27, 7  ;;  %v6332_v47 = vld [vmem:[#allocation2 + $0x148] sm:$0x3]  ;;  %v7109_v13 = vld [vmem:[#allocation2 + $0x110] sm:$0xff]  ;;  %v6518_v51 = vld [vmem:[#allocation2 + $0x138] sm:$0x80] }
 0x5e7   : > { %v10255_v30 = vmul.f32 %v6188_v29, %v6185_v23  ;;  %v10257_v34 = vmul.f32 %v6212_v31, %v6206_v53  ;;  %v10259_v58 = vmul.f32 %v7107_v19, %v6212_v31  ;;  %v10261_v26 = vmul.f32 %v6212_v31, %v6209_v7  ;;  %v6542_v53 = vld [vmem:[#allocation2 + $0x138] sm:$0xc0] }
 0x5e8   : > { %v5638_v41 = vadd.f32 %v5637_v48, %v5597_v12  ;;  %v6390_v48 = vld [vmem:[#allocation2 + $0x148] sm:$0xc0] }
 0x5e9   : > { %v6417_v12 = vld [vmem:[#allocation2 + $0x148] sm:$0xe0] }
 0x5ea   : > { %v5671_v61 = vadd.f32 %v5670_v20, %v5638_v41  ;;  %v10243_v46 = vpop.f32.mrf.mxu0  ;;  %v7108_v20 = vld [vmem:[#allocation2 + $0xb0] sm:$0xff]  ;;  %v10277_v41 = vmul.f32 %v7109_v13, %v6311_v16 }
 0x5eb   : > { %v5699_v24 = vpop.f32.mrf.mxu2  ;;  %v5837_v42 = vpop.f32.mrf.mxu1  ;;  %v6496_v25 = vld [vmem:[#allocation3 + $0x30] sm:$0xe]  ;;  %v10263_v62 = vmul.f32 %v7108_v20, %v6233_v2  ;;  %v6690_v31 = vld [vmem:[#allocation3 + $0x30] sm:$0x80] }
 0x5ec   : > { %v5756_v5 = vpop.f32.mrf.mxu3  ;;  %6173 = vst [vmem:[#allocation3] sm:$0xff] %v5671_v61  ;;  %v10279_v61 = vmul.f32 %v6311_v16, %v6308_v11  ;;  %v6705_v20 = vperm.slane %v6690_v31, 7 }
 0x5ed   : > { %v5757_v36 = vadd.f32 %v5756_v5, %v5699_v24  ;;  %v10265_v24 = vmul.f32 %v7107_v19, %v6233_v2  ;;  %v10267_v5 = vmul.f32 %v6287_v17, %v6278_v28 }
 0x5ef   : > { %v5795_v57 = vadd.f32 %v5794_v22, %v5757_v36  ;;  %v10269_v22 = vmul.f32 %v7109_v13, %v6287_v17  ;;  %v6396_v36 = vld [vmem:[#allocation2 + $0x138] sm:$0x3f] }
 0x5f1   : > { %v5832_v39 = vadd.f32 %v5831_v49, %v5795_v57  ;;  %v10283_v57 = vmul.f32 %v6335_v50, %v6329_v10 }
 0x5f2   : > { %v10247_v56 = vpop.f32.mrf.mxu0 }
 0x5f3   : > { %v5707_v9 = vpop.f32.mrf.mxu2  ;;  %v10245_v35 = vpop.f32.mrf.mxu1 }
 0x5f4   : > { %v5760_v44 = vpop.f32.mrf.mxu3 }
 0x5f5   : > { %v5761_v59 = vadd.f32 %v5760_v44, %v5707_v9  ;;  %v10273_v9 = vmul.f32 %v6287_v17, %v6284_v37  ;;  %v10275_v44 = vmul.f32 %v6311_v16, %v6305_v1  ;;  %v6521_v16 = vld [vmem:[#allocation2 + $0x80] sm:$0x7f]  ;;  %v7111_v1 = vld [vmem:[#allocation2 + $0x158] sm:$0xff] }
 0x5f7   : > { %v5800_v0 = vadd.f32 %v5799_v33, %v5761_v59  ;;  %v7104_v33 = vld [vmem:[#allocation3 + $0x30] ss:$0 sm:$0xff]  ;;  %v10285_v59 = vmul.f32 %v7109_v13, %v6335_v50  ;;  %v6693_v13 = vld [vmem:[#allocation3] sm:$0x3] }
 0x5f8   : > { %v10309_v28 = vmul.f32 %v7104_v33, %v6444_v21  ;;  %v6625_v21 = vld [vmem:[#allocation2 + $0xa0] sm:$0x1] }
 0x5f9   : > { %v5838_v18 = vadd.f32 %v5837_v42, %v5800_v0  ;;  %v10281_v42 = vld [vmem:[#allocation3 + $0x30] sm:$0x70]  ;;  %v6420_v0 = vld [vmem:[#allocation2 + $0x138] sm:$0x1f] }
 0x5fa   : > { %v10271_v49 = vpop.f32.mrf.mxu0  ;;  %v6604_v29 = vperm.slane %v10281_v42, 4  ;;  %v10302_v2 = vmul.f32 %v6423_v52, %v6420_v0  ;;  %v6628_v7 = vperm.slane %v10281_v42, 5  ;;  %v6649_v37 = vperm.slane %v10281_v42, 6  ;;  %v6802_v0 = vld [vmem:[#allocation3] sm:$0x1c] }
 0x5fb   : > { %v10239_v3 = vpop.f32.mrf.mxu2  ;;  %v10249_v8 = vpop.f32.mrf.mxu1 }
 0x5fc   : > { %v10241_v40 = vpop.f32.mrf.mxu3 }
 0x603   : > { %v5876_v14 = vpop.f32.mrf.mxu2  ;;  %v10300_v27 = vpop.f32.mrf.mxu1 }
 0x604   : > { %v5909_v38 = vpop.f32.mrf.mxu3  ;;  %v5877_v6 = vadd.f32 %v5876_v14, %v5832_v39  ;;  %v10287_v14 = vmul.f32 %v6335_v50, %v6332_v47  ;;  %v6441_v39 = vld [vmem:[#allocation2 + $0x148] sm:$0xf0]  ;;  %v6545_v50 = vld [vmem:[#allocation2 + $0x80] sm:$0x3f] }
 0x605   : > { %v10304_v17 = vmul.f32 %v7104_v33, %v6441_v39 }
 0x606   : > { %v5910_v60 = vadd.f32 %v5909_v38, %v5877_v6  ;;  %v6505_v38 = vperm.slane %v6496_v25, 1  ;;  %v10289_v6 = vmul.f32 %v6399_v4, %v6390_v48 }
 0x608   : > { %6168 = vst [vmem:[#allocation3 + $0x10] sm:$0xff] %v5910_v60  ;;  %v10311_v19 = vmul.f32 %v7111_v1, %v6505_v38 }
 0x60b   : > { %v5880_v54 = vpop.f32.mrf.mxu2 }
 0x60c   : > { %v5913_v15 = vpop.f32.mrf.mxu3  ;;  %v5881_v45 = vadd.f32 %v5880_v54, %v5838_v18  ;;  %v7110_v18 = vld [vmem:[#allocation2 + $0xd8] sm:$0xff]  ;;  %v10293_v54 = vmul.f32 %v6399_v4, %v6396_v36 }
 0x60d   : > { %v10291_v60 = vmul.f32 %v7110_v18, %v6399_v4  ;;  %v10297_v63 = vmul.f32 %v7110_v18, %v6423_v52  ;;  %v10306_v23 = vmul.f32 %v7110_v18, %v7104_v33  ;;  %v7112_v4 = vld [vmem:[#allocation2 + $0x80] sm:$0xff] }
 0x60e   : > { %v5914_v55 = vadd.f32 %v5913_v15, %v5881_v45  ;;  %v6524_v15 = vperm.slane %v6496_v25, 2  ;;  %v10295_v45 = vmul.f32 %v6423_v52, %v6417_v12  ;;  %v10313_v10 = vmul.f32 %v7112_v4, %v6505_v38  ;;  %v6622_v12 = vld [vmem:[#allocation2] sm:$0xfe] }
 0x60f   : > { %v6601_v33 = vld [vmem:[#allocation2 + $0xa0] sm:$0x3]  ;;  %v10338_v31 = vmul.f32 %v6628_v7, %v6622_v12 }
 0x610   : > { %6171 = vst [vmem:[#allocation3 + $0x8] sm:$0xff] %v5914_v55  ;;  %v6548_v55 = vperm.slane %v6496_v25, 3  ;;  %v6595_v25 = vld [vmem:[#allocation2] sm:$0xfc]  ;;  %v10318_v11 = vmul.f32 %v6524_v15, %v6518_v51  ;;  %v10320_v47 = vmul.f32 %v7111_v1, %v6524_v15  ;;  %v10322_v48 = vmul.f32 %v6524_v15, %v6521_v16  ;;  %v7113_v51 = vld [vmem:[#allocation2 + $0x1a8] sm:$0xff] }
 0x611   : > { %v10330_v42 = vmul.f32 %v6604_v29, %v6595_v25  ;;  %v10334_v4 = vmul.f32 %v7113_v51, %v6604_v29  ;;  %v10336_v15 = vmul.f32 %v6604_v29, %v6601_v33  ;;  %11738 = vst [vmem:[#allocation17_spill] sm:$0xff] %v10338_v31  ;;  %v6696_v16 = vld [vmem:[#allocation2 + $0xa0] sm:$0xf0]  ;;  %v6702_v29 = vld [vmem:[#allocation2 + $0xf0] sm:$0xf]  ;;  %v10350_v33 = vmul.f32 %v7113_v51, %v6649_v37 }
 0x612   : > { %11729 = vst [vmem:[#allocation148_spill] sm:$0xff] %v10318_v11  ;;  %v10324_v36 = vmul.f32 %v6548_v55, %v6542_v53  ;;  %v10326_v39 = vmul.f32 %v7111_v1, %v6548_v55  ;;  %v10328_v38 = vmul.f32 %v6548_v55, %v6545_v50  ;;  %v5765_v53 = vadd.f32 %v10241_v40, %v10239_v3  ;;  %v7114_v50 = vld [vmem:[#allocation2] sm:$0xff] }
 0x613   : > { %v10316_v52 = vpop.f32.mrf.mxu2  ;;  %11730 = vst [vmem:[#allocation9_spill] sm:$0xff] %v10320_v47  ;;  %v10342_v1 = vmul.f32 %v7113_v51, %v6628_v7  ;;  %v10344_v55 = vmul.f32 %v6628_v7, %v6625_v21  ;;  %v10346_v25 = vmul.f32 %v7114_v50, %v6649_v37  ;;  %v10352_v12 = vmul.f32 %v6705_v20, %v6696_v16  ;;  %v6747_v40 = vld [vmem:[#allocation2 + $0xa0] sm:$0xfc] }
 0x614   : > { %11731 = vst [vmem:[#allocation6_spill] sm:$0xff] %v10322_v48  ;;  %v10332_v18 = vpop.f32.mrf.mxu3  ;;  %v6753_v31 = vperm.slane %v6693_v13, 1  ;;  %v6814_v3 = vperm.slane %v6802_v0, 2  ;;  %v10356_v21 = vmul.f32 %v6705_v20, %v6702_v29  ;;  %v6838_v50 = vperm.slane %v6802_v0, 3  ;;  %v10369_v29 = vld [vmem:[#allocation3 + $0x10] sm:$0x7] }
 0x615   : > { %11732 = vst [vmem:[#allocation5_spill] sm:$0xff] %v10324_v36  ;;  %v6862_v36 = vperm.slane %v6802_v0, 4  ;;  %v5805_v16 = vadd.f32 %v10243_v46, %v5765_v53  ;;  %v6835_v53 = vld [vmem:[#allocation2 + $0x60] sm:$0x1f] }
 0x616   : > { %11733 = vst [vmem:[#allocation13_spill] sm:$0xff] %v10326_v39  ;;  %v10348_v39 = vpop.f32.mrf.mxu0 }
 0x617   : > { %11734 = vst [vmem:[#allocation4_spill] sm:$0xff] %v10328_v38  ;;  %v6911_v38 = vld [vmem:[#allocation3] sm:$0xe0] }
 0x618   : > { %11735 = vst [vmem:[#allocation10_spill] sm:$0xff] %v10330_v42  ;;  %v6729_v42 = vperm.slane %v6693_v13, 0  ;;  %v6920_v37 = vperm.slane %v6911_v38, 5  ;;  %v6939_v51 = vperm.slane %v6911_v38, 6  ;;  %v6805_v13 = vld [vmem:[#allocation2 + $0xf0] sm:$0xc0] }
 0x619   : > { %11736 = vst [vmem:[#allocation8_spill] sm:$0xff] %v10334_v4  ;;  %v6723_v4 = vld [vmem:[#allocation2 + $0xa0] sm:$0xf8]  ;;  %v10379_v46 = vmul.f32 %v6814_v3, %v6805_v13  ;;  %v6192_v13 = vperm.slane %v10369_v29, 0 }
 0x61a   : > { %11737 = vst [vmem:[#allocation136_spill] sm:$0xff] %v10336_v15  ;;  %v6726_v15 = vld [vmem:[#allocation2 + $0xf0] sm:$0x7] }
 0x61b   : > { %11739 = vst [vmem:[#allocation7_spill] sm:$0xff] %v10342_v1  ;;  %v7115_v1 = vld [vmem:[#allocation2 + $0xc0] sm:$0xff]  ;;  %v10367_v48 = vmul.f32 %v6729_v42, %v6726_v15 }
 0x61c   : > { %11740 = vst [vmem:[#allocation14_spill] sm:$0xff] %v10344_v55  ;;  %v10354_v7 = vmul.f32 %v7115_v1, %v6705_v20  ;;  %v6750_v55 = vld [vmem:[#allocation2 + $0xf0] sm:$0x3]  ;;  %v6963_v20 = vperm.slane %v6911_v38, 7  ;;  %v10375_v0 = vmul.f32 %v7115_v1, %v6753_v31 }
 0x61d   : > { %11741 = vst [vmem:[#allocation12_spill] sm:$0xff] %v10346_v25  ;;  %v10360_v25 = vadd.f32 %v10249_v8, %v10247_v56  ;;  %v6832_v56 = vld [vmem:[#allocation2 + $0xf0] sm:$0xe0]  ;;  %v6811_v8 = vld [vmem:[#allocation2 + $0x60] sm:$0x3f]  ;;  %v10377_v47 = vmul.f32 %v6753_v31, %v6750_v55 }
 0x61e   : > { %11742 = vst [vmem:[#allocation134_spill] sm:$0xff] %v10350_v33  ;;  %v10365_v33 = vmul.f32 %v7115_v1, %v6729_v42  ;;  %v10383_v38 = vmul.f32 %v6814_v3, %v6811_v8  ;;  %v10385_v15 = vmul.f32 %v6838_v50, %v6832_v56  ;;  %v10389_v1 = vmul.f32 %v6838_v50, %v6835_v53  ;;  %v7118_v8 = vld [vmem:[#allocation2 + $0xe0] sm:$0xff] }
 0x61f   : > { %11743 = vst [vmem:[#allocation21_spill] sm:$0xff] %v10352_v12  ;;  %v10363_v12 = vmul.f32 %v6729_v42, %v6723_v4  ;;  %v6856_v4 = vld [vmem:[#allocation2 + $0xf0] sm:$0xf0]  ;;  %v6960_v53 = vld [vmem:[#allocation2 + $0xe0] sm:$0x3f] }
 0x620   : > { %11744 = vst [vmem:[#allocation11_spill] sm:$0xff] %v10354_v7  ;;  %v10373_v7 = vmul.f32 %v6753_v31, %v6747_v40  ;;  %v6859_v40 = vld [vmem:[#allocation2 + $0x60] sm:$0xf]  ;;  %v10391_v31 = vmul.f32 %v6862_v36, %v6856_v4  ;;  %v6180_v4 = vld [vmem:[#allocation2 + $0xd0] sm:$0xfc] }
 0x621   : > { %11745 = vst [vmem:[#allocation18_spill] sm:$0xff] %v10356_v21  ;;  %v10371_v21 = vpop.f32.mrf.mxu1 }
 0x622   : > { %11746 = vst [vmem:[#allocation16_spill] sm:$0xff] %v10363_v12  ;;  %v6041_v12 = vpop.f32.mrf.mxu2 }
 0x623   : > { %11747 = vst [vmem:[#allocation135_spill] sm:$0xff] %v10365_v33  ;;  %v7116_v33 = vld [vmem:[#allocation2 + $0xf8] sm:$0xff] }
 0x624   : > { %11748 = vst [vmem:[#allocation25_spill] sm:$0xff] %v10367_v48  ;;  %v10381_v42 = vmul.f32 %v7116_v33, %v6814_v3  ;;  %v10387_v48 = vmul.f32 %v7116_v33, %v6838_v50  ;;  %v10393_v55 = vmul.f32 %v7116_v33, %v6862_v36  ;;  %v7117_v3 = vld [vmem:[#allocation2 + $0x38] sm:$0xff]  ;;  %v6078_v50 = vpop.f32.mrf.mxu3 }
 0x625   : > { %11749 = vst [vmem:[#allocation15_spill] sm:$0xff] %v10373_v7  ;;  %v6933_v7 = vld [vmem:[#allocation2 + $0x60] sm:$0x80]  ;;  %v10398_v56 = vmul.f32 %v7117_v3, %v6920_v37  ;;  %v10405_v33 = vmul.f32 %v7117_v3, %v6939_v51 }
 0x626   : > { %11750 = vst [vmem:[#allocation22_spill] sm:$0xff] %v10375_v0  ;;  %v7119_v0 = vld [vmem:[#allocation2 + $0x160] sm:$0xff] }
 0x627   : > { %11751 = vst [vmem:[#allocation20_spill] sm:$0xff] %v10377_v47  ;;  %v6936_v47 = vld [vmem:[#allocation2 + $0xe0] sm:$0x7f] }
 0x628   : > { %11752 = vst [vmem:[#allocation141_spill] sm:$0xff] %v10379_v46  ;;  %v6957_v46 = vld [vmem:[#allocation2 + $0x60] sm:$0xc0] }
 0x629   : > { %11753 = vst [vmem:[#allocation29_spill] sm:$0xff] %v10381_v42  ;;  %v10396_v42 = vmul.f32 %v6862_v36, %v6859_v40  ;;  %v6276_v36 = vld [vmem:[#allocation3 + $0x10] sm:$0x38]  ;;  %v6186_v40 = vld [vmem:[#allocation2 + $0x178] sm:$0x3] }
 0x62a   : > { %11754 = vst [vmem:[#allocation19_spill] sm:$0xff] %v10383_v38  ;;  %v6123_v38 = vpop.f32.mrf.mxu0 }
 0x62b   : > { %11755 = vst [vmem:[#allocation26_spill] sm:$0xff] %v10385_v15  ;;  %v6216_v15 = vperm.slane %v10369_v29, 1 }
 0x62c   : > { %11756 = vst [vmem:[#allocation24_spill] sm:$0xff] %v10387_v48  ;;  %v10400_v48 = vmul.f32 %v7118_v8, %v6920_v37  ;;  %v5844_v37 = vadd.f32 %v10245_v35, %v5805_v16  ;;  %v6236_v8 = vperm.slane %v10369_v29, 2 }
 0x62d   : > { %11757 = vst [vmem:[#allocation140_spill] sm:$0xff] %v10389_v1  ;;  %v10409_v1 = vmul.f32 %v6963_v20, %v6957_v46  ;;  %v6210_v46 = vld [vmem:[#allocation2 + $0x178] sm:$0x1] }
 0x62e   : > { %11758 = vst [vmem:[#allocation33_spill] sm:$0xff] %v10391_v31  ;;  %v10403_v31 = vmul.f32 %v6939_v51, %v6933_v7  ;;  %v6207_v7 = vld [vmem:[#allocation2 + $0xd0] sm:$0xfe]  ;;  %v6219_v35 = vmul.f32 %v6216_v15, %v6210_v46 }
 0x62f   : > { %11759 = vst [vmem:[#allocation23_spill] sm:$0xff] %v10393_v55  ;;  %v10407_v55 = vmul.f32 %v6939_v51, %v6936_v47  ;;  %v6195_v47 = vmul.f32 %v6192_v13, %v6186_v40  ;;  %v6008_v51 = vadd.f32 %v10300_v27, %v10271_v49  ;;  %v6042_v49 = vadd.f32 %v6041_v12, %v10360_v25  ;;  %v6279_v27 = vld [vmem:[#allocation2 + $0x178] sm:$0xf0]  ;;  %v6046_v12 = vpop.f32.mrf.mxu2 }
 0x630   : > { %11760 = vst [vmem:[#allocation30_spill] sm:$0xff] %v10396_v42  ;;  %v10411_v42 = vmul.f32 %v7117_v3, %v6963_v20  ;;  %v6291_v3 = vperm.slane %v6276_v36, 3 }
 0x631   : > { %11761 = vst [vmem:[#allocation28_spill] sm:$0xff] %v10398_v56  ;;  %v10413_v56 = vmul.f32 %v6963_v20, %v6960_v53  ;;  %v6339_v20 = vperm.slane %v6276_v36, 5  ;;  %v6156_v53 = vpop.f32.mrf.mxu1  ;;  %v6079_v25 = vadd.f32 %v6078_v50, %v6042_v49 }
 0x632   : > { %11762 = vst [vmem:[#allocation138_spill] sm:$0xff] %v10400_v48  ;;  %v6385_v48 = vld [vmem:[#allocation3 + $0x10] sm:$0xc0]  ;;  %v6127_v49 = vpop.f32.mrf.mxu0 }
 0x633   : > { %11763 = vst [vmem:[#allocation37_spill] sm:$0xff] %v10403_v31  ;;  %v6193_v31 = vmul.f32 %v6192_v13, %v6180_v4  ;;  %v6403_v16 = vperm.slane %v6385_v48, 6  ;;  %v10419_v29 = vperm.slane %v6385_v48, 7  ;;  %v5885_v4 = vadd.f32 %v10316_v52, %v5844_v37  ;;  %v7121_v37 = vld [vmem:[#allocation2 + $0x90] sm:$0xff] }
 0x634   : > { %11764 = vst [vmem:[#allocation27_spill] sm:$0xff] %v10405_v33  ;;  %v6194_v33 = vmul.f32 %v7119_v0, %v6192_v13  ;;  %v10424_v13 = vadd.f32 %v10371_v21, %v10348_v39  ;;  %v10434_v48 = vadd.f32 %v6195_v47, %v10255_v30  ;;  %v6292_v39 = vmul.f32 %v6291_v3, %v6279_v27  ;;  %v6330_v47 = vld [vmem:[#allocation2 + $0x178] sm:$0xfc]  ;;  %v6333_v27 = vld [vmem:[#allocation2 + $0x100] sm:$0x3] }
 0x635   : > { %11765 = vst [vmem:[#allocation34_spill] sm:$0xff] %v10407_v55  ;;  %v7120_v55 = vld [vmem:[#allocation2 + $0xd0] sm:$0xff]  ;;  %v10428_v40 = vadd.f32 %v6193_v31, %v10251_v32  ;;  %v5918_v21 = vadd.f32 %v10332_v18, %v5885_v4  ;;  %v6293_v32 = vmul.f32 %v7121_v37, %v6291_v3 }
 0x636   : > { %11766 = vst [vmem:[#allocation32_spill] sm:$0xff] %v10409_v1  ;;  %v6217_v1 = vmul.f32 %v6216_v15, %v6207_v7  ;;  %v6237_v11 = vmul.f32 %v7120_v55, %v6236_v8  ;;  %v6306_v55 = vld [vmem:[#allocation2 + $0x178] sm:$0xf8]  ;;  %v6285_v7 = vld [vmem:[#allocation2 + $0x100] sm:$0xf]  ;;  %v10453_v4 = vadd.f32 %v6292_v39, %v10267_v5 }
 0x637   : > { %11767 = vst [vmem:[#allocation139_spill] sm:$0xff] %v10411_v42  ;;  %v6315_v42 = vperm.slane %v6276_v36, 4  ;;  %v10431_v36 = vadd.f32 %v6194_v33, %v10253_v43  ;;  %v6294_v31 = vmul.f32 %v6291_v3, %v6285_v7  ;;  %v6047_v43 = vadd.f32 %v6046_v12, %v6008_v51  ;;  %v6309_v33 = vld [vmem:[#allocation2 + $0x100] sm:$0x7]  ;;  %v6418_v5 = vld [vmem:[#allocation2 + $0x100] sm:$0xe0] }
 0x638   : > { %11768 = vst [vmem:[#allocation41_spill] sm:$0xff] %v10413_v56  ;;  %v6218_v56 = vmul.f32 %v7119_v0, %v6216_v15  ;;  %v6238_v15 = vmul.f32 %v7119_v0, %v6236_v8  ;;  %v10437_v52 = vadd.f32 %v6217_v1, %v10257_v34  ;;  %v10444_v0 = vadd.f32 %v6219_v35, %v10261_v26  ;;  %v6084_v1 = vpop.f32.mrf.mxu3  ;;  %v6497_v26 = vld [vmem:[#allocation3 + $0x8] sm:$0xe] }
 0x639   : > { %11769 = vst [vmem:[#allocation31_spill] sm:$0xff] %v10424_v13  ;;  %v6316_v46 = vmul.f32 %v6315_v42, %v6306_v55  ;;  %v6317_v8 = vmul.f32 %v7121_v37, %v6315_v42  ;;  %v6124_v34 = vadd.f32 %v6123_v38, %v6079_v25  ;;  %v10447_v18 = vadd.f32 %v6237_v11, %v10263_v62  ;;  %v6391_v38 = vld [vmem:[#allocation2 + $0x100] sm:$0xc0]  ;;  %v7105_v11 = vld [vmem:[#allocation3 + $0x8] ss:$0 sm:$0xff] }
 0x63a   : > { %v10441_v30 = vadd.f32 %v6218_v56, %v10259_v58  ;;  %6174 = vst [vmem:[#allocation3 + $0x20] sm:$0xff] %v5918_v21  ;;  %v10450_v50 = vadd.f32 %v6238_v15, %v10265_v24  ;;  %v6318_v3 = vmul.f32 %v6315_v42, %v6309_v33  ;;  %v6085_v51 = vadd.f32 %v6084_v1, %v6047_v43  ;;  %v6397_v15 = vld [vmem:[#allocation2 + $0x78] sm:$0x3f]  ;;  %v7122_v21 = vld [vmem:[#allocation2 + $0x180] sm:$0xff] }
 0x63b   : > { %v6340_v58 = vmul.f32 %v6339_v20, %v6330_v47  ;;  %v6341_v56 = vmul.f32 %v7121_v37, %v6339_v20  ;;  %v6157_v35 = vadd.f32 %v6156_v53, %v6124_v34  ;;  %v10456_v55 = vadd.f32 %v6293_v32, %v10269_v22  ;;  %v6160_v22 = vpop.f32.mrf.mxu1  ;;  %v6445_v33 = vld [vmem:[#allocation2 + $0x78] sm:$0xf]  ;;  %v6593_v47 = vld [vmem:[#allocation3 + $0x8] sm:$0x70] }
 0x63c   : > { %v10459_v62 = vadd.f32 %v6294_v31, %v10273_v9  ;;  %v10462_v24 = vadd.f32 %v6316_v46, %v10275_v44  ;;  %v6128_v42 = vadd.f32 %v6127_v49, %v6085_v51  ;;  %v10465_v7 = vadd.f32 %v6317_v8, %v10277_v41  ;;  %v6442_v44 = vld [vmem:[#allocation2 + $0x100] sm:$0xf0]  ;;  %v6421_v31 = vld [vmem:[#allocation2 + $0x78] sm:$0x1f] }
 0x63d   : > { %v6342_v53 = vmul.f32 %v6339_v20, %v6333_v27  ;;  %v6404_v39 = vmul.f32 %v6403_v16, %v6391_v38  ;;  %v6405_v25 = vmul.f32 %v7122_v21, %v6403_v16  ;;  %6169 = vst [vmem:[#allocation3 + $0x38] sm:$0xff] %v6157_v35  ;;  %v6406_v12 = vmul.f32 %v6403_v16, %v6397_v15 }
 0x63e   : > { %v6428_v9 = vmul.f32 %v10419_v29, %v6418_v5  ;;  %v6508_v37 = vperm.slane %v6497_v26, 1  ;;  %v6161_v32 = vadd.f32 %v6160_v22, %v6128_v42  ;;  %v10469_v46 = vadd.f32 %v6318_v3, %v10279_v61  ;;  %v6691_v42 = vld [vmem:[#allocation3 + $0x8] sm:$0x80]  ;;  %v6596_v22 = vld [vmem:[#allocation2 + $0x168] sm:$0xfc] }
 0x63f   : > { %v10472_v43 = vadd.f32 %v6340_v58, %v10283_v57  ;;  %v6429_v41 = vmul.f32 %v7122_v21, %v10419_v29  ;;  %v6528_v20 = vperm.slane %v6497_v26, 2  ;;  %v10476_v8 = vadd.f32 %v6341_v56, %v10285_v59  ;;  %v6519_v58 = vld [vmem:[#allocation2 + $0x78] sm:$0x80] }
 0x640   : > { %v6430_v16 = vmul.f32 %v10419_v29, %v6421_v31  ;;  %v6452_v34 = vmul.f32 %v7105_v11, %v6442_v44  ;;  %v6453_v1 = vmul.f32 %v7122_v21, %v7105_v11  ;;  %v10480_v51 = vadd.f32 %v6342_v53, %v10287_v14  ;;  %6172 = vst [vmem:[#allocation3 + $0x40] sm:$0xff] %v6161_v32  ;;  %v7123_v56 = vld [vmem:[#allocation2 + $0x98] sm:$0xff]  ;;  %v6602_v32 = vld [vmem:[#allocation2 + $0x170] sm:$0x3] }
 0x641   : > { %v10483_v61 = vadd.f32 %v6404_v39, %v10289_v6  ;;  %v10486_v57 = vadd.f32 %v6405_v25, %v10291_v60  ;;  %v6454_v3 = vmul.f32 %v7105_v11, %v6445_v33  ;;  %v10489_v59 = vadd.f32 %v6406_v12, %v10293_v54  ;;  %v7124_v6 = vld [vmem:[#allocation2 + $0xa8] sm:$0xff]  ;;  %v11770_v44 = vld [vmem:[#allocation148_spill] sm:$0xff]  ;;  %v7125_v33 = vld [vmem:[#allocation2 + $0x140] sm:$0xff] }
 0x642   : > { %v10492_v29 = vadd.f32 %v6428_v9, %v10295_v45  ;;  %v6509_v35 = vmul.f32 %v7123_v56, %v6508_v37  ;;  %v6552_v49 = vperm.slane %v6497_v26, 3  ;;  %v10495_v14 = vadd.f32 %v6429_v41, %v10297_v63  ;;  %v6522_v11 = vld [vmem:[#allocation2 + $0xa8] sm:$0x7f]  ;;  %v6543_v26 = vld [vmem:[#allocation2 + $0x78] sm:$0xc0] }
 0x643   : > { %v6510_v27 = vmul.f32 %v7124_v6, %v6508_v37  ;;  %v6529_v38 = vmul.f32 %v6528_v20, %v6519_v58  ;;  %v6608_v60 = vperm.slane %v6593_v47, 4  ;;  %v10498_v5 = vadd.f32 %v6430_v16, %v10302_v2  ;;  %v6546_v25 = vld [vmem:[#allocation2 + $0xa8] sm:$0x3f]  ;;  %v11771_v58 = vld [vmem:[#allocation9_spill] sm:$0xff] }
 0x644   : > { %v10501_v54 = vadd.f32 %v6452_v34, %v10304_v17  ;;  %v10504_v45 = vadd.f32 %v6453_v1, %v10306_v23  ;;  %v6632_v15 = vperm.slane %v6593_v47, 5  ;;  %v10507_v63 = vadd.f32 %v6454_v3, %v10309_v28  ;;  %v6623_v37 = vld [vmem:[#allocation2 + $0x168] sm:$0xfe]  ;;  %v6703_v3 = vld [vmem:[#allocation2 + $0x150] sm:$0xf] }
 0x645   : > { %v6530_v53 = vmul.f32 %v7123_v56, %v6528_v20  ;;  %v6531_v39 = vmul.f32 %v6528_v20, %v6522_v11  ;;  %v6652_v21 = vperm.slane %v6593_v47, 6  ;;  %v10510_v12 = vadd.f32 %v6509_v35, %v10311_v19  ;;  %v6626_v20 = vld [vmem:[#allocation2 + $0x170] sm:$0x1]  ;;  %v6697_v47 = vld [vmem:[#allocation2 + $0x170] sm:$0xf0] }
 0x646   : > { %v6553_v2 = vmul.f32 %v6552_v49, %v6543_v26  ;;  %v6554_v9 = vmul.f32 %v7123_v56, %v6552_v49  ;;  %v6709_v17 = vperm.slane %v6691_v42, 7  ;;  %v10513_v23 = vadd.f32 %v6510_v27, %v10313_v10  ;;  %v7126_v10 = vld [vmem:[#allocation2 + $0x168] sm:$0xff]  ;;  %v10525_v11 = vld [vmem:[#allocation2 + $0x190] sm:$0xff] }
 0x647   : > { %v10516_v31 = vadd.f32 %v6529_v38, %v11770_v44  ;;  %v6555_v28 = vmul.f32 %v6552_v49, %v6546_v25  ;;  %v6609_v41 = vmul.f32 %v6608_v60, %v6596_v22  ;;  %v6610_v16 = vmul.f32 %v7125_v33, %v6608_v60  ;;  %v11772_v38 = vld [vmem:[#allocation6_spill] sm:$0xff]  ;;  %11773 = vst [vmem:[#allocation38_spill] sm:$0xff] %v10525_v11  ;;  %v11774_v22 = vld [vmem:[#allocation5_spill] sm:$0xff] }
 0x648   : > { %v6611_v34 = vmul.f32 %v6608_v60, %v6602_v32  ;;  %v6633_v19 = vmul.f32 %v6632_v15, %v6623_v37  ;;  %v6634_v1 = vmul.f32 %v7125_v33, %v6632_v15  ;;  %v10519_v56 = vadd.f32 %v6530_v53, %v11771_v58  ;;  %v6178_v25 = vld [vmem:[#allocation3 + $0x38] sm:$0x7]  ;;  %v11775_v53 = vld [vmem:[#allocation13_spill] sm:$0xff]  ;;  %v11776_v32 = vld [vmem:[#allocation4_spill] sm:$0xff] }
 0x649   : > { %v6635_v35 = vmul.f32 %v6632_v15, %v6626_v20  ;;  %v6653_v6 = vmul.f32 %v7126_v10, %v6652_v21  ;;  %v6654_v27 = vmul.f32 %v7125_v33, %v6652_v21  ;;  %v10523_v49 = vadd.f32 %v6531_v39, %v11772_v38  ;;  %v11777_v44 = vld [vmem:[#allocation10_spill] sm:$0xff]  ;;  %v11779_v39 = vld [vmem:[#allocation8_spill] sm:$0xff] }
 0x64a   : > { %v6710_v42 = vmul.f32 %v6709_v17, %v6697_v47  ;;  %v6711_v60 = vmul.f32 %v10525_v11, %v6709_v17  ;;  %v6712_v26 = vmul.f32 %v6709_v17, %v6703_v3  ;;  %v10529_v37 = vadd.f32 %v6553_v2, %v11774_v22  ;;  %v11781_v47 = vld [vmem:[#allocation136_spill] sm:$0xff]  ;;  %v11783_v17 = vld [vmem:[#allocation17_spill] sm:$0xff]  ;;  %v11784_v2 = vld [vmem:[#allocation7_spill] sm:$0xff] }
 0x64b   : > { %v10532_v15 = vadd.f32 %v6554_v9, %v11775_v53  ;;  %v10535_v21 = vadd.f32 %v6555_v28, %v11776_v32  ;;  %v10538_v20 = vadd.f32 %v6609_v41, %v11777_v44  ;;  %v10541_v33 = vadd.f32 %v6610_v16, %v11779_v39  ;;  %v11786_v9 = vld [vmem:[#allocation14_spill] sm:$0xff]  ;;  %v11787_v41 = vld [vmem:[#allocation12_spill] sm:$0xff]  ;;  %v11789_v53 = vld [vmem:[#allocation21_spill] sm:$0xff] }
 0x64c   : > { %v10544_v58 = vadd.f32 %v6611_v34, %v11781_v47  ;;  %v10547_v3 = vadd.f32 %v6633_v19, %v11783_v17  ;;  %v10550_v10 = vadd.f32 %v6634_v1, %v11784_v2  ;;  %v10559_v28 = vadd.f32 %v6635_v35, %v11786_v9  ;;  %v11788_v38 = vld [vmem:[#allocation134_spill] sm:$0xff]  ;;  %v6181_v1 = vld [vmem:[#allocation2 + $0x10] sm:$0xfc] }
 0x64d   : > { %11778 = vst [vmem:[#allocation36_spill] sm:$0xff] %v10538_v20  ;;  %v10562_v16 = vadd.f32 %v6653_v6, %v11787_v41  ;;  %v10565_v34 = vadd.f32 %v6654_v27, %v11788_v38  ;;  %v6199_v19 = vperm.slane %v6178_v25, 0  ;;  %v6277_v22 = vld [vmem:[#allocation3 + $0x38] sm:$0x38]  ;;  %v10568_v32 = vadd.f32 %v6710_v42, %v11789_v53  ;;  %v11791_v44 = vld [vmem:[#allocation11_spill] sm:$0xff] }
 0x64e   : > { %11780 = vst [vmem:[#allocation45_spill] sm:$0xff] %v10541_v33  ;;  %v10571_v39 = vadd.f32 %v6711_v60, %v11791_v44  ;;  %v11793_v47 = vld [vmem:[#allocation18_spill] sm:$0xff]  ;;  %v6223_v17 = vperm.slane %v6178_v25, 1  ;;  %v6208_v6 = vld [vmem:[#allocation2 + $0x10] sm:$0xfe]  ;;  %v6241_v38 = vperm.slane %v6178_v25, 2 }
 0x64f   : > { %11782 = vst [vmem:[#allocation35_spill] sm:$0xff] %v10544_v58  ;;  %v10574_v35 = vadd.f32 %v6712_v26, %v11793_v47  ;;  %v6211_v2 = vld [vmem:[#allocation2 + $0x108] sm:$0x1]  ;;  %v6200_v9 = vmul.f32 %v6199_v19, %v6181_v1  ;;  %v6298_v44 = vperm.slane %v6277_v22, 3  ;;  %v7129_v1 = vld [vmem:[#allocation2 + $0x10] sm:$0xff] }
 0x650   : > { %11790 = vst [vmem:[#allocation42_spill] sm:$0xff] %v10568_v32  ;;  %v7128_v27 = vld [vmem:[#allocation2 + $0x128] sm:$0xff]  ;;  %v6224_v42 = vmul.f32 %v6223_v17, %v6208_v6  ;;  %v6226_v60 = vmul.f32 %v6223_v17, %v6211_v2  ;;  %v6286_v25 = vld [vmem:[#allocation2 + $0x58] sm:$0xf] }
 0x651   : > { %11792 = vst [vmem:[#allocation40_spill] sm:$0xff] %v10571_v39  ;;  %v6201_v41 = vmul.f32 %v7128_v27, %v6199_v19  ;;  %v6187_v11 = vld [vmem:[#allocation2 + $0x108] sm:$0x3]  ;;  %v6225_v53 = vmul.f32 %v7128_v27, %v6223_v17  ;;  %v6203_v26 = vadd.f32 %v6200_v9, %v10428_v40  ;;  %v6280_v32 = vld [vmem:[#allocation2 + $0x108] sm:$0xf0]  ;;  %v6243_v6 = vmul.f32 %v7128_v27, %v6241_v38 }
 0x652   : > { %11794 = vst [vmem:[#allocation49_spill] sm:$0xff] %v10574_v35  ;;  %v6202_v39 = vmul.f32 %v6199_v19, %v6187_v11  ;;  %v6242_v35 = vmul.f32 %v7129_v1, %v6241_v38  ;;  %v6227_v58 = vadd.f32 %v6224_v42, %v10437_v52  ;;  %v6229_v33 = vadd.f32 %v6226_v60, %v10444_v0  ;;  %v7130_v11 = vld [vmem:[#allocation2 + $0x118] sm:$0xff]  ;;  %v6386_v27 = vld [vmem:[#allocation3 + $0x38] sm:$0xc0] }
 0x653   : > { %v6204_v47 = vadd.f32 %v6201_v41, %v10431_v36  ;;  %v6228_v13 = vadd.f32 %v6225_v53, %v10441_v30  ;;  %v6299_v2 = vmul.f32 %v6298_v44, %v6280_v32  ;;  %v6300_v19 = vmul.f32 %v7130_v11, %v6298_v44  ;;  %v6331_v53 = vld [vmem:[#allocation2 + $0x108] sm:$0xfc]  ;;  %v6310_v60 = vld [vmem:[#allocation2 + $0x58] sm:$0x7] }
 0x654   : > { %v6244_v17 = vadd.f32 %v6242_v35, %v10447_v18  ;;  %v6301_v20 = vmul.f32 %v6298_v44, %v6286_v25  ;;  %v6245_v40 = vadd.f32 %v6243_v6, %v10450_v50  ;;  %v6249_v36 = vrot.slane %v6227_v58, 7  ;;  %v6334_v44 = vld [vmem:[#allocation2 + $0x58] sm:$0x3] }
 0x655   : > { %v6250_v9 = vrot.slane %v6228_v13, 7  ;;  %v6252_v41 = vrot.slane %v6229_v33, 7  ;;  %v6205_v1 = vadd.f32 %v6202_v39, %v10434_v48  ;;  %v6302_v30 = vadd.f32 %v6299_v2, %v10453_v4  ;;  %v6307_v4 = vld [vmem:[#allocation2 + $0x108] sm:$0xf8] }
 0x656   : > { %v6263_v52 = vrot.slane %v6244_v17, 6  ;;  %v6303_v0 = vadd.f32 %v6300_v19, %v10456_v55  ;;  %v6257_v35 = vadd.f32 %v6249_v36, %v6203_v26  ;;  %v6264_v38 = vrot.slane %v6245_v40, 6  ;;  %v6392_v17 = vld [vmem:[#allocation2 + $0x58] sm:$0xc0] }
 0x657   : > { %v6251_v18 = vsel %vm392_vm0, %v6249_v36, %v6250_v9  ;;  %v6253_v32 = vsel %vm392_vm0, %v6250_v9, %v6252_v41  ;;  %v6322_v48 = vperm.slane %v6277_v22, 4  ;;  %v6346_v33 = vperm.slane %v6277_v22, 5  ;;  %v7131_v9 = vld [vmem:[#allocation2 + $0x130] sm:$0xff] }
 0x658   : > { %v6258_v13 = vadd.f32 %v6251_v18, %v6204_v47  ;;  %v6259_v50 = vadd.f32 %v6253_v32, %v6205_v1  ;;  %v6265_v55 = vsel %vm6262_vm4, %v6263_v52, %v6264_v38  ;;  %v6269_v58 = vadd.f32 %v6263_v52, %v6257_v35  ;;  %v6398_v1 = vld [vmem:[#allocation2 + $0x1a0] sm:$0x3f] }
 0x659   : > { %v6304_v39 = vadd.f32 %v6301_v20, %v10459_v62  ;;  %v6410_v42 = vperm.slane %v6386_v27, 6  ;;  %v6323_v6 = vmul.f32 %v6322_v48, %v6307_v4  ;;  %v6324_v47 = vmul.f32 %v7130_v11, %v6322_v48  ;;  %v7106_v4 = vld [vmem:[#allocation3 + $0x40] ss:$0 sm:$0xff] }
 0x65a   : > { %v6270_v26 = vadd.f32 %v6265_v55, %v6258_v13  ;;  %v6271_v25 = vadd.f32 %v6264_v38, %v6259_v50  ;;  %6272 = vst [vmem:[%s10598_s11 - $0x2] sm:$0xfc] %v6269_v58  ;;  %v6325_v2 = vmul.f32 %v6322_v48, %v6310_v60  ;;  %v6347_v22 = vmul.f32 %v6346_v33, %v6331_v53  ;;  %v6419_v53 = vld [vmem:[#allocation2 + $0x58] sm:$0xe0] }
 0x65b   : > { %v6348_v19 = vmul.f32 %v7130_v11, %v6346_v33  ;;  %v6349_v40 = vmul.f32 %v6346_v33, %v6334_v44  ;;  %v6326_v36 = vadd.f32 %v6323_v6, %v10462_v24  ;;  %v6327_v62 = vadd.f32 %v6324_v47, %v10465_v7  ;;  %v6443_v60 = vld [vmem:[#allocation2 + $0x58] sm:$0xf0]  ;;  %v6422_v44 = vld [vmem:[#allocation2 + $0x1a0] sm:$0x1f]  ;;  %v6498_v47 = vld [vmem:[#allocation3 + $0x40] sm:$0xe] }
 0x65c   : > { %6273 = vst [vmem:[%s10598_s11 + $0x6] sm:$0xff] %v6270_v26  ;;  %v6411_v20 = vmul.f32 %v6410_v42, %v6392_v17  ;;  %v6412_v41 = vmul.f32 %v7131_v9, %v6410_v42  ;;  %v6328_v52 = vadd.f32 %v6325_v2, %v10469_v46  ;;  %v6350_v18 = vadd.f32 %v6347_v22, %v10472_v43 }
 0x65d   : > { %6274 = vst [vmem:[%s10598_s11 + $0xe] sm:$0x3] %v6271_v25  ;;  %v6351_v32 = vadd.f32 %v6348_v19, %v10476_v8  ;;  %v6352_v35 = vadd.f32 %v6349_v40, %v10480_v51  ;;  %v6356_v11 = vrot.slane %v6326_v36, 7  ;;  %v6357_v38 = vrot.slane %v6327_v62, 7 }
 0x65e   : > { %v6413_v13 = vmul.f32 %v6410_v42, %v6398_v1  ;;  %v6434_v50 = vperm.slane %v6386_v27, 7  ;;  %v6359_v24 = vrot.slane %v6328_v52, 7  ;;  %v6370_v48 = vrot.slane %v6350_v18, 6  ;;  %v6694_v1 = vld [vmem:[#allocation3 + $0x20] sm:$0x3] }
 0x65f   : > { %v6371_v7 = vrot.slane %v6351_v32, 6  ;;  %v6373_v33 = vrot.slane %v6352_v35, 6  ;;  %v6358_v55 = vsel %vm392_vm0, %v6356_v11, %v6357_v38  ;;  %v6364_v58 = vadd.f32 %v6356_v11, %v6302_v30 }
 0x660   : > { %v6414_v46 = vadd.f32 %v6411_v20, %v10483_v61  ;;  %v6415_v43 = vadd.f32 %v6412_v41, %v10486_v57  ;;  %v6360_v8 = vsel %vm392_vm0, %v6357_v38, %v6359_v24  ;;  %v6365_v51 = vadd.f32 %v6358_v55, %v6303_v0  ;;  %v6446_v61 = vld [vmem:[#allocation2 + $0x1a0] sm:$0xf] }
 0x661   : > { %v6372_v42 = vsel %vm6262_vm4, %v6370_v48, %v6371_v7  ;;  %v6374_v27 = vsel %vm6262_vm4, %v6371_v7, %v6373_v33  ;;  %v6366_v26 = vadd.f32 %v6360_v8, %v6304_v39  ;;  %v6378_v25 = vadd.f32 %v6370_v48, %v6364_v58  ;;  %v7133_v58 = vld [vmem:[#allocation2 + $0x28] sm:$0xff] }
 0x662   : > { %v6435_v6 = vmul.f32 %v6434_v50, %v6419_v53  ;;  %v6436_v30 = vmul.f32 %v7131_v9, %v6434_v50  ;;  %v6379_v57 = vadd.f32 %v6372_v42, %v6365_v51  ;;  %v6437_v17 = vmul.f32 %v6434_v50, %v6422_v44  ;;  %v6594_v53 = vld [vmem:[#allocation3 + $0x40] sm:$0x70] }
 0x663   : > { %v6459_v2 = vmul.f32 %v7106_v4, %v6443_v60  ;;  %v6460_v22 = vmul.f32 %v7131_v9, %v7106_v4  ;;  %v6380_v0 = vadd.f32 %v6374_v27, %v6366_v26  ;;  %6381 = vst [vmem:[%s10598_s11 + $0xc] sm:$0xf0] %v6378_v25  ;;  %v6461_v36 = vmul.f32 %v7106_v4, %v6446_v61  ;;  %v6544_v25 = vld [vmem:[#allocation2 + $0x1a0] sm:$0xc0] }
 0x664   : > { %v6438_v19 = vadd.f32 %v6435_v6, %v10492_v29  ;;  %v6439_v40 = vadd.f32 %v6436_v30, %v10495_v14  ;;  %6382 = vst [vmem:[%s10598_s11 + $0x14] sm:$0xff] %v6379_v57  ;;  %v6440_v39 = vadd.f32 %v6437_v17, %v10498_v5  ;;  %v6513_v41 = vperm.slane %v6498_v47, 1  ;;  %v6547_v6 = vld [vmem:[#allocation2 + $0x28] sm:$0x3f] }
 0x665   : > { %v6462_v62 = vadd.f32 %v6459_v2, %v10501_v54  ;;  %v6463_v20 = vadd.f32 %v6460_v22, %v10504_v45  ;;  %6383 = vst [vmem:[%s10598_s11 + $0x1c] sm:$0xf] %v6380_v0  ;;  %v6416_v52 = vadd.f32 %v6413_v13, %v10489_v59  ;;  %v6464_v32 = vadd.f32 %v6461_v36, %v10507_v63  ;;  %v7132_v54 = vld [vmem:[#allocation2 + $0xe8] sm:$0xff]  ;;  %v6520_v13 = vld [vmem:[#allocation2 + $0x1a0] sm:$0x80] }
 0x666   : > { %v6468_v9 = vrot.slane %v6438_v19, 7  ;;  %v6469_v18 = vrot.slane %v6439_v40, 7  ;;  %v6471_v29 = vrot.slane %v6440_v39, 7  ;;  %v6535_v11 = vperm.slane %v6498_v47, 2  ;;  %v6523_v63 = vld [vmem:[#allocation2 + $0x28] sm:$0x7f] }
 0x667   : > { %v6482_v35 = vrot.slane %v6462_v62, 6  ;;  %v6483_v14 = vrot.slane %v6463_v20, 6  ;;  %v6485_v50 = vrot.slane %v6464_v32, 6  ;;  %v6514_v24 = vmul.f32 %v7132_v54, %v6513_v41  ;;  %v6597_v39 = vld [vmem:[#allocation2 + $0xb8] sm:$0xfc] }
 0x668   : > { %v6470_v38 = vsel %vm392_vm0, %v6468_v9, %v6469_v18  ;;  %v6476_v5 = vadd.f32 %v6468_v9, %v6414_v46  ;;  %v10628_v45 = vperm.slane %v6694_v1, 0  ;;  %v6472_v48 = vsel %vm392_vm0, %v6469_v18, %v6471_v29  ;;  %v6624_v9 = vld [vmem:[#allocation2 + $0xb8] sm:$0xfe] }
 0x669   : > { %v6477_v7 = vadd.f32 %v6470_v38, %v6415_v43  ;;  %v6484_v59 = vsel %vm6262_vm4, %v6482_v35, %v6483_v14  ;;  %v6478_v33 = vadd.f32 %v6472_v48, %v6416_v52  ;;  %v6486_v4 = vsel %vm6262_vm4, %v6483_v14, %v6485_v50  ;;  %v6603_v18 = vld [vmem:[#allocation2 + $0x198] sm:$0x3] }
 0x66a   : > { %v6490_v55 = vadd.f32 %v6482_v35, %v6476_v5  ;;  %v6515_v46 = vmul.f32 %v7133_v58, %v6513_v41  ;;  %v6536_v51 = vmul.f32 %v6535_v11, %v6520_v13  ;;  %v6537_v42 = vmul.f32 %v7132_v54, %v6535_v11 }
 0x66b   : > { %v6491_v8 = vadd.f32 %v6484_v59, %v6477_v7  ;;  %v6538_v27 = vmul.f32 %v6535_v11, %v6523_v63  ;;  %v10633_v60 = vperm.slane %v6694_v1, 1  ;;  %v6492_v43 = vadd.f32 %v6486_v4, %v6478_v33  ;;  %v7134_v1 = vld [vmem:[#allocation2 + $0x50] sm:$0xff]  ;;  %v6627_v11 = vld [vmem:[#allocation2 + $0x198] sm:$0x1]  ;;  %v6051_v33 = vpop.f32.mrf.mxu2 }
 0x66c   : > { %6493 = vst [vmem:[%s10598_s11 + $0x1a] sm:$0xc0] %v6490_v55  ;;  %v6516_v44 = vadd.f32 %v6514_v24, %v10510_v12  ;;  %v6559_v26 = vperm.slane %v6498_v47, 3  ;;  %v6539_v30 = vadd.f32 %v6536_v51, %v10516_v31  ;;  %v6540_v61 = vadd.f32 %v6537_v42, %v10519_v56  ;;  %v6803_v4 = vld [vmem:[#allocation3 + $0x20] sm:$0x1c]  ;;  %v11796_v42 = vld [vmem:[#allocation45_spill] sm:$0xff] }
 0x66d   : > { %6494 = vst [vmem:[%s10598_s11 + $0x22] sm:$0xff] %v6491_v8  ;;  %v6541_v57 = vadd.f32 %v6538_v27, %v10523_v49  ;;  %v6615_v17 = vperm.slane %v6594_v53, 4  ;;  %v6517_v2 = vadd.f32 %v6515_v46, %v10513_v23  ;;  %v6639_v47 = vperm.slane %v6594_v53, 5  ;;  %v11795_v8 = vld [vmem:[#allocation36_spill] sm:$0xff] }
 0x66e   : > { %6495 = vst [vmem:[%s10598_s11 + $0x2a] sm:$0x3f] %v6492_v43  ;;  %v6560_v22 = vmul.f32 %v6559_v26, %v6544_v25  ;;  %v6561_v0 = vmul.f32 %v7132_v54, %v6559_v26  ;;  %v6562_v19 = vmul.f32 %v6559_v26, %v6547_v6  ;;  %v6569_v40 = vrot.slane %v6539_v30, 7  ;;  %v7135_v54 = vld [vmem:[#allocation2 + $0xb8] sm:$0xff]  ;;  %v11797_v25 = vld [vmem:[#allocation31_spill] sm:$0xff] }
 0x66f   : > { %v6570_v36 = vrot.slane %v6540_v61, 7  ;;  %v6572_v12 = vrot.slane %v6541_v57, 7  ;;  %v6657_v20 = vperm.slane %v6594_v53, 6  ;;  %v6616_v23 = vmul.f32 %v6615_v17, %v6597_v39  ;;  %v11798_v61 = vld [vmem:[#allocation35_spill] sm:$0xff] }
 0x670   : > { %v6563_v62 = vadd.f32 %v6560_v22, %v10529_v37  ;;  %v6564_v31 = vadd.f32 %v6561_v0, %v10532_v15  ;;  %v6565_v56 = vadd.f32 %v6562_v19, %v10535_v21  ;;  %v6617_v52 = vmul.f32 %v7134_v1, %v6615_v17 }
 0x671   : > { %v6571_v49 = vsel %vm392_vm0, %v6569_v40, %v6570_v36  ;;  %v6573_v41 = vsel %vm392_vm0, %v6570_v36, %v6572_v12  ;;  %v6618_v38 = vmul.f32 %v6615_v17, %v6603_v18  ;;  %v6640_v15 = vmul.f32 %v6639_v47, %v6624_v9  ;;  %v6724_v17 = vld [vmem:[#allocation2 + $0x170] sm:$0xf8]  ;;  %v6727_v40 = vld [vmem:[#allocation2 + $0x150] sm:$0x7] }
 0x672   : > { %v6576_v32 = vadd.f32 %v6571_v49, %v6516_v44  ;;  %v6577_v29 = vadd.f32 %v6573_v41, %v6517_v2  ;;  %v6581_v35 = vrot.slane %v6563_v62, 6  ;;  %v6582_v14 = vrot.slane %v6564_v31, 6  ;;  %v10664_v12 = vld [vmem:[#allocation3 + $0x20] sm:$0xe0]  ;;  %v6131_v31 = vpop.f32.mrf.mxu0  ;;  %v11799_v49 = vld [vmem:[#allocation38_spill] sm:$0xff] }
 0x673   : > { %v6584_v37 = vrot.slane %v6565_v56, 6  ;;  %v6641_v5 = vmul.f32 %v7134_v1, %v6639_v47  ;;  %v6642_v50 = vmul.f32 %v6639_v47, %v6627_v11  ;;  %v6658_v24 = vmul.f32 %v7135_v54, %v6657_v20  ;;  %v6748_v56 = vld [vmem:[#allocation2 + $0x170] sm:$0xfc]  ;;  %v11800_v54 = vld [vmem:[#allocation16_spill] sm:$0xff] }
 0x674   : > { %v6583_v21 = vsel %vm6262_vm4, %v6581_v35, %v6582_v14  ;;  %v6659_v48 = vmul.f32 %v7134_v1, %v6657_v20  ;;  %v6643_v13 = vadd.f32 %v6640_v15, %v10547_v3  ;;  %v6619_v51 = vadd.f32 %v6616_v23, %v11795_v8  ;;  %v6751_v20 = vld [vmem:[#allocation2 + $0x150] sm:$0x3]  ;;  %v6806_v9 = vld [vmem:[#allocation2 + $0x150] sm:$0xc0]  ;;  %v11804_v8 = vld [vmem:[#allocation22_spill] sm:$0xff] }
 0x675   : > { %v6585_v7 = vsel %vm6262_vm4, %v6582_v14, %v6584_v37  ;;  %v6588_v59 = vadd.f32 %v6583_v21, %v6576_v32  ;;  %v6644_v63 = vadd.f32 %v6641_v5, %v10550_v10  ;;  %v6645_v58 = vadd.f32 %v6642_v50, %v10559_v28  ;;  %v6164_v14 = vpop.f32.mrf.mxu1  ;;  %v6812_v11 = vld [vmem:[#allocation2 + $0x70] sm:$0x3f]  ;;  %v6692_v5 = vld [vmem:[#allocation3 + $0x40] sm:$0x80] }
 0x676   : > { %v6589_v55 = vadd.f32 %v6585_v7, %v6577_v29  ;;  %v6660_v46 = vadd.f32 %v6658_v24, %v10562_v16  ;;  %v6661_v53 = vadd.f32 %v6659_v48, %v10565_v34  ;;  %v6620_v27 = vadd.f32 %v6617_v52, %v11796_v42  ;;  %v6090_v34 = vpop.f32.mrf.mxu3  ;;  %v6833_v50 = vld [vmem:[#allocation2 + $0x150] sm:$0xe0]  ;;  %v11805_v42 = vld [vmem:[#allocation20_spill] sm:$0xff] }
 0x677   : > { %6590 = vst [vmem:[%s10598_s11 + $0x30] sm:$0xff] %v6588_v59  ;;  %v6665_v43 = vrot.slane %v6643_v13, 7  ;;  %v6666_v44 = vrot.slane %v6644_v63, 7  ;;  %v6668_v3 = vrot.slane %v6645_v58, 7  ;;  %v6052_v6 = vadd.f32 %v6051_v33, %v11797_v25  ;;  %v11801_v59 = vld [vmem:[#allocation135_spill] sm:$0xff]  ;;  %v11802_v63 = vld [vmem:[#allocation25_spill] sm:$0xff] }
 0x678   : > { %6591 = vst [vmem:[%s10598_s11 + $0x38] sm:$0xff] %v6589_v55  ;;  %v6678_v26 = vrot.slane %v6660_v46, 6  ;;  %v6679_v10 = vrot.slane %v6661_v53, 6  ;;  %v6818_v30 = vperm.slane %v6803_v4, 2  ;;  %v6621_v28 = vadd.f32 %v6618_v38, %v11798_v61  ;;  %v7136_v38 = vld [vmem:[#allocation2 + $0x18] sm:$0xff]  ;;  %v11803_v46 = vld [vmem:[#allocation15_spill] sm:$0xff] }
 0x679   : > { %v6667_v16 = vsel %vm392_vm0, %v6665_v43, %v6666_v44  ;;  %v6673_v57 = vadd.f32 %v6665_v43, %v6619_v51  ;;  %v6842_v2 = vperm.slane %v6803_v4, 3  ;;  %v6866_v22 = vperm.slane %v6803_v4, 4  ;;  %v6836_v58 = vld [vmem:[#allocation2 + $0x70] sm:$0x1f]  ;;  %v11807_v25 = vld [vmem:[#allocation29_spill] sm:$0xff] }
 0x67a   : > { %v6669_v0 = vsel %vm392_vm0, %v6666_v44, %v6668_v3  ;;  %v6674_v19 = vadd.f32 %v6667_v16, %v6620_v27  ;;  %v6734_v36 = vmul.f32 %v10628_v45, %v6724_v17  ;;  %v6680_v39 = vsel %vm6262_vm4, %v6678_v26, %v6679_v10  ;;  %v6857_v44 = vld [vmem:[#allocation2 + $0x150] sm:$0xf0]  ;;  %v6860_v3 = vld [vmem:[#allocation2 + $0x70] sm:$0xf]  ;;  %v6937_v16 = vld [vmem:[#allocation2 + $0x120] sm:$0x7f] }
 0x67b   : > { %v6675_v47 = vadd.f32 %v6669_v0, %v6621_v28  ;;  %v6684_v62 = vadd.f32 %v6678_v26, %v6673_v57  ;;  %v6735_v41 = vmul.f32 %v11799_v49, %v10628_v45  ;;  %v6736_v23 = vmul.f32 %v10628_v45, %v6727_v40  ;;  %v11806_v26 = vld [vmem:[#allocation141_spill] sm:$0xff]  ;;  %v6934_v28 = vld [vmem:[#allocation2 + $0x70] sm:$0x80] }
 0x67c   : > { %v6685_v1 = vadd.f32 %v6680_v39, %v6674_v19  ;;  %v6091_v52 = vadd.f32 %v6090_v34, %v6052_v6  ;;  %v6758_v18 = vmul.f32 %v10633_v60, %v6748_v56  ;;  %v6759_v32 = vmul.f32 %v11799_v49, %v10633_v60  ;;  %v11808_v57 = vld [vmem:[#allocation19_spill] sm:$0xff] }
 0x67d   : > { %v6760_v29 = vmul.f32 %v10633_v60, %v6751_v20  ;;  %v6686_v35 = vadd.f32 %v6679_v10, %v6675_v47  ;;  %6687 = vst [vmem:[%s10598_s11 + $0x3e] sm:$0xfc] %v6684_v62  ;;  %v6819_v37 = vmul.f32 %v6818_v30, %v6806_v9  ;;  %v6820_v15 = vmul.f32 %v7136_v38, %v6818_v30  ;;  %v6958_v40 = vld [vmem:[#allocation2 + $0x70] sm:$0xc0]  ;;  %v11809_v47 = vld [vmem:[#allocation26_spill] sm:$0xff] }
 0x67e   : > { %v6923_v45 = vperm.slane %v10664_v12, 5  ;;  %6688 = vst [vmem:[%s10598_s11 + $0x46] sm:$0xff] %v6685_v1  ;;  %v6132_v21 = vadd.f32 %v6131_v31, %v6091_v52  ;;  %v10678_v24 = vadd.f32 %v6734_v36, %v11800_v54  ;;  %v6821_v48 = vmul.f32 %v6818_v30, %v6812_v11  ;;  %v6961_v36 = vld [vmem:[#allocation2 + $0x120] sm:$0x3f]  ;;  %v6704_v1 = vld [vmem:[#allocation2 + $0x30] sm:$0xf] }
 0x67f   : > { %v6943_v60 = vperm.slane %v10664_v12, 6  ;;  %v6967_v7 = vperm.slane %v10664_v12, 7  ;;  %6689 = vst [vmem:[%s10598_s11 + $0x4e] sm:$0x3] %v6686_v35  ;;  %v10684_v13 = vadd.f32 %v6735_v41, %v11801_v59  ;;  %v10687_v33 = vadd.f32 %v6736_v23, %v11802_v63  ;;  %v6698_v12 = vld [vmem:[#allocation2 + $0x198] sm:$0xf0] }
 0x680   : > { %v6843_v4 = vmul.f32 %v6842_v2, %v6833_v50  ;;  %v6165_v55 = vadd.f32 %v6164_v14, %v6132_v21  ;;  %v10690_v53 = vadd.f32 %v6758_v18, %v11803_v46  ;;  %v10693_v51 = vadd.f32 %v6759_v32, %v11804_v8  ;;  %v7137_v31 = vld [vmem:[#allocation2 + $0x20] sm:$0xff]  ;;  %v11810_v52 = vld [vmem:[#allocation24_spill] sm:$0xff]  ;;  %v11817_v63 = vld [vmem:[#allocation34_spill] sm:$0xff] }
 0x681   : > { %v10696_v27 = vadd.f32 %v6760_v29, %v11805_v42  ;;  %v6716_v43 = vperm.slane %v6692_v5, 7  ;;  %v10699_v10 = vadd.f32 %v6819_v37, %v11806_v26  ;;  %v10702_v6 = vadd.f32 %v6820_v15, %v11807_v25  ;;  %v11811_v18 = vld [vmem:[#allocation140_spill] sm:$0xff]  ;;  %v7138_v29 = vld [vmem:[#allocation2 + $0xc8] sm:$0xff]  ;;  %v11812_v14 = vld [vmem:[#allocation33_spill] sm:$0xff] }
 0x682   : > { %v6844_v30 = vmul.f32 %v7136_v38, %v6842_v2  ;;  %v6845_v61 = vmul.f32 %v6842_v2, %v6836_v58  ;;  %6175 = vst [vmem:[#allocation3 + $0x28] sm:$0xff] %v6165_v55  ;;  %v10705_v34 = vadd.f32 %v6821_v48, %v11808_v57  ;;  %v6867_v17 = vmul.f32 %v6866_v22, %v6857_v44  ;;  %v11813_v37 = vld [vmem:[#allocation23_spill] sm:$0xff]  ;;  %v11814_v15 = vld [vmem:[#allocation30_spill] sm:$0xff]  ;;  %v7139_v50 = vld [vmem:[#allocation2 + $0x120] sm:$0xff] }
 0x683   : > { %v6868_v0 = vmul.f32 %v7136_v38, %v6866_v22  ;;  %v6869_v19 = vmul.f32 %v6866_v22, %v6860_v3  ;;  %v10708_v39 = vadd.f32 %v6843_v4, %v11809_v47  ;;  %v6944_v62 = vmul.f32 %v6943_v60, %v6934_v28  ;;  %v11815_v48 = vld [vmem:[#allocation37_spill] sm:$0xff]  ;;  %v6725_v55 = vld [vmem:[#allocation2 + $0x198] sm:$0xf8]  ;;  %v11819_v8 = vld [vmem:[#allocation139_spill] sm:$0xff] }
 0x684   : > { %v6945_v56 = vmul.f32 %v7137_v31, %v6943_v60  ;;  %v6946_v20 = vmul.f32 %v6943_v60, %v6937_v16  ;;  %v6968_v2 = vmul.f32 %v6967_v7, %v6958_v40  ;;  %v6969_v49 = vmul.f32 %v7137_v31, %v6967_v7  ;;  %v11818_v58 = vld [vmem:[#allocation32_spill] sm:$0xff]  ;;  %v11823_v40 = vld [vmem:[#allocation49_spill] sm:$0xff] }
 0x685   : > { %v6970_v41 = vmul.f32 %v6967_v7, %v6961_v36  ;;  %v6717_v23 = vmul.f32 %v6716_v43, %v6698_v12  ;;  %v10711_v9 = vadd.f32 %v6844_v30, %v11810_v52  ;;  %v10714_v22 = vadd.f32 %v6845_v61, %v11811_v18  ;;  %v11816_v7 = vld [vmem:[#allocation27_spill] sm:$0xff]  ;;  %v6749_v61 = vld [vmem:[#allocation2 + $0x198] sm:$0xfc] }
 0x686   : > { %v10716_v32 = vmul.f32 %v7137_v31, %v6923_v45  ;;  %v6718_v35 = vmul.f32 %v7138_v29, %v6716_v43  ;;  %v10719_v11 = vadd.f32 %v6867_v17, %v11812_v14  ;;  %v10722_v38 = vadd.f32 %v6868_v0, %v11813_v37  ;;  %v11822_v28 = vld [vmem:[#allocation40_spill] sm:$0xff]  ;;  %v6752_v31 = vld [vmem:[#allocation2 + $0x30] sm:$0x3] }
 0x687   : > { %v10725_v5 = vadd.f32 %v6869_v19, %v11814_v15  ;;  %v6719_v21 = vmul.f32 %v6716_v43, %v6704_v1  ;;  %v10727_v54 = vmul.f32 %v7139_v50, %v6923_v45  ;;  %v10730_v60 = vadd.f32 %v6944_v62, %v11815_v48  ;;  %v11820_v43 = vld [vmem:[#allocation41_spill] sm:$0xff]  ;;  %v11821_v45 = vld [vmem:[#allocation42_spill] sm:$0xff]  ;;  %v6728_v19 = vld [vmem:[#allocation2 + $0x30] sm:$0x7] }
 0x688   : > { %v10733_v59 = vadd.f32 %v6945_v56, %v11816_v7  ;;  %v10736_v4 = vadd.f32 %v6946_v20, %v11817_v63  ;;  %v10739_v46 = vadd.f32 %v6968_v2, %v11818_v58  ;;  %v10742_v42 = vadd.f32 %v6969_v49, %v11819_v8  ;;  %v6807_v56 = vld [vmem:[#allocation2 + $0x30] sm:$0xc0]  ;;  %v7140_v48 = vld [vmem:[#allocation2 + $0x8] sm:$0xff] }
 0x689   : > { %v10745_v44 = vadd.f32 %v6970_v41, %v11820_v43  ;;  %v6720_v3 = vadd.f32 %v6717_v23, %v11821_v45  ;;  %v6695_v26 = vld [vmem:[#allocation3 + $0x28] sm:$0x3]  ;;  %v6804_v25 = vld [vmem:[#allocation3 + $0x28] sm:$0x1c]  ;;  %v10748_v30 = vld [vmem:[#allocation3 + $0x28] sm:$0xe0]  ;;  %v6721_v16 = vadd.f32 %v6718_v35, %v11822_v28  ;;  %v6722_v36 = vadd.f32 %v6719_v21, %v11823_v40 }
 0x68a   : > { %v6740_v57 = vperm.slane %v6695_v26, 0  ;;  %v6764_v17 = vperm.slane %v6695_v26, 1  ;;  %v6825_v0 = vperm.slane %v6804_v25, 2  ;;  %v6849_v12 = vperm.slane %v6804_v25, 3  ;;  %v6813_v63 = vld [vmem:[#allocation2 + $0x68] sm:$0x3f] }
 0x68b   : > { %v6873_v47 = vperm.slane %v6804_v25, 4  ;;  %v6928_v62 = vperm.slane %v10748_v30, 5  ;;  %v10754_v18 = vperm.slane %v10748_v30, 6  ;;  %v6834_v43 = vld [vmem:[#allocation2 + $0x30] sm:$0xe0] }
 0x68c   : > { %v6741_v20 = vmul.f32 %v6740_v57, %v6725_v55  ;;  %v6742_v2 = vmul.f32 %v7138_v29, %v6740_v57  ;;  %v6743_v49 = vmul.f32 %v6740_v57, %v6728_v19  ;;  %v6765_v41 = vmul.f32 %v6764_v17, %v6749_v61  ;;  %v6837_v61 = vld [vmem:[#allocation2 + $0x68] sm:$0x1f]  ;;  %v6858_v40 = vld [vmem:[#allocation2 + $0x30] sm:$0xf0] }
 0x68d   : > { %v6766_v23 = vmul.f32 %v7138_v29, %v6764_v17  ;;  %v6767_v1 = vmul.f32 %v6764_v17, %v6752_v31  ;;  %v6826_v52 = vmul.f32 %v6825_v0, %v6807_v56  ;;  %v6827_v7 = vmul.f32 %v7140_v48, %v6825_v0 }
 0x68e   : > { %v6744_v35 = vadd.f32 %v6741_v20, %v10678_v24  ;;  %v6745_v14 = vadd.f32 %v6742_v2, %v10684_v13  ;;  %v6746_v37 = vadd.f32 %v6743_v49, %v10687_v33  ;;  %v6768_v15 = vadd.f32 %v6765_v41, %v10690_v53  ;;  %v6861_v20 = vld [vmem:[#allocation2 + $0x68] sm:$0xf] }
 0x68f   : > { %v6769_v21 = vadd.f32 %v6766_v23, %v10693_v51  ;;  %v6770_v50 = vadd.f32 %v6767_v1, %v10696_v27  ;;  %v10763_v29 = vperm.slane %v10748_v30, 7  ;;  %v6828_v33 = vmul.f32 %v6825_v0, %v6813_v63  ;;  %v6938_v63 = vld [vmem:[#allocation2 + $0x188] sm:$0x7f] }
 0x690   : > { %v6774_v55 = vrot.slane %v6744_v35, 7  ;;  %v6775_v58 = vrot.slane %v6745_v14, 7  ;;  %v6777_v8 = vrot.slane %v6746_v37, 7  ;;  %v6788_v24 = vrot.slane %v6768_v15, 6 }
 0x691   : > { %v6789_v13 = vrot.slane %v6769_v21, 6  ;;  %v6791_v45 = vrot.slane %v6770_v50, 6  ;;  %v6829_v53 = vadd.f32 %v6826_v52, %v10699_v10  ;;  %v6850_v25 = vmul.f32 %v6849_v12, %v6834_v43  ;;  %v6959_v43 = vld [vmem:[#allocation2 + $0x68] sm:$0xc0] }
 0x692   : > { %v6776_v51 = vsel %vm392_vm0, %v6774_v55, %v6775_v58  ;;  %v6778_v27 = vsel %vm392_vm0, %v6775_v58, %v6777_v8  ;;  %v6782_v26 = vadd.f32 %v6774_v55, %v6720_v3  ;;  %v6851_v0 = vmul.f32 %v7140_v48, %v6849_v12 }
 0x693   : > { %v6783_v28 = vadd.f32 %v6776_v51, %v6721_v16  ;;  %v6784_v57 = vadd.f32 %v6778_v27, %v6722_v36  ;;  %v6790_v17 = vsel %vm6262_vm4, %v6788_v24, %v6789_v13  ;;  %v6792_v19 = vsel %vm6262_vm4, %v6789_v13, %v6791_v45 }
 0x694   : > { %v6796_v31 = vadd.f32 %v6788_v24, %v6782_v26  ;;  %v6852_v56 = vmul.f32 %v6849_v12, %v6837_v61  ;;  %v6853_v10 = vadd.f32 %v6850_v25, %v10708_v39  ;;  %v6874_v49 = vmul.f32 %v6873_v47, %v6858_v40 }
 0x695   : > { %v6797_v2 = vadd.f32 %v6790_v17, %v6783_v28  ;;  %v6798_v3 = vadd.f32 %v6792_v19, %v6784_v57  ;;  %v6875_v41 = vmul.f32 %v7140_v48, %v6873_v47  ;;  %v6854_v16 = vadd.f32 %v6851_v0, %v10711_v9  ;;  %v6935_v9 = vld [vmem:[#allocation2 + $0x68] sm:$0x80]  ;;  %v11824_v17 = vld [vmem:[#allocation28_spill] sm:$0xff] }
 0x696   : > { %6799 = vst [vmem:[%s10598_s11 + $0x4c] sm:$0xf0] %v6796_v31  ;;  %v6855_v36 = vadd.f32 %v6852_v56, %v10714_v22  ;;  %v6876_v23 = vmul.f32 %v6873_v47, %v6861_v20  ;;  %v6883_v1 = vrot.slane %v6853_v10, 7  ;;  %v6830_v52 = vadd.f32 %v6827_v7, %v10702_v6  ;;  %v7141_v47 = vld [vmem:[#allocation2 + $0x88] sm:$0xff] }
 0x697   : > { %6800 = vst [vmem:[%s10598_s11 + $0x54] sm:$0xff] %v6797_v2  ;;  %v6831_v12 = vadd.f32 %v6828_v33, %v10705_v34  ;;  %v6877_v39 = vadd.f32 %v6874_v49, %v10719_v11  ;;  %v6878_v35 = vadd.f32 %v6875_v41, %v10722_v38  ;;  %v6884_v37 = vrot.slane %v6854_v16, 7  ;;  %v7142_v6 = vld [vmem:[#allocation2 + $0x188] sm:$0xff] }
 0x698   : > { %6801 = vst [vmem:[%s10598_s11 + $0x5c] sm:$0xf] %v6798_v3  ;;  %v6879_v14 = vadd.f32 %v6876_v23, %v10725_v5  ;;  %v6886_v15 = vrot.slane %v6855_v36, 7  ;;  %v6891_v21 = vadd.f32 %v6883_v1, %v6829_v53  ;;  %v6929_v48 = vmul.f32 %v7141_v47, %v6928_v62  ;;  %v6962_v33 = vld [vmem:[#allocation2 + $0x188] sm:$0x3f] }
 0x699   : > { %v6897_v50 = vrot.slane %v6877_v39, 6  ;;  %v6898_v22 = vrot.slane %v6878_v35, 6  ;;  %v6930_v34 = vmul.f32 %v7142_v6, %v6928_v62  ;;  %v6885_v11 = vsel %vm392_vm0, %v6883_v1, %v6884_v37 }
 0x69a   : > { %v6887_v38 = vsel %vm392_vm0, %v6884_v37, %v6886_v15  ;;  %v6900_v5 = vrot.slane %v6879_v14, 6  ;;  %v6951_v7 = vmul.f32 %v10754_v18, %v6935_v9  ;;  %v6892_v55 = vadd.f32 %v6885_v11, %v6830_v52 }
 0x69b   : > { %v6893_v58 = vadd.f32 %v6887_v38, %v6831_v12  ;;  %v6899_v8 = vsel %vm6262_vm4, %v6897_v50, %v6898_v22  ;;  %v6905_v24 = vadd.f32 %v6897_v50, %v6891_v21  ;;  %v6952_v30 = vmul.f32 %v7141_v47, %v10754_v18 }
 0x69c   : > { %v6901_v13 = vsel %vm6262_vm4, %v6898_v22, %v6900_v5  ;;  %v6953_v62 = vmul.f32 %v10754_v18, %v6938_v63  ;;  %v6954_v45 = vadd.f32 %v6951_v7, %v10730_v60  ;;  %v6906_v53 = vadd.f32 %v6899_v8, %v6892_v55  ;;  %v11825_v60 = vld [vmem:[#allocation138_spill] sm:$0xff] }
 0x69d   : > { %v6907_v51 = vadd.f32 %v6901_v13, %v6893_v58  ;;  %6908 = vst [vmem:[%s10598_s11 + $0x5a] sm:$0xc0] %v6905_v24  ;;  %v6975_v27 = vmul.f32 %v10763_v29, %v6959_v43  ;;  %v6976_v26 = vmul.f32 %v7141_v47, %v10763_v29  ;;  %v6955_v25 = vadd.f32 %v6952_v30, %v10733_v59 }
 0x69e   : > { %v6956_v61 = vadd.f32 %v6953_v62, %v10736_v4  ;;  %v6977_v28 = vmul.f32 %v10763_v29, %v6962_v33  ;;  %v6984_v57 = vrot.slane %v6954_v45, 7  ;;  %v6926_v18 = vadd.f32 %v10716_v32, %v11824_v17  ;;  %6909 = vst [vmem:[%s10598_s11 + $0x62] sm:$0xff] %v6906_v53 }
 0x69f   : > { %v6927_v19 = vadd.f32 %v10727_v54, %v11825_v60  ;;  %v6978_v40 = vadd.f32 %v6975_v27, %v10739_v46  ;;  %v6979_v31 = vadd.f32 %v6976_v26, %v10742_v42  ;;  %6910 = vst [vmem:[%s10598_s11 + $0x6a] sm:$0x3f] %v6907_v51  ;;  %v6985_v59 = vrot.slane %v6955_v25, 7 }
 0x6a0   : > { %v6980_v0 = vadd.f32 %v6977_v28, %v10745_v44  ;;  %v6987_v4 = vrot.slane %v6956_v61, 7  ;;  %v6931_v29 = vadd.f32 %v6929_v48, %v6926_v18 }
 0x6a1   : > { %v6932_v56 = vadd.f32 %v6930_v34, %v6927_v19  ;;  %v6996_v10 = vrot.slane %v6978_v40, 6  ;;  %v6997_v20 = vrot.slane %v6979_v31, 6  ;;  %v6986_v32 = vsel %vm392_vm0, %v6984_v57, %v6985_v59 }
 0x6a2   : > { %v6988_v54 = vsel %vm392_vm0, %v6985_v59, %v6987_v4  ;;  %v6999_v2 = vrot.slane %v6980_v0, 6  ;;  %v6991_v3 = vadd.f32 %v6986_v32, %v6931_v29 }
 0x6a3   : > { %v6992_v46 = vadd.f32 %v6988_v54, %v6932_v56  ;;  %v6998_v42 = vsel %vm6262_vm4, %v6996_v10, %v6997_v20 }
 0x6a4   : > { %v7000_v49 = vsel %vm6262_vm4, %v6997_v20, %v6999_v2  ;;  %v7003_v44 = vadd.f32 %v6998_v42, %v6991_v3 }
 0x6a5   : > { %v7004_v41 = vadd.f32 %v7000_v49, %v6992_v46 }
 0x6a6   : > { %7005 = vst [vmem:[%s10598_s11 + $0x70] sm:$0xff] %v7003_v44 }
 0x6a7   : > { %7006 = vst [vmem:[%s10598_s11 + $0x78] sm:$0xff] %v7004_v41 }
 0x6a8 PF: > { %s14_s15 = sadd.s32 1, %s7149_s15  }
 0x6a9   : > { %p11_p6 = scmp.ge.s32.totalorder %s14_s15, 4  }
 0x6ab   :  { %13 = sbr.rel (!%p11_p6) target bundleno = 1 (0x1), region = 69 }

</bundles_post_ra>
